<compile_context>
chip_gen: v7x
topology: tpu7x:2x2x1
jax: 0.10.0
libtpu: 0.0.40
codegen_flags: <defaults>
</compile_context>

<pallas_src>
import functools

import jax
import jax.numpy as jnp
from jax.experimental import pallas as pl
from jax.experimental.pallas import tpu as pltpu


# --------------------------------------------------------------------------
# In-kernel helpers
# --------------------------------------------------------------------------
def _zero_halo(ref):
    """Zero only the 1-pixel halo border of a padded scratch tile."""
    Hp, Wp, C = ref.shape
    ref[0:1, :, :] = jnp.zeros((1, Wp, C), ref.dtype)
    ref[Hp - 1:Hp, :, :] = jnp.zeros((1, Wp, C), ref.dtype)
    ref[:, 0:1, :] = jnp.zeros((Hp, 1, C), ref.dtype)
    ref[:, Wp - 1:Wp, :] = jnp.zeros((Hp, 1, C), ref.dtype)


def _conv3x3_acc(pad_ref, w_ref, Hp, Wp):
    """3x3 same-padding conv as 9 MXU matmuls with f32 accumulation.

    pad_ref: VMEM ref (Hp+2, Wp+2, K) bf16, zero 1-px halo already present.
    w_ref:   VMEM ref (9, K, Cout) bf16, tap-major (index dh*3 + dw).
    returns: (Hp*Wp, Cout) f32 accumulator.

    Only 3 shifted slab loads are issued (one per dw); the dh shifts are free
    leading-dim slices of the loaded slab.
    """
    K = pad_ref.shape[-1]
    Cout = w_ref.shape[-1]
    acc = jnp.zeros((Hp * Wp, Cout), jnp.float32)
    for dw in range(3):
        cols = pad_ref[:, dw:dw + Wp, :]                     # (Hp+2, Wp, K) bf16
        for dh in range(3):
            patch = cols[dh:dh + Hp].reshape(Hp * Wp, K)     # free row shift
            acc = acc + jnp.dot(patch, w_ref[dh * 3 + dw],
                                preferred_element_type=jnp.float32)
    return acc


def _expanding_block_kernel(x_ref, skip_ref, wup_ref, bup_ref,
                            w1_ref, s1_ref, b1_ref,
                            w2_ref, s2_ref, b2_ref,
                            o_ref,
                            up_pad, cat_pad, t_pad,
                            *, H, W):
    H2, W2 = 2 * H, 2 * W
    Cin = x_ref.shape[-1]
    Cmid = Cin // 2
    Cout = t_pad.shape[-1]

    # Keep the 1-px halos zero (borders only; interiors are fully overwritten
    # below).  Done unconditionally — cheap — so it stays correct if the batch
    # grid axis is split across TensorCores (v7x megacore).
    _zero_halo(up_pad)
    _zero_halo(cat_pad)
    _zero_halo(t_pad)

    # ---- nearest-neighbour 2x upsample straight into the padded scratch -----
    xv = x_ref[...].astype(jnp.bfloat16)                          # (H, W, Cin)
    # row repeat: leading-dim broadcast + leading-dims-only reshape (safe)
    xr = jnp.broadcast_to(xv[:, None], (H, 2, W, Cin)).reshape(H2, W, Cin)
    # column repeat: one width-2 store per source column (W stores).
    # TODO(synk): replace with a fully vectorised sublane interleave
    #             (strided store / pltpu.roll) for production-size W.
    for j in range(W):
        col2 = jnp.broadcast_to(xr[:, j:j + 1, :], (H2, 2, Cin))
        up_pad[1:H2 + 1, 1 + 2 * j:3 + 2 * j, :] = col2

    # ---- upsample conv: Conv2d(Cin, Cin//2, 3, pad=1) + bias ----------------
    u = _conv3x3_acc(up_pad, wup_ref, H2, W2) + bup_ref[0, :]     # (H2*W2, Cmid)
    # channel concat fused into the shared scratch: conv_up out -> [:Cmid],
    # skip -> [Cmid:], so conv1 contracts the full Cin in one pass.
    cat_pad[1:H2 + 1, 1:W2 + 1, 0:Cmid] = (
        u.reshape(H2, W2, Cmid).astype(jnp.bfloat16))
    cat_pad[1:H2 + 1, 1:W2 + 1, Cmid:Cin] = skip_ref[...].astype(jnp.bfloat16)

    # ---- conv1 -> BN -> ReLU -------------------------------------------------
    t = _conv3x3_acc(cat_pad, w1_ref, H2, W2)
    t = jnp.maximum(t * s1_ref[0, :] + b1_ref[0, :], 0.0)
    t_pad[1:H2 + 1, 1:W2 + 1, :] = t.reshape(H2, W2, Cout).astype(jnp.bfloat16)

    # ---- conv2 -> BN -> ReLU -> output ---------------------------------------
    y = _conv3x3_acc(t_pad, w2_ref, H2, W2)
    y = jnp.maximum(y * s2_ref[0, :] + b2_ref[0, :], 0.0)
    # TODO(synk): lane-dense (H2, W2*Cout) output slab once channel counts are
    #             padded toward the 128-lane width in the production path.
    o_ref[...] = y.reshape(H2, W2, Cout).astype(o_ref.dtype)


# --------------------------------------------------------------------------
# Wrapper: one fused pallas_call for the whole ExpandingBlock
# --------------------------------------------------------------------------
def _fold_bn(conv_bias, gamma, beta, running_mean, running_var, eps=1e-5):
    scale = gamma / jnp.sqrt(running_var + eps)
    bias = beta + (conv_bias - running_mean) * scale
    return scale, bias


def expanding_block_forward(params, x_nchw, skip_nchw,
                            expansion_mode='upsample'):
    if expansion_mode != 'upsample':
        # TODO(synk): ConvTranspose2d(k=2, s=2) expansion branch not implemented.
        raise NotImplementedError("only expansion_mode='upsample' supported")

    x = jnp.transpose(x_nchw, (0, 2, 3, 1))         # -> NHWC
    skip = jnp.transpose(skip_nchw, (0, 2, 3, 1))   # -> NHWC

    N, H, W, Cin = x.shape
    _, H2, W2, Cs = skip.shape
    assert (H2, W2) == (2 * H, 2 * W) and Cs == Cin // 2
    Cmid = Cin // 2
    Cout = params['w1'].shape[-1]

    # weights: HWIO -> (9, I, O), pre-cast to bf16 for the MXU
    wup = params['up_w'].reshape(9, Cin, Cmid).astype(jnp.bfloat16)
    w1 = params['w1'].reshape(9, Cin, Cout).astype(jnp.bfloat16)
    w2 = params['w2'].reshape(9, Cout, Cout).astype(jnp.bfloat16)

    bup = params['up_b'].reshape(1, Cmid).astype(jnp.float32)
    s1, b1 = _fold_bn(params['b1'], params['g1'], params['be1'],
                      params['m1'], params['v1'])
    s2, b2 = _fold_bn(params['b2'], params['g2'], params['be2'],
                      params['m2'], params['v2'])
    s1 = s1.reshape(1, Cout).astype(jnp.float32)
    b1 = b1.reshape(1, Cout).astype(jnp.float32)
    s2 = s2.reshape(1, Cout).astype(jnp.float32)
    b2 = b2.reshape(1, Cout).astype(jnp.float32)

    kernel = functools.partial(_expanding_block_kernel, H=H, W=W)
    zero3 = lambda n: (0, 0, 0)
    zero2 = lambda n: (0, 0)

    out_nhwc = pl.pallas_call(
        kernel,
        out_shape=jax.ShapeDtypeStruct((N, H2, W2, Cout), jnp.float32),
        grid_spec=pltpu.PrefetchScalarGridSpec(
            num_scalar_prefetch=0,
            grid=(N,),
            in_specs=[
                pl.BlockSpec((pl.Squeezed(), H, W, Cin), lambda n: (n, 0, 0, 0)),
                pl.BlockSpec((pl.Squeezed(), H2, W2, Cs), lambda n: (n, 0, 0, 0)),
                pl.BlockSpec((9, Cin, Cmid), zero3),
                pl.BlockSpec((1, Cmid), zero2),
                pl.BlockSpec((9, Cin, Cout), zero3),
                pl.BlockSpec((1, Cout), zero2),
                pl.BlockSpec((1, Cout), zero2),
                pl.BlockSpec((9, Cout, Cout), zero3),
                pl.BlockSpec((1, Cout), zero2),
                pl.BlockSpec((1, Cout), zero2),
            ],
            out_specs=pl.BlockSpec((pl.Squeezed(), H2, W2, Cout),
                                   lambda n: (n, 0, 0, 0)),
            scratch_shapes=[
                pltpu.VMEM((H2 + 2, W2 + 2, Cin), jnp.bfloat16),   # upsampled x
                pltpu.VMEM((H2 + 2, W2 + 2, Cin), jnp.bfloat16),   # conv_up ++ skip
                pltpu.VMEM((H2 + 2, W2 + 2, Cout), jnp.bfloat16),  # conv1 out
            ],
        ),
        compiler_params=pltpu.CompilerParams(
            dimension_semantics=("parallel",)),
    )(x, skip, wup, bup, w1, s1, b1, w2, s2, b2)

    return jnp.transpose(out_nhwc, (0, 3, 1, 2))                 # -> NCHW


# --------------------------------------------------------------------------
# Pure-JAX f32 reference (for correctness check)
# --------------------------------------------------------------------------
def _conv3x3_ref(x_nhwc, w_hwio, b):
    y = jax.lax.conv_general_dilated(
        x_nhwc, w_hwio, window_strides=(1, 1), padding='SAME',
        dimension_numbers=('NHWC', 'HWIO', 'NHWC'))
    return y + b


def expanding_block_ref(params, x_nchw, skip_nchw):
    x = jnp.transpose(x_nchw, (0, 2, 3, 1))
    skip = jnp.transpose(skip_nchw, (0, 2, 3, 1))
    x = jnp.repeat(jnp.repeat(x, 2, axis=1), 2, axis=2)
    x = _conv3x3_ref(x, params['up_w'], params['up_b'])
    x = jnp.concatenate([x, skip], axis=-1)
    s1, b1 = _fold_bn(params['b1'], params['g1'], params['be1'],
                      params['m1'], params['v1'])
    x = jnp.maximum(_conv3x3_ref(x, params['w1'], 0.0) * s1 + b1, 0.0)
    s2, b2 = _fold_bn(params['b2'], params['g2'], params['be2'],
                      params['m2'], params['v2'])
    x = jnp.maximum(_conv3x3_ref(x, params['w2'], 0.0) * s2 + b2, 0.0)
    return jnp.transpose(x, (0, 3, 1, 2))


# --------------------------------------------------------------------------
# Deterministic parameter init + run
# --------------------------------------------------------------------------
def init_params(key, in_channels, out_channels):
    ks = jax.random.split(key, 12)
    cin, cout = in_channels, out_channels
    return {
        # upsample conv: Conv2d(Cin, Cin//2, 3, pad=1)
        'up_w': 0.1 * jax.random.normal(ks[0], (3, 3, cin, cin // 2), jnp.float32),
        'up_b': 0.1 * jax.random.normal(ks[1], (cin // 2,), jnp.float32),
        # conv1: Conv2d(Cin, Cout, 3, pad=1) + BN(Cout)
        'w1': 0.1 * jax.random.normal(ks[2], (3, 3, cin, cout), jnp.float32),
        'b1': 0.1 * jax.random.normal(ks[3], (cout,), jnp.float32),
        'g1': 1.0 + 0.1 * jax.random.normal(ks[4], (cout,), jnp.float32),
        'be1': 0.1 * jax.random.normal(ks[5], (cout,), jnp.float32),
        'm1': 0.1 * jax.random.normal(ks[6], (cout,), jnp.float32),
        'v1': 1.0 + 0.1 * jnp.abs(jax.random.normal(ks[7], (cout,), jnp.float32)),
        # conv2: Conv2d(Cout, Cout, 3, pad=1) + BN(Cout)
        'w2': 0.1 * jax.random.normal(ks[8], (3, 3, cout, cout), jnp.float32),
        'b2': 0.1 * jax.random.normal(ks[9], (cout,), jnp.float32),
        'g2': 1.0 + 0.1 * jax.random.normal(ks[10], (cout,), jnp.float32),
        'be2': 0.1 * jax.random.normal(ks[11], (cout,), jnp.float32),
        'm2': 0.05 * jnp.ones((cout,), jnp.float32),
        'v2': 1.2 * jnp.ones((cout,), jnp.float32),
    }


if __name__ == "__main__":
    key = jax.random.PRNGKey(0)
    k_params, k_x, k_skip = jax.random.split(key, 3)

    N, in_channels, out_channels = 2, 16, 16
    H = W = 8                                    # x spatial; skip is 2H x 2W

    params = init_params(k_params, in_channels, out_channels)
    x = jax.random.normal(k_x, (N, in_channels, H, W), jnp.float32)
    skip = jax.random.normal(k_skip, (N, in_channels // 2, 2 * H, 2 * W),
                             jnp.float32)

    fwd = jax.jit(lambda p, a, b: expanding_block_forward(p, a, b,
                                                          expansion_mode='upsample'))
    out = jax.block_until_ready(fwd(params, x, skip))

    assert out.shape == (N, out_channels, 2 * H, 2 * W), out.shape
    ref = expanding_block_ref(params, x, skip)
    # bf16 MXU inputs (f32 accumulation) over three chained convs vs. a pure-f32
    # XLA reference -> loose tolerance; numerics are unchanged from the previous
    # validated version (matmuls consumed bf16 there too).
    max_err = float(jnp.max(jnp.abs(out - ref)))
    assert jnp.allclose(out, ref, atol=1e-1, rtol=1e-1), max_err

    print("KERNEL_OK")
</pallas_src>

<mosaic_0001>
module attributes {stable_mosaic.version = 11 : i64} {
  func.func @_expanding_block_kernel(%arg0: i32, %arg1: memref<1x8x8x16xf32, #tpu.memory_space<vmem>>, %arg2: memref<1x16x16x8xf32, #tpu.memory_space<vmem>>, %arg3: memref<9x16x8xbf16, #tpu.memory_space<vmem>>, %arg4: memref<1x8xf32, #tpu.memory_space<vmem>>, %arg5: memref<9x16x16xbf16, #tpu.memory_space<vmem>>, %arg6: memref<1x16xf32, #tpu.memory_space<vmem>>, %arg7: memref<1x16xf32, #tpu.memory_space<vmem>>, %arg8: memref<9x16x16xbf16, #tpu.memory_space<vmem>>, %arg9: memref<1x16xf32, #tpu.memory_space<vmem>>, %arg10: memref<1x16xf32, #tpu.memory_space<vmem>>, %arg11: memref<1x16x16x16xf32, #tpu.memory_space<vmem>>, %arg12: memref<18x18x16xbf16, #tpu.memory_space<vmem>>, %arg13: memref<18x18x16xbf16, #tpu.memory_space<vmem>>, %arg14: memref<18x18x16xbf16, #tpu.memory_space<vmem>>) attributes {dimension_semantics = [#tpu.dimension_semantics<parallel>], iteration_bounds = array<i64: 2>, scalar_prefetch = 0 : i64, scratch_operands = 3 : i64, tpu.core_type = #tpu.core_type<tc>, window_params = [{transform_indices = @transform_0, window_bounds = array<i64: 1, 8, 8, 16>}, {transform_indices = @transform_1, window_bounds = array<i64: 1, 16, 16, 8>}, {pipeline_mode = #tpu.pipeline_mode<synchronous>, transform_indices = @transform_2, window_bounds = array<i64: 9, 16, 8>}, {pipeline_mode = #tpu.pipeline_mode<synchronous>, transform_indices = @transform_3, window_bounds = array<i64: 1, 8>}, {pipeline_mode = #tpu.pipeline_mode<synchronous>, transform_indices = @transform_4, window_bounds = array<i64: 9, 16, 16>}, {pipeline_mode = #tpu.pipeline_mode<synchronous>, transform_indices = @transform_5, window_bounds = array<i64: 1, 16>}, {pipeline_mode = #tpu.pipeline_mode<synchronous>, transform_indices = @transform_6, window_bounds = array<i64: 1, 16>}, {pipeline_mode = #tpu.pipeline_mode<synchronous>, transform_indices = @transform_7, window_bounds = array<i64: 9, 16, 16>}, {pipeline_mode = #tpu.pipeline_mode<synchronous>, transform_indices = @transform_8, window_bounds = array<i64: 1, 16>}, {pipeline_mode = #tpu.pipeline_mode<synchronous>, transform_indices = @transform_9, window_bounds = array<i64: 1, 16>}, {transform_indices = @transform_10, window_bounds = array<i64: 1, 16, 16, 16>}]} {
    %cst = arith.constant 0.000000e+00 : bf16
    %0 = vector.broadcast %cst : bf16 to vector<1x18x16xbf16>
    %c0 = arith.constant 0 : index
    %c0_0 = arith.constant 0 : index
    %c0_1 = arith.constant 0 : index
    %1 = vector.load %arg12[%c0, %c0_0, %c0_1] : memref<18x18x16xbf16, #tpu.memory_space<vmem>>, vector<1x18x16xbf16>
    tpu.vector_store %arg12[%c0, %c0_0, %c0_1], %0 {strides = array<i32>} : memref<18x18x16xbf16, #tpu.memory_space<vmem>>, vector<1x18x16xbf16>,
    %cst_2 = arith.constant 0.000000e+00 : bf16
    %2 = vector.broadcast %cst_2 : bf16 to vector<1x18x16xbf16>
    %c17 = arith.constant 17 : index
    %c0_3 = arith.constant 0 : index
    %c0_4 = arith.constant 0 : index
    %3 = vector.load %arg12[%c17, %c0_3, %c0_4] : memref<18x18x16xbf16, #tpu.memory_space<vmem>>, vector<1x18x16xbf16>
    tpu.vector_store %arg12[%c17, %c0_3, %c0_4], %2 {strides = array<i32>} : memref<18x18x16xbf16, #tpu.memory_space<vmem>>, vector<1x18x16xbf16>,
    %cst_5 = arith.constant 0.000000e+00 : bf16
    %4 = vector.broadcast %cst_5 : bf16 to vector<18x1x16xbf16>
    %c0_6 = arith.constant 0 : index
    %c0_7 = arith.constant 0 : index
    %c0_8 = arith.constant 0 : index
    %5 = vector.load %arg12[%c0_6, %c0_7, %c0_8] : memref<18x18x16xbf16, #tpu.memory_space<vmem>>, vector<18x1x16xbf16>
    tpu.vector_store %arg12[%c0_6, %c0_7, %c0_8], %4 {strides = array<i32>} : memref<18x18x16xbf16, #tpu.memory_space<vmem>>, vector<18x1x16xbf16>,
    %cst_9 = arith.constant 0.000000e+00 : bf16
    %6 = vector.broadcast %cst_9 : bf16 to vector<18x1x16xbf16>
    %c0_10 = arith.constant 0 : index
    %c17_11 = arith.constant 17 : index
    %c0_12 = arith.constant 0 : index
    %7 = vector.load %arg12[%c0_10, %c17_11, %c0_12] : memref<18x18x16xbf16, #tpu.memory_space<vmem>>, vector<18x1x16xbf16>
    tpu.vector_store %arg12[%c0_10, %c17_11, %c0_12], %6 {strides = array<i32>} : memref<18x18x16xbf16, #tpu.memory_space<vmem>>, vector<18x1x16xbf16>,
    %cst_13 = arith.constant 0.000000e+00 : bf16
    %8 = vector.broadcast %cst_13 : bf16 to vector<1x18x16xbf16>
    %c0_14 = arith.constant 0 : index
    %c0_15 = arith.constant 0 : index
    %c0_16 = arith.constant 0 : index
    %9 = vector.load %arg13[%c0_14, %c0_15, %c0_16] : memref<18x18x16xbf16, #tpu.memory_space<vmem>>, vector<1x18x16xbf16>
    tpu.vector_store %arg13[%c0_14, %c0_15, %c0_16], %8 {strides = array<i32>} : memref<18x18x16xbf16, #tpu.memory_space<vmem>>, vector<1x18x16xbf16>,
    %cst_17 = arith.constant 0.000000e+00 : bf16
    %10 = vector.broadcast %cst_17 : bf16 to vector<1x18x16xbf16>
    %c17_18 = arith.constant 17 : index
    %c0_19 = arith.constant 0 : index
    %c0_20 = arith.constant 0 : index
    %11 = vector.load %arg13[%c17_18, %c0_19, %c0_20] : memref<18x18x16xbf16, #tpu.memory_space<vmem>>, vector<1x18x16xbf16>
    tpu.vector_store %arg13[%c17_18, %c0_19, %c0_20], %10 {strides = array<i32>} : memref<18x18x16xbf16, #tpu.memory_space<vmem>>, vector<1x18x16xbf16>,
    %cst_21 = arith.constant 0.000000e+00 : bf16
    %12 = vector.broadcast %cst_21 : bf16 to vector<18x1x16xbf16>
    %c0_22 = arith.constant 0 : index
    %c0_23 = arith.constant 0 : index
    %c0_24 = arith.constant 0 : index
    %13 = vector.load %arg13[%c0_22, %c0_23, %c0_24] : memref<18x18x16xbf16, #tpu.memory_space<vmem>>, vector<18x1x16xbf16>
    tpu.vector_store %arg13[%c0_22, %c0_23, %c0_24], %12 {strides = array<i32>} : memref<18x18x16xbf16, #tpu.memory_space<vmem>>, vector<18x1x16xbf16>,
    %cst_25 = arith.constant 0.000000e+00 : bf16
    %14 = vector.broadcast %cst_25 : bf16 to vector<18x1x16xbf16>
    %c0_26 = arith.constant 0 : index
    %c17_27 = arith.constant 17 : index
    %c0_28 = arith.constant 0 : index
    %15 = vector.load %arg13[%c0_26, %c17_27, %c0_28] : memref<18x18x16xbf16, #tpu.memory_space<vmem>>, vector<18x1x16xbf16>
    tpu.vector_store %arg13[%c0_26, %c17_27, %c0_28], %14 {strides = array<i32>} : memref<18x18x16xbf16, #tpu.memory_space<vmem>>, vector<18x1x16xbf16>,
    %cst_29 = arith.constant 0.000000e+00 : bf16
    %16 = vector.broadcast %cst_29 : bf16 to vector<1x18x16xbf16>
    %c0_30 = arith.constant 0 : index
    %c0_31 = arith.constant 0 : index
    %c0_32 = arith.constant 0 : index
    %17 = vector.load %arg14[%c0_30, %c0_31, %c0_32] : memref<18x18x16xbf16, #tpu.memory_space<vmem>>, vector<1x18x16xbf16>
    tpu.vector_store %arg14[%c0_30, %c0_31, %c0_32], %16 {strides = array<i32>} : memref<18x18x16xbf16, #tpu.memory_space<vmem>>, vector<1x18x16xbf16>,
    %cst_33 = arith.constant 0.000000e+00 : bf16
    %18 = vector.broadcast %cst_33 : bf16 to vector<1x18x16xbf16>
    %c17_34 = arith.constant 17 : index
    %c0_35 = arith.constant 0 : index
    %c0_36 = arith.constant 0 : index
    %19 = vector.load %arg14[%c17_34, %c0_35, %c0_36] : memref<18x18x16xbf16, #tpu.memory_space<vmem>>, vector<1x18x16xbf16>
    tpu.vector_store %arg14[%c17_34, %c0_35, %c0_36], %18 {strides = array<i32>} : memref<18x18x16xbf16, #tpu.memory_space<vmem>>, vector<1x18x16xbf16>,
    %cst_37 = arith.constant 0.000000e+00 : bf16
    %20 = vector.broadcast %cst_37 : bf16 to vector<18x1x16xbf16>
    %c0_38 = arith.constant 0 : index
    %c0_39 = arith.constant 0 : index
    %c0_40 = arith.constant 0 : index
    %21 = vector.load %arg14[%c0_38, %c0_39, %c0_40] : memref<18x18x16xbf16, #tpu.memory_space<vmem>>, vector<18x1x16xbf16>
    tpu.vector_store %arg14[%c0_38, %c0_39, %c0_40], %20 {strides = array<i32>} : memref<18x18x16xbf16, #tpu.memory_space<vmem>>, vector<18x1x16xbf16>,
    %cst_41 = arith.constant 0.000000e+00 : bf16
    %22 = vector.broadcast %cst_41 : bf16 to vector<18x1x16xbf16>
    %c0_42 = arith.constant 0 : index
    %c17_43 = arith.constant 17 : index
    %c0_44 = arith.constant 0 : index
    %23 = vector.load %arg14[%c0_42, %c17_43, %c0_44] : memref<18x18x16xbf16, #tpu.memory_space<vmem>>, vector<18x1x16xbf16>
    tpu.vector_store %arg14[%c0_42, %c17_43, %c0_44], %22 {strides = array<i32>} : memref<18x18x16xbf16, #tpu.memory_space<vmem>>, vector<18x1x16xbf16>,
    %c0_45 = arith.constant 0 : index
    %c0_46 = arith.constant 0 : index
    %c0_47 = arith.constant 0 : index
    %c0_48 = arith.constant 0 : index
    %24 = vector.load %arg1[%c0_45, %c0_46, %c0_47, %c0_48] : memref<1x8x8x16xf32, #tpu.memory_space<vmem>>, vector<1x8x8x16xf32>
    %25 = vector.shape_cast %24 : vector<1x8x8x16xf32> to vector<8x8x16xf32>
    %26 = arith.truncf %25 : vector<8x8x16xf32> to vector<8x8x16xbf16>
    %27 = vector.shape_cast %26 : vector<8x8x16xbf16> to vector<8x1x8x16xbf16>
    %28 = vector.shape_cast %27 : vector<8x1x8x16xbf16> to vector<8x1x8x16xbf16>
    %29 = vector.broadcast %28 : vector<8x1x8x16xbf16> to vector<8x2x8x16xbf16>
    %30 = vector.shape_cast %29 : vector<8x2x8x16xbf16> to vector<16x8x16xbf16>
    %31 = vector.extract_strided_slice %30 {offsets = [0, 0, 0], sizes = [16, 1, 16], strides = [1, 1, 1]} : vector<16x8x16xbf16> to vector<16x1x16xbf16>
    %32 = vector.shape_cast %31 : vector<16x1x16xbf16> to vector<16x1x16xbf16>
    %33 = vector.broadcast %32 : vector<16x1x16xbf16> to vector<16x2x16xbf16>
    %c1 = arith.constant 1 : index
    %c1_49 = arith.constant 1 : index
    %c0_50 = arith.constant 0 : index
    %34 = vector.load %arg12[%c1, %c1_49, %c0_50] : memref<18x18x16xbf16, #tpu.memory_space<vmem>>, vector<16x2x16xbf16>
    tpu.vector_store %arg12[%c1, %c1_49, %c0_50], %33 {strides = array<i32>} : memref<18x18x16xbf16, #tpu.memory_space<vmem>>, vector<16x2x16xbf16>,
    %35 = vector.extract_strided_slice %30 {offsets = [0, 1, 0], sizes = [16, 1, 16], strides = [1, 1, 1]} : vector<16x8x16xbf16> to vector<16x1x16xbf16>
    %36 = vector.shape_cast %35 : vector<16x1x16xbf16> to vector<16x1x16xbf16>
    %37 = vector.broadcast %36 : vector<16x1x16xbf16> to vector<16x2x16xbf16>
    %c1_51 = arith.constant 1 : index
    %c3 = arith.constant 3 : index
    %c0_52 = arith.constant 0 : index
    %38 = vector.load %arg12[%c1_51, %c3, %c0_52] : memref<18x18x16xbf16, #tpu.memory_space<vmem>>, vector<16x2x16xbf16>
    tpu.vector_store %arg12[%c1_51, %c3, %c0_52], %37 {strides = array<i32>} : memref<18x18x16xbf16, #tpu.memory_space<vmem>>, vector<16x2x16xbf16>,
    %39 = vector.extract_strided_slice %30 {offsets = [0, 2, 0], sizes = [16, 1, 16], strides = [1, 1, 1]} : vector<16x8x16xbf16> to vector<16x1x16xbf16>
    %40 = vector.shape_cast %39 : vector<16x1x16xbf16> to vector<16x1x16xbf16>
    %41 = vector.broadcast %40 : vector<16x1x16xbf16> to vector<16x2x16xbf16>
    %c1_53 = arith.constant 1 : index
    %c5 = arith.constant 5 : index
    %c0_54 = arith.constant 0 : index
    %42 = vector.load %arg12[%c1_53, %c5, %c0_54] : memref<18x18x16xbf16, #tpu.memory_space<vmem>>, vector<16x2x16xbf16>
    tpu.vector_store %arg12[%c1_53, %c5, %c0_54], %41 {strides = array<i32>} : memref<18x18x16xbf16, #tpu.memory_space<vmem>>, vector<16x2x16xbf16>,
    %43 = vector.extract_strided_slice %30 {offsets = [0, 3, 0], sizes = [16, 1, 16], strides = [1, 1, 1]} : vector<16x8x16xbf16> to vector<16x1x16xbf16>
    %44 = vector.shape_cast %43 : vector<16x1x16xbf16> to vector<16x1x16xbf16>
    %45 = vector.broadcast %44 : vector<16x1x16xbf16> to vector<16x2x16xbf16>
    %c1_55 = arith.constant 1 : index
    %c7 = arith.constant 7 : index
    %c0_56 = arith.constant 0 : index
    %46 = vector.load %arg12[%c1_55, %c7, %c0_56] : memref<18x18x16xbf16, #tpu.memory_space<vmem>>, vector<16x2x16xbf16>
    tpu.vector_store %arg12[%c1_55, %c7, %c0_56], %45 {strides = array<i32>} : memref<18x18x16xbf16, #tpu.memory_space<vmem>>, vector<16x2x16xbf16>,
    %47 = vector.extract_strided_slice %30 {offsets = [0, 4, 0], sizes = [16, 1, 16], strides = [1, 1, 1]} : vector<16x8x16xbf16> to vector<16x1x16xbf16>
    %48 = vector.shape_cast %47 : vector<16x1x16xbf16> to vector<16x1x16xbf16>
    %49 = vector.broadcast %48 : vector<16x1x16xbf16> to vector<16x2x16xbf16>
    %c1_57 = arith.constant 1 : index
    %c9 = arith.constant 9 : index
    %c0_58 = arith.constant 0 : index
    %50 = vector.load %arg12[%c1_57, %c9, %c0_58] : memref<18x18x16xbf16, #tpu.memory_space<vmem>>, vector<16x2x16xbf16>
    tpu.vector_store %arg12[%c1_57, %c9, %c0_58], %49 {strides = array<i32>} : memref<18x18x16xbf16, #tpu.memory_space<vmem>>, vector<16x2x16xbf16>,
    %51 = vector.extract_strided_slice %30 {offsets = [0, 5, 0], sizes = [16, 1, 16], strides = [1, 1, 1]} : vector<16x8x16xbf16> to vector<16x1x16xbf16>
    %52 = vector.shape_cast %51 : vector<16x1x16xbf16> to vector<16x1x16xbf16>
    %53 = vector.broadcast %52 : vector<16x1x16xbf16> to vector<16x2x16xbf16>
    %c1_59 = arith.constant 1 : index
    %c11 = arith.constant 11 : index
    %c0_60 = arith.constant 0 : index
    %54 = vector.load %arg12[%c1_59, %c11, %c0_60] : memref<18x18x16xbf16, #tpu.memory_space<vmem>>, vector<16x2x16xbf16>
    tpu.vector_store %arg12[%c1_59, %c11, %c0_60], %53 {strides = array<i32>} : memref<18x18x16xbf16, #tpu.memory_space<vmem>>, vector<16x2x16xbf16>,
    %55 = vector.extract_strided_slice %30 {offsets = [0, 6, 0], sizes = [16, 1, 16], strides = [1, 1, 1]} : vector<16x8x16xbf16> to vector<16x1x16xbf16>
    %56 = vector.shape_cast %55 : vector<16x1x16xbf16> to vector<16x1x16xbf16>
    %57 = vector.broadcast %56 : vector<16x1x16xbf16> to vector<16x2x16xbf16>
    %c1_61 = arith.constant 1 : index
    %c13 = arith.constant 13 : index
    %c0_62 = arith.constant 0 : index
    %58 = vector.load %arg12[%c1_61, %c13, %c0_62] : memref<18x18x16xbf16, #tpu.memory_space<vmem>>, vector<16x2x16xbf16>
    tpu.vector_store %arg12[%c1_61, %c13, %c0_62], %57 {strides = array<i32>} : memref<18x18x16xbf16, #tpu.memory_space<vmem>>, vector<16x2x16xbf16>,
    %59 = vector.extract_strided_slice %30 {offsets = [0, 7, 0], sizes = [16, 1, 16], strides = [1, 1, 1]} : vector<16x8x16xbf16> to vector<16x1x16xbf16>
    %60 = vector.shape_cast %59 : vector<16x1x16xbf16> to vector<16x1x16xbf16>
    %61 = vector.broadcast %60 : vector<16x1x16xbf16> to vector<16x2x16xbf16>
    %c1_63 = arith.constant 1 : index
    %c15 = arith.constant 15 : index
    %c0_64 = arith.constant 0 : index
    %62 = vector.load %arg12[%c1_63, %c15, %c0_64] : memref<18x18x16xbf16, #tpu.memory_space<vmem>>, vector<16x2x16xbf16>
    tpu.vector_store %arg12[%c1_63, %c15, %c0_64], %61 {strides = array<i32>} : memref<18x18x16xbf16, #tpu.memory_space<vmem>>, vector<16x2x16xbf16>,
    %cst_65 = arith.constant 0.000000e+00 : f32
    %63 = vector.broadcast %cst_65 : f32 to vector<256x8xf32>
    %c0_66 = arith.constant 0 : index
    %c0_67 = arith.constant 0 : index
    %c0_68 = arith.constant 0 : index
    %64 = vector.load %arg12[%c0_66, %c0_67, %c0_68] : memref<18x18x16xbf16, #tpu.memory_space<vmem>>, vector<18x16x16xbf16>
    %65 = vector.extract_strided_slice %64 {offsets = [0, 0, 0], sizes = [16, 16, 16], strides = [1, 1, 1]} : vector<18x16x16xbf16> to vector<16x16x16xbf16>
    %66 = vector.shape_cast %65 : vector<16x16x16xbf16> to vector<256x16xbf16>
    %c0_69 = arith.constant 0 : index
    %c0_70 = arith.constant 0 : index
    %c0_71 = arith.constant 0 : index
    %67 = vector.load %arg3[%c0_69, %c0_70, %c0_71] : memref<9x16x8xbf16, #tpu.memory_space<vmem>>, vector<1x16x8xbf16>
    %68 = vector.shape_cast %67 : vector<1x16x8xbf16> to vector<16x8xbf16>
    %cst_72 = arith.constant dense<0.000000e+00> : vector<256x8xf32>
    %69 = tpu.matmul %66, %68, %cst_72 {dimension_numbers = #tpu.dot_dimension_numbers<[1], [0], [0], [1], [0, 0, 1, 1], [], []>} : vector<256x16xbf16>, vector<16x8xbf16>, vector<256x8xf32> -> vector<256x8xf32>
    %70 = arith.addf %63, %69 : vector<256x8xf32>
    %71 = vector.extract_strided_slice %64 {offsets = [1, 0, 0], sizes = [16, 16, 16], strides = [1, 1, 1]} : vector<18x16x16xbf16> to vector<16x16x16xbf16>
    %72 = vector.shape_cast %71 : vector<16x16x16xbf16> to vector<256x16xbf16>
    %c3_73 = arith.constant 3 : index
    %c0_74 = arith.constant 0 : index
    %c0_75 = arith.constant 0 : index
    %73 = vector.load %arg3[%c3_73, %c0_74, %c0_75] : memref<9x16x8xbf16, #tpu.memory_space<vmem>>, vector<1x16x8xbf16>
    %74 = vector.shape_cast %73 : vector<1x16x8xbf16> to vector<16x8xbf16>
    %cst_76 = arith.constant dense<0.000000e+00> : vector<256x8xf32>
    %75 = tpu.matmul %72, %74, %cst_76 {dimension_numbers = #tpu.dot_dimension_numbers<[1], [0], [0], [1], [0, 0, 1, 1], [], []>} : vector<256x16xbf16>, vector<16x8xbf16>, vector<256x8xf32> -> vector<256x8xf32>
    %76 = arith.addf %70, %75 : vector<256x8xf32>
    %77 = vector.extract_strided_slice %64 {offsets = [2, 0, 0], sizes = [16, 16, 16], strides = [1, 1, 1]} : vector<18x16x16xbf16> to vector<16x16x16xbf16>
    %78 = vector.shape_cast %77 : vector<16x16x16xbf16> to vector<256x16xbf16>
    %c6 = arith.constant 6 : index
    %c0_77 = arith.constant 0 : index
    %c0_78 = arith.constant 0 : index
    %79 = vector.load %arg3[%c6, %c0_77, %c0_78] : memref<9x16x8xbf16, #tpu.memory_space<vmem>>, vector<1x16x8xbf16>
    %80 = vector.shape_cast %79 : vector<1x16x8xbf16> to vector<16x8xbf16>
    %cst_79 = arith.constant dense<0.000000e+00> : vector<256x8xf32>
    %81 = tpu.matmul %78, %80, %cst_79 {dimension_numbers = #tpu.dot_dimension_numbers<[1], [0], [0], [1], [0, 0, 1, 1], [], []>} : vector<256x16xbf16>, vector<16x8xbf16>, vector<256x8xf32> -> vector<256x8xf32>
    %82 = arith.addf %76, %81 : vector<256x8xf32>
    %c0_80 = arith.constant 0 : index
    %c1_81 = arith.constant 1 : index
    %c0_82 = arith.constant 0 : index
    %83 = vector.load %arg12[%c0_80, %c1_81, %c0_82] : memref<18x18x16xbf16, #tpu.memory_space<vmem>>, vector<18x16x16xbf16>
    %84 = vector.extract_strided_slice %83 {offsets = [0, 0, 0], sizes = [16, 16, 16], strides = [1, 1, 1]} : vector<18x16x16xbf16> to vector<16x16x16xbf16>
    %85 = vector.shape_cast %84 : vector<16x16x16xbf16> to vector<256x16xbf16>
    %c1_83 = arith.constant 1 : index
    %c0_84 = arith.constant 0 : index
    %c0_85 = arith.constant 0 : index
    %86 = vector.load %arg3[%c1_83, %c0_84, %c0_85] : memref<9x16x8xbf16, #tpu.memory_space<vmem>>, vector<1x16x8xbf16>
    %87 = vector.shape_cast %86 : vector<1x16x8xbf16> to vector<16x8xbf16>
    %cst_86 = arith.constant dense<0.000000e+00> : vector<256x8xf32>
    %88 = tpu.matmul %85, %87, %cst_86 {dimension_numbers = #tpu.dot_dimension_numbers<[1], [0], [0], [1], [0, 0, 1, 1], [], []>} : vector<256x16xbf16>, vector<16x8xbf16>, vector<256x8xf32> -> vector<256x8xf32>
    %89 = arith.addf %82, %88 : vector<256x8xf32>
    %90 = vector.extract_strided_slice %83 {offsets = [1, 0, 0], sizes = [16, 16, 16], strides = [1, 1, 1]} : vector<18x16x16xbf16> to vector<16x16x16xbf16>
    %91 = vector.shape_cast %90 : vector<16x16x16xbf16> to vector<256x16xbf16>
    %c4 = arith.constant 4 : index
    %c0_87 = arith.constant 0 : index
    %c0_88 = arith.constant 0 : index
    %92 = vector.load %arg3[%c4, %c0_87, %c0_88] : memref<9x16x8xbf16, #tpu.memory_space<vmem>>, vector<1x16x8xbf16>
    %93 = vector.shape_cast %92 : vector<1x16x8xbf16> to vector<16x8xbf16>
    %cst_89 = arith.constant dense<0.000000e+00> : vector<256x8xf32>
    %94 = tpu.matmul %91, %93, %cst_89 {dimension_numbers = #tpu.dot_dimension_numbers<[1], [0], [0], [1], [0, 0, 1, 1], [], []>} : vector<256x16xbf16>, vector<16x8xbf16>, vector<256x8xf32> -> vector<256x8xf32>
    %95 = arith.addf %89, %94 : vector<256x8xf32>
    %96 = vector.extract_strided_slice %83 {offsets = [2, 0, 0], sizes = [16, 16, 16], strides = [1, 1, 1]} : vector<18x16x16xbf16> to vector<16x16x16xbf16>
    %97 = vector.shape_cast %96 : vector<16x16x16xbf16> to vector<256x16xbf16>
    %c7_90 = arith.constant 7 : index
    %c0_91 = arith.constant 0 : index
    %c0_92 = arith.constant 0 : index
    %98 = vector.load %arg3[%c7_90, %c0_91, %c0_92] : memref<9x16x8xbf16, #tpu.memory_space<vmem>>, vector<1x16x8xbf16>
    %99 = vector.shape_cast %98 : vector<1x16x8xbf16> to vector<16x8xbf16>
    %cst_93 = arith.constant dense<0.000000e+00> : vector<256x8xf32>
    %100 = tpu.matmul %97, %99, %cst_93 {dimension_numbers = #tpu.dot_dimension_numbers<[1], [0], [0], [1], [0, 0, 1, 1], [], []>} : vector<256x16xbf16>, vector<16x8xbf16>, vector<256x8xf32> -> vector<256x8xf32>
    %101 = arith.addf %95, %100 : vector<256x8xf32>
    %c0_94 = arith.constant 0 : index
    %c2 = arith.constant 2 : index
    %c0_95 = arith.constant 0 : index
    %102 = vector.load %arg12[%c0_94, %c2, %c0_95] : memref<18x18x16xbf16, #tpu.memory_space<vmem>>, vector<18x16x16xbf16>
    %103 = vector.extract_strided_slice %102 {offsets = [0, 0, 0], sizes = [16, 16, 16], strides = [1, 1, 1]} : vector<18x16x16xbf16> to vector<16x16x16xbf16>
    %104 = vector.shape_cast %103 : vector<16x16x16xbf16> to vector<256x16xbf16>
    %c2_96 = arith.constant 2 : index
    %c0_97 = arith.constant 0 : index
    %c0_98 = arith.constant 0 : index
    %105 = vector.load %arg3[%c2_96, %c0_97, %c0_98] : memref<9x16x8xbf16, #tpu.memory_space<vmem>>, vector<1x16x8xbf16>
    %106 = vector.shape_cast %105 : vector<1x16x8xbf16> to vector<16x8xbf16>
    %cst_99 = arith.constant dense<0.000000e+00> : vector<256x8xf32>
    %107 = tpu.matmul %104, %106, %cst_99 {dimension_numbers = #tpu.dot_dimension_numbers<[1], [0], [0], [1], [0, 0, 1, 1], [], []>} : vector<256x16xbf16>, vector<16x8xbf16>, vector<256x8xf32> -> vector<256x8xf32>
    %108 = arith.addf %101, %107 : vector<256x8xf32>
    %109 = vector.extract_strided_slice %102 {offsets = [1, 0, 0], sizes = [16, 16, 16], strides = [1, 1, 1]} : vector<18x16x16xbf16> to vector<16x16x16xbf16>
    %110 = vector.shape_cast %109 : vector<16x16x16xbf16> to vector<256x16xbf16>
    %c5_100 = arith.constant 5 : index
    %c0_101 = arith.constant 0 : index
    %c0_102 = arith.constant 0 : index
    %111 = vector.load %arg3[%c5_100, %c0_101, %c0_102] : memref<9x16x8xbf16, #tpu.memory_space<vmem>>, vector<1x16x8xbf16>
    %112 = vector.shape_cast %111 : vector<1x16x8xbf16> to vector<16x8xbf16>
    %cst_103 = arith.constant dense<0.000000e+00> : vector<256x8xf32>
    %113 = tpu.matmul %110, %112, %cst_103 {dimension_numbers = #tpu.dot_dimension_numbers<[1], [0], [0], [1], [0, 0, 1, 1], [], []>} : vector<256x16xbf16>, vector<16x8xbf16>, vector<256x8xf32> -> vector<256x8xf32>
    %114 = arith.addf %108, %113 : vector<256x8xf32>
    %115 = vector.extract_strided_slice %102 {offsets = [2, 0, 0], sizes = [16, 16, 16], strides = [1, 1, 1]} : vector<18x16x16xbf16> to vector<16x16x16xbf16>
    %116 = vector.shape_cast %115 : vector<16x16x16xbf16> to vector<256x16xbf16>
    %c8 = arith.constant 8 : index
    %c0_104 = arith.constant 0 : index
    %c0_105 = arith.constant 0 : index
    %117 = vector.load %arg3[%c8, %c0_104, %c0_105] : memref<9x16x8xbf16, #tpu.memory_space<vmem>>, vector<1x16x8xbf16>
    %118 = vector.shape_cast %117 : vector<1x16x8xbf16> to vector<16x8xbf16>
    %cst_106 = arith.constant dense<0.000000e+00> : vector<256x8xf32>
    %119 = tpu.matmul %116, %118, %cst_106 {dimension_numbers = #tpu.dot_dimension_numbers<[1], [0], [0], [1], [0, 0, 1, 1], [], []>} : vector<256x16xbf16>, vector<16x8xbf16>, vector<256x8xf32> -> vector<256x8xf32>
    %120 = arith.addf %114, %119 : vector<256x8xf32>
    %c0_107 = arith.constant 0 : index
    %c0_108 = arith.constant 0 : index
    %121 = vector.load %arg4[%c0_107, %c0_108] : memref<1x8xf32, #tpu.memory_space<vmem>>, vector<1x8xf32>
    %122 = vector.shape_cast %121 : vector<1x8xf32> to vector<8xf32>
    %123 = vector.shape_cast %122 : vector<8xf32> to vector<1x8xf32>
    %124 = vector.broadcast %123 : vector<1x8xf32> to vector<256x8xf32>
    %125 = arith.addf %120, %124 : vector<256x8xf32>
    %126 = vector.shape_cast %125 : vector<256x8xf32> to vector<16x16x8xf32>
    %127 = arith.truncf %126 : vector<16x16x8xf32> to vector<16x16x8xbf16>
    %c1_109 = arith.constant 1 : index
    %c1_110 = arith.constant 1 : index
    %c0_111 = arith.constant 0 : index
    %128 = vector.load %arg13[%c1_109, %c1_110, %c0_111] : memref<18x18x16xbf16, #tpu.memory_space<vmem>>, vector<16x16x8xbf16>
    tpu.vector_store %arg13[%c1_109, %c1_110, %c0_111], %127 {strides = array<i32>} : memref<18x18x16xbf16, #tpu.memory_space<vmem>>, vector<16x16x8xbf16>,
    %c0_112 = arith.constant 0 : index
    %c0_113 = arith.constant 0 : index
    %c0_114 = arith.constant 0 : index
    %c0_115 = arith.constant 0 : index
    %129 = vector.load %arg2[%c0_112, %c0_113, %c0_114, %c0_115] : memref<1x16x16x8xf32, #tpu.memory_space<vmem>>, vector<1x16x16x8xf32>
    %130 = vector.shape_cast %129 : vector<1x16x16x8xf32> to vector<16x16x8xf32>
    %131 = arith.truncf %130 : vector<16x16x8xf32> to vector<16x16x8xbf16>
    %c1_116 = arith.constant 1 : index
    %c1_117 = arith.constant 1 : index
    %c8_118 = arith.constant 8 : index
    %132 = vector.load %arg13[%c1_116, %c1_117, %c8_118] : memref<18x18x16xbf16, #tpu.memory_space<vmem>>, vector<16x16x8xbf16>
    tpu.vector_store %arg13[%c1_116, %c1_117, %c8_118], %131 {strides = array<i32>} : memref<18x18x16xbf16, #tpu.memory_space<vmem>>, vector<16x16x8xbf16>,
    %cst_119 = arith.constant 0.000000e+00 : f32
    %133 = vector.broadcast %cst_119 : f32 to vector<256x16xf32>
    %c0_120 = arith.constant 0 : index
    %c0_121 = arith.constant 0 : index
    %c0_122 = arith.constant 0 : index
    %134 = vector.load %arg13[%c0_120, %c0_121, %c0_122] : memref<18x18x16xbf16, #tpu.memory_space<vmem>>, vector<18x16x16xbf16>
    %135 = vector.extract_strided_slice %134 {offsets = [0, 0, 0], sizes = [16, 16, 16], strides = [1, 1, 1]} : vector<18x16x16xbf16> to vector<16x16x16xbf16>
    %136 = vector.shape_cast %135 : vector<16x16x16xbf16> to vector<256x16xbf16>
    %c0_123 = arith.constant 0 : index
    %c0_124 = arith.constant 0 : index
    %c0_125 = arith.constant 0 : index
    %137 = vector.load %arg5[%c0_123, %c0_124, %c0_125] : memref<9x16x16xbf16, #tpu.memory_space<vmem>>, vector<1x16x16xbf16>
    %138 = vector.shape_cast %137 : vector<1x16x16xbf16> to vector<16x16xbf16>
    %cst_126 = arith.constant dense<0.000000e+00> : vector<256x16xf32>
    %139 = tpu.matmul %136, %138, %cst_126 {dimension_numbers = #tpu.dot_dimension_numbers<[1], [0], [0], [1], [0, 0, 1, 1], [], []>} : vector<256x16xbf16>, vector<16x16xbf16>, vector<256x16xf32> -> vector<256x16xf32>
    %140 = arith.addf %133, %139 : vector<256x16xf32>
    %141 = vector.extract_strided_slice %134 {offsets = [1, 0, 0], sizes = [16, 16, 16], strides = [1, 1, 1]} : vector<18x16x16xbf16> to vector<16x16x16xbf16>
    %142 = vector.shape_cast %141 : vector<16x16x16xbf16> to vector<256x16xbf16>
    %c3_127 = arith.constant 3 : index
    %c0_128 = arith.constant 0 : index
    %c0_129 = arith.constant 0 : index
    %143 = vector.load %arg5[%c3_127, %c0_128, %c0_129] : memref<9x16x16xbf16, #tpu.memory_space<vmem>>, vector<1x16x16xbf16>
    %144 = vector.shape_cast %143 : vector<1x16x16xbf16> to vector<16x16xbf16>
    %cst_130 = arith.constant dense<0.000000e+00> : vector<256x16xf32>
    %145 = tpu.matmul %142, %144, %cst_130 {dimension_numbers = #tpu.dot_dimension_numbers<[1], [0], [0], [1], [0, 0, 1, 1], [], []>} : vector<256x16xbf16>, vector<16x16xbf16>, vector<256x16xf32> -> vector<256x16xf32>
    %146 = arith.addf %140, %145 : vector<256x16xf32>
    %147 = vector.extract_strided_slice %134 {offsets = [2, 0, 0], sizes = [16, 16, 16], strides = [1, 1, 1]} : vector<18x16x16xbf16> to vector<16x16x16xbf16>
    %148 = vector.shape_cast %147 : vector<16x16x16xbf16> to vector<256x16xbf16>
    %c6_131 = arith.constant 6 : index
    %c0_132 = arith.constant 0 : index
    %c0_133 = arith.constant 0 : index
    %149 = vector.load %arg5[%c6_131, %c0_132, %c0_133] : memref<9x16x16xbf16, #tpu.memory_space<vmem>>, vector<1x16x16xbf16>
    %150 = vector.shape_cast %149 : vector<1x16x16xbf16> to vector<16x16xbf16>
    %cst_134 = arith.constant dense<0.000000e+00> : vector<256x16xf32>
    %151 = tpu.matmul %148, %150, %cst_134 {dimension_numbers = #tpu.dot_dimension_numbers<[1], [0], [0], [1], [0, 0, 1, 1], [], []>} : vector<256x16xbf16>, vector<16x16xbf16>, vector<256x16xf32> -> vector<256x16xf32>
    %152 = arith.addf %146, %151 : vector<256x16xf32>
    %c0_135 = arith.constant 0 : index
    %c1_136 = arith.constant 1 : index
    %c0_137 = arith.constant 0 : index
    %153 = vector.load %arg13[%c0_135, %c1_136, %c0_137] : memref<18x18x16xbf16, #tpu.memory_space<vmem>>, vector<18x16x16xbf16>
    %154 = vector.extract_strided_slice %153 {offsets = [0, 0, 0], sizes = [16, 16, 16], strides = [1, 1, 1]} : vector<18x16x16xbf16> to vector<16x16x16xbf16>
    %155 = vector.shape_cast %154 : vector<16x16x16xbf16> to vector<256x16xbf16>
    %c1_138 = arith.constant 1 : index
    %c0_139 = arith.constant 0 : index
    %c0_140 = arith.constant 0 : index
    %156 = vector.load %arg5[%c1_138, %c0_139, %c0_140] : memref<9x16x16xbf16, #tpu.memory_space<vmem>>, vector<1x16x16xbf16>
    %157 = vector.shape_cast %156 : vector<1x16x16xbf16> to vector<16x16xbf16>
    %cst_141 = arith.constant dense<0.000000e+00> : vector<256x16xf32>
    %158 = tpu.matmul %155, %157, %cst_141 {dimension_numbers = #tpu.dot_dimension_numbers<[1], [0], [0], [1], [0, 0, 1, 1], [], []>} : vector<256x16xbf16>, vector<16x16xbf16>, vector<256x16xf32> -> vector<256x16xf32>
    %159 = arith.addf %152, %158 : vector<256x16xf32>
    %160 = vector.extract_strided_slice %153 {offsets = [1, 0, 0], sizes = [16, 16, 16], strides = [1, 1, 1]} : vector<18x16x16xbf16> to vector<16x16x16xbf16>
    %161 = vector.shape_cast %160 : vector<16x16x16xbf16> to vector<256x16xbf16>
    %c4_142 = arith.constant 4 : index
    %c0_143 = arith.constant 0 : index
    %c0_144 = arith.constant 0 : index
    %162 = vector.load %arg5[%c4_142, %c0_143, %c0_144] : memref<9x16x16xbf16, #tpu.memory_space<vmem>>, vector<1x16x16xbf16>
    %163 = vector.shape_cast %162 : vector<1x16x16xbf16> to vector<16x16xbf16>
    %cst_145 = arith.constant dense<0.000000e+00> : vector<256x16xf32>
    %164 = tpu.matmul %161, %163, %cst_145 {dimension_numbers = #tpu.dot_dimension_numbers<[1], [0], [0], [1], [0, 0, 1, 1], [], []>} : vector<256x16xbf16>, vector<16x16xbf16>, vector<256x16xf32> -> vector<256x16xf32>
    %165 = arith.addf %159, %164 : vector<256x16xf32>
    %166 = vector.extract_strided_slice %153 {offsets = [2, 0, 0], sizes = [16, 16, 16], strides = [1, 1, 1]} : vector<18x16x16xbf16> to vector<16x16x16xbf16>
    %167 = vector.shape_cast %166 : vector<16x16x16xbf16> to vector<256x16xbf16>
    %c7_146 = arith.constant 7 : index
    %c0_147 = arith.constant 0 : index
    %c0_148 = arith.constant 0 : index
    %168 = vector.load %arg5[%c7_146, %c0_147, %c0_148] : memref<9x16x16xbf16, #tpu.memory_space<vmem>>, vector<1x16x16xbf16>
    %169 = vector.shape_cast %168 : vector<1x16x16xbf16> to vector<16x16xbf16>
    %cst_149 = arith.constant dense<0.000000e+00> : vector<256x16xf32>
    %170 = tpu.matmul %167, %169, %cst_149 {dimension_numbers = #tpu.dot_dimension_numbers<[1], [0], [0], [1], [0, 0, 1, 1], [], []>} : vector<256x16xbf16>, vector<16x16xbf16>, vector<256x16xf32> -> vector<256x16xf32>
    %171 = arith.addf %165, %170 : vector<256x16xf32>
    %c0_150 = arith.constant 0 : index
    %c2_151 = arith.constant 2 : index
    %c0_152 = arith.constant 0 : index
    %172 = vector.load %arg13[%c0_150, %c2_151, %c0_152] : memref<18x18x16xbf16, #tpu.memory_space<vmem>>, vector<18x16x16xbf16>
    %173 = vector.extract_strided_slice %172 {offsets = [0, 0, 0], sizes = [16, 16, 16], strides = [1, 1, 1]} : vector<18x16x16xbf16> to vector<16x16x16xbf16>
    %174 = vector.shape_cast %173 : vector<16x16x16xbf16> to vector<256x16xbf16>
    %c2_153 = arith.constant 2 : index
    %c0_154 = arith.constant 0 : index
    %c0_155 = arith.constant 0 : index
    %175 = vector.load %arg5[%c2_153, %c0_154, %c0_155] : memref<9x16x16xbf16, #tpu.memory_space<vmem>>, vector<1x16x16xbf16>
    %176 = vector.shape_cast %175 : vector<1x16x16xbf16> to vector<16x16xbf16>
    %cst_156 = arith.constant dense<0.000000e+00> : vector<256x16xf32>
    %177 = tpu.matmul %174, %176, %cst_156 {dimension_numbers = #tpu.dot_dimension_numbers<[1], [0], [0], [1], [0, 0, 1, 1], [], []>} : vector<256x16xbf16>, vector<16x16xbf16>, vector<256x16xf32> -> vector<256x16xf32>
    %178 = arith.addf %171, %177 : vector<256x16xf32>
    %179 = vector.extract_strided_slice %172 {offsets = [1, 0, 0], sizes = [16, 16, 16], strides = [1, 1, 1]} : vector<18x16x16xbf16> to vector<16x16x16xbf16>
    %180 = vector.shape_cast %179 : vector<16x16x16xbf16> to vector<256x16xbf16>
    %c5_157 = arith.constant 5 : index
    %c0_158 = arith.constant 0 : index
    %c0_159 = arith.constant 0 : index
    %181 = vector.load %arg5[%c5_157, %c0_158, %c0_159] : memref<9x16x16xbf16, #tpu.memory_space<vmem>>, vector<1x16x16xbf16>
    %182 = vector.shape_cast %181 : vector<1x16x16xbf16> to vector<16x16xbf16>
    %cst_160 = arith.constant dense<0.000000e+00> : vector<256x16xf32>
    %183 = tpu.matmul %180, %182, %cst_160 {dimension_numbers = #tpu.dot_dimension_numbers<[1], [0], [0], [1], [0, 0, 1, 1], [], []>} : vector<256x16xbf16>, vector<16x16xbf16>, vector<256x16xf32> -> vector<256x16xf32>
    %184 = arith.addf %178, %183 : vector<256x16xf32>
    %185 = vector.extract_strided_slice %172 {offsets = [2, 0, 0], sizes = [16, 16, 16], strides = [1, 1, 1]} : vector<18x16x16xbf16> to vector<16x16x16xbf16>
    %186 = vector.shape_cast %185 : vector<16x16x16xbf16> to vector<256x16xbf16>
    %c8_161 = arith.constant 8 : index
    %c0_162 = arith.constant 0 : index
    %c0_163 = arith.constant 0 : index
    %187 = vector.load %arg5[%c8_161, %c0_162, %c0_163] : memref<9x16x16xbf16, #tpu.memory_space<vmem>>, vector<1x16x16xbf16>
    %188 = vector.shape_cast %187 : vector<1x16x16xbf16> to vector<16x16xbf16>
    %cst_164 = arith.constant dense<0.000000e+00> : vector<256x16xf32>
    %189 = tpu.matmul %186, %188, %cst_164 {dimension_numbers = #tpu.dot_dimension_numbers<[1], [0], [0], [1], [0, 0, 1, 1], [], []>} : vector<256x16xbf16>, vector<16x16xbf16>, vector<256x16xf32> -> vector<256x16xf32>
    %190 = arith.addf %184, %189 : vector<256x16xf32>
    %c0_165 = arith.constant 0 : index
    %c0_166 = arith.constant 0 : index
    %191 = vector.load %arg6[%c0_165, %c0_166] : memref<1x16xf32, #tpu.memory_space<vmem>>, vector<1x16xf32>
    %192 = vector.shape_cast %191 : vector<1x16xf32> to vector<16xf32>
    %193 = vector.shape_cast %192 : vector<16xf32> to vector<1x16xf32>
    %194 = vector.broadcast %193 : vector<1x16xf32> to vector<256x16xf32>
    %195 = arith.mulf %190, %194 : vector<256x16xf32>
    %c0_167 = arith.constant 0 : index
    %c0_168 = arith.constant 0 : index
    %196 = vector.load %arg7[%c0_167, %c0_168] : memref<1x16xf32, #tpu.memory_space<vmem>>, vector<1x16xf32>
    %197 = vector.shape_cast %196 : vector<1x16xf32> to vector<16xf32>
    %198 = vector.shape_cast %197 : vector<16xf32> to vector<1x16xf32>
    %199 = vector.broadcast %198 : vector<1x16xf32> to vector<256x16xf32>
    %200 = arith.addf %195, %199 : vector<256x16xf32>
    %cst_169 = arith.constant 0.000000e+00 : f32
    %201 = vector.broadcast %cst_169 : f32 to vector<256x16xf32>
    %202 = arith.maximumf %200, %201 : vector<256x16xf32>
    %203 = vector.shape_cast %202 : vector<256x16xf32> to vector<16x16x16xf32>
    %204 = arith.truncf %203 : vector<16x16x16xf32> to vector<16x16x16xbf16>
    %c1_170 = arith.constant 1 : index
    %c1_171 = arith.constant 1 : index
    %c0_172 = arith.constant 0 : index
    %205 = vector.load %arg14[%c1_170, %c1_171, %c0_172] : memref<18x18x16xbf16, #tpu.memory_space<vmem>>, vector<16x16x16xbf16>
    tpu.vector_store %arg14[%c1_170, %c1_171, %c0_172], %204 {strides = array<i32>} : memref<18x18x16xbf16, #tpu.memory_space<vmem>>, vector<16x16x16xbf16>,
    %cst_173 = arith.constant 0.000000e+00 : f32
    %206 = vector.broadcast %cst_173 : f32 to vector<256x16xf32>
    %c0_174 = arith.constant 0 : index
    %c0_175 = arith.constant 0 : index
    %c0_176 = arith.constant 0 : index
    %207 = vector.load %arg14[%c0_174, %c0_175, %c0_176] : memref<18x18x16xbf16, #tpu.memory_space<vmem>>, vector<18x16x16xbf16>
    %208 = vector.extract_strided_slice %207 {offsets = [0, 0, 0], sizes = [16, 16, 16], strides = [1, 1, 1]} : vector<18x16x16xbf16> to vector<16x16x16xbf16>
    %209 = vector.shape_cast %208 : vector<16x16x16xbf16> to vector<256x16xbf16>
    %c0_177 = arith.constant 0 : index
    %c0_178 = arith.constant 0 : index
    %c0_179 = arith.constant 0 : index
    %210 = vector.load %arg8[%c0_177, %c0_178, %c0_179] : memref<9x16x16xbf16, #tpu.memory_space<vmem>>, vector<1x16x16xbf16>
    %211 = vector.shape_cast %210 : vector<1x16x16xbf16> to vector<16x16xbf16>
    %cst_180 = arith.constant dense<0.000000e+00> : vector<256x16xf32>
    %212 = tpu.matmul %209, %211, %cst_180 {dimension_numbers = #tpu.dot_dimension_numbers<[1], [0], [0], [1], [0, 0, 1, 1], [], []>} : vector<256x16xbf16>, vector<16x16xbf16>, vector<256x16xf32> -> vector<256x16xf32>
    %213 = arith.addf %206, %212 : vector<256x16xf32>
    %214 = vector.extract_strided_slice %207 {offsets = [1, 0, 0], sizes = [16, 16, 16], strides = [1, 1, 1]} : vector<18x16x16xbf16> to vector<16x16x16xbf16>
    %215 = vector.shape_cast %214 : vector<16x16x16xbf16> to vector<256x16xbf16>
    %c3_181 = arith.constant 3 : index
    %c0_182 = arith.constant 0 : index
    %c0_183 = arith.constant 0 : index
    %216 = vector.load %arg8[%c3_181, %c0_182, %c0_183] : memref<9x16x16xbf16, #tpu.memory_space<vmem>>, vector<1x16x16xbf16>
    %217 = vector.shape_cast %216 : vector<1x16x16xbf16> to vector<16x16xbf16>
    %cst_184 = arith.constant dense<0.000000e+00> : vector<256x16xf32>
    %218 = tpu.matmul %215, %217, %cst_184 {dimension_numbers = #tpu.dot_dimension_numbers<[1], [0], [0], [1], [0, 0, 1, 1], [], []>} : vector<256x16xbf16>, vector<16x16xbf16>, vector<256x16xf32> -> vector<256x16xf32>
    %219 = arith.addf %213, %218 : vector<256x16xf32>
    %220 = vector.extract_strided_slice %207 {offsets = [2, 0, 0], sizes = [16, 16, 16], strides = [1, 1, 1]} : vector<18x16x16xbf16> to vector<16x16x16xbf16>
    %221 = vector.shape_cast %220 : vector<16x16x16xbf16> to vector<256x16xbf16>
    %c6_185 = arith.constant 6 : index
    %c0_186 = arith.constant 0 : index
    %c0_187 = arith.constant 0 : index
    %222 = vector.load %arg8[%c6_185, %c0_186, %c0_187] : memref<9x16x16xbf16, #tpu.memory_space<vmem>>, vector<1x16x16xbf16>
    %223 = vector.shape_cast %222 : vector<1x16x16xbf16> to vector<16x16xbf16>
    %cst_188 = arith.constant dense<0.000000e+00> : vector<256x16xf32>
    %224 = tpu.matmul %221, %223, %cst_188 {dimension_numbers = #tpu.dot_dimension_numbers<[1], [0], [0], [1], [0, 0, 1, 1], [], []>} : vector<256x16xbf16>, vector<16x16xbf16>, vector<256x16xf32> -> vector<256x16xf32>
    %225 = arith.addf %219, %224 : vector<256x16xf32>
    %c0_189 = arith.constant 0 : index
    %c1_190 = arith.constant 1 : index
    %c0_191 = arith.constant 0 : index
    %226 = vector.load %arg14[%c0_189, %c1_190, %c0_191] : memref<18x18x16xbf16, #tpu.memory_space<vmem>>, vector<18x16x16xbf16>
    %227 = vector.extract_strided_slice %226 {offsets = [0, 0, 0], sizes = [16, 16, 16], strides = [1, 1, 1]} : vector<18x16x16xbf16> to vector<16x16x16xbf16>
    %228 = vector.shape_cast %227 : vector<16x16x16xbf16> to vector<256x16xbf16>
    %c1_192 = arith.constant 1 : index
    %c0_193 = arith.constant 0 : index
    %c0_194 = arith.constant 0 : index
    %229 = vector.load %arg8[%c1_192, %c0_193, %c0_194] : memref<9x16x16xbf16, #tpu.memory_space<vmem>>, vector<1x16x16xbf16>
    %230 = vector.shape_cast %229 : vector<1x16x16xbf16> to vector<16x16xbf16>
    %cst_195 = arith.constant dense<0.000000e+00> : vector<256x16xf32>
    %231 = tpu.matmul %228, %230, %cst_195 {dimension_numbers = #tpu.dot_dimension_numbers<[1], [0], [0], [1], [0, 0, 1, 1], [], []>} : vector<256x16xbf16>, vector<16x16xbf16>, vector<256x16xf32> -> vector<256x16xf32>
    %232 = arith.addf %225, %231 : vector<256x16xf32>
    %233 = vector.extract_strided_slice %226 {offsets = [1, 0, 0], sizes = [16, 16, 16], strides = [1, 1, 1]} : vector<18x16x16xbf16> to vector<16x16x16xbf16>
    %234 = vector.shape_cast %233 : vector<16x16x16xbf16> to vector<256x16xbf16>
    %c4_196 = arith.constant 4 : index
    %c0_197 = arith.constant 0 : index
    %c0_198 = arith.constant 0 : index
    %235 = vector.load %arg8[%c4_196, %c0_197, %c0_198] : memref<9x16x16xbf16, #tpu.memory_space<vmem>>, vector<1x16x16xbf16>
    %236 = vector.shape_cast %235 : vector<1x16x16xbf16> to vector<16x16xbf16>
    %cst_199 = arith.constant dense<0.000000e+00> : vector<256x16xf32>
    %237 = tpu.matmul %234, %236, %cst_199 {dimension_numbers = #tpu.dot_dimension_numbers<[1], [0], [0], [1], [0, 0, 1, 1], [], []>} : vector<256x16xbf16>, vector<16x16xbf16>, vector<256x16xf32> -> vector<256x16xf32>
    %238 = arith.addf %232, %237 : vector<256x16xf32>
    %239 = vector.extract_strided_slice %226 {offsets = [2, 0, 0], sizes = [16, 16, 16], strides = [1, 1, 1]} : vector<18x16x16xbf16> to vector<16x16x16xbf16>
    %240 = vector.shape_cast %239 : vector<16x16x16xbf16> to vector<256x16xbf16>
    %c7_200 = arith.constant 7 : index
    %c0_201 = arith.constant 0 : index
    %c0_202 = arith.constant 0 : index
    %241 = vector.load %arg8[%c7_200, %c0_201, %c0_202] : memref<9x16x16xbf16, #tpu.memory_space<vmem>>, vector<1x16x16xbf16>
    %242 = vector.shape_cast %241 : vector<1x16x16xbf16> to vector<16x16xbf16>
    %cst_203 = arith.constant dense<0.000000e+00> : vector<256x16xf32>
    %243 = tpu.matmul %240, %242, %cst_203 {dimension_numbers = #tpu.dot_dimension_numbers<[1], [0], [0], [1], [0, 0, 1, 1], [], []>} : vector<256x16xbf16>, vector<16x16xbf16>, vector<256x16xf32> -> vector<256x16xf32>
    %244 = arith.addf %238, %243 : vector<256x16xf32>
    %c0_204 = arith.constant 0 : index
    %c2_205 = arith.constant 2 : index
    %c0_206 = arith.constant 0 : index
    %245 = vector.load %arg14[%c0_204, %c2_205, %c0_206] : memref<18x18x16xbf16, #tpu.memory_space<vmem>>, vector<18x16x16xbf16>
    %246 = vector.extract_strided_slice %245 {offsets = [0, 0, 0], sizes = [16, 16, 16], strides = [1, 1, 1]} : vector<18x16x16xbf16> to vector<16x16x16xbf16>
    %247 = vector.shape_cast %246 : vector<16x16x16xbf16> to vector<256x16xbf16>
    %c2_207 = arith.constant 2 : index
    %c0_208 = arith.constant 0 : index
    %c0_209 = arith.constant 0 : index
    %248 = vector.load %arg8[%c2_207, %c0_208, %c0_209] : memref<9x16x16xbf16, #tpu.memory_space<vmem>>, vector<1x16x16xbf16>
    %249 = vector.shape_cast %248 : vector<1x16x16xbf16> to vector<16x16xbf16>
    %cst_210 = arith.constant dense<0.000000e+00> : vector<256x16xf32>
    %250 = tpu.matmul %247, %249, %cst_210 {dimension_numbers = #tpu.dot_dimension_numbers<[1], [0], [0], [1], [0, 0, 1, 1], [], []>} : vector<256x16xbf16>, vector<16x16xbf16>, vector<256x16xf32> -> vector<256x16xf32>
    %251 = arith.addf %244, %250 : vector<256x16xf32>
    %252 = vector.extract_strided_slice %245 {offsets = [1, 0, 0], sizes = [16, 16, 16], strides = [1, 1, 1]} : vector<18x16x16xbf16> to vector<16x16x16xbf16>
    %253 = vector.shape_cast %252 : vector<16x16x16xbf16> to vector<256x16xbf16>
    %c5_211 = arith.constant 5 : index
    %c0_212 = arith.constant 0 : index
    %c0_213 = arith.constant 0 : index
    %254 = vector.load %arg8[%c5_211, %c0_212, %c0_213] : memref<9x16x16xbf16, #tpu.memory_space<vmem>>, vector<1x16x16xbf16>
    %255 = vector.shape_cast %254 : vector<1x16x16xbf16> to vector<16x16xbf16>
    %cst_214 = arith.constant dense<0.000000e+00> : vector<256x16xf32>
    %256 = tpu.matmul %253, %255, %cst_214 {dimension_numbers = #tpu.dot_dimension_numbers<[1], [0], [0], [1], [0, 0, 1, 1], [], []>} : vector<256x16xbf16>, vector<16x16xbf16>, vector<256x16xf32> -> vector<256x16xf32>
    %257 = arith.addf %251, %256 : vector<256x16xf32>
    %258 = vector.extract_strided_slice %245 {offsets = [2, 0, 0], sizes = [16, 16, 16], strides = [1, 1, 1]} : vector<18x16x16xbf16> to vector<16x16x16xbf16>
    %259 = vector.shape_cast %258 : vector<16x16x16xbf16> to vector<256x16xbf16>
    %c8_215 = arith.constant 8 : index
    %c0_216 = arith.constant 0 : index
    %c0_217 = arith.constant 0 : index
    %260 = vector.load %arg8[%c8_215, %c0_216, %c0_217] : memref<9x16x16xbf16, #tpu.memory_space<vmem>>, vector<1x16x16xbf16>
    %261 = vector.shape_cast %260 : vector<1x16x16xbf16> to vector<16x16xbf16>
    %cst_218 = arith.constant dense<0.000000e+00> : vector<256x16xf32>
    %262 = tpu.matmul %259, %261, %cst_218 {dimension_numbers = #tpu.dot_dimension_numbers<[1], [0], [0], [1], [0, 0, 1, 1], [], []>} : vector<256x16xbf16>, vector<16x16xbf16>, vector<256x16xf32> -> vector<256x16xf32>
    %263 = arith.addf %257, %262 : vector<256x16xf32>
    %c0_219 = arith.constant 0 : index
    %c0_220 = arith.constant 0 : index
    %264 = vector.load %arg9[%c0_219, %c0_220] : memref<1x16xf32, #tpu.memory_space<vmem>>, vector<1x16xf32>
    %265 = vector.shape_cast %264 : vector<1x16xf32> to vector<16xf32>
    %266 = vector.shape_cast %265 : vector<16xf32> to vector<1x16xf32>
    %267 = vector.broadcast %266 : vector<1x16xf32> to vector<256x16xf32>
    %268 = arith.mulf %263, %267 : vector<256x16xf32>
    %c0_221 = arith.constant 0 : index
    %c0_222 = arith.constant 0 : index
    %269 = vector.load %arg10[%c0_221, %c0_222] : memref<1x16xf32, #tpu.memory_space<vmem>>, vector<1x16xf32>
    %270 = vector.shape_cast %269 : vector<1x16xf32> to vector<16xf32>
    %271 = vector.shape_cast %270 : vector<16xf32> to vector<1x16xf32>
    %272 = vector.broadcast %271 : vector<1x16xf32> to vector<256x16xf32>
    %273 = arith.addf %268, %272 : vector<256x16xf32>
    %cst_223 = arith.constant 0.000000e+00 : f32
    %274 = vector.broadcast %cst_223 : f32 to vector<256x16xf32>
    %275 = arith.maximumf %273, %274 : vector<256x16xf32>
    %276 = vector.shape_cast %275 : vector<256x16xf32> to vector<16x16x16xf32>
    %c0_224 = arith.constant 0 : index
    %c0_225 = arith.constant 0 : index
    %c0_226 = arith.constant 0 : index
    %c0_227 = arith.constant 0 : index
    %277 = vector.load %arg11[%c0_224, %c0_225, %c0_226, %c0_227] : memref<1x16x16x16xf32, #tpu.memory_space<vmem>>, vector<1x16x16x16xf32>
    %278 = vector.shape_cast %277 : vector<1x16x16x16xf32> to vector<16x16x16xf32>
    %279 = vector.shape_cast %276 : vector<16x16x16xf32> to vector<1x16x16x16xf32>
    tpu.vector_store %arg11[%c0_224, %c0_225, %c0_226, %c0_227], %279 {strides = array<i32>} : memref<1x16x16x16xf32, #tpu.memory_space<vmem>>, vector<1x16x16x16xf32>,
    return
  }
  func.func @transform_0(%arg0: i32) -> (i32, i32, i32, i32) {
    %c0_i32 = arith.constant 0 : i32
    %c0_i32_0 = arith.constant 0 : i32
    %c0_i32_1 = arith.constant 0 : i32
    %c0_i32_2 = arith.constant 0 : i32
    return %arg0, %c0_i32, %c0_i32_0, %c0_i32_1 : i32, i32, i32, i32
  }
  func.func @transform_1(%arg0: i32) -> (i32, i32, i32, i32) {
    %c0_i32 = arith.constant 0 : i32
    %c0_i32_0 = arith.constant 0 : i32
    %c0_i32_1 = arith.constant 0 : i32
    %c0_i32_2 = arith.constant 0 : i32
    return %arg0, %c0_i32, %c0_i32_0, %c0_i32_1 : i32, i32, i32, i32
  }
  func.func @transform_2(%arg0: i32) -> (i32, i32, i32) {
    %c0_i32 = arith.constant 0 : i32
    %c0_i32_0 = arith.constant 0 : i32
    %c0_i32_1 = arith.constant 0 : i32
    %c0_i32_2 = arith.constant 0 : i32
    return %c0_i32, %c0_i32_0, %c0_i32_1 : i32, i32, i32
  }
  func.func @transform_3(%arg0: i32) -> (i32, i32) {
    %c0_i32 = arith.constant 0 : i32
    %c0_i32_0 = arith.constant 0 : i32
    %c0_i32_1 = arith.constant 0 : i32
    return %c0_i32, %c0_i32_0 : i32, i32
  }
  func.func @transform_4(%arg0: i32) -> (i32, i32, i32) {
    %c0_i32 = arith.constant 0 : i32
    %c0_i32_0 = arith.constant 0 : i32
    %c0_i32_1 = arith.constant 0 : i32
    %c0_i32_2 = arith.constant 0 : i32
    return %c0_i32, %c0_i32_0, %c0_i32_1 : i32, i32, i32
  }
  func.func @transform_5(%arg0: i32) -> (i32, i32) {
    %c0_i32 = arith.constant 0 : i32
    %c0_i32_0 = arith.constant 0 : i32
    %c0_i32_1 = arith.constant 0 : i32
    return %c0_i32, %c0_i32_0 : i32, i32
  }
  func.func @transform_6(%arg0: i32) -> (i32, i32) {
    %c0_i32 = arith.constant 0 : i32
    %c0_i32_0 = arith.constant 0 : i32
    %c0_i32_1 = arith.constant 0 : i32
    return %c0_i32, %c0_i32_0 : i32, i32
  }
  func.func @transform_7(%arg0: i32) -> (i32, i32, i32) {
    %c0_i32 = arith.constant 0 : i32
    %c0_i32_0 = arith.constant 0 : i32
    %c0_i32_1 = arith.constant 0 : i32
    %c0_i32_2 = arith.constant 0 : i32
    return %c0_i32, %c0_i32_0, %c0_i32_1 : i32, i32, i32
  }
  func.func @transform_8(%arg0: i32) -> (i32, i32) {
    %c0_i32 = arith.constant 0 : i32
    %c0_i32_0 = arith.constant 0 : i32
    %c0_i32_1 = arith.constant 0 : i32
    return %c0_i32, %c0_i32_0 : i32, i32
  }
  func.func @transform_9(%arg0: i32) -> (i32, i32) {
    %c0_i32 = arith.constant 0 : i32
    %c0_i32_0 = arith.constant 0 : i32
    %c0_i32_1 = arith.constant 0 : i32
    return %c0_i32, %c0_i32_0 : i32, i32
  }
  func.func @transform_10(%arg0: i32) -> (i32, i32, i32, i32) {
    %c0_i32 = arith.constant 0 : i32
    %c0_i32_0 = arith.constant 0 : i32
    %c0_i32_1 = arith.constant 0 : i32
    %c0_i32_2 = arith.constant 0 : i32
    return %arg0, %c0_i32, %c0_i32_0, %c0_i32_1 : i32, i32, i32, i32
  }
}

</mosaic_0001>

<bundles_post_ra>
// kernel: _lambda_.1
= control target key start
LH: loop header
LB: loop body
LE: loop exit
PB: predicated region body
PF: predicated region fallthrough
CT: control target
= control target key end

     0   :  { %s15491_s13 = smov 0   ;;  %s19922_s0 = inlined_call_operand.vmem [shape: f32[2,8,8,16], index: 0, kind: input, shape index: {}]   ;;  %s19923_s1 = inlined_call_operand.vmem [shape: f32[2,16,16,8], index: 1, kind: input, shape index: {}]   ;;  %s19924_s2 = inlined_call_operand.vmem [shape: bf16[9,16,8], index: 2, kind: input, shape index: {}]   ;;  %s19925_s3 = inlined_call_operand.vmem [shape: f32[1,8], index: 3, kind: input, shape index: {}]   ;;  %s19926_s4 = inlined_call_operand.vmem [shape: bf16[9,16,16], index: 4, kind: input, shape index: {}]   ;;  %s19927_s5 = inlined_call_operand.vmem [shape: f32[1,16], index: 5, kind: input, shape index: {}]   ;;  %s19928_s6 = inlined_call_operand.vmem [shape: f32[1,16], index: 6, kind: input, shape index: {}]   ;;  %s19929_s7 = inlined_call_operand.vmem [shape: bf16[9,16,16], index: 7, kind: input, shape index: {}]   ;;  %s19930_s8 = inlined_call_operand.vmem [shape: f32[1,16], index: 8, kind: input, shape index: {}]   ;;  %s19931_s9 = inlined_call_operand.vmem [shape: f32[1,16], index: 9, kind: input, shape index: {}]   ;;  %s19932_s10 = inlined_call_operand.vmem [shape: f32[2,16,16,16], index: 10, kind: output, shape index: {}]  }
   0x1 LB: > { %s12202_s14 = sadd.s32 4294967295, %s15432_s13   ;;  %p12206_p0 = scmp.ge.s32.totalorder %s15432_s13, 1  ;;  %s15432_s13 = sphi %s15491_s13, %s20_s13  }
   0x2   : > { %p322_p1 = scmp.lt.s32.totalorder %s15432_s13, 3 }
   0x4   : > { %p323_p2 = pnand %p12206_p0, %p322_p1 }
   0x6   : > { %326 = sbr.rel (%p323_p2) target bundleno = 2211 (0x8a3), region = 60 }
   0xd   : > { %v15311_v0 = vld [vmem:[%s19924_s2 + $0x18] sm:$0xff]   ;;  %p365_p3 = scmp.lt.s32.totalorder %s12202_s14, 1  ;;  %v752_v1 = vlaneseq  ;;  %vm384_vm0 = vcmask 122880   ;;  %vm391_vm1 = vsmask.f32 256  ;;  %v20002_v3 = vmov 0 }
   0xe   : > { %v396_v2 = vld [vmem:[#allocation2 + $0xc] sm:$0x1]  ;;  %13613 = vmatprep.subr.bf16.mxu1 %v15311_v0  ;;  %vm15506_vm2 = vmand %vm384_vm0, %vm391_vm1  ;;  %v15314_v6 = vld [vmem:[%s19924_s2 + $0x20] sm:$0xff]   ;;  %vm807_vm3 = vsmask.f32 1282  ;;  %vm806_vm4 = vcmask 123904  }
   0xf   : > { %s20167_s14 = smov (!%p365_p3, %s12202_s14), 1  ;;  %v20003_v3 = vsel %vm15506_vm2, 4294967295, %v20002_v3  ;;  %13614 = vmatpush3.bf16.msra.mxu1 %v15311_v0  ;;  %v397_v4 = vsel %vm15506_vm2, 0, %v396_v2  ;;  %v753_v5 = vshrl.u32 %v752_v1, 7  ;;  %v399_v8 = vld [vmem:[#allocation2 + $0x18] sm:$0x1]  ;;  %13749 = vmatprep.subr.bf16.mxu0 %v15314_v6  ;;  %vm15534_vm6 = vmand %vm806_vm4, %vm807_vm3 }
  0x10   : > { %20004 = vst [vmem:[#allocation5_spill] sm:$0xff] %v20003_v3  ;;  %s13055_s17 = sshll.u32 %s20167_s14, 6  ;;  %398 = vst [vmem:[#allocation2 + $0xc] sm:$0x1] %v397_v4  ;;  %v400_v11 = vsel %vm15506_vm2, 0, %v399_v8  ;;  %13750 = vmatpush3.bf16.msra.mxu0 %v15314_v6  ;;  %v15549_v27 = vld [vmem:[%s19924_s2] sm:$0xff]  }
  0x11   : > { %s15516_s20 = scalar_lea.vmem %s19922_s0, %s13055_s17  ;;  %v15522_v10 = vsub.s32 0, %v753_v5  ;;  %v15527_v13 = vsub.s32 1, %v753_v5  ;;  %401 = vst [vmem:[#allocation2 + $0x18] sm:$0x1] %v400_v11  ;;  %v402_v14 = vld [vmem:[#allocation2 + $0x24] sm:$0x1]  ;;  %13647 = vmatprep.subr.bf16.mxu1 %v15549_v27 }
  0x12   : > { %v733_v7 = vld [vmem:[%s15516_s20] sm:$0xff]  ;;  %v734_v12 = vld [vmem:[%s15516_s20 + $0x8] sm:$0xff]  ;;  %v403_v18 = vsel %vm15506_vm2, 0, %v402_v14  ;;  %v405_v19 = vld [vmem:[#allocation2 + $0x30] sm:$0x1]  ;;  %v15551_v28 = vsub.s32 2, %v753_v5 }
  0x13   : > { %v741_v9 = vpack.c.bf16 %v733_v7, %v733_v7  ;;  %v742_v15 = vpack.c.bf16 %v734_v12, %v734_v12  ;;  %vm447_vm5 = vsmask.f32 7938  ;;  %404 = vst [vmem:[#allocation2 + $0x24] sm:$0x1] %v403_v18  ;;  %v406_v23 = vsel %vm15506_vm2, 0, %v405_v19  ;;  %v15318_v30 = vld [vmem:[%s19924_s2 + $0x38] sm:$0xff]  }
  0x14   : > { %vm914_vm7 = vsmask.f32 2310  ;;  %407 = vst [vmem:[#allocation2 + $0x30] sm:$0x1] %v406_v23  ;;  %vm913_vm8 = vcmask 124929   ;;  %v15562_v34 = vsub.s32 3, %v753_v5  ;;  %vm15567_vm9 = vmand %vm384_vm0, %vm447_vm5  ;;  %13783 = vmatprep.subr.bf16.mxu0 %v15318_v30 }
  0x15   : > { %v15529_v16 = vpack.i.b16 %v741_v9, %v741_v9  ;;  %v857_v17 = vshrl.u32 %v741_v9, 16  ;;  %v15538_v21 = vpack.i.b16 %v742_v15, %v742_v15  ;;  %v864_v22 = vshrl.u32 %v742_v15, 16  ;;  %v1117_v33 = vld [vmem:[#allocation2 + $0x10] sm:$0x1]  ;;  %v452_v36 = vld [vmem:[#allocation2 + $0x14] sm:$0x1]  ;;  %vm15615_vm12 = vmand %vm913_vm8, %vm914_vm7 }
  0x16   : > { %v20007_v35 = vmov 0  ;;  %vm996_vm10 = vcmask 125954   ;;  %vm997_vm11 = vsmask.f32 3338  ;;  %v1123_v37 = vld [vmem:[#allocation2 + $0x1c] sm:$0x1] }
  0x17   : > { %v755_v24 = vrot.slane %v15529_v16, %v15522_v10  ;;  %v809_v25 = vld [vmem:[#allocation2 + $0xc] sm:$0x3]  ;;  %v15544_v26 = vpack.i.b16 %v857_v17, %v857_v17  ;;  %v15553_v29 = vpack.i.b16 %v864_v22, %v864_v22  ;;  %v20008_v35 = vsel %vm15567_vm9, 4294967295, %v20007_v35  ;;  %v1129_v40 = vld [vmem:[#allocation2 + $0x28] sm:$0x1]  ;;  %v735_v50 = vld [vmem:[%s15516_s20 + $0x10] sm:$0xff] }
  0x18   : > { %20009 = vst [vmem:[#allocation6_spill] sm:$0xff] %v20008_v35  ;;  %v762_v38 = vrot.slane %v15538_v21, %v15522_v10  ;;  %v1135_v41 = vld [vmem:[#allocation2 + $0x34] sm:$0x1]  ;;  %v812_v43 = vld [vmem:[#allocation2 + $0x18] sm:$0x3]  ;;  %v15579_v46 = vrot.slane %v15529_v16, %v15551_v28  ;;  %v453_v49 = vsel %vm15567_vm9, 0, %v452_v36  ;;  %v15621_v5 = vrot.slane %v15538_v21, %v15551_v28  ;;  %vm15670_vm13 = vmand %vm996_vm10, %vm997_vm11 }
  0x19   : > { %v810_v31 = vsel %vm15534_vm6, %v755_v24, %v809_v25  ;;  %v1050_v32 = vrot.slane %v15544_v26, %v15527_v13  ;;  %v1054_v39 = vrot.slane %v15553_v29, %v15527_v13  ;;  %v455_v44 = vld [vmem:[#allocation2 + $0x20] sm:$0x1]  ;;  %v408_v45 = vld [vmem:[#allocation2 + $0x3c] sm:$0x1]  ;;  %v813_v47 = vsel %vm15534_vm6, %v755_v24, %v812_v43  ;;  %v411_v51 = vld [vmem:[#allocation2 + $0x48] sm:$0x1] }
  0x1a   : > { %811 = vst [vmem:[#allocation2 + $0xc] sm:$0x3] %v810_v31  ;;  %v458_v52 = vld [vmem:[#allocation2 + $0x2c] sm:$0x1]  ;;  %v15590_v53 = vrot.slane %v15544_v26, %v15522_v10  ;;  %v1453_v55 = vrot.slane %v15544_v26, %v15562_v34  ;;  %814 = vst [vmem:[#allocation2 + $0x18] sm:$0x3] %v813_v47  ;;  %v15604_v61 = vrot.slane %v15553_v29, %v15522_v10 }
  0x1b   : > { %v15575_v42 = vcombine.low %v1050_v32, %v1050_v32  ;;  %v15583_v48 = vcombine.low %v1054_v39, %v1054_v39  ;;  %v815_v57 = vld [vmem:[#allocation2 + $0x24] sm:$0x3]  ;;  %454 = vst [vmem:[#allocation2 + $0x14] sm:$0x1] %v453_v49  ;;  %v461_v58 = vld [vmem:[#allocation2 + $0x38] sm:$0x1]  ;;  %v743_v11 = vpack.c.bf16 %v735_v50, %v735_v50 }
  0x1c   : > { %v414_v59 = vld [vmem:[#allocation2 + $0x54] sm:$0x1]  ;;  %v816_v60 = vsel %vm15534_vm6, %v762_v38, %v815_v57  ;;  %v818_v63 = vld [vmem:[#allocation2 + $0x30] sm:$0x3]  ;;  %v736_v1 = vld [vmem:[%s15516_s20 + $0x18] sm:$0xff]  ;;  %v456_v7 = vsel %vm15567_vm9, 0, %v455_v44  ;;  %v15650_v36 = vcombine.low %v1453_v55, %v1453_v55 }
  0x1d   : > { %v1118_v54 = vsel %vm15506_vm2, %v15575_v42, %v1117_v33  ;;  %v1124_v56 = vsel %vm15506_vm2, %v15575_v42, %v1123_v37  ;;  %v1130_v62 = vsel %vm15506_vm2, %v15583_v48, %v1129_v40  ;;  %v1136_v0 = vsel %vm15506_vm2, %v15583_v48, %v1135_v41  ;;  %v417_v2 = vld [vmem:[#allocation2 + $0x60] sm:$0x1]  ;;  %817 = vst [vmem:[#allocation2 + $0x24] sm:$0x3] %v816_v60  ;;  %v464_v9 = vld [vmem:[#allocation2 + $0x44] sm:$0x1] }
  0x1e   : > { %1119 = vst [vmem:[#allocation2 + $0x10] sm:$0x1] %v1118_v54  ;;  %1125 = vst [vmem:[#allocation2 + $0x1c] sm:$0x1] %v1124_v56  ;;  %v819_v6 = vsel %vm15534_vm6, %v762_v38, %v818_v63  ;;  %v409_v8 = vsel %vm15506_vm2, 0, %v408_v45  ;;  %v412_v12 = vsel %vm15506_vm2, 0, %v411_v51  ;;  %v15637_v22 = vpack.c.bf16 %v736_v1, %v736_v1 }
  0x1f   : > { %1131 = vst [vmem:[#allocation2 + $0x28] sm:$0x1] %v1130_v62  ;;  %1137 = vst [vmem:[#allocation2 + $0x34] sm:$0x1] %v1136_v0  ;;  %v459_v14 = vsel %vm15567_vm9, 0, %v458_v52  ;;  %v462_v15 = vsel %vm15567_vm9, 0, %v461_v58  ;;  %v15646_v30 = vpack.i.b16 %v743_v11, %v743_v11  ;;  %v1457_v37 = vrot.slane %v15553_v29, %v15562_v34 }
  0x20   : > { %820 = vst [vmem:[#allocation2 + $0x30] sm:$0x3] %v819_v6  ;;  %457 = vst [vmem:[#allocation2 + $0x20] sm:$0x1] %v456_v7  ;;  %v467_v17 = vld [vmem:[#allocation2 + $0x50] sm:$0x1]  ;;  %v15656_v38 = vpack.i.b16 %v15637_v22, %v15637_v22  ;;  %v15666_v45 = vrot.slane %v15529_v16, %v15527_v13 }
  0x21   : > { %410 = vst [vmem:[#allocation2 + $0x3c] sm:$0x1] %v409_v8  ;;  %v916_v18 = vld [vmem:[#allocation2 + $0xc] sm:$0x6]  ;;  %413 = vst [vmem:[#allocation2 + $0x48] sm:$0x1] %v412_v12  ;;  %v769_v43 = vrot.slane %v15646_v30, %v15522_v10  ;;  %v15699_v1 = vcombine.low %v1457_v37, %v1457_v37 }
  0x22   : > { %460 = vst [vmem:[#allocation2 + $0x2c] sm:$0x1] %v459_v14  ;;  %463 = vst [vmem:[#allocation2 + $0x38] sm:$0x1] %v462_v15  ;;  %v415_v19 = vsel %vm15506_vm2, 0, %v414_v59  ;;  %v418_v23 = vsel %vm15506_vm2, 0, %v417_v2  ;;  %v917_v25 = vsel %vm15615_vm12, %v15590_v53, %v916_v18  ;;  %v15691_v63 = vrot.slane %v15656_v38, %v15522_v10 }
  0x23   : > { %v465_v24 = vsel %vm15567_vm9, 0, %v464_v9  ;;  %v871_v31 = vshrl.u32 %v743_v11, 16  ;;  %416 = vst [vmem:[#allocation2 + $0x54] sm:$0x1] %v415_v19  ;;  %419 = vst [vmem:[#allocation2 + $0x60] sm:$0x1] %v418_v23 }
  0x24   : > { %466 = vst [vmem:[#allocation2 + $0x44] sm:$0x1] %v465_v24  ;;  %v468_v32 = vsel %vm15567_vm9, 0, %v467_v17  ;;  %v420_v33 = vld [vmem:[#allocation2 + $0x6c] sm:$0x1]  ;;  %v878_v56 = vshrl.u32 %v15637_v22, 16 }
  0x25   : > { %918 = vst [vmem:[#allocation2 + $0xc] sm:$0x6] %v917_v25  ;;  %469 = vst [vmem:[#allocation2 + $0x50] sm:$0x1] %v468_v32  ;;  %v421_v39 = vsel %vm15506_vm2, 0, %v420_v33  ;;  %v15662_v44 = vpack.i.b16 %v871_v31, %v871_v31  ;;  %vm1111_vm14 = vcmask 125955  }
  0x26   : > { %v919_v40 = vld [vmem:[#allocation2 + $0x18] sm:$0x6]  ;;  %v1517_v41 = vld [vmem:[#allocation2 + $0x14] sm:$0x1]  ;;  %422 = vst [vmem:[#allocation2 + $0x6c] sm:$0x1] %v421_v39  ;;  %v15734_v39 = vpack.i.b16 %v878_v56, %v878_v56 }
  0x27   : > { %v1242_v49 = vld [vmem:[#allocation2 + $0x10] sm:$0x3]  ;;  %v920_v50 = vsel %vm15615_vm12, %v15590_v53, %v919_v40  ;;  %v1245_v51 = vld [vmem:[#allocation2 + $0x1c] sm:$0x3]  ;;  %v1518_v52 = vsel %vm15506_vm2, %v15650_v36, %v1517_v41  ;;  %v1141_v54 = vld [vmem:[#allocation2 + $0x40] sm:$0x1]  ;;  %v1058_v62 = vrot.slane %v15662_v44, %v15527_v13 }
  0x28   : > { %v1147_v55 = vld [vmem:[#allocation2 + $0x4c] sm:$0x1]  ;;  %vm1112_vm15 = vsmask.f32 7950  ;;  %v1243_v57 = vsel %vm15534_vm6, %v15579_v46, %v1242_v49  ;;  %921 = vst [vmem:[#allocation2 + $0x18] sm:$0x6] %v920_v50  ;;  %v1246_v53 = vsel %vm15534_vm6, %v15579_v46, %v1245_v51  ;;  %v1293_v49 = vrot.slane %v15544_v26, %v15551_v28 }
  0x29   : > { %v922_v58 = vld [vmem:[#allocation2 + $0x24] sm:$0x6]  ;;  %v1248_v59 = vld [vmem:[#allocation2 + $0x28] sm:$0x3]  ;;  %v1251_v60 = vld [vmem:[#allocation2 + $0x34] sm:$0x3]  ;;  %v15712_v14 = vcombine.low %v1058_v62, %v1058_v62  ;;  %v15743_v50 = vrot.slane %v15529_v16, %v15562_v34  ;;  %v1062_v16 = vrot.slane %v15734_v39, %v15527_v13 }
  0x2a   : > { %1519 = vst [vmem:[#allocation2 + $0x14] sm:$0x1] %v1518_v52  ;;  %1244 = vst [vmem:[#allocation2 + $0x10] sm:$0x3] %v1243_v57  ;;  %v923_v0 = vsel %vm15615_vm12, %v15604_v61, %v922_v58  ;;  %v1249_v46 = vsel %vm15534_vm6, %v15621_v5, %v1248_v59  ;;  %v925_v2 = vld [vmem:[#allocation2 + $0x30] sm:$0x6]  ;;  %v1252_v6 = vsel %vm15534_vm6, %v15621_v5, %v1251_v60 }
  0x2b   : > { %1247 = vst [vmem:[#allocation2 + $0x1c] sm:$0x3] %v1246_v53  ;;  %v1523_v7 = vld [vmem:[#allocation2 + $0x20] sm:$0x1]  ;;  %v821_v8 = vld [vmem:[#allocation2 + $0x3c] sm:$0x3]  ;;  %v926_v9 = vsel %vm15615_vm12, %v15604_v61, %v925_v2  ;;  %v1461_v61 = vrot.slane %v15662_v44, %v15562_v34  ;;  %v1142_v32 = vsel %vm15506_vm2, %v15712_v14, %v1141_v54  ;;  %v1148_v33 = vsel %vm15506_vm2, %v15712_v14, %v1147_v55  ;;  %vm15800_vm3 = vmand %vm1111_vm14, %vm1112_vm15 }
  0x2c   : > { %924 = vst [vmem:[#allocation2 + $0x24] sm:$0x6] %v923_v0  ;;  %1250 = vst [vmem:[#allocation2 + $0x28] sm:$0x3] %v1249_v46  ;;  %v1524_v11 = vsel %vm15506_vm2, %v15650_v36, %v1523_v7  ;;  %v822_v12 = vsel %vm15534_vm6, %v769_v43, %v821_v8  ;;  %v824_v5 = vld [vmem:[#allocation2 + $0x48] sm:$0x3]  ;;  %v971_v52 = vrot.slane %v15538_v21, %v15527_v13 }
  0x2d   : > { %1253 = vst [vmem:[#allocation2 + $0x34] sm:$0x3] %v1252_v6  ;;  %v1529_v15 = vld [vmem:[#allocation2 + $0x2c] sm:$0x1]  ;;  %v1535_v17 = vld [vmem:[#allocation2 + $0x38] sm:$0x1]  ;;  %v825_v18 = vsel %vm15534_vm6, %v769_v43, %v824_v5  ;;  %v15745_v51 = vcombine.low %v1461_v61, %v1461_v61  ;;  %v1297_v54 = vrot.slane %v15553_v29, %v15551_v28  ;;  %v15753_v55 = vrot.slane %v15538_v21, %v15562_v34 }
  0x2e   : > { %927 = vst [vmem:[#allocation2 + $0x30] sm:$0x6] %v926_v9  ;;  %1525 = vst [vmem:[#allocation2 + $0x20] sm:$0x1] %v1524_v11  ;;  %v1530_v19 = vsel %vm15506_vm2, %v15699_v1, %v1529_v15  ;;  %v1536_v22 = vsel %vm15506_vm2, %v15699_v1, %v1535_v17  ;;  %v827_v23 = vld [vmem:[#allocation2 + $0x54] sm:$0x3]  ;;  %v877_v0 = vrot.slane %v15662_v44, %v15522_v10 }
  0x2f   : > { %823 = vst [vmem:[#allocation2 + $0x3c] sm:$0x3] %v822_v12  ;;  %v830_v24 = vld [vmem:[#allocation2 + $0x60] sm:$0x3]  ;;  %v999_v31 = vld [vmem:[#allocation2 + $0xc] sm:$0xc]  ;;  %v828_v37 = vsel %vm15534_vm6, %v15691_v63, %v827_v23  ;;  %v15777_v46 = vcombine.low %v1062_v16, %v1062_v16  ;;  %v15785_v11 = vrot.slane %v15734_v39, %v15522_v10 }
  0x30   : > { %v737_v25 = vld [vmem:[%s15516_s20 + $0x20] sm:$0xff]  ;;  %826 = vst [vmem:[#allocation2 + $0x48] sm:$0x3] %v825_v18  ;;  %1531 = vst [vmem:[#allocation2 + $0x2c] sm:$0x1] %v1530_v19  ;;  %v1000_v43 = vsel %vm15670_vm13, %v15666_v45, %v999_v31  ;;  %v831_v53 = vsel %vm15534_vm6, %v15691_v63, %v830_v24  ;;  %v1221_v63 = vrot.slane %v15646_v30, %v15551_v28  ;;  %vm1737_vm4 = vcmask 130048  }
  0x31   : > { %1537 = vst [vmem:[#allocation2 + $0x38] sm:$0x1] %v1536_v22  ;;  %v1541_v40 = vld [vmem:[#allocation2 + $0x44] sm:$0x1]  ;;  %v1547_v41 = vld [vmem:[#allocation2 + $0x50] sm:$0x1]  ;;  %v15768_v29 = vpack.c.bf16 %v737_v25, %v737_v25 }
  0x32   : > { %1143 = vst [vmem:[#allocation2 + $0x40] sm:$0x1] %v1142_v32  ;;  %1149 = vst [vmem:[#allocation2 + $0x4c] sm:$0x1] %v1148_v33  ;;  %v1002_v26 = vld [vmem:[#allocation2 + $0x18] sm:$0xc]  ;;  %v1542_v58 = vsel %vm15506_vm2, %v15745_v51, %v1541_v40  ;;  %v1548_v21 = vsel %vm15506_vm2, %v15745_v51, %v1547_v41  ;;  %v15816_v41 = vrot.slane %v15646_v30, %v15527_v13 }
  0x33   : > { %829 = vst [vmem:[#allocation2 + $0x54] sm:$0x3] %v828_v37  ;;  %1001 = vst [vmem:[#allocation2 + $0xc] sm:$0xc] %v1000_v43  ;;  %v15757_v56 = vld [vmem:[#allocation2 + $0x14] sm:$0x1]  ;;  %v1003_v60 = vsel %vm15670_vm13, %v15666_v45, %v1002_v26  ;;  %v15789_v12 = vpack.i.b16 %v15768_v29, %v15768_v29 }
  0x34   : > { %v1153_v57 = vld [vmem:[#allocation2 + $0x58] sm:$0x1]  ;;  %v1322_v59 = vld [vmem:[#allocation2 + $0x10] sm:$0x6]  ;;  %v1325_v62 = vld [vmem:[#allocation2 + $0x1c] sm:$0x6] }
  0x35   : > { %832 = vst [vmem:[#allocation2 + $0x60] sm:$0x3] %v831_v53  ;;  %v1159_v2 = vld [vmem:[#allocation2 + $0x64] sm:$0x1]  ;;  %1543 = vst [vmem:[#allocation2 + $0x44] sm:$0x1] %v1542_v58  ;;  %v1323_v6 = vsel %vm15615_vm12, %v1293_v49, %v1322_v59  ;;  %v1326_v45 = vsel %vm15615_vm12, %v1293_v49, %v1325_v62  ;;  %v1154_v33 = vsel %vm15506_vm2, %v15777_v46, %v1153_v57 }
  0x36   : > { %1549 = vst [vmem:[#allocation2 + $0x50] sm:$0x1] %v1548_v21  ;;  %1004 = vst [vmem:[#allocation2 + $0x18] sm:$0xc] %v1003_v60  ;;  %v1005_v7 = vld [vmem:[#allocation2 + $0x24] sm:$0xc]  ;;  %v1160_v37 = vsel %vm15506_vm2, %v15777_v46, %v1159_v2  ;;  %v15828_v57 = vrot.slane %v15662_v44, %v15551_v28  ;;  %v15832_v53 = vrot.slane %v15646_v30, %v15562_v34 }
  0x37   : > { %v1328_v8 = vld [vmem:[#allocation2 + $0x28] sm:$0x6]  ;;  %v1331_v9 = vld [vmem:[#allocation2 + $0x34] sm:$0x6]  ;;  %v833_v5 = vld [vmem:[#allocation2 + $0x6c] sm:$0x3]  ;;  %v1006_v15 = vsel %vm15670_vm13, %v971_v52, %v1005_v7  ;;  %v1225_v7 = vrot.slane %v15656_v38, %v15551_v28 }
  0x38   : > { %1324 = vst [vmem:[#allocation2 + $0x10] sm:$0x6] %v1323_v6  ;;  %1327 = vst [vmem:[#allocation2 + $0x1c] sm:$0x6] %v1326_v45  ;;  %v1329_v17 = vsel %vm15615_vm12, %v1297_v54, %v1328_v8  ;;  %v1008_v61 = vld [vmem:[#allocation2 + $0x30] sm:$0xc]  ;;  %v1332_v18 = vsel %vm15615_vm12, %v1297_v54, %v1331_v9  ;;  %v15822_v54 = vrot.slane %v15789_v12, %v15522_v10 }
  0x39   : > { %v2433_v19 = vshll.u32 %v15757_v56, 16  ;;  %v2340_v22 = vld [vmem:[#allocation2 + $0x20] sm:$0x1]  ;;  %1007 = vst [vmem:[#allocation2 + $0x24] sm:$0xc] %v1006_v15  ;;  %v1009_v24 = vsel %vm15670_vm13, %v971_v52, %v1008_v61  ;;  %v3616_v62 = vrot.slane %v15757_v56, 5 }
  0x3a   : > { %1330 = vst [vmem:[#allocation2 + $0x28] sm:$0x6] %v1329_v17  ;;  %1333 = vst [vmem:[#allocation2 + $0x34] sm:$0x6] %v1332_v18  ;;  %v2457_v25 = vshll.u32 %v2340_v22, 16  ;;  %v834_v30 = vsel %vm15534_vm6, %v15822_v54, %v833_v5  ;;  %vm3601_vm7 = vcmask 1042432  }
  0x3b   : > { %v928_v31 = vld [vmem:[#allocation2 + $0x3c] sm:$0x6]  ;;  %v931_v32 = vld [vmem:[#allocation2 + $0x48] sm:$0x6]  ;;  %1010 = vst [vmem:[#allocation2 + $0x30] sm:$0xc] %v1009_v24 }
  0x3c   : > { %v929_v40 = vsel %vm15615_vm12, %v877_v0, %v928_v31  ;;  %v1254_v43 = vld [vmem:[#allocation2 + $0x40] sm:$0x3]  ;;  %v932_v49 = vsel %vm15615_vm12, %v877_v0, %v931_v32  ;;  %v1257_v52 = vld [vmem:[#allocation2 + $0x4c] sm:$0x3]  ;;  %1155 = vst [vmem:[#allocation2 + $0x58] sm:$0x1] %v1154_v33 }
  0x3d   : > { %1161 = vst [vmem:[#allocation2 + $0x64] sm:$0x1] %v1160_v37  ;;  %v1114_v16 = vld [vmem:[#allocation2 + $0xc] sm:$0x8]  ;;  %930 = vst [vmem:[#allocation2 + $0x3c] sm:$0x6] %v929_v40  ;;  %v1255_v26 = vsel %vm15534_vm6, %v1221_v63, %v1254_v43  ;;  %v1258_v58 = vsel %vm15534_vm6, %v1221_v63, %v1257_v52  ;;  %v15886_v43 = vrot.slane %v15734_v39, %v15551_v28 }
  0x3e   : > { %933 = vst [vmem:[#allocation2 + $0x48] sm:$0x6] %v932_v49  ;;  %v15836_v21 = vld [vmem:[#allocation2 + $0x2c] sm:$0x1]  ;;  %v15838_v59 = vld [vmem:[#allocation2 + $0x38] sm:$0x1]  ;;  %v1115_v60 = vsel %vm15800_vm3, %v15575_v42, %v1114_v16 }
  0x3f   : > { %1256 = vst [vmem:[#allocation2 + $0x40] sm:$0x3] %v1255_v26  ;;  %1259 = vst [vmem:[#allocation2 + $0x4c] sm:$0x3] %v1258_v58  ;;  %v934_v44 = vld [vmem:[#allocation2 + $0x54] sm:$0x6] }
  0x40   : > { %v885_v0 = vshrl.u32 %v15768_v29, 16  ;;  %v423_v63 = vld [vmem:[#allocation2 + $0x78] sm:$0x1]  ;;  %1116 = vst [vmem:[#allocation2 + $0xc] sm:$0x8] %v1115_v60  ;;  %v15848_v2 = vrot.slane %v2433_v19, 5  ;;  %v935_v45 = vsel %vm15615_vm12, %v15785_v11, %v934_v44 }
  0x41   : > { %v15850_v6 = vrot.slane %v2457_v25, 5  ;;  %v937_v8 = vld [vmem:[#allocation2 + $0x60] sm:$0x6]  ;;  %v15857_v9 = vld [vmem:[#allocation2 + $0x44] sm:$0x1]  ;;  %v2481_v29 = vshll.u32 %v15836_v21, 16  ;;  %v15873_v25 = vrot.slane %v15656_v38, %v15527_v13 }
  0x42   : > { %835 = vst [vmem:[#allocation2 + $0x6c] sm:$0x3] %v834_v30  ;;  %v1120_v5 = vld [vmem:[#allocation2 + $0x18] sm:$0x8]  ;;  %v2505_v15 = vshll.u32 %v15838_v59, 16  ;;  %v938_v17 = vsel %vm15615_vm12, %v15785_v11, %v937_v8  ;;  %v15866_v18 = vpack.i.b16 %v885_v0, %v885_v0  ;;  %v2529_v31 = vshll.u32 %v15857_v9, 16 }
  0x43   : > { %936 = vst [vmem:[#allocation2 + $0x54] sm:$0x6] %v935_v45  ;;  %v15864_v61 = vld [vmem:[#allocation2 + $0x50] sm:$0x1]  ;;  %v1402_v19 = vld [vmem:[#allocation2 + $0x10] sm:$0xc]  ;;  %v1121_v22 = vsel %vm15800_vm3, %v15575_v42, %v1120_v5  ;;  %v1465_v59 = vrot.slane %v15734_v39, %v15562_v34 }
  0x44   : > { %v1405_v24 = vld [vmem:[#allocation2 + $0x1c] sm:$0xc]  ;;  %939 = vst [vmem:[#allocation2 + $0x60] sm:$0x6] %v938_v17  ;;  %v424_v11 = vsel %vm15506_vm2, 0, %v423_v63  ;;  %v1403_v32 = vsel %vm15670_vm13, %v15743_v50, %v1402_v19  ;;  %v1066_v49 = vrot.slane %v15866_v18, %v15527_v13  ;;  %v2553_v8 = vshll.u32 %v15864_v61, 16 }
  0x45   : > { %1122 = vst [vmem:[#allocation2 + $0x18] sm:$0x8] %v1121_v22  ;;  %v1406_v42 = vsel %vm15670_vm13, %v15743_v50, %v1405_v24  ;;  %v1126_v33 = vld [vmem:[#allocation2 + $0x24] sm:$0x8]  ;;  %v1408_v37 = vld [vmem:[#allocation2 + $0x28] sm:$0xc]  ;;  %v15917_v17 = vrot.slane %v15866_v18, %v15522_v10 }
  0x46   : > { %v1411_v40 = vld [vmem:[#allocation2 + $0x34] sm:$0xc]  ;;  %v1165_v52 = vld [vmem:[#allocation2 + $0x70] sm:$0x1]  ;;  %425 = vst [vmem:[#allocation2 + $0x78] sm:$0x1] %v424_v11  ;;  %v1127_v16 = vsel %vm15800_vm3, %v15583_v48, %v1126_v33  ;;  %v1409_v50 = vsel %vm15670_vm13, %v15753_v55, %v1408_v37 }
  0x47   : > { %1404 = vst [vmem:[#allocation2 + $0x10] sm:$0xc] %v1403_v32  ;;  %1407 = vst [vmem:[#allocation2 + $0x1c] sm:$0xc] %v1406_v42  ;;  %v1132_v26 = vld [vmem:[#allocation2 + $0x30] sm:$0x8]  ;;  %v1412_v58 = vsel %vm15670_vm13, %v15753_v55, %v1411_v40 }
  0x48   : > { %v1260_v21 = vld [vmem:[#allocation2 + $0x58] sm:$0x3]  ;;  %v1263_v60 = vld [vmem:[#allocation2 + $0x64] sm:$0x3]  ;;  %v1171_v44 = vld [vmem:[#allocation2 + $0x7c] sm:$0x1]  ;;  %v1133_v30 = vsel %vm15800_vm3, %v15583_v48, %v1132_v26 }
  0x49   : > { %1128 = vst [vmem:[#allocation2 + $0x24] sm:$0x8] %v1127_v16  ;;  %1410 = vst [vmem:[#allocation2 + $0x28] sm:$0xc] %v1409_v50  ;;  %v1011_v0 = vld [vmem:[#allocation2 + $0x3c] sm:$0xc]  ;;  %v1261_v45 = vsel %vm15534_vm6, %v1225_v7, %v1260_v21  ;;  %v1264_v55 = vsel %vm15534_vm6, %v1225_v7, %v1263_v60  ;;  %v15919_v7 = vcombine.low %v1066_v49, %v1066_v49 }
  0x4a   : > { %1413 = vst [vmem:[#allocation2 + $0x34] sm:$0xc] %v1412_v58  ;;  %v1014_v63 = vld [vmem:[#allocation2 + $0x48] sm:$0xc]  ;;  %1134 = vst [vmem:[#allocation2 + $0x30] sm:$0x8] %v1133_v30  ;;  %v1012_v39 = vsel %vm15670_vm13, %v15816_v41, %v1011_v0 }
  0x4b   : > { %v1334_v9 = vld [vmem:[#allocation2 + $0x40] sm:$0x6]  ;;  %v1015_v48 = vsel %vm15670_vm13, %v15816_v41, %v1014_v63  ;;  %v1337_v5 = vld [vmem:[#allocation2 + $0x4c] sm:$0x6]  ;;  %1262 = vst [vmem:[#allocation2 + $0x58] sm:$0x3] %v1261_v45  ;;  %v1166_v40 = vsel %vm15506_vm2, %v15919_v7, %v1165_v52 }
  0x4c   : > { %1265 = vst [vmem:[#allocation2 + $0x64] sm:$0x3] %v1264_v55  ;;  %v470_v61 = vld [vmem:[#allocation2 + $0x5c] sm:$0x1]  ;;  %v2335_v19 = vld [vmem:[#allocation2 + $0xc] sm:$0xf]  ;;  %v1335_v22 = vsel %vm15615_vm12, %v15828_v57, %v1334_v9  ;;  %v1338_v41 = vsel %vm15615_vm12, %v15828_v57, %v1337_v5  ;;  %v15957_v55 = vrot.slane %v15656_v38, %v15562_v34  ;;  %v15969_v38 = vrot.slane %v15789_v12, %v15527_v13 }
  0x4d   : > { %1013 = vst [vmem:[#allocation2 + $0x3c] sm:$0xc] %v1012_v39  ;;  %1016 = vst [vmem:[#allocation2 + $0x48] sm:$0xc] %v1015_v48  ;;  %v15927_v24 = vrot.slane %v2481_v29, 5  ;;  %v15929_v11 = vrot.slane %v2505_v15, 5 }
  0x4e   : > { %v2414_v32 = vshrl.u32 %v2335_v19, 16  ;;  %v2417_v42 = vshll.u32 %v2335_v19, 16  ;;  %1336 = vst [vmem:[#allocation2 + $0x40] sm:$0x6] %v1335_v22  ;;  %1339 = vst [vmem:[#allocation2 + $0x4c] sm:$0x6] %v1338_v41 }
  0x4f   : > { %v1017_v33 = vld [vmem:[#allocation2 + $0x54] sm:$0xc]  ;;  %v15931_v37 = vrot.slane %v2529_v31, 5  ;;  %v15936_v49 = vld [vmem:[#allocation2 + $0xc] sm:$0xe]  ;;  %v15941_v15 = vrot.slane %v2553_v8, 5  ;;  %v1172_v31 = vsel %vm15506_vm2, %v15919_v7, %v1171_v44  ;;  %v15959_v8 = vcombine.low %v1465_v59, %v1465_v59 }
  0x50   : > { %v1018_v57 = vsel %vm15670_vm13, %v15873_v25, %v1017_v33  ;;  %v1020_v29 = vld [vmem:[#allocation2 + $0x60] sm:$0xc]  ;;  %v940_v16 = vld [vmem:[#allocation2 + $0x6c] sm:$0x6]  ;;  %1167 = vst [vmem:[#allocation2 + $0x70] sm:$0x1] %v1166_v40 }
  0x51   : > { %v471_v50 = vsel %vm15567_vm9, 0, %v470_v61  ;;  %v738_v26 = vld [vmem:[%s15516_s20 + $0x28] sm:$0xff]  ;;  %v2416_v52 = vrot.slane %v2414_v32, 4  ;;  %v2419_v58 = vrot.slane %v2417_v42, 5  ;;  %v2338_v21 = vld [vmem:[#allocation2 + $0x18] sm:$0xf]  ;;  %v1021_v60 = vsel %vm15670_vm13, %v15873_v25, %v1020_v29 }
  0x52   : > { %1019 = vst [vmem:[#allocation2 + $0x54] sm:$0xc] %v1018_v57  ;;  %v941_v30 = vsel %vm15615_vm12, %v15917_v17, %v940_v16  ;;  %1173 = vst [vmem:[#allocation2 + $0x7c] sm:$0x1] %v1172_v31  ;;  %v1514_v0 = vld [vmem:[#allocation2 + $0x10] sm:$0x8]  ;;  %v15980_v57 = vrot.slane %v15789_v12, %v15551_v28  ;;  %v15982_v29 = vpack.c.bf16 %v738_v26, %v738_v26 }
  0x53   : > { %472 = vst [vmem:[#allocation2 + $0x5c] sm:$0x1] %v471_v50  ;;  %v1520_v44 = vld [vmem:[#allocation2 + $0x1c] sm:$0x8]  ;;  %vm3602_vm8 = vcmask 1046532   ;;  %v2438_v63 = vshrl.u32 %v2338_v21, 16  ;;  %v1515_v39 = vsel %vm15800_vm3, %v15650_v36, %v1514_v0  ;;  %v2420_v61 = vor.u32 %v2419_v58, %v2416_v52 }
  0x54   : > { %v2441_v45 = vshll.u32 %v2338_v21, 16  ;;  %1022 = vst [vmem:[#allocation2 + $0x60] sm:$0xc] %v1021_v60  ;;  %942 = vst [vmem:[#allocation2 + $0x6c] sm:$0x6] %v941_v30  ;;  %v1521_v9 = vsel %vm15800_vm3, %v15650_v36, %v1520_v44  ;;  %v12378_v32 = vrot.slane %v15936_v49, 9 }
  0x55   : > { %v473_v25 = vld [vmem:[#allocation2 + $0x68] sm:$0x1]  ;;  %v1526_v48 = vld [vmem:[#allocation2 + $0x28] sm:$0x8]  ;;  %v1532_v5 = vld [vmem:[#allocation2 + $0x34] sm:$0x8] }
  0x56   : > { %1516 = vst [vmem:[#allocation2 + $0x10] sm:$0x8] %v1515_v39  ;;  %1522 = vst [vmem:[#allocation2 + $0x1c] sm:$0x8] %v1521_v9  ;;  %v1527_v59 = vsel %vm15800_vm3, %v15699_v1, %v1526_v48  ;;  %v1533_v19 = vsel %vm15800_vm3, %v15699_v1, %v1532_v5  ;;  %vm2386_vm10 = vsmask.f32 3328 }
  0x57   : > { %vm2387_vm11 = vsmask.f32 7440  ;;  %v2440_v36 = vrot.slane %v2438_v63, 4  ;;  %v2443_v22 = vrot.slane %v2441_v45, 5  ;;  %v2341_v41 = vld [vmem:[#allocation2 + $0x24] sm:$0xf]  ;;  %vm16041_vm14 = vmor %vm3601_vm7, %vm3602_vm8 }
  0x58   : > { %1528 = vst [vmem:[#allocation2 + $0x28] sm:$0x8] %v1527_v59  ;;  %1534 = vst [vmem:[#allocation2 + $0x34] sm:$0x8] %v1533_v19  ;;  %v1138_v42 = vld [vmem:[#allocation2 + $0x3c] sm:$0x8]  ;;  %v1469_v19 = vrot.slane %v15866_v18, %v15562_v34 }
  0x59   : > { %v1144_v33 = vld [vmem:[#allocation2 + $0x48] sm:$0x8]  ;;  %v2462_v40 = vshrl.u32 %v2341_v41, 16  ;;  %v15984_v16 = vrot.slane %v2420_v61, 4  ;;  %v1139_v1 = vsel %vm15800_vm3, %v15712_v14, %v1138_v42  ;;  %v1414_v31 = vld [vmem:[#allocation2 + $0x40] sm:$0xc]  ;;  %vm16060_vm15 = vmor %vm2386_vm10, %vm2387_vm11 }
  0x5a   : > { %v1145_v50 = vsel %vm15800_vm3, %v15712_v14, %v1144_v33  ;;  %v1417_v52 = vld [vmem:[#allocation2 + $0x4c] sm:$0xc]  ;;  %v2465_v58 = vshll.u32 %v2341_v41, 16  ;;  %1140 = vst [vmem:[#allocation2 + $0x3c] sm:$0x8] %v1139_v1  ;;  %v1415_v21 = vsel %vm15670_vm13, %v15832_v53, %v1414_v31  ;;  %v474_v44 = vsel %vm15567_vm9, 0, %v473_v25 }
  0x5b   : > { %1146 = vst [vmem:[#allocation2 + $0x48] sm:$0x8] %v1145_v50  ;;  %v1418_v26 = vsel %vm15670_vm13, %v15832_v53, %v1417_v52  ;;  %v2464_v60 = vrot.slane %v2462_v40, 4  ;;  %v2344_v30 = vld [vmem:[#allocation2 + $0x30] sm:$0xf]  ;;  %v2444_v14 = vor.u32 %v2443_v22, %v2440_v36  ;;  %v16010_v36 = vpack.i.b16 %v15982_v29, %v15982_v29  ;;  %s13056_s27 = sshll.u32 %s20167_s14, 8 }
  0x5c   : > { %v1340_v0 = vld [vmem:[#allocation2 + $0x58] sm:$0x6]  ;;  %v426_v63 = vld [vmem:[#allocation2 + $0x84] sm:$0x1]  ;;  %1416 = vst [vmem:[#allocation2 + $0x40] sm:$0xc] %v1415_v21  ;;  %s17097_s30 = scalar_lea.vmem %s19923_s1, %s13056_s27 }
  0x5d   : > { %1419 = vst [vmem:[#allocation2 + $0x4c] sm:$0xc] %v1418_v26  ;;  %v2467_v45 = vrot.slane %v2465_v58, 5  ;;  %v2486_v39 = vshrl.u32 %v2344_v30, 16  ;;  %v2489_v9 = vshll.u32 %v2344_v30, 16  ;;  %v1341_v53 = vsel %vm15615_vm12, %v15886_v43, %v1340_v0  ;;  %v15333_v31 = vld [vmem:[%s19924_s2 + $0x30] sm:$0xff]  }
  0x5e   : > { %v1150_v48 = vld [vmem:[#allocation2 + $0x54] sm:$0x8]  ;;  %475 = vst [vmem:[#allocation2 + $0x68] sm:$0x1] %v474_v44  ;;  %v1156_v61 = vld [vmem:[#allocation2 + $0x60] sm:$0x8] }
  0x5f   : > { %v1151_v5 = vsel %vm15800_vm3, %v15777_v46, %v1150_v48  ;;  %v1343_v59 = vld [vmem:[#allocation2 + $0x64] sm:$0x6]  ;;  %v1023_v25 = vld [vmem:[#allocation2 + $0x6c] sm:$0xc]  ;;  %v2468_v22 = vor.u32 %v2467_v45, %v2464_v60  ;;  %v2488_v41 = vrot.slane %v2486_v39, 4  ;;  %v2491_v42 = vrot.slane %v2489_v9, 5 }
  0x60   : > { %1152 = vst [vmem:[#allocation2 + $0x54] sm:$0x8] %v1151_v5  ;;  %1342 = vst [vmem:[#allocation2 + $0x58] sm:$0x6] %v1341_v53  ;;  %v1157_v33 = vsel %vm15800_vm3, %v15777_v46, %v1156_v61  ;;  %v1266_v40 = vld [vmem:[#allocation2 + $0x70] sm:$0x3]  ;;  %v1344_v52 = vsel %vm15615_vm12, %v15886_v43, %v1343_v59  ;;  %v1024_v58 = vsel %vm15670_vm13, %v15969_v38, %v1023_v25 }
  0x61   : > { %v836_v1 = vld [vmem:[#allocation2 + $0x78] sm:$0x3]  ;;  %v15312_v50 = vld [vmem:[#allocation2 + $0xc] sm:$0xff]   ;;  %1158 = vst [vmem:[#allocation2 + $0x60] sm:$0x8] %v1157_v33  ;;  %v1267_v46 = vsel %vm15534_vm6, %v15980_v57, %v1266_v40  ;;  %v15315_v60 = vld [vmem:[#allocation2 + $0x24] sm:$0xff]   ;;  %v2492_v0 = vor.u32 %v2491_v42, %v2488_v41  ;;  %v16034_v43 = vrot.slane %v15789_v12, %v15562_v34  ;;  %v16049_v39 = vrot.slane %v15866_v18, %v15551_v28 }
  0x62   : > { %v837_v21 = vsel %vm15534_vm6, %v15822_v54, %v836_v1  ;;  %v15313_v26 = vld [vmem:[#allocation2 + $0x18] sm:$0xff]   ;;  %v16030_v30 = vrot.slane %v2444_v14, 4  ;;  %1345 = vst [vmem:[#allocation2 + $0x64] sm:$0x6] %v1344_v52  ;;  %1025 = vst [vmem:[#allocation2 + $0x6c] sm:$0xc] %v1024_v58  ;;  %13615 = vmatprep.mubr.msk.bf16.mxu1 %vm1737_vm4, %v15312_v50  ;;  %v16051_v12 = vcombine.low %v1469_v19, %v1469_v19 }
  0x63   : > { %1268 = vst [vmem:[#allocation2 + $0x70] sm:$0x3] %v1267_v46  ;;  %838 = vst [vmem:[#allocation2 + $0x78] sm:$0x3] %v837_v21  ;;  %v427_v44 = vsel %vm15506_vm2, 0, %v426_v63  ;;  %v20016_v54 = vmov 0  ;;  %13616 = vmatmul.mubr.msk.bf16.vlgmr.msra.gmra.mrb[0].mxu1 %vm1737_vm4, %v15313_v26  ;;  %v16067_v19 = vrot.slane %v16010_v36, %v15522_v10 }
  0x64   : > { %v2336_v45 = vld [vmem:[#allocation2 + $0x10] sm:$0xf]  ;;  %v20017_v54 = vsel %vm16041_vm14, 4294967295, %v20016_v54  ;;  %v16045_v14 = vrot.slane %v2468_v22, 4  ;;  %428 = vst [vmem:[#allocation2 + $0x84] sm:$0x1] %v427_v44  ;;  %13619 = vmatprep.mubr.msk.bf16.mxu1 %vm1737_vm4, %v15315_v60  ;;  %13648 = vmatpush3.bf16.msra.mxu1 %v15549_v27 }
  0x65   : > { %20018 = vst [vmem:[#allocation7_spill] sm:$0xff] %v20017_v54  ;;  %v892_v63 = vshrl.u32 %v15982_v29, 16  ;;  %v2423_v9 = vshll.u32 %v2336_v45, 16  ;;  %v2427_v48 = vshrl.u32 %v2336_v45, 16  ;;  %v3613_v5 = vrot.slane %v2336_v45, 5  ;;  %13681 = vmatprep.subr.bf16.mxu1 %v15333_v31  ;;  %v15316_v21 = vld [vmem:[#allocation2 + $0x30] sm:$0xff]  }
  0x66   : > { %v2339_v53 = vld [vmem:[#allocation2 + $0x1c] sm:$0xf]  ;;  %v16055_v61 = vrot.slane %v2492_v0, 4  ;;  %v20019_v18 = vmov 0  ;;  %v1538_v25 = vld [vmem:[#allocation2 + $0x40] sm:$0x8] }
  0x67   : > { %v20020_v18 = vsel %vm16060_vm15, 4294967295, %v20019_v18  ;;  %v2447_v59 = vshll.u32 %v2339_v53, 16  ;;  %v2451_v29 = vshrl.u32 %v2339_v53, 16  ;;  %v16069_v22 = vpack.i.b16 %v892_v63, %v892_v63  ;;  %v1544_v1 = vld [vmem:[#allocation2 + $0x4c] sm:$0x8]  ;;  %s15435_s11 = smov 8  }
  0x68   : > { %20021 = vst [vmem:[#allocation8_spill] sm:$0xff] %v20020_v18  ;;  %v2425_v41 = vrot.slane %v2423_v9, 5  ;;  %v2429_v42 = vrot.slane %v2427_v48, 4  ;;  %v3614_v33 = vsel %vm16041_vm14, %v12378_v32, %v3613_v5  ;;  %v3615_v40 = vrot.slane %v3613_v5, 4  ;;  %v2342_v46 = vld [vmem:[#allocation2 + $0x28] sm:$0xf] }
  0x69   : > { %v2449_v27 = vrot.slane %v2447_v59, 5  ;;  %v2453_v50 = vrot.slane %v2451_v29, 4  ;;  %v1539_v52 = vsel %vm15800_vm3, %v15745_v51, %v1538_v25  ;;  %v1545_v58 = vsel %vm15800_vm3, %v15745_v51, %v1544_v1  ;;  %v2345_v60 = vld [vmem:[#allocation2 + $0x34] sm:$0xf]  ;;  %v1420_v0 = vld [vmem:[#allocation2 + $0x58] sm:$0xc] }
  0x6a   : > { %v2426_v49 = vsel %vm16060_vm15, %v15984_v16, %v2425_v41  ;;  %v2430_v32 = vor.u32 %v2429_v42, %v2425_v41  ;;  %v3617_v31 = vsel %vm16041_vm14, %v3615_v40, %v3616_v62  ;;  %1540 = vst [vmem:[#allocation2 + $0x40] sm:$0x8] %v1539_v52  ;;  %1546 = vst [vmem:[#allocation2 + $0x4c] sm:$0x8] %v1545_v58  ;;  %v2471_v26 = vshll.u32 %v2342_v46, 16 }
  0x6b   : > { %v16088_v44 = vcombine.low %v3614_v33, %v3617_v31  ;;  %v2450_v51 = vsel %vm16060_vm15, %v16030_v30, %v2449_v27  ;;  %v2454_v45 = vor.u32 %v2453_v50, %v2449_v27  ;;  %v2475_v63 = vshrl.u32 %v2342_v46, 16  ;;  %v1423_v16 = vld [vmem:[#allocation2 + $0x64] sm:$0xc]  ;;  %v2347_v25 = vld [vmem:[#allocation2 + $0x3c] sm:$0xf]  ;;  %13620 = vmatmul.mubr.msk.bf16.gmra.mrb[4].mxu1 %vm1737_vm4, %v15316_v21 }
  0x6c   : > { %v2431_v9 = vrot.slane %v2430_v32, 4  ;;  %v2473_v48 = vrot.slane %v2471_v26, 5  ;;  %v2495_v56 = vshll.u32 %v2345_v60, 16  ;;  %v2499_v5 = vshrl.u32 %v2345_v60, 16  ;;  %v1162_v40 = vld [vmem:[#allocation2 + $0x6c] sm:$0x8] }
  0x6d   : > { %v2455_v53 = vrot.slane %v2454_v45, 4  ;;  %v2477_v62 = vrot.slane %v2475_v63, 4  ;;  %v1421_v59 = vsel %vm15670_vm13, %v15957_v55, %v1420_v0  ;;  %v1424_v29 = vsel %vm15670_vm13, %v15957_v55, %v1423_v16  ;;  %v1346_v1 = vld [vmem:[#allocation2 + $0x70] sm:$0x6]  ;;  %v943_v58 = vld [vmem:[#allocation2 + $0x78] sm:$0x6] }
  0x6e   : > { %v2436_v30 = vsel %vm16060_vm15, %v2431_v9, %v15848_v2  ;;  %v2474_v41 = vsel %vm16060_vm15, %v16045_v14, %v2473_v48  ;;  %v2497_v42 = vrot.slane %v2495_v56, 5  ;;  %v2501_v33 = vrot.slane %v2499_v5, 4  ;;  %1422 = vst [vmem:[#allocation2 + $0x58] sm:$0xc] %v1421_v59  ;;  %1425 = vst [vmem:[#allocation2 + $0x64] sm:$0xc] %v1424_v29 }
  0x6f   : > { %v16106_v27 = vcombine.low %v2426_v49, %v2436_v30  ;;  %v2460_v55 = vsel %vm16060_vm15, %v2455_v53, %v15850_v6  ;;  %v2478_v50 = vor.u32 %v2477_v62, %v2473_v48  ;;  %v2510_v52 = vshrl.u32 %v2347_v25, 16  ;;  %v1269_v2 = vld [vmem:[#allocation2 + $0x7c] sm:$0x3]  ;;  %v2350_v31 = vld [vmem:[#allocation2 + $0x48] sm:$0xf]  ;;  %v16119_v49 = vld [vmem:[%s19924_s2 + $0x10] sm:$0xff]  }
  0x70   : > { %v16111_v46 = vcombine.low %v2450_v51, %v2460_v55  ;;  %v2498_v14 = vsel %vm16060_vm15, %v16055_v61, %v2497_v42  ;;  %v2502_v21 = vor.u32 %v2501_v33, %v2497_v42  ;;  %v2513_v32 = vshll.u32 %v2347_v25, 16  ;;  %v1553_v26 = vld [vmem:[#allocation2 + $0x5c] sm:$0x1]  ;;  %v2353_v29 = vld [vmem:[#allocation2 + $0x54] sm:$0xf] }
  0x71   : > { %13751 = vmatprep.mubr.msk.bf16.mxu0 %vm1737_vm4, %v16106_v27  ;;  %v15319_v6 = vld [vmem:[#allocation2 + $0x3c] sm:$0xff]   ;;  %v2479_v60 = vrot.slane %v2478_v50, 4  ;;  %v1163_v0 = vsel %vm15800_vm3, %v15919_v7, %v1162_v40  ;;  %v1347_v61 = vsel %vm15615_vm12, %v16049_v39, %v1346_v1  ;;  %v944_v51 = vsel %vm15615_vm12, %v15917_v17, %v943_v58  ;;  %v15320_v45 = vld [vmem:[#allocation2 + $0x48] sm:$0xff]  }
  0x72   : > { %13752 = vmatmul.mubr.msk.bf16.vlgmr.msra.gmra.mrb[0].mxu0 %vm1737_vm4, %v16111_v46  ;;  %v2503_v63 = vrot.slane %v2502_v21, 4  ;;  %v2348_v16 = vld [vmem:[#allocation2 + $0x40] sm:$0xf]  ;;  %v2512_v9 = vrot.slane %v2510_v52, 4  ;;  %v2515_v48 = vrot.slane %v2513_v32, 5  ;;  %v1270_v56 = vsel %vm15534_vm6, %v15980_v57, %v1269_v2  ;;  %v15392_v5 = vld [vmem:[%s19924_s2 + $0x38] sm:$0xff]   ;;  %13623 = vmatprep.mubr.msk.bf16.mxu1 %vm1737_vm4, %v15319_v6 }
  0x73   : > { %1164 = vst [vmem:[#allocation2 + $0x6c] sm:$0x8] %v1163_v0  ;;  %1348 = vst [vmem:[#allocation2 + $0x70] sm:$0x6] %v1347_v61  ;;  %13784 = vmatpush3.bf16.msra.mxu0 %v15392_v5  ;;  %v2484_v17 = vsel %vm16060_vm15, %v2479_v60, %v15927_v24  ;;  %v2519_v53 = vshll.u32 %v2348_v16, 16  ;;  %v2523_v62 = vshrl.u32 %v2348_v16, 16  ;;  %13624 = vmatmul.mubr.msk.bf16.gmra.mrb[8].mxu1 %vm1737_vm4, %v15320_v45 }
  0x74   : > { %945 = vst [vmem:[#allocation2 + $0x78] sm:$0x6] %v944_v51  ;;  %v2534_v59 = vshrl.u32 %v2350_v31, 16  ;;  %1271 = vst [vmem:[#allocation2 + $0x7c] sm:$0x3] %v1270_v56  ;;  %v16144_v25 = vcombine.low %v2474_v41, %v2484_v17  ;;  %v2508_v57 = vsel %vm16060_vm15, %v2503_v63, %v15929_v11  ;;  %v2516_v30 = vor.u32 %v2515_v48, %v2512_v9  ;;  %v739_v60 = vld [vmem:[%s15516_s20 + $0x30] sm:$0xff] }
  0x75   : > { %v2351_v42 = vld [vmem:[#allocation2 + $0x4c] sm:$0xf]  ;;  %v2537_v33 = vshll.u32 %v2350_v31, 16  ;;  %v1559_v40 = vld [vmem:[#allocation2 + $0x68] sm:$0x1]  ;;  %13817 = vmatprep.subr.bf16.mxu0 %v16119_v49  ;;  %v16150_v1 = vcombine.low %v2498_v14, %v2508_v57  ;;  %v2521_v50 = vrot.slane %v2519_v53, 5  ;;  %v1554_v41 = vsel %vm15506_vm2, %v15959_v8, %v1553_v26 }
  0x76   : > { %v1550_v24 = vld [vmem:[#allocation2 + $0x58] sm:$0x8]  ;;  %v1556_v55 = vld [vmem:[#allocation2 + $0x64] sm:$0x8]  ;;  %v2525_v52 = vrot.slane %v2523_v62, 4  ;;  %13755 = vmatprep.mubr.msk.bf16.mxu0 %vm1737_vm4, %v16144_v25  ;;  %v2517_v2 = vrot.slane %v2516_v30, 4  ;;  %v1560_v45 = vsel %vm15506_vm2, %v15959_v8, %v1559_v40 }
  0x77   : > { %v1551_v11 = vsel %vm15800_vm3, %v15959_v8, %v1550_v24  ;;  %v1557_v58 = vsel %vm15800_vm3, %v15959_v8, %v1556_v55  ;;  %v2536_v14 = vrot.slane %v2534_v59, 4  ;;  %1555 = vst [vmem:[#allocation2 + $0x5c] sm:$0x1] %v1554_v41  ;;  %v2539_v32 = vrot.slane %v2537_v33, 5  ;;  %v839_v6 = vld [vmem:[#allocation2 + $0x84] sm:$0x3] }
  0x78   : > { %1552 = vst [vmem:[#allocation2 + $0x58] sm:$0x8] %v1551_v11  ;;  %1558 = vst [vmem:[#allocation2 + $0x64] sm:$0x8] %v1557_v58  ;;  %v2526_v21 = vor.u32 %v2525_v52, %v2521_v50  ;;  %v2543_v31 = vshll.u32 %v2351_v42, 16  ;;  %v2547_v26 = vshrl.u32 %v2351_v42, 16  ;;  %v2522_v0 = vsel %vm16060_vm15, %v2517_v2, %v2521_v50 }
  0x79   : > { %v2558_v61 = vshrl.u32 %v2353_v29, 16  ;;  %v2561_v51 = vshll.u32 %v2353_v29, 16  ;;  %v2356_v63 = vld [vmem:[#allocation2 + $0x60] sm:$0xf]  ;;  %v2540_v9 = vor.u32 %v2539_v32, %v2536_v14  ;;  %1561 = vst [vmem:[#allocation2 + $0x68] sm:$0x1] %v1560_v45  ;;  %v840_v8 = vsel %vm15534_vm6, %v16067_v19, %v839_v6 }
  0x7a   : > { %v2527_v16 = vrot.slane %v2526_v21, 4  ;;  %v2545_v48 = vrot.slane %v2543_v31, 5  ;;  %v2549_v56 = vrot.slane %v2547_v26, 4  ;;  %v1426_v5 = vld [vmem:[#allocation2 + $0x70] sm:$0xc]  ;;  %13756 = vmatmul.mubr.msk.bf16.gmra.mrb[4].mxu0 %vm1737_vm4, %v16150_v1  ;;  %v1070_v59 = vrot.slane %v16069_v22, %v15527_v13  ;;  %v740_v52 = vld [vmem:[%s15516_s20 + $0x38] sm:$0xff] }
  0x7b   : > { %v1427_v17 = vsel %vm15670_vm13, %v16034_v43, %v1426_v5  ;;  %v1026_v53 = vld [vmem:[#allocation2 + $0x78] sm:$0xc]  ;;  %v1349_v62 = vld [vmem:[#allocation2 + $0x7c] sm:$0x6]  ;;  %v16180_v29 = vpack.c.bf16 %v739_v60, %v739_v60  ;;  %v2541_v30 = vrot.slane %v2540_v9, 4  ;;  %v2560_v55 = vrot.slane %v2558_v61, 4 }
  0x7c   : > { %v2532_v57 = vsel %vm16060_vm15, %v2527_v16, %v15931_v37  ;;  %v2550_v42 = vor.u32 %v2549_v56, %v2545_v48  ;;  %1428 = vst [vmem:[#allocation2 + $0x70] sm:$0xc] %v1427_v17  ;;  %v1027_v33 = vsel %vm15670_vm13, %v15969_v38, %v1026_v53  ;;  %841 = vst [vmem:[#allocation2 + $0x84] sm:$0x3] %v840_v8  ;;  %v2563_v50 = vrot.slane %v2561_v51, 5 }
  0x7d   : > { %v16188_v40 = vcombine.low %v2522_v0, %v2532_v57  ;;  %1028 = vst [vmem:[#allocation2 + $0x78] sm:$0xc] %v1027_v33  ;;  %v1350_v24 = vsel %vm15615_vm12, %v16049_v39, %v1349_v62  ;;  %v2546_v37 = vsel %vm16060_vm15, %v2541_v30, %v2545_v48  ;;  %v2582_v58 = vshrl.u32 %v2356_v63, 16  ;;  %v1177_v38 = vld [vmem:[#allocation2 + $0x88] sm:$0x1] }
  0x7e   : > { %v2551_v41 = vrot.slane %v2550_v42, 4  ;;  %1351 = vst [vmem:[#allocation2 + $0x7c] sm:$0x6] %v1350_v24  ;;  %v2355_v11 = vld [vmem:[#allocation2 + $0x5c] sm:$0x1]  ;;  %v2585_v2 = vshll.u32 %v2356_v63, 16  ;;  %v2564_v21 = vor.u32 %v2563_v50, %v2560_v55  ;;  %v16198_v32 = vcombine.low %v1070_v59, %v1070_v59 }
  0x7f   : > { %v15321_v14 = vld [vmem:[#allocation2 + $0x54] sm:$0xff]   ;;  %13759 = vmatprep.mubr.msk.bf16.mxu0 %vm1737_vm4, %v16188_v40  ;;  %v16202_v39 = vrot.slane %v16010_v36, %v15551_v28  ;;  %v16206_v31 = vpack.i.b16 %v16180_v29, %v16180_v29  ;;  %v15322_v26 = vld [vmem:[#allocation2 + $0x60] sm:$0xff]   ;;  %v2584_v61 = vrot.slane %v2582_v58, 4  ;;  %v16213_v51 = vrot.slane %v16069_v22, %v15522_v10  ;;  %v429_v62 = vld [vmem:[#allocation2 + $0x90] sm:$0x1] }
  0x80   : > { %v2556_v6 = vsel %vm16060_vm15, %v2551_v41, %v15941_v15  ;;  %v2354_v60 = vld [vmem:[#allocation2 + $0x58] sm:$0xf]  ;;  %v2357_v0 = vld [vmem:[#allocation2 + $0x64] sm:$0xf]  ;;  %v16215_v45 = vpack.c.bf16 %v740_v52, %v740_v52  ;;  %13627 = vmatprep.mubr.msk.bf16.mxu1 %vm1737_vm4, %v15321_v14  ;;  %v2577_v48 = vshll.u32 %v2355_v11, 16  ;;  %v2565_v15 = vrot.slane %v2564_v21, 4 }
  0x81   : > { %v16218_v63 = vcombine.low %v2546_v37, %v2556_v6  ;;  %v2567_v16 = vshll.u32 %v2354_v60, 16  ;;  %v2571_v9 = vshrl.u32 %v2354_v60, 16  ;;  %v2358_v56 = vld [vmem:[#allocation2 + $0x68] sm:$0x1]  ;;  %13628 = vmatmul.mubr.msk.bf16.gmra.mrb[12].mxu1 %vm1737_vm4, %v15322_v26  ;;  %v2587_v5 = vrot.slane %v2585_v2, 5 }
  0x82   : > { %v2591_v17 = vshll.u32 %v2357_v0, 16  ;;  %v2595_v53 = vshrl.u32 %v2357_v0, 16  ;;  %v1183_v8 = vld [vmem:[#allocation2 + $0x94] sm:$0x1]  ;;  %v2601_v42 = vshll.u32 %v2358_v56, 16  ;;  %v1178_v33 = vsel %vm15506_vm2, %v16198_v32, %v1177_v38 }
  0x83   : > { %13760 = vmatmul.mubr.msk.bf16.gmra.mrb[8].mxu0 %vm1737_vm4, %v16218_v63  ;;  %v1562_v59 = vld [vmem:[#allocation2 + $0x70] sm:$0x8]  ;;  %v2569_v57 = vrot.slane %v2567_v16, 5  ;;  %v2573_v30 = vrot.slane %v2571_v9, 4  ;;  %v432_v24 = vld [vmem:[#allocation2 + $0x9c] sm:$0x1]  ;;  %v2588_v52 = vor.u32 %v2587_v5, %v2584_v61 }
  0x84   : > { %v1563_v55 = vsel %vm15800_vm3, %v16051_v12, %v1562_v59  ;;  %v1168_v50 = vld [vmem:[#allocation2 + $0x78] sm:$0x8]  ;;  %v2593_v37 = vrot.slane %v2591_v17, 5  ;;  %v2597_v41 = vrot.slane %v2595_v53, 4  ;;  %v946_v11 = vld [vmem:[#allocation2 + $0x84] sm:$0x6] }
  0x85   : > { %1179 = vst [vmem:[#allocation2 + $0x88] sm:$0x1] %v1178_v33  ;;  %1564 = vst [vmem:[#allocation2 + $0x70] sm:$0x8] %v1563_v55  ;;  %v1169_v58 = vsel %vm15800_vm3, %v15919_v7, %v1168_v50  ;;  %v1429_v2 = vld [vmem:[#allocation2 + $0x7c] sm:$0xc]  ;;  %v2574_v14 = vor.u32 %v2573_v30, %v2569_v57  ;;  %v947_v0 = vsel %vm15615_vm12, %v16213_v51, %v946_v11 }
  0x86   : > { %v2579_v21 = vrot.slane %v2577_v48, 5  ;;  %v2603_v38 = vrot.slane %v2601_v42, 5  ;;  %1170 = vst [vmem:[#allocation2 + $0x78] sm:$0x8] %v1169_v58  ;;  %v1430_v26 = vsel %vm15670_vm13, %v16034_v43, %v1429_v2  ;;  %v2589_v6 = vrot.slane %v2588_v52, 4 }
  0x87   : > { %v2598_v60 = vor.u32 %v2597_v41, %v2593_v37  ;;  %v435_v61 = vld [vmem:[#allocation2 + $0xa8] sm:$0x1]  ;;  %v438_v16 = vld [vmem:[#allocation2 + $0xb4] sm:$0x1]  ;;  %1431 = vst [vmem:[#allocation2 + $0x7c] sm:$0xc] %v1430_v26  ;;  %v2570_v7 = vsel %vm16060_vm15, %v2565_v15, %v2569_v57  ;;  %v1184_v43 = vsel %vm15506_vm2, %v16198_v32, %v1183_v8  ;;  %v16282_v58 = vrot.slane %v16010_v36, %v15562_v34 }
  0x88   : > { %v2575_v9 = vrot.slane %v2574_v14, 4  ;;  %948 = vst [vmem:[#allocation2 + $0x84] sm:$0x6] %v947_v0  ;;  %v430_v48 = vsel %vm15506_vm2, 0, %v429_v62  ;;  %v2594_v56 = vsel %vm16060_vm15, %v2589_v6, %v2593_v37  ;;  %1185 = vst [vmem:[#allocation2 + $0x94] sm:$0x1] %v1184_v43  ;;  %v16296_v26 = vrot.slane %v16206_v31, %v15551_v28 }
  0x89   : > { %v2599_v5 = vrot.slane %v2598_v60, 4  ;;  %431 = vst [vmem:[#allocation2 + $0x90] sm:$0x1] %v430_v48  ;;  %v433_v17 = vsel %vm15506_vm2, 0, %v432_v24  ;;  %v899_v15 = vshrl.u32 %v16180_v29, 16  ;;  %v436_v62 = vsel %vm15506_vm2, 0, %v435_v61 }
  0x8a   : > { %v2580_v53 = vsel %vm16060_vm15, %v2575_v9, %v2579_v21  ;;  %434 = vst [vmem:[#allocation2 + $0x9c] sm:$0x1] %v433_v17  ;;  %v439_v8 = vsel %vm15506_vm2, 0, %v438_v16  ;;  %v906_v59 = vshrl.u32 %v16215_v45, 16  ;;  %437 = vst [vmem:[#allocation2 + $0xa8] sm:$0x1] %v436_v62  ;;  %v16265_v29 = vpack.i.b16 %v16215_v45, %v16215_v45 }
  0x8b   : > { %v16257_v57 = vcombine.low %v2570_v7, %v2580_v53  ;;  %v2604_v30 = vsel %vm16060_vm15, %v2599_v5, %v2603_v38  ;;  %v16261_v42 = vpack.i.b16 %v899_v15, %v899_v15  ;;  %440 = vst [vmem:[#allocation2 + $0xb4] sm:$0x1] %v439_v8  ;;  %v16271_v24 = vrot.slane %v16010_v36, %v15527_v13  ;;  %v1189_v50 = vld [vmem:[#allocation2 + $0xa0] sm:$0x1]  ;;  %v1195_v52 = vld [vmem:[#allocation2 + $0xac] sm:$0x1] }
  0x8c   : > { %v16267_v33 = vcombine.low %v2594_v56, %v2604_v30  ;;  %v1272_v55 = vld [vmem:[#allocation2 + $0x88] sm:$0x3]  ;;  %v16273_v37 = vpack.i.b16 %v906_v59, %v906_v59  ;;  %v441_v41 = vld [vmem:[#allocation2 + $0xc0] sm:$0x1]  ;;  %v15323_v11 = vld [vmem:[#allocation2 + $0x6c] sm:$0xff]   ;;  %v16290_v21 = vrot.slane %v16069_v22, %v15551_v28  ;;  %v797_v38 = vrot.slane %v16206_v31, %v15522_v10 }
  0x8d   : > { %20022 = vst [vmem:[#allocation9_spill] sm:$0xff] %v16257_v57  ;;  %13763 = vmatprep.mubr.msk.bf16.mxu0 %vm1737_vm4, %v16257_v57  ;;  %v1273_v45 = vsel %vm15534_vm6, %v16202_v39, %v1272_v55  ;;  %v1074_v2 = vrot.slane %v16261_v42, %v15527_v13  ;;  %v1201_v14 = vld [vmem:[#allocation2 + $0xb8] sm:$0x1]  ;;  %v1207_v6 = vld [vmem:[#allocation2 + $0xc4] sm:$0x1]  ;;  %13631 = vmatprep.mubr.msk.bf16.mxu1 %vm1737_vm4, %v15323_v11  ;;  %v442_v48 = vsel %vm15506_vm2, 0, %v441_v41 }
  0x8e   : > { %20023 = vst [vmem:[#allocation10_spill] sm:$0xff] %v16267_v33  ;;  %13764 = vmatmul.mubr.msk.bf16.gmra.mrb[12].mxu0 %vm1737_vm4, %v16267_v33  ;;  %1274 = vst [vmem:[#allocation2 + $0x88] sm:$0x3] %v1273_v45  ;;  %v1078_v36 = vrot.slane %v16273_v37, %v15527_v13  ;;  %v16300_v60 = vld [vmem:[#allocation2 + $0x74] sm:$0x1]  ;;  %v16305_v16 = vrot.slane %v16069_v22, %v15562_v34  ;;  %v16313_v9 = vrot.slane %v16265_v29, %v15522_v10  ;;  %vm381_vm7 = vcmask 125952  }
  0x8f   : > { %v1568_v0 = vld [vmem:[#allocation2 + $0x7c] sm:$0x8]  ;;  %v1029_v61 = vld [vmem:[#allocation2 + $0x84] sm:$0xc]  ;;  %13785 = vmatprep.mubr.msk.bf16.mxu0 %vm1737_vm4, %v16111_v46  ;;  %v16309_v7 = vcombine.low %v1074_v2, %v1074_v2  ;;  %v16317_v43 = vld [vmem:[#allocation2 + $0x6c] sm:$0xf]  ;;  %v16580_v4 = vrot.slane %v16265_v29, %v15562_v34 }
  0x90   : > { %v1569_v56 = vsel %vm15800_vm3, %v16051_v12, %v1568_v0  ;;  %v1030_v22 = vsel %vm15670_vm13, %v16271_v24, %v1029_v61  ;;  %v842_v5 = vld [vmem:[#allocation2 + $0x90] sm:$0x3]  ;;  %v1275_v17 = vld [vmem:[#allocation2 + $0x94] sm:$0x3]  ;;  %v16325_v15 = vcombine.low %v1078_v36, %v1078_v36  ;;  %443 = vst [vmem:[#allocation2 + $0xc0] sm:$0x1] %v442_v48 }
  0x91   : > { %v16327_v53 = vld [vmem:[#allocation2 + $0x80] sm:$0x1]  ;;  %v16329_v62 = vld [vmem:[#allocation2 + $0x8c] sm:$0x1]  ;;  %1570 = vst [vmem:[#allocation2 + $0x7c] sm:$0x8] %v1569_v56  ;;  %v843_v8 = vsel %vm15534_vm6, %v16067_v19, %v842_v5  ;;  %v1276_v59 = vsel %vm15534_vm6, %v16202_v39, %v1275_v17  ;;  %v1190_v55 = vsel %vm15506_vm2, %v16309_v7, %v1189_v50  ;;  %v1196_v41 = vsel %vm15506_vm2, %v16309_v7, %v1195_v52 }
  0x92   : > { %1031 = vst [vmem:[#allocation2 + $0x84] sm:$0xc] %v1030_v22  ;;  %v845_v30 = vld [vmem:[#allocation2 + $0x9c] sm:$0x3]  ;;  %v16343_v11 = vld [vmem:[#allocation2 + $0x70] sm:$0xf]  ;;  %v1202_v50 = vsel %vm15506_vm2, %v16325_v15, %v1201_v14  ;;  %v16354_v52 = vrot.slane %v16265_v29, %v15551_v28  ;;  %v1208_v36 = vsel %vm15506_vm2, %v16325_v15, %v1207_v6  ;;  %v16369_v56 = vrot.slane %v16261_v42, %v15522_v10 }
  0x93   : > { %v16345_v45 = vld [vmem:[#allocation2 + $0x78] sm:$0xf]  ;;  %844 = vst [vmem:[#allocation2 + $0x90] sm:$0x3] %v843_v8  ;;  %1277 = vst [vmem:[#allocation2 + $0x94] sm:$0x3] %v1276_v59  ;;  %v846_v19 = vsel %vm15534_vm6, %v797_v38, %v845_v30 }
  0x94   : > { %1191 = vst [vmem:[#allocation2 + $0xa0] sm:$0x1] %v1190_v55  ;;  %v848_v39 = vld [vmem:[#allocation2 + $0xa8] sm:$0x3]  ;;  %1197 = vst [vmem:[#allocation2 + $0xac] sm:$0x1] %v1196_v41 }
  0x95   : > { %v851_v2 = vld [vmem:[#allocation2 + $0xb4] sm:$0x3]  ;;  %v485_v0 = vld [vmem:[#allocation2 + $0x98] sm:$0x1]  ;;  %847 = vst [vmem:[#allocation2 + $0x9c] sm:$0x3] %v846_v19  ;;  %v849_v61 = vsel %vm15534_vm6, %v797_v38, %v848_v39 }
  0x96   : > { %v852_v48 = vsel %vm15534_vm6, %v16313_v9, %v851_v2  ;;  %1203 = vst [vmem:[#allocation2 + $0xb8] sm:$0x1] %v1202_v50  ;;  %1209 = vst [vmem:[#allocation2 + $0xc4] sm:$0x1] %v1208_v36  ;;  %v477_v14 = vsel %vm15567_vm9, 0, %v16300_v60  ;;  %v15434_v6 = vmov 0   ;;  %13786 = vmatmul.mubr.msk.bf16.vlgmr.msra.gmra.mrb[0].mxu0 %vm1737_vm4, %v16144_v25 }
  0x97   : > { %850 = vst [vmem:[#allocation2 + $0xa8] sm:$0x3] %v849_v61  ;;  %853 = vst [vmem:[#allocation2 + $0xb4] sm:$0x3] %v852_v48  ;;  %v2606_v38 = vshrl.u32 %v16317_v43, 16  ;;  %v2609_v60 = vshll.u32 %v16317_v43, 16  ;;  %13818 = vmatpush3.bf16.msra.mxu0 %v16119_v49  ;;  %13789 = vmatprep.mubr.msk.bf16.mxu0 %vm1737_vm4, %v16150_v1  ;;  %v16430_v49 = vrot.slane %v16273_v37, %v15522_v10 }
  0x98   : > { %382 = vst.msk [vmem:[#allocation2] sm:$0xf] %vm381_vm7, %v15434_v6  ;;  %383 = vst.msk [vmem:[#allocation2 + $0x4] sm:$0xf] %vm381_vm7, %v15434_v6  ;;  %v2615_v22 = vshll.u32 %v16343_v11, 16  ;;  %v15334_v17 = vld [vmem:[%s19924_s2 + $0x28] sm:$0xff]  }
  0x99   : > { %385 = vst.msk [vmem:[#allocation2 + $0x8] sm:$0x1] %vm384_vm0, %v15434_v6  ;;  %389 = vst.msk [vmem:[#allocation2 + $0xd4] sm:$0x1] %vm384_vm0, %v15434_v6  ;;  %v488_v5 = vld [vmem:[#allocation2 + $0xa4] sm:$0x1]  ;;  %13851 = vmatprep.subr.bf16.mxu0 %v15334_v17 }
  0x9a   : > { %387 = vst.msk [vmem:[#allocation2 + $0xcc] sm:$0xf] %vm381_vm7, %v15434_v6  ;;  %388 = vst.msk [vmem:[#allocation2 + $0xd0] sm:$0xf] %vm381_vm7, %v15434_v6  ;;  %v1352_v8 = vld [vmem:[#allocation2 + $0x88] sm:$0x6] }
  0x9b   : > { %503 = vst.msk [vmem:[#allocation3] sm:$0xf] %vm381_vm7, %v15434_v6  ;;  %504 = vst.msk [vmem:[#allocation3 + $0x4] sm:$0xf] %vm381_vm7, %v15434_v6  ;;  %v480_v59 = vsel %vm15567_vm9, 0, %v16327_v53  ;;  %v2630_v30 = vshrl.u32 %v16345_v45, 16  ;;  %v1353_v41 = vsel %vm15615_vm12, %v16290_v21, %v1352_v8 }
  0x9c   : > { %505 = vst.msk [vmem:[#allocation3 + $0x8] sm:$0x1] %vm384_vm0, %v15434_v6  ;;  %509 = vst.msk [vmem:[#allocation3 + $0xd4] sm:$0x1] %vm384_vm0, %v15434_v6  ;;  %v2633_v55 = vshll.u32 %v16345_v45, 16  ;;  %v483_v43 = vsel %vm15567_vm9, 0, %v16329_v62 }
  0x9d   : > { %507 = vst.msk [vmem:[#allocation3 + $0xcc] sm:$0xf] %vm381_vm7, %v15434_v6  ;;  %508 = vst.msk [vmem:[#allocation3 + $0xd0] sm:$0xf] %vm381_vm7, %v15434_v6  ;;  %v16408_v19 = vrot.slane %v2606_v38, 4  ;;  %v16410_v39 = vrot.slane %v2609_v60, 5  ;;  %v16442_v60 = vcombine.low %v16305_v16, %v16305_v16 }
  0x9e   : > { %618 = vst.msk [vmem:[#allocation4] sm:$0xf] %vm381_vm7, %v15434_v6  ;;  %619 = vst.msk [vmem:[#allocation4 + $0x4] sm:$0xf] %vm381_vm7, %v15434_v6  ;;  %v2619_v53 = vshrl.u32 %v16343_v11, 16  ;;  %v16416_v45 = vrot.slane %v2615_v22, 5  ;;  %13790 = vmatmul.mubr.msk.bf16.gmra.mrb[4].mxu0 %vm1737_vm4, %v16188_v40 }
  0x9f   : > { %620 = vst.msk [vmem:[#allocation4 + $0x8] sm:$0x1] %vm384_vm0, %v15434_v6  ;;  %624 = vst.msk [vmem:[#allocation4 + $0xd4] sm:$0x1] %vm384_vm0, %v15434_v6  ;;  %v854_v62 = vld [vmem:[#allocation2 + $0xc0] sm:$0x3]  ;;  %13793 = vmatprep.mubr.msk.bf16.mxu0 %vm1737_vm4, %v16218_v63 }
  0xa0   : > { %622 = vst.msk [vmem:[#allocation4 + $0xcc] sm:$0xf] %vm381_vm7, %v15434_v6  ;;  %623 = vst.msk [vmem:[#allocation4 + $0xd0] sm:$0xf] %vm381_vm7, %v15434_v6  ;;  %v16418_v2 = vrot.slane %v2630_v30, 4  ;;  %v16420_v50 = vrot.slane %v2633_v55, 5  ;;  %v855_v6 = vsel %vm15534_vm6, %v16313_v9, %v854_v62  ;;  %v2612_v9 = vor.u32 %v16410_v39, %v16408_v19 }
  0xa1   : > { %478 = vst [vmem:[#allocation2 + $0x74] sm:$0x1] %v477_v14  ;;  %481 = vst [vmem:[#allocation2 + $0x80] sm:$0x1] %v480_v59  ;;  %v486_v36 = vsel %vm15567_vm9, 0, %v485_v0  ;;  %v15324_v61 = vld [vmem:[#allocation2 + $0x78] sm:$0xff]   ;;  %v16426_v14 = vrot.slane %v16206_v31, %v15527_v13  ;;  %v16446_v59 = vrot.slane %v16265_v29, %v15527_v13 }
  0xa2   : > { %484 = vst [vmem:[#allocation2 + $0x8c] sm:$0x1] %v483_v43  ;;  %1354 = vst [vmem:[#allocation2 + $0x88] sm:$0x6] %v1353_v41  ;;  %v1174_v48 = vld [vmem:[#allocation2 + $0x84] sm:$0x8]  ;;  %13632 = vmatmul.mubr.msk.bf16.gmra.mrb[16].mxu1 %vm1737_vm4, %v15324_v61  ;;  %v2636_v41 = vor.u32 %v16420_v50, %v16418_v2 }
  0xa3   : > { %487 = vst [vmem:[#allocation2 + $0x98] sm:$0x1] %v486_v36  ;;  %v489_v38 = vsel %vm15567_vm9, 0, %v488_v5  ;;  %v1175_v0 = vsel %vm15800_vm3, %v16198_v32, %v1174_v48  ;;  %v949_v22 = vld [vmem:[#allocation2 + $0x90] sm:$0x6]  ;;  %v16475_v48 = vrot.slane %v16261_v42, %v15551_v28  ;;  %vm5576_vm11 = vcmask 122944  }
  0xa4   : > { %v1355_v10 = vld [vmem:[#allocation2 + $0x94] sm:$0x6]  ;;  %v1278_v8 = vld [vmem:[#allocation2 + $0xa0] sm:$0x3]  ;;  %856 = vst [vmem:[#allocation2 + $0xc0] sm:$0x3] %v855_v6  ;;  %v950_v16 = vsel %vm15615_vm12, %v16213_v51, %v949_v22 }
  0xa5   : > { %490 = vst [vmem:[#allocation2 + $0xa4] sm:$0x1] %v489_v38  ;;  %v491_v5 = vld [vmem:[#allocation2 + $0xb0] sm:$0x1]  ;;  %1176 = vst [vmem:[#allocation2 + $0x84] sm:$0x8] %v1175_v0  ;;  %v1356_v17 = vsel %vm15615_vm12, %v16290_v21, %v1355_v10  ;;  %v1279_v13 = vsel %vm15534_vm6, %v16296_v26, %v1278_v8  ;;  %v1477_v21 = vrot.slane %v16261_v42, %v15562_v34 }
  0xa6   : > { %v952_v30 = vld [vmem:[#allocation2 + $0x9c] sm:$0x6]  ;;  %v1281_v55 = vld [vmem:[#allocation2 + $0xac] sm:$0x3]  ;;  %v1284_v43 = vld [vmem:[#allocation2 + $0xb8] sm:$0x3]  ;;  %13794 = vmatmul.mubr.msk.bf16.gmra.mrb[8].mxu0 %vm1737_vm4, %v16257_v57 }
  0xa7   : > { %951 = vst [vmem:[#allocation2 + $0x90] sm:$0x6] %v950_v16  ;;  %1357 = vst [vmem:[#allocation2 + $0x94] sm:$0x6] %v1356_v17  ;;  %v953_v51 = vsel %vm15615_vm12, %v16369_v56, %v952_v30  ;;  %v955_v19 = vld [vmem:[#allocation2 + $0xa8] sm:$0x6]  ;;  %v1282_v39 = vsel %vm15534_vm6, %v16296_v26, %v1281_v55  ;;  %v1285_v2 = vsel %vm15534_vm6, %v16354_v52, %v1284_v43  ;;  %13797 = vmatprep.mubr.msk.bf16.mxu0 %vm1737_vm4, %v16267_v33 }
  0xa8   : > { %1280 = vst [vmem:[#allocation2 + $0xa0] sm:$0x3] %v1279_v13  ;;  %v958_v62 = vld [vmem:[#allocation2 + $0xb4] sm:$0x6]  ;;  %v1287_v50 = vld [vmem:[#allocation2 + $0xc4] sm:$0x3]  ;;  %v956_v6 = vsel %vm15615_vm12, %v16369_v56, %v955_v19  ;;  %v16501_v16 = vrot.slane %v16273_v37, %v15551_v28  ;;  %v16513_v13 = vcombine.low %v1477_v21, %v1477_v21 }
  0xa9   : > { %v494_v36 = vld [vmem:[#allocation2 + $0xbc] sm:$0x1]  ;;  %v497_v61 = vld [vmem:[#allocation2 + $0xc8] sm:$0x1]  ;;  %954 = vst [vmem:[#allocation2 + $0x9c] sm:$0x6] %v953_v51  ;;  %v959_v26 = vsel %vm15615_vm12, %v16430_v49, %v958_v62  ;;  %v1288_v38 = vsel %vm15534_vm6, %v16354_v52, %v1287_v50 }
  0xaa   : > { %1283 = vst [vmem:[#allocation2 + $0xac] sm:$0x3] %v1282_v39  ;;  %1286 = vst [vmem:[#allocation2 + $0xb8] sm:$0x3] %v1285_v2  ;;  %v393_v0 = vld [vmem:[#allocation2] sm:$0x1] }
  0xab   : > { %v1565_v22 = vld [vmem:[#allocation2 + $0x74] sm:$0x1]  ;;  %957 = vst [vmem:[#allocation2 + $0xa8] sm:$0x6] %v956_v6  ;;  %960 = vst [vmem:[#allocation2 + $0xb4] sm:$0x6] %v959_v26 }
  0xac   : > { %1289 = vst [vmem:[#allocation2 + $0xc4] sm:$0x3] %v1288_v38  ;;  %v394_v42 = vsel %vm15506_vm2, 0, %v393_v0  ;;  %v1566_v56 = vsel %vm15506_vm2, %v16051_v12, %v1565_v22  ;;  %v16491_v10 = vrot.slane %v2612_v9, 4  ;;  %v16495_v8 = vrot.slane %v2619_v53, 4 }
  0xad   : > { %v1571_v20 = vld [vmem:[#allocation2 + $0x80] sm:$0x1]  ;;  %v1432_v52 = vld [vmem:[#allocation2 + $0x88] sm:$0xc]  ;;  %395 = vst [vmem:[#allocation2] sm:$0x1] %v394_v42 }
  0xae   : > { %1567 = vst [vmem:[#allocation2 + $0x74] sm:$0x1] %v1566_v56  ;;  %v1572_v9 = vsel %vm15506_vm2, %v16051_v12, %v1571_v20  ;;  %v2363_v17 = vld [vmem:[#allocation2 + $0x7c] sm:$0xf]  ;;  %v16506_v30 = vrot.slane %v2636_v41, 4  ;;  %v492_v11 = vsel %vm15567_vm9, 0, %v491_v5  ;;  %v1433_v53 = vsel %vm15670_vm13, %v16282_v58, %v1432_v52 }
  0xaf   : > { %1573 = vst [vmem:[#allocation2 + $0x80] sm:$0x1] %v1572_v9  ;;  %v2639_v28 = vshll.u32 %v2363_v17, 16  ;;  %v2643_v55 = vshrl.u32 %v2363_v17, 16  ;;  %v1577_v43 = vld [vmem:[#allocation2 + $0x8c] sm:$0x1]  ;;  %v1481_v9 = vrot.slane %v16273_v37, %v15562_v34 }
  0xb0   : > { %v1583_v12 = vld [vmem:[#allocation2 + $0x98] sm:$0x1]  ;;  %493 = vst [vmem:[#allocation2 + $0xb0] sm:$0x1] %v492_v11  ;;  %1434 = vst [vmem:[#allocation2 + $0x88] sm:$0xc] %v1433_v53  ;;  %v1578_v5 = vsel %vm15506_vm2, %v16442_v60, %v1577_v43 }
  0xb1   : > { %v961_v41 = vld [vmem:[#allocation2 + $0xc0] sm:$0x6]  ;;  %v1584_v51 = vsel %vm15506_vm2, %v16442_v60, %v1583_v12  ;;  %v1589_v21 = vld [vmem:[#allocation2 + $0xa4] sm:$0x1]  ;;  %v495_v19 = vsel %vm15567_vm9, 0, %v494_v36  ;;  %v498_v39 = vsel %vm15567_vm9, 0, %v497_v61  ;;  %v16537_v61 = vrot.slane %v16206_v31, %v15562_v34 }
  0xb2   : > { %v962_v62 = vsel %vm15615_vm12, %v16430_v49, %v961_v41  ;;  %v16530_v2 = vrot.slane %v2639_v28, 5  ;;  %v2645_v50 = vrot.slane %v2643_v55, 4  ;;  %1579 = vst [vmem:[#allocation2 + $0x8c] sm:$0x1] %v1578_v5  ;;  %v2365_v6 = vld [vmem:[#allocation2 + $0x84] sm:$0xf]  ;;  %v1590_v26 = vsel %vm15506_vm2, %v16513_v13, %v1589_v21 }
  0xb3   : > { %1585 = vst [vmem:[#allocation2 + $0x98] sm:$0x1] %v1584_v51  ;;  %496 = vst [vmem:[#allocation2 + $0xbc] sm:$0x1] %v495_v19  ;;  %v1032_v36 = vld [vmem:[#allocation2 + $0x90] sm:$0xc]  ;;  %v2622_v49 = vor.u32 %v16495_v8, %v16416_v45 }
  0xb4   : > { %499 = vst [vmem:[#allocation2 + $0xc8] sm:$0x1] %v498_v39  ;;  %v1435_v38 = vld [vmem:[#allocation2 + $0x94] sm:$0xc]  ;;  %v1358_v0 = vld [vmem:[#allocation2 + $0xa0] sm:$0x6]  ;;  %v1033_v22 = vsel %vm15670_vm13, %v16271_v24, %v1032_v36  ;;  %v2646_v37 = vor.u32 %v2645_v50, %v16530_v2 }
  0xb5   : > { %963 = vst [vmem:[#allocation2 + $0xc0] sm:$0x6] %v962_v62  ;;  %1591 = vst [vmem:[#allocation2 + $0xa4] sm:$0x1] %v1590_v26  ;;  %v1436_v42 = vsel %vm15670_vm13, %v16282_v58, %v1435_v38  ;;  %v1035_v56 = vld [vmem:[#allocation2 + $0x9c] sm:$0xc]  ;;  %v1359_v20 = vsel %vm15615_vm12, %v16475_v48, %v1358_v0  ;;  %v2642_v38 = vsel %vm16060_vm15, %v16506_v30, %v16530_v2 }
  0xb6   : > { %v1361_v31 = vld [vmem:[#allocation2 + $0xac] sm:$0x6]  ;;  %v1364_v52 = vld [vmem:[#allocation2 + $0xb8] sm:$0x6]  ;;  %1034 = vst [vmem:[#allocation2 + $0x90] sm:$0xc] %v1033_v22  ;;  %v1036_v24 = vsel %vm15670_vm13, %v16426_v14, %v1035_v56 }
  0xb7   : > { %1437 = vst [vmem:[#allocation2 + $0x94] sm:$0xc] %v1436_v42  ;;  %1360 = vst [vmem:[#allocation2 + $0xa0] sm:$0x6] %v1359_v20  ;;  %v1038_v8 = vld [vmem:[#allocation2 + $0xa8] sm:$0xc]  ;;  %v1362_v58 = vsel %vm15615_vm12, %v16475_v48, %v1361_v31  ;;  %v1365_v11 = vsel %vm15615_vm12, %v16501_v16, %v1364_v52 }
  0xb8   : > { %v1041_v17 = vld [vmem:[#allocation2 + $0xb4] sm:$0xc]  ;;  %v1367_v53 = vld [vmem:[#allocation2 + $0xc4] sm:$0x6]  ;;  %1037 = vst [vmem:[#allocation2 + $0x9c] sm:$0xc] %v1036_v24  ;;  %v1039_v28 = vsel %vm15670_vm13, %v16426_v14, %v1038_v8 }
  0xb9   : > { %1363 = vst [vmem:[#allocation2 + $0xac] sm:$0x6] %v1362_v58  ;;  %v1042_v55 = vsel %vm15670_vm13, %v16446_v59, %v1041_v17  ;;  %1366 = vst [vmem:[#allocation2 + $0xb8] sm:$0x6] %v1365_v11  ;;  %v1368_v48 = vsel %vm15615_vm12, %v16501_v16, %v1367_v53  ;;  %v16571_v43 = vld [vmem:[#allocation2 + $0x74] sm:$0x1]  ;;  %v2618_v16 = vsel %vm16060_vm15, %v16491_v10, %v16416_v45 }
  0xba   : > { %v2654_v12 = vshrl.u32 %v2365_v6, 16  ;;  %1040 = vst [vmem:[#allocation2 + $0xa8] sm:$0xc] %v1039_v28  ;;  %1043 = vst [vmem:[#allocation2 + $0xb4] sm:$0xc] %v1042_v55  ;;  %v2623_v14 = vrot.slane %v2622_v49, 4  ;;  %v16601_v45 = vcombine.low %v1481_v9, %v1481_v9 }
  0xbb   : > { %1369 = vst [vmem:[#allocation2 + $0xc4] sm:$0x6] %v1368_v48  ;;  %v2625_v41 = vshll.u32 %v16571_v43, 16  ;;  %v16576_v5 = vld [vmem:[#allocation2 + $0x80] sm:$0x1]  ;;  %v2647_v51 = vrot.slane %v2646_v37, 4 }
  0xbc   : > { %v2657_v21 = vshll.u32 %v2365_v6, 16  ;;  %v1574_v19 = vld [vmem:[#allocation2 + $0x88] sm:$0x8]  ;;  %v2649_v39 = vshll.u32 %v16576_v5, 16  ;;  %v16589_v62 = vrot.slane %v2654_v12, 4  ;;  %vm4908_vm12 = vcmask 60416  }
  0xbd   : > { %v1595_v50 = vld [vmem:[#allocation2 + $0xb0] sm:$0x1]  ;;  %v1575_v6 = vsel %vm15800_vm3, %v16442_v60, %v1574_v19  ;;  %v2627_v26 = vrot.slane %v2625_v41, 5  ;;  %v16594_v34 = vld [vmem:[#allocation2 + $0x8c] sm:$0x1]  ;;  %vm17587_vm8 = vmand %vm4908_vm12, %vm447_vm5 }
  0xbe   : > { %v16596_v29 = vrot.slane %v2657_v21, 5  ;;  %v1596_v36 = vsel %vm15506_vm2, %v16513_v13, %v1595_v50  ;;  %1576 = vst [vmem:[#allocation2 + $0x88] sm:$0x8] %v1575_v6  ;;  %v1044_v10 = vld [vmem:[#allocation2 + $0xc0] sm:$0xc]  ;;  %v2651_v0 = vrot.slane %v2649_v39, 5 }
  0xbf   : > { %v2673_v49 = vshll.u32 %v16594_v34, 16  ;;  %v16608_v22 = vld [vmem:[#allocation2 + $0x98] sm:$0x1]  ;;  %1597 = vst [vmem:[#allocation2 + $0xb0] sm:$0x1] %v1596_v36  ;;  %v1045_v42 = vsel %vm15670_vm13, %v16446_v59, %v1044_v10  ;;  %v2628_v56 = vsel %vm16060_vm15, %v2623_v14, %v2627_v26 }
  0xc0   : > { %v16615_v20 = vld [vmem:[#allocation2 + $0xa4] sm:$0x1]  ;;  %v1601_v31 = vld [vmem:[#allocation2 + $0xbc] sm:$0x1]  ;;  %v1607_v52 = vld [vmem:[#allocation2 + $0xc8] sm:$0x1]  ;;  %v16617_v2 = vcombine.low %v2618_v16, %v2628_v56  ;;  %v2652_v8 = vsel %vm16060_vm15, %v2647_v51, %v2651_v0  ;;  %v2660_v21 = vor.u32 %v16596_v29, %v16589_v62 }
  0xc1   : > { %v1180_v9 = vld [vmem:[#allocation2 + $0x90] sm:$0x8]  ;;  %v1580_v24 = vld [vmem:[#allocation2 + $0x94] sm:$0x8]  ;;  %v1438_v30 = vld [vmem:[#allocation2 + $0xa0] sm:$0xc]  ;;  %v1602_v59 = vsel %vm15506_vm2, %v16601_v45, %v1601_v31  ;;  %v1608_v58 = vsel %vm15506_vm2, %v16601_v45, %v1607_v52  ;;  %v16636_v48 = vcombine.low %v2642_v38, %v2652_v8 }
  0xc2   : > { %1046 = vst [vmem:[#allocation2 + $0xc0] sm:$0xc] %v1045_v42  ;;  %20024 = vst [vmem:[#allocation11_spill] sm:$0xff] %v16617_v2  ;;  %v1181_v17 = vsel %vm15800_vm3, %v16198_v32, %v1180_v9  ;;  %v1581_v11 = vsel %vm15800_vm3, %v16442_v60, %v1580_v24  ;;  %v1186_v53 = vld [vmem:[#allocation2 + $0x9c] sm:$0x8]  ;;  %v1439_v37 = vsel %vm15670_vm13, %v16537_v61, %v1438_v30  ;;  %13798 = vmatmul.mubr.msk.bf16.gmra.mrb[12].mxu0 %vm1737_vm4, %v16617_v2 }
  0xc3   : > { %v1441_v28 = vld [vmem:[#allocation2 + $0xac] sm:$0xc]  ;;  %v1444_v55 = vld [vmem:[#allocation2 + $0xb8] sm:$0xc]  ;;  %20025 = vst [vmem:[#allocation12_spill] sm:$0xff] %v16636_v48  ;;  %v1187_v32 = vsel %vm15800_vm3, %v16309_v7, %v1186_v53  ;;  %v2697_v39 = vshll.u32 %v16608_v22, 16  ;;  %13801 = vmatprep.mubr.msk.bf16.mxu0 %vm1737_vm4, %v16636_v48 }
  0xc4   : > { %1603 = vst [vmem:[#allocation2 + $0xbc] sm:$0x1] %v1602_v59  ;;  %1609 = vst [vmem:[#allocation2 + $0xc8] sm:$0x1] %v1608_v58  ;;  %v1192_v12 = vld [vmem:[#allocation2 + $0xa8] sm:$0x8]  ;;  %v1442_v60 = vsel %vm15670_vm13, %v16537_v61, %v1441_v28  ;;  %v1445_v41 = vsel %vm15670_vm13, %v16580_v4, %v1444_v55 }
  0xc5   : > { %1182 = vst [vmem:[#allocation2 + $0x90] sm:$0x8] %v1181_v17  ;;  %1582 = vst [vmem:[#allocation2 + $0x94] sm:$0x8] %v1581_v11  ;;  %v1198_v14 = vld [vmem:[#allocation2 + $0xb4] sm:$0x8]  ;;  %v1193_v19 = vsel %vm15800_vm3, %v16309_v7, %v1192_v12 }
  0xc6   : > { %1440 = vst [vmem:[#allocation2 + $0xa0] sm:$0xc] %v1439_v37  ;;  %v1447_v51 = vld [vmem:[#allocation2 + $0xc4] sm:$0xc]  ;;  %1188 = vst [vmem:[#allocation2 + $0x9c] sm:$0x8] %v1187_v32  ;;  %v1199_v16 = vsel %vm15800_vm3, %v16325_v15, %v1198_v14 }
  0xc7   : > { %1443 = vst [vmem:[#allocation2 + $0xac] sm:$0xc] %v1442_v60  ;;  %1446 = vst [vmem:[#allocation2 + $0xb8] sm:$0xc] %v1445_v41  ;;  %v1448_v61 = vsel %vm15670_vm13, %v16580_v4, %v1447_v51  ;;  %v444_v62 = vld [vmem:[#allocation2 + $0xcc] sm:$0x1] }
  0xc8   : > { %v500_v50 = vld [vmem:[#allocation2 + $0xd4] sm:$0x1]  ;;  %1194 = vst [vmem:[#allocation2 + $0xa8] sm:$0x8] %v1193_v19  ;;  %1200 = vst [vmem:[#allocation2 + $0xb4] sm:$0x8] %v1199_v16 }
  0xc9   : > { %1449 = vst [vmem:[#allocation2 + $0xc4] sm:$0xc] %v1448_v61  ;;  %v2721_v7 = vshll.u32 %v16615_v20, 16  ;;  %v445_v6 = vsel %vm15506_vm2, 0, %v444_v62  ;;  %v16666_v47 = vld [vmem:[#allocation2 + $0xd0] sm:$0xf] }
  0xca   : > { %v16668_v4 = vld [vmem:[#allocation2 + $0x84] sm:$0xff]   ;;  %446 = vst [vmem:[#allocation2 + $0xcc] sm:$0x1] %v445_v6  ;;  %v501_v29 = vsel %vm15567_vm9, 0, %v500_v50  ;;  %v2661_v36 = vrot.slane %v2660_v21, 4  ;;  %v2675_v56 = vrot.slane %v2673_v49, 5 }
  0xcb   : > { %v16670_v26 = vld [vmem:[#allocation2 + $0x88] sm:$0xf]  ;;  %v16676_v0 = vld [vmem:[#allocation2 + $0xb0] sm:$0x1]  ;;  %502 = vst [vmem:[#allocation2 + $0xd4] sm:$0x1] %v501_v29  ;;  %13635 = vmatprep.mubr.msk.bf16.mxu1 %vm1737_vm4, %v16668_v4 }
  0xcc   : > { %v2663_v10 = vshll.u32 %v16670_v26, 16  ;;  %v2667_v38 = vshrl.u32 %v16670_v26, 16  ;;  %v1204_v42 = vld [vmem:[#allocation2 + $0xc0] sm:$0x8]  ;;  %v16680_v31 = vrot.slane %v2697_v39, 5  ;;  %v16682_v52 = vrot.slane %v2721_v7, 5 }
  0xcd   : > { %v1205_v24 = vsel %vm15800_vm3, %v16325_v15, %v1204_v42  ;;  %v2745_v59 = vshll.u32 %v16676_v0, 16  ;;  %v16689_v58 = vld [vmem:[#allocation2 + $0x90] sm:$0xff]   ;;  %v1586_v49 = vld [vmem:[#allocation2 + $0xa0] sm:$0x8]  ;;  %v16707_v51 = vld [vmem:[#allocation2 + $0xbc] sm:$0x1] }
  0xce   : > { %v2665_v30 = vrot.slane %v2663_v10, 5  ;;  %v2669_v8 = vrot.slane %v2667_v38, 4  ;;  %1206 = vst [vmem:[#allocation2 + $0xc0] sm:$0x8] %v1205_v24  ;;  %v1592_v11 = vld [vmem:[#allocation2 + $0xac] sm:$0x8]  ;;  %13636 = vmatmul.mubr.msk.bf16.gmra.mrb[20].mxu1 %vm1737_vm4, %v16689_v58  ;;  %v1587_v37 = vsel %vm15800_vm3, %v16513_v13, %v1586_v49 }
  0xcf   : > { %v1593_v15 = vsel %vm15800_vm3, %v16513_v13, %v1592_v11  ;;  %v1598_v28 = vld [vmem:[#allocation2 + $0xb8] sm:$0x8]  ;;  %1588 = vst [vmem:[#allocation2 + $0xa0] sm:$0x8] %v1587_v37  ;;  %v2368_v14 = vld [vmem:[#allocation2 + $0x90] sm:$0xf] }
  0xd0   : > { %v2670_v53 = vor.u32 %v2669_v8, %v2665_v30  ;;  %1594 = vst [vmem:[#allocation2 + $0xac] sm:$0x8] %v1593_v15  ;;  %v1599_v55 = vsel %vm15800_vm3, %v16601_v45, %v1598_v28  ;;  %v1604_v32 = vld [vmem:[#allocation2 + $0xc4] sm:$0x8]  ;;  %v2666_v12 = vsel %vm16060_vm15, %v2661_v36, %v2665_v30  ;;  %v16705_v41 = vrot.slane %v2745_v59, 5 }
  0xd1   : > { %1600 = vst [vmem:[#allocation2 + $0xb8] sm:$0x8] %v1599_v55  ;;  %v1605_v13 = vsel %vm15800_vm3, %v16601_v45, %v1604_v32  ;;  %v16712_v21 = vld [vmem:[#allocation2 + $0x94] sm:$0xf]  ;;  %v2678_v19 = vshrl.u32 %v2368_v14, 16  ;;  %v2681_v16 = vshll.u32 %v2368_v14, 16 }
  0xd2   : > { %v2671_v60 = vrot.slane %v2670_v53, 4  ;;  %v2371_v61 = vld [vmem:[#allocation2 + $0x9c] sm:$0xf]  ;;  %1606 = vst [vmem:[#allocation2 + $0xc4] sm:$0x8] %v1605_v13  ;;  %v2687_v62 = vshll.u32 %v16712_v21, 16 }
  0xd3   : > { %v2691_v50 = vshrl.u32 %v16712_v21, 16  ;;  %v2702_v7 = vshrl.u32 %v2371_v61, 16  ;;  %v2374_v6 = vld [vmem:[#allocation2 + $0xa8] sm:$0xf]  ;;  %v2680_v36 = vrot.slane %v2678_v19, 4  ;;  %v2683_v23 = vrot.slane %v2681_v16, 5 }
  0xd4   : > { %v2676_v39 = vsel %vm16060_vm15, %v2671_v60, %v2675_v56  ;;  %v2705_v45 = vshll.u32 %v2371_v61, 16  ;;  %v2377_v10 = vld [vmem:[#allocation2 + $0xb4] sm:$0xf]  ;;  %v2689_v38 = vrot.slane %v2687_v62, 5  ;;  %v2726_v30 = vshrl.u32 %v2374_v6, 16 }
  0xd5   : > { %v16718_v29 = vcombine.low %v2666_v12, %v2676_v39  ;;  %v2693_v42 = vrot.slane %v2691_v50, 4  ;;  %v2704_v24 = vrot.slane %v2702_v7, 4  ;;  %v2684_v56 = vor.u32 %v2683_v23, %v2680_v36  ;;  %v15399_v35 = vld [vmem:[#allocation2 + $0x20] sm:$0x1] }
  0xd6   : > { %v2707_v8 = vrot.slane %v2705_v45, 5  ;;  %v2729_v59 = vshll.u32 %v2374_v6, 16  ;;  %v2769_v49 = vshll.u32 %v16707_v51, 16  ;;  %v2728_v53 = vrot.slane %v2726_v30, 4  ;;  %v16723_v28 = vld [vmem:[#allocation2 + $0x9c] sm:$0xff]  }
  0xd7   : > { %20026 = vst [vmem:[#allocation13_spill] sm:$0xff] %v16718_v29  ;;  %13802 = vmatmul.mubr.msk.bf16.gmra.mrb[16].mxu0 %vm1737_vm4, %v16718_v29  ;;  %v2694_v11 = vor.u32 %v2693_v42, %v2689_v38  ;;  %v2750_v37 = vshrl.u32 %v2377_v10, 16  ;;  %v2753_v15 = vshll.u32 %v2377_v10, 16  ;;  %v2685_v55 = vrot.slane %v2684_v56, 4  ;;  %v16725_v12 = vld [vmem:[#allocation2 + $0xa8] sm:$0xff]   ;;  %13639 = vmatprep.mubr.msk.bf16.mxu1 %vm1737_vm4, %v16723_v28 }
  0xd8   : > { %v2708_v32 = vor.u32 %v2707_v8, %v2704_v24  ;;  %v16727_v60 = vld [vmem:[#allocation2 + $0xb4] sm:$0xff]   ;;  %v2731_v13 = vrot.slane %v2729_v59, 5  ;;  %v16733_v16 = vld [vmem:[#allocation2 + $0xa0] sm:$0xf]  ;;  %v16735_v39 = vrot.slane %v2769_v49, 5  ;;  %13640 = vmatmul.mubr.msk.bf16.gmra.mrb[24].mxu1 %vm1737_vm4, %v16725_v12  ;;  %vm5569_vm13 = vcmask 126016  }
  0xd9   : > { %v2695_v14 = vrot.slane %v2694_v11, 4  ;;  %v2690_v19 = vsel %vm16060_vm15, %v2685_v55, %v2689_v38  ;;  %v2711_v50 = vshll.u32 %v16733_v16, 16  ;;  %v2715_v7 = vshrl.u32 %v16733_v16, 16  ;;  %v16744_v6 = vld [vmem:[#allocation2 + $0xac] sm:$0xf]  ;;  %13643 = vmatprep.mubr.msk.bf16.mxu1 %vm1737_vm4, %v16727_v60  ;;  %v16758_v55 = vld [vmem:[#allocation2 + $0xc0] sm:$0xff]  }
  0xda   : > { %v2709_v61 = vrot.slane %v2708_v32, 4  ;;  %v2732_v36 = vor.u32 %v2731_v13, %v2728_v53  ;;  %v16746_v23 = vld [vmem:[#allocation2 + $0xb8] sm:$0xf]  ;;  %v2735_v10 = vshll.u32 %v16744_v6, 16  ;;  %v2739_v38 = vshrl.u32 %v16744_v6, 16 }
  0xdb   : > { %v2700_v62 = vsel %vm16060_vm15, %v2695_v14, %v16680_v31  ;;  %v2752_v42 = vrot.slane %v2750_v37, 4  ;;  %v2380_v31 = vld [vmem:[#allocation2 + $0xc0] sm:$0xf]  ;;  %v2713_v24 = vrot.slane %v2711_v50, 5  ;;  %v2717_v30 = vrot.slane %v2715_v7, 4 }
  0xdc   : > { %v16750_v45 = vcombine.low %v2690_v19, %v2700_v62  ;;  %v2733_v56 = vrot.slane %v2732_v36, 4  ;;  %v2755_v8 = vrot.slane %v2753_v15, 5  ;;  %v2737_v59 = vrot.slane %v2735_v10, 5  ;;  %v16762_v13 = vld [vmem:[#allocation2 + $0xc4] sm:$0xf] }
  0xdd   : > { %v2741_v49 = vrot.slane %v2739_v38, 4  ;;  %v2759_v11 = vshll.u32 %v16746_v23, 16  ;;  %v2763_v53 = vshrl.u32 %v16746_v23, 16  ;;  %v2714_v32 = vsel %vm16060_vm15, %v2709_v61, %v2713_v24  ;;  %v15332_v15 = vld [vmem:[#allocation2] sm:$0xff]   ;;  %v16766_v10 = vld [vmem:[#allocation2 + $0xc8] sm:$0x1] }
  0xde   : > { %20027 = vst [vmem:[#allocation14_spill] sm:$0xff] %v16750_v45  ;;  %13805 = vmatprep.mubr.msk.bf16.mxu0 %vm1737_vm4, %v16750_v45  ;;  %v2718_v37 = vor.u32 %v2717_v30, %v2713_v24  ;;  %v2756_v14 = vor.u32 %v2755_v8, %v2752_v42  ;;  %v3072_v19 = vshrl.u32 %v2380_v31, 16  ;;  %v2738_v62 = vsel %vm16060_vm15, %v2733_v56, %v2737_v59  ;;  %v3546_v29 = vld [vmem:[#allocation2 + $0x84] sm:$0xe] }
  0xdf   : > { %v2742_v50 = vor.u32 %v2741_v49, %v2737_v59  ;;  %v2761_v7 = vrot.slane %v2759_v11, 5  ;;  %v2765_v36 = vrot.slane %v2763_v53, 4  ;;  %v3075_v3 = vshll.u32 %v2380_v31, 16  ;;  %v2383_v59 = vld [vmem:[#allocation2 + $0xcc] sm:$0xf] }
  0xe0   : > { %v2719_v38 = vrot.slane %v2718_v37, 4  ;;  %v2757_v17 = vrot.slane %v2756_v14, 4  ;;  %v3074_v9 = vrot.slane %v3072_v19, 4  ;;  %v3081_v42 = vshll.u32 %v16762_v13, 16  ;;  %13644 = vmatmul.mubr.msk.bf16.gmra.mrb[28].mxu1 %vm1737_vm4, %v16758_v55  ;;  %v449_v49 = vld [vmem:[#allocation2 + $0x8] sm:$0x1] }
  0xe1   : > { %v2743_v45 = vrot.slane %v2742_v50, 4  ;;  %v2766_v61 = vor.u32 %v2765_v36, %v2761_v7  ;;  %v3085_v24 = vshrl.u32 %v16762_v13, 16  ;;  %v3077_v56 = vrot.slane %v3075_v3, 5  ;;  %13649 = vmatprep.mubr.msk.bf16.mxu1 %vm1737_vm4, %v15332_v15  ;;  %v2385_v50 = vld [vmem:[#allocation2 + $0xd4] sm:$0x1] }
  0xe2   : > { %v2724_v30 = vsel %vm16060_vm15, %v2719_v38, %v16682_v52  ;;  %v3091_v8 = vshll.u32 %v16766_v10, 16  ;;  %v3083_v37 = vrot.slane %v3081_v42, 5  ;;  %v2762_v52 = vsel %vm16060_vm15, %v2757_v17, %v2761_v7 }
  0xe3   : > { %v16777_v31 = vcombine.low %v2714_v32, %v2724_v30  ;;  %v2748_v11 = vsel %vm16060_vm15, %v2743_v45, %v16705_v41  ;;  %v2767_v53 = vrot.slane %v2766_v61, 4  ;;  %v3078_v3 = vor.u32 %v3077_v56, %v3074_v9  ;;  %v16790_v41 = vld [vmem:[#allocation2 + $0x4] sm:$0xf] }
  0xe4   : > { %v16782_v14 = vcombine.low %v2738_v62, %v2748_v11  ;;  %v3087_v19 = vrot.slane %v3085_v24, 4  ;;  %v3093_v15 = vrot.slane %v3091_v8, 5  ;;  %v3304_v32 = vshrl.u32 %v2383_v59, 16 }
  0xe5   : > { %20028 = vst [vmem:[#allocation15_spill] sm:$0xff] %v16777_v31  ;;  %13806 = vmatmul.mubr.msk.bf16.gmra.mrb[20].mxu0 %vm1737_vm4, %v16777_v31  ;;  %v3307_v36 = vshll.u32 %v2383_v59, 16  ;;  %v20030_v38 = vshll.u32 %v16666_v47, 16  ;;  %v2772_v9 = vsel %vm16060_vm15, %v2767_v53, %v16735_v39  ;;  %v3079_v17 = vrot.slane %v3078_v3, 4  ;;  %v16806_v39 = vld [vmem:[%s19924_s2 + $0x8] sm:$0xff]   ;;  %v16843_v31 = vld [vmem:[#allocation2 + $0x30] sm:$0xff]  }
  0xe6   : > { %20029 = vst [vmem:[#allocation16_spill] sm:$0xff] %v16782_v14  ;;  %13809 = vmatprep.mubr.msk.bf16.mxu0 %vm1737_vm4, %v16782_v14  ;;  %v3088_v45 = vor.u32 %v3087_v19, %v3083_v37  ;;  %v20031_v62 = vshrl.u32 %v16666_v47, 16  ;;  %v3306_v61 = vrot.slane %v3304_v32, 4  ;;  %v3323_v24 = vshll.u32 %v2385_v50, 16  ;;  %v3535_v3 = vld [vmem:[#allocation2] sm:$0xe] }
  0xe7   : > { %v3315_v30 = vrot.slane %v20030_v38, 5  ;;  %v3309_v42 = vrot.slane %v3307_v36, 5  ;;  %v450_v56 = vsel %vm15567_vm9, 0, %v449_v49  ;;  %v3084_v8 = vsel %vm16060_vm15, %v3079_v17, %v3083_v37  ;;  %v15393_v19 = vld [vmem:[#allocation2 + $0xc] sm:$0xff]   ;;  %v3537_v36 = vld [vmem:[#allocation2 + $0x18] sm:$0xe] }
  0xe8   : > { %v3319_v7 = vrot.slane %v20031_v62, 4  ;;  %v3089_v59 = vrot.slane %v3088_v45, 4  ;;  %451 = vst [vmem:[#allocation2 + $0x8] sm:$0x1] %v450_v56  ;;  %v16808_v53 = vcombine.low %v2762_v52, %v2772_v9  ;;  %13650 = vmatmul.mubr.msk.bf16.vlgmr.msra.gmra.mrb[0].mxu1 %vm1737_vm4, %v15393_v19  ;;  %v3325_v37 = vrot.slane %v3323_v24, 5  ;;  %v16814_v38 = vld [vmem:[#allocation2 + $0x18] sm:$0xff]  }
  0xe9   : > { %v3310_v47 = vor.u32 %v3309_v42, %v3306_v61  ;;  %v3606_v32 = vrot.slane %v16790_v41, 5  ;;  %13653 = vmatprep.mubr.msk.bf16.mxu1 %vm1737_vm4, %v16814_v38  ;;  %v15395_v52 = vld [vmem:[%s19924_s2 + $0x30] sm:$0xff]   ;;  %v15396_v45 = vld [vmem:[#allocation2 + $0x1c] sm:$0xf]  ;;  %v3538_v62 = vld [vmem:[#allocation2 + $0x24] sm:$0xe] }
  0xea   : > { %v3320_v11 = vor.u32 %v3319_v7, %v3315_v30  ;;  %20032 = vst [vmem:[#allocation17_spill] sm:$0xff] %v16808_v53  ;;  %v3094_v49 = vsel %vm16060_vm15, %v3089_v59, %v3093_v15  ;;  %13682 = vmatpush3.bf16.msra.mxu1 %v15395_v52  ;;  %v3620_v15 = vrot.slane %v15396_v45, 5  ;;  %v12377_v7 = vrot.slane %v3535_v3, 9  ;;  %v3539_v61 = vld [vmem:[#allocation2 + $0x30] sm:$0xe] }
  0xeb   : > { %v16821_v9 = vcombine.low %v3084_v8, %v3094_v49  ;;  %v3311_v17 = vrot.slane %v3310_v47, 4  ;;  %13715 = vmatprep.subr.bf16.mxu1 %v16806_v39  ;;  %v3608_v56 = vrot.slane %v3606_v32, 4  ;;  %v15397_v8 = vld [vmem:[#allocation2 + $0x28] sm:$0xf]  ;;  %v12379_v47 = vrot.slane %v3537_v36, 9 }
  0xec   : > { %v3321_v50 = vrot.slane %v3320_v11, 4  ;;  %v3627_v59 = vrot.slane %v15397_v8, 5  ;;  %v3622_v3 = vrot.slane %v3620_v15, 4  ;;  %v15398_v19 = vld [vmem:[#allocation2 + $0x34] sm:$0xf]  ;;  %v3607_v52 = vsel %vm16041_vm14, %v12377_v7, %v3606_v32  ;;  %v16837_v8 = vld [vmem:[#allocation2 + $0x24] sm:$0xff]  }
  0xed   : > { %20033 = vst [vmem:[#allocation18_spill] sm:$0xff] %v16821_v9  ;;  %13810 = vmatmul.mubr.msk.bf16.gmra.mrb[24].mxu0 %vm1737_vm4, %v16808_v53  ;;  %v3316_v42 = vsel %vm16060_vm15, %v3311_v17, %v3315_v30  ;;  %v3634_v49 = vrot.slane %v15398_v19, 5  ;;  %v12380_v30 = vrot.slane %v3538_v62, 9  ;;  %v15400_v53 = vld [vmem:[#allocation2 + $0x2c] sm:$0x1]  ;;  %vm4915_vm3 = vcmask 57344  }
  0xee   : > { %13813 = vmatprep.mubr.msk.bf16.mxu0 %vm1737_vm4, %v16821_v9  ;;  %v3326_v24 = vsel %vm16060_vm15, %v3321_v50, %v3325_v37  ;;  %v3623_v9 = vrot.slane %v15399_v35, 5  ;;  %v3630_v50 = vrot.slane %v15400_v53, 5  ;;  %v12381_v37 = vrot.slane %v3539_v61, 9  ;;  %v3540_v14 = vld [vmem:[#allocation2 + $0x3c] sm:$0xe]  ;;  %vm17598_vm10 = vmand %vm4915_vm3, %vm391_vm1 }
  0xef   : > { %v16832_v11 = vld [vmem:[#allocation2 + $0x8] sm:$0x1]  ;;  %v12359_v17 = vcombine.low %v3316_v42, %v3326_v24  ;;  %v3629_v19 = vrot.slane %v3627_v59, 4  ;;  %v15402_v32 = vld [vmem:[#allocation2 + $0x38] sm:$0x1]  ;;  %v3636_v53 = vrot.slane %v3634_v49, 4  ;;  %v3621_v24 = vsel %vm16041_vm14, %v12379_v47, %v3620_v15  ;;  %vm17662_vm3 = vmand %vm5576_vm11, %vm391_vm1 }
  0xf0   : > { %v3609_v45 = vrot.slane %v16832_v11, 5  ;;  %13654 = vmatmul.mubr.msk.bf16.gmra.mrb[4].mxu1 %vm1737_vm4, %v16837_v8  ;;  %v3637_v7 = vrot.slane %v15402_v32, 5  ;;  %v15404_v62 = vld [vmem:[#allocation2 + $0x40] sm:$0xf]  ;;  %v3541_v42 = vld [vmem:[#allocation2 + $0x48] sm:$0xe] }
  0xf1   : > { %13657 = vmatprep.mubr.msk.bf16.mxu1 %vm1737_vm4, %v16843_v31  ;;  %v3641_v61 = vrot.slane %v15404_v62, 5  ;;  %v15405_v32 = vld [vmem:[#allocation2 + $0x44] sm:$0x1]  ;;  %vm4585_vm0 = vsmask.f32 4368 }
  0xf2   : > { %v3610_v36 = vsel %vm16041_vm14, %v3608_v56, %v3609_v45  ;;  %v3624_v56 = vsel %vm16041_vm14, %v3622_v3, %v3623_v9  ;;  %v3628_v45 = vsel %vm16041_vm14, %v12380_v30, %v3627_v59  ;;  %v3644_v62 = vrot.slane %v15405_v32, 5  ;;  %v3547_v3 = vld [vmem:[#allocation2 + $0x90] sm:$0xe]  ;;  %v15406_v59 = vld [vmem:[#allocation2 + $0x4c] sm:$0xf]  ;;  %vm17116_vm6 = vmor %vm391_vm1, %vm4585_vm0 }
  0xf3   : > { %v12395_v35 = vcombine.low %v3607_v52, %v3610_v36  ;;  %v3631_v52 = vsel %vm16041_vm14, %v3629_v19, %v3630_v50  ;;  %v12382_v36 = vrot.slane %v3540_v14, 9  ;;  %v3638_v15 = vsel %vm16041_vm14, %v3636_v53, %v3637_v7  ;;  %v16865_v50 = vld [vmem:[#allocation2 + $0x50] sm:$0x1]  ;;  %v3548_v19 = vld [vmem:[#allocation2 + $0x9c] sm:$0xe]  ;;  %vm17635_vm0 = vmand %vm5569_vm13, %vm447_vm5 }
  0xf4   : > { %v3643_v47 = vrot.slane %v3641_v61, 4  ;;  %v12383_v9 = vrot.slane %v3541_v42, 9  ;;  %v16863_v48 = vcombine.low %v3628_v45, %v3631_v52  ;;  %v3648_v30 = vrot.slane %v15406_v59, 5  ;;  %v16896_v32 = vld [vmem:[#allocation2 + $0x58] sm:$0xf]  ;;  %vm18795_vm1 = vmand %vm381_vm7, %vm447_vm5 }
  0xf5   : > { %13814 = vmatmul.mubr.msk.bf16.gmra.mrb[28].mxu0 %vm1737_vm4, %v12359_v17  ;;  %v3635_v17 = vsel %vm16041_vm14, %v12381_v37, %v3634_v49  ;;  %v16871_v49 = vld [vmem:[%s19924_s2 + $0x40] sm:$0xff]   ;;  %v16881_v53 = vsel %vm16041_vm14, %v12382_v36, %v3641_v61  ;;  %v12388_v42 = vrot.slane %v3546_v29, 9  ;;  %v3686_v29 = vrot.slane %v16594_v34, 5  ;;  %v15411_v34 = vld [vmem:[%s19924_s2 + $0x28] sm:$0xff]  }
  0xf6   : > { %13819 = vmatprep.mubr.msk.bf16.mxu0 %vm1737_vm4, %v12395_v35  ;;  %v16861_v35 = vcombine.low %v3621_v24, %v3624_v56  ;;  %v16873_v37 = vld [vmem:[#allocation2 + $0x3c] sm:$0xff]   ;;  %v16877_v7 = vcombine.low %v3635_v17, %v3638_v15  ;;  %v3683_v24 = vrot.slane %v16670_v26, 5  ;;  %v16884_v56 = vld [vmem:[#allocation2 + $0x48] sm:$0xff]   ;;  %v16890_v45 = vsel %vm16041_vm14, %v3643_v47, %v3644_v62 }
  0xf7   : > { %v16894_v52 = vsel %vm16041_vm14, %v12383_v9, %v3648_v30  ;;  %v3549_v26 = vld [vmem:[#allocation2 + $0xa8] sm:$0xe]  ;;  %v12389_v15 = vrot.slane %v3547_v3, 9  ;;  %v3690_v59 = vrot.slane %v16712_v21, 5  ;;  %v3650_v62 = vrot.slane %v3648_v30, 4 }
  0xf8   : > { %13658 = vmatmul.mubr.msk.bf16.gmra.mrb[8].mxu1 %vm1737_vm4, %v16873_v37  ;;  %v3684_v36 = vsel %vm16041_vm14, %v12388_v42, %v3683_v24  ;;  %v3685_v17 = vrot.slane %v3683_v24, 4  ;;  %v3693_v47 = vrot.slane %v16608_v22, 5  ;;  %v12390_v9 = vrot.slane %v3548_v19, 9  ;;  %v16912_v3 = vld [vmem:[#allocation2 + $0x64] sm:$0xf] }
  0xf9   : > { %13661 = vmatprep.mubr.msk.bf16.mxu1 %vm1737_vm4, %v16884_v56  ;;  %v3697_v14 = vrot.slane %v16733_v16, 5  ;;  %v3691_v22 = vsel %vm16041_vm14, %v12389_v15, %v3690_v59  ;;  %v3692_v19 = vrot.slane %v3690_v59, 4  ;;  %v3550_v16 = vld [vmem:[#allocation2 + $0xb4] sm:$0xe]  ;;  %v3700_v61 = vrot.slane %v16615_v20, 5 }
  0xfa   : > { %v3687_v30 = vsel %vm16041_vm14, %v3685_v17, %v3686_v29  ;;  %v12391_v2 = vrot.slane %v3549_v26, 9  ;;  %v3704_v29 = vrot.slane %v16744_v6, 5  ;;  %v3707_v17 = vrot.slane %v16676_v0, 5  ;;  %v2332_v15 = vld [vmem:[#allocation2] sm:$0xf]  ;;  %v16934_v20 = vld [vmem:[#allocation2 + $0x54] sm:$0xff]  }
  0xfb   : > { %v16919_v42 = vcombine.low %v3684_v36, %v3687_v30  ;;  %v3698_v24 = vsel %vm16041_vm14, %v12390_v9, %v3697_v14  ;;  %v3694_v21 = vsel %vm16041_vm14, %v3692_v19, %v3693_v47  ;;  %v12392_v9 = vrot.slane %v3550_v16, 9 }
  0xfc   : > { %v16929_v59 = vcombine.low %v3691_v22, %v3694_v21  ;;  %v3705_v6 = vsel %vm16041_vm14, %v12391_v2, %v3704_v29  ;;  %v3706_v0 = vrot.slane %v3704_v29, 4  ;;  %v3714_v26 = vrot.slane %v16707_v51, 5  ;;  %v16943_v21 = vld [vmem:[#allocation2 + $0x60] sm:$0xff]  }
  0xfd   : > { %13820 = vmatmul.mubr.msk.bf16.vlgmr.msra.gmra.mrb[0].mxu0 %vm1737_vm4, %v16088_v44  ;;  %v2390_v30 = vshrl.u32 %v2332_v15, 16  ;;  %v2393_v22 = vshll.u32 %v2332_v15, 16  ;;  %v2399_v16 = vshll.u32 %v16790_v41, 16  ;;  %v2403_v2 = vshrl.u32 %v16790_v41, 16 }
  0xfe   : > { %13852 = vmatpush3.bf16.msra.mxu0 %v15411_v34  ;;  %13823 = vmatprep.mubr.msk.bf16.mxu0 %vm1737_vm4, %v16861_v35  ;;  %v3699_v34 = vrot.slane %v3697_v14, 4  ;;  %v3711_v14 = vrot.slane %v16746_v23, 5  ;;  %v3708_v19 = vsel %vm16041_vm14, %v3706_v0, %v3707_v17  ;;  %v2409_v51 = vshll.u32 %v16832_v11, 16  ;;  %v3551_v0 = vld [vmem:[#allocation2 + $0xc0] sm:$0xe] }
  0xff   : > { %13885 = vmatprep.subr.bf16.mxu0 %v16871_v49  ;;  %v2395_v15 = vrot.slane %v2393_v22, 5  ;;  %v20034_v17 = vrot.slane %v16865_v50, 5  ;;  %v12428_v33 = vrot.slane %v3551_v0, 9 }
 0x100   : > { %v3701_v36 = vsel %vm16041_vm14, %v3699_v34, %v3700_v61  ;;  %13662 = vmatmul.mubr.msk.bf16.gmra.mrb[12].mxu1 %vm1737_vm4, %v16934_v20  ;;  %v3712_v23 = vsel %vm16041_vm14, %v12392_v9, %v3711_v14  ;;  %v3713_v61 = vrot.slane %v3711_v14, 4  ;;  %v16956_v34 = vcombine.low %v3705_v6, %v3708_v19  ;;  %v3543_v6 = vld [vmem:[#allocation2 + $0x60] sm:$0xe] }
 0x101   : > { %v16938_v47 = vcombine.low %v3698_v24, %v3701_v36  ;;  %13665 = vmatprep.mubr.msk.bf16.mxu1 %vm1737_vm4, %v16943_v21  ;;  %v3542_v24 = vld [vmem:[#allocation2 + $0x54] sm:$0xe]  ;;  %v2392_v36 = vrot.slane %v2390_v30, 4  ;;  %v3652_v41 = vsel %vm16041_vm14, %v3650_v62, %v20034_v17  ;;  %v2401_v9 = vrot.slane %v2399_v16, 5  ;;  %v15415_v62 = vld [vmem:[#allocation2 + $0x5c] sm:$0x1] }
 0x102   : > { %v3715_v29 = vsel %vm16041_vm14, %v3713_v61, %v3714_v26  ;;  %v2405_v14 = vrot.slane %v2403_v2, 4  ;;  %v4019_v26 = vrot.slane %v16762_v13, 5  ;;  %v4022_v61 = vrot.slane %v16766_v10, 5  ;;  %v15418_v17 = vld [vmem:[#allocation2 + $0x68] sm:$0x1] }
 0x103   : > { %v16966_v11 = vcombine.low %v3712_v23, %v3715_v29  ;;  %v2396_v19 = vor.u32 %v2395_v15, %v2392_v36  ;;  %v16972_v30 = vcombine.low %v16881_v53, %v16890_v45  ;;  %v12384_v50 = vrot.slane %v3542_v24, 9  ;;  %v16976_v36 = vld [vmem:[#allocation2 + $0x6c] sm:$0xff]   ;;  %v16985_v24 = vld [vmem:[#allocation2 + $0x78] sm:$0xff]  }
 0x104   : > { %v2406_v22 = vor.u32 %v2405_v14, %v2401_v9  ;;  %v2411_v57 = vrot.slane %v2409_v51, 5  ;;  %v3658_v23 = vrot.slane %v15415_v62, 5  ;;  %v4020_v16 = vsel %vm16041_vm14, %v12428_v33, %v4019_v26 }
 0x105   : > { %13824 = vmatmul.mubr.msk.bf16.gmra.mrb[4].mxu0 %vm1737_vm4, %v16863_v48  ;;  %v2397_v29 = vrot.slane %v2396_v19, 4  ;;  %v4021_v2 = vrot.slane %v4019_v26, 4  ;;  %v16981_v13 = vcombine.low %v16894_v52, %v3652_v41  ;;  %v20035_v10 = vrot.slane %v16896_v32, 5  ;;  %v3545_v32 = vld [vmem:[#allocation2 + $0x78] sm:$0xe] }
 0x106   : > { %13827 = vmatprep.mubr.msk.bf16.mxu0 %vm1737_vm4, %v16877_v7  ;;  %v12385_v45 = vrot.slane %v3543_v6, 9  ;;  %v2407_v51 = vrot.slane %v2406_v22, 4  ;;  %v20036_v33 = vrot.slane %v16912_v3, 5  ;;  %v3665_v14 = vrot.slane %v15418_v17, 5  ;;  %v15419_v22 = vld [vmem:[#allocation2 + $0x70] sm:$0xf] }
 0x107   : > { %v3657_v53 = vrot.slane %v20035_v10, 4  ;;  %v2402_v0 = vsel %vm16060_vm15, %v2397_v29, %v2401_v9  ;;  %v4023_v52 = vsel %vm16041_vm14, %v4021_v2, %v4022_v61  ;;  %v20037_v26 = vmov %v20035_v10  ;;  %v3544_v2 = vld [vmem:[#allocation2 + $0x6c] sm:$0xe]  ;;  %v15420_v10 = vld [vmem:[#allocation2 + $0x7c] sm:$0xf] }
 0x108   : > { %13666 = vmatmul.mubr.msk.bf16.gmra.mrb[16].mxu1 %vm1737_vm4, %v16976_v36  ;;  %v3664_v15 = vrot.slane %v20036_v33, 4  ;;  %v2412_v41 = vsel %vm16060_vm15, %v2407_v51, %v2411_v57  ;;  %v16997_v6 = vcombine.low %v4020_v16, %v4023_v52  ;;  %v3656_v9 = vsel %vm16041_vm14, %v12384_v50, %v20037_v26 }
 0x109   : > { %13669 = vmatprep.mubr.msk.bf16.mxu1 %vm1737_vm4, %v16985_v24  ;;  %v17001_v19 = vcombine.low %v2402_v0, %v2412_v41  ;;  %v3659_v61 = vsel %vm16041_vm14, %v3657_v53, %v3658_v23  ;;  %v3669_v57 = vrot.slane %v15419_v22, 5  ;;  %v20038_v62 = vmov %v20036_v33 }
 0x10a   : > { %v3663_v29 = vsel %vm16041_vm14, %v12385_v45, %v20038_v62  ;;  %v3666_v16 = vsel %vm16041_vm14, %v3664_v15, %v3665_v14  ;;  %v3676_v51 = vrot.slane %v15420_v10, 5  ;;  %v17017_v33 = vcombine.low %v3656_v9, %v3659_v61  ;;  %v5030_v61 = vld [vmem:[%s17097_s30 + $0x28] sm:$0xff] }
 0x10b   : > { %v17021_v50 = vcombine.low %v3663_v29, %v3666_v16  ;;  %v12386_v23 = vrot.slane %v3544_v2, 9  ;;  %v3671_v53 = vrot.slane %v3669_v57, 4  ;;  %v3672_v3 = vrot.slane %v16571_v43, 5 }
 0x10c   : > { %v12387_v45 = vrot.slane %v3545_v32, 9  ;;  %v3678_v15 = vrot.slane %v3676_v51, 4  ;;  %v3679_v17 = vrot.slane %v16576_v5, 5  ;;  %v13095_v32 = vpack.c.bf16 %v5030_v61, %v5030_v61 }
 0x10d   : > { %13828 = vmatmul.mubr.msk.bf16.gmra.mrb[8].mxu0 %vm1737_vm4, %v16972_v30  ;;  %v3670_v14 = vsel %vm16041_vm14, %v12386_v23, %v3669_v57  ;;  %v3673_v0 = vsel %vm16041_vm14, %v3671_v53, %v3672_v3  ;;  %v20039_v3 = vmov 0 }
 0x10e   : > { %13831 = vmatprep.mubr.msk.bf16.mxu0 %vm1737_vm4, %v16981_v13  ;;  %v3677_v43 = vsel %vm16041_vm14, %v12387_v45, %v3676_v51  ;;  %v3680_v52 = vsel %vm16041_vm14, %v3678_v15, %v3679_v17  ;;  %v17039_v41 = vcombine.low %v3670_v14, %v3673_v0  ;;  %v20040_v3 = vsel %vm17116_vm6, 4294967295, %v20039_v3  ;;  %v5031_v17 = vld [vmem:[%s17097_s30 + $0x30] sm:$0xff]  ;;  %v5032_v14 = vld [vmem:[%s17097_s30 + $0x38] sm:$0xff] }
 0x10f   : > { %v17043_v5 = vcombine.low %v3677_v43, %v3680_v52  ;;  %20041 = vst [vmem:[#allocation19_spill] sm:$0xff] %v20040_v3 }
 0x110   : > { %13670 = vmatmul.mubr.msk.bf16.gmra.mrb[20].mxu1 %vm1737_vm4, %v16668_v4 }
 0x111   : > { %13673 = vmatprep.mubr.msk.bf16.mxu1 %vm1737_vm4, %v16689_v58 }
 0x115   : > { %13832 = vmatmul.mubr.msk.bf16.gmra.mrb[12].mxu0 %vm1737_vm4, %v17017_v33 }
 0x116   : > { %13835 = vmatprep.mubr.msk.bf16.mxu0 %vm1737_vm4, %v17021_v50 }
 0x118   : > { %13674 = vmatmul.mubr.msk.bf16.gmra.mrb[24].mxu1 %vm1737_vm4, %v16723_v28 }
 0x119   : > { %13677 = vmatprep.mubr.msk.bf16.mxu1 %vm1737_vm4, %v16725_v12 }
 0x11d   : > { %13836 = vmatmul.mubr.msk.bf16.gmra.mrb[16].mxu0 %vm1737_vm4, %v17039_v41 }
 0x11e   : > { %13839 = vmatprep.mubr.msk.bf16.mxu0 %vm1737_vm4, %v17043_v5 }
 0x120   : > { %13678 = vmatmul.mubr.msk.bf16.gmra.mrb[28].mxu1 %vm1737_vm4, %v16727_v60 }
 0x121   : > { %13683 = vmatprep.mubr.msk.bf16.mxu1 %vm1737_vm4, %v16814_v38  ;;  %v17067_v38 = vld [vmem:[%s19924_s2 + $0x20] sm:$0xff]  }
 0x125   : > { %13840 = vmatmul.mubr.msk.bf16.gmra.mrb[20].mxu0 %vm1737_vm4, %v16919_v42 }
 0x126   : > { %13843 = vmatprep.mubr.msk.bf16.mxu0 %vm1737_vm4, %v16929_v59 }
 0x128   : > { %13684 = vmatmul.mubr.msk.bf16.vlgmr.msra.gmra.mrb[0].mxu1 %vm1737_vm4, %v16837_v8  ;;  %v5028_v8 = vld [vmem:[%s17097_s30 + $0x18] sm:$0xff] }
 0x129   : > { %13687 = vmatprep.mubr.msk.bf16.mxu1 %vm1737_vm4, %v16843_v31  ;;  %13716 = vmatpush3.bf16.msra.mxu1 %v16806_v39  ;;  %v5025_v39 = vld [vmem:[%s17097_s30] sm:$0xff] }
 0x12a   : > { %14531 = vmatprep.subr.bf16.mxu1 %v17067_v38 }
 0x12d   : > { %13844 = vmatmul.mubr.msk.bf16.gmra.mrb[24].mxu0 %vm1737_vm4, %v16938_v47 }
 0x12e   : > { %13847 = vmatprep.mubr.msk.bf16.mxu0 %vm1737_vm4, %v16956_v34 }
 0x130   : > { %13688 = vmatmul.mubr.msk.bf16.gmra.mrb[4].mxu1 %vm1737_vm4, %v16873_v37  ;;  %v13090_v37 = vpack.c.bf16 %v5025_v39, %v5025_v39 }
 0x131   : > { %13691 = vmatprep.mubr.msk.bf16.mxu1 %vm1737_vm4, %v16884_v56  ;;  %v13093_v56 = vpack.c.bf16 %v5028_v8, %v5028_v8 }
 0x133   : > { %v5179_v57 = vshrl.u32 %v13093_v56, 16  ;;  %v5182_v29 = vshll.u32 %v13093_v56, 16 }
 0x135   : > { %13848 = vmatmul.mubr.msk.bf16.gmra.mrb[28].mxu0 %vm1737_vm4, %v16966_v11  ;;  %v17113_v10 = vrot.slane %v5179_v57, 7 }
 0x136   : > { %13853 = vmatprep.mubr.msk.bf16.mxu0 %vm1737_vm4, %v16088_v44  ;;  %v5027_v44 = vld [vmem:[%s17097_s30 + $0x10] sm:$0xff] }
 0x137   : > { %v13092_v31 = vpack.c.bf16 %v5027_v44, %v5027_v44  ;;  %v5184_v52 = vor.u32 %v5182_v29, %v17113_v10  ;;  %v5196_v44 = vshrl.u32 %v13095_v32, 16  ;;  %v5036_v29 = vld [vmem:[%s17097_s30 + $0x58] sm:$0xff] }
 0x138   : > { %13692 = vmatmul.mubr.msk.bf16.gmra.mrb[8].mxu1 %vm1737_vm4, %v16934_v20 }
 0x139   : > { %13695 = vmatprep.mubr.msk.bf16.mxu1 %vm1737_vm4, %v16943_v21  ;;  %v5029_v21 = vld [vmem:[%s17097_s30 + $0x20] sm:$0xff]  ;;  %v5171_v26 = vshrl.u32 %v13092_v31, 16  ;;  %v5174_v9 = vshll.u32 %v13092_v31, 16  ;;  %v17135_v56 = vrot.slane %v5196_v44, 7 }
 0x13a   : > { %v13094_v22 = vpack.c.bf16 %v5029_v21, %v5029_v21  ;;  %v5033_v31 = vld [vmem:[%s17097_s30 + $0x40] sm:$0xff]  ;;  %v13097_v21 = vpack.c.bf16 %v5032_v14, %v5032_v14 }
 0x13b   : > { %v5173_v62 = vrot.slane %v5171_v26, 7  ;;  %v13098_v61 = vpack.c.bf16 %v5033_v31, %v5033_v31 }
 0x13c   : > { %v5188_v15 = vshrl.u32 %v13094_v22, 16  ;;  %v5213_v57 = vshrl.u32 %v13097_v21, 16 }
 0x13d   : > { %13854 = vmatmul.mubr.msk.bf16.vlgmr.msra.gmra.mrb[0].mxu0 %vm1737_vm4, %v16861_v35  ;;  %v5176_v23 = vor.u32 %v5174_v9, %v5173_v62  ;;  %v5177_v53 = vrot.slane %v5173_v62, 4  ;;  %v5216_v62 = vshll.u32 %v13097_v21, 16 }
 0x13e   : > { %13886 = vmatpush3.bf16.msra.mxu0 %v16871_v49  ;;  %13857 = vmatprep.mubr.msk.bf16.mxu0 %vm1737_vm4, %v16863_v48  ;;  %v5026_v49 = vld [vmem:[%s17097_s30 + $0x8] sm:$0xff]  ;;  %v5190_v8 = vrot.slane %v5188_v15, 7  ;;  %v17151_v15 = vrot.slane %v5213_v57, 7 }
 0x13f   : > { %v13091_v20 = vpack.c.bf16 %v5026_v49, %v5026_v49  ;;  %5431 = vrot.lane.b32.xlu1 %v5176_v23, %s15435_s11  ;;  %v5199_v49 = vshll.u32 %v13095_v32, 16  ;;  %v5222_v32 = vshrl.u32 %v13098_v61, 16 }
 0x140   : > { %13696 = vmatmul.mubr.msk.bf16.gmra.mrb[12].mxu1 %vm1737_vm4, %v16976_v36  ;;  %v5154_v36 = vshrl.u32 %v13090_v37, 16  ;;  %v5194_v9 = vrot.slane %v5190_v8, 4  ;;  %v5218_v31 = vor.u32 %v5216_v62, %v17151_v15 }
 0x141   : > { %13699 = vmatprep.mubr.msk.bf16.mxu1 %vm1737_vm4, %v16985_v24  ;;  %v5157_v24 = vshll.u32 %v13090_v37, 16  ;;  %v5162_v16 = vshrl.u32 %v13091_v20, 16  ;;  %v5165_v51 = vshll.u32 %v13091_v20, 16  ;;  %v5191_v37 = vshll.u32 %v13094_v22, 16  ;;  %v5035_v22 = vld [vmem:[%s17097_s30 + $0x50] sm:$0xff] }
 0x142   : > { %v5156_v2 = vrot.slane %v5154_v36, 7  ;;  %v13096_v20 = vpack.c.bf16 %v5031_v17, %v5031_v17  ;;  %v5201_v36 = vor.u32 %v5199_v49, %v17135_v56  ;;  %v17153_v17 = vpack.c.bf16 %v5035_v22, %v5035_v22  ;;  %v5037_v49 = vld [vmem:[%s17097_s30 + $0x60] sm:$0xff] }
 0x143   : > { %v17120_v45 = vrot.slane %v5162_v16, 7  ;;  %v5193_v16 = vor.u32 %v5191_v37, %v5190_v8  ;;  %v5224_v14 = vrot.slane %v5222_v32, 7  ;;  %v5038_v37 = vld [vmem:[%s17097_s30 + $0x68] sm:$0xff] }
 0x144   : > { %v5159_v0 = vor.u32 %v5157_v24, %v5156_v2  ;;  %v5160_v43 = vrot.slane %v5156_v2, 4  ;;  %v5205_v24 = vshrl.u32 %v13096_v20, 16  ;;  %v5208_v2 = vshll.u32 %v13096_v20, 16 }
 0x145   : > { %13858 = vmatmul.mubr.msk.bf16.gmra.mrb[4].mxu0 %vm1737_vm4, %v16877_v7  ;;  %v5167_v39 = vor.u32 %v5165_v51, %v17120_v45  ;;  %v5202_v23 = vsel %vm17116_vm6, %v5194_v9, %v5201_v36  ;;  %v5239_v8 = vshrl.u32 %v17153_v17, 16  ;;  %v13103_v57 = vpack.c.bf16 %v5038_v37, %v5038_v37 }
 0x146   : > { %13861 = vmatprep.mubr.msk.bf16.mxu0 %vm1737_vm4, %v16972_v30  ;;  %5425 = vrot.lane.b32.xlu0 %v5159_v0, %s15435_s11 }
 0x147   : > { %v5168_v26 = vsel %vm17116_vm6, %v5160_v43, %v5167_v39  ;;  %v5225_v39 = vshll.u32 %v13098_v61, 16  ;;  %v5241_v61 = vrot.slane %v5239_v8, 7 }
 0x148   : > { %13700 = vmatmul.mubr.msk.bf16.gmra.mrb[16].mxu1 %vm1737_vm4, %v16668_v4  ;;  %v5185_v4 = vsel %vm17116_vm6, %v5177_v53, %v5184_v52  ;;  %v5207_v53 = vrot.slane %v5205_v24, 7  ;;  %v13101_v52 = vpack.c.bf16 %v5036_v29, %v5036_v29  ;;  %v13102_v24 = vpack.c.bf16 %v5037_v49, %v5037_v49 }
 0x149   : > { %13703 = vmatprep.mubr.msk.bf16.mxu1 %vm1737_vm4, %v16689_v58  ;;  %v5034_v58 = vld [vmem:[%s17097_s30 + $0x48] sm:$0xff]  ;;  %5433 = vrot.lane.b32.xlu1 %v5185_v4, %s15435_s11  ;;  %v5228_v4 = vrot.slane %v5224_v14, 4  ;;  %v5227_v62 = vor.u32 %v5225_v39, %v5224_v14  ;;  %v5242_v29 = vshll.u32 %v17153_v17, 16  ;;  %v5245_v32 = vrot.slane %v5241_v61, 4 }
 0x14a   : > { %v13099_v51 = vpack.c.bf16 %v5034_v58, %v5034_v58  ;;  %5427 = vrot.lane.b32.xlu0 %v5168_v26, %s15435_s11  ;;  %v5211_v44 = vrot.slane %v5207_v53, 4  ;;  %v5247_v21 = vshrl.u32 %v13101_v52, 16  ;;  %v5039_v58 = vld [vmem:[%s17097_s30 + $0x70] sm:$0xff]  ;;  %v5040_v26 = vld [vmem:[%s17097_s30 + $0x78] sm:$0xff]  ;;  %v5210_v9 = vor.u32 %v5208_v2, %v5207_v53  ;;  %v5042_v17 = vld [vmem:[%s17097_s30 + $0x88] sm:$0xff] }
 0x14b   : > { %v5250_v22 = vshll.u32 %v13101_v52, 16  ;;  %v13105_v2 = vpack.c.bf16 %v5040_v26, %v5040_v26  ;;  %v5264_v53 = vshrl.u32 %v13103_v57, 16  ;;  %v5267_v52 = vshll.u32 %v13103_v57, 16  ;;  %v5045_v57 = vld [vmem:[%s17097_s30 + $0xa0] sm:$0xff] }
 0x14c   : > { %v5230_v0 = vshrl.u32 %v13099_v51, 16  ;;  %v5233_v43 = vshll.u32 %v13099_v51, 16  ;;  %v17174_v36 = vrot.slane %v5247_v21, 7  ;;  %v5259_v8 = vshll.u32 %v13102_v24, 16 }
 0x14d   : > { %13862 = vmatmul.mubr.msk.bf16.gmra.mrb[8].mxu0 %vm1737_vm4, %v16981_v13  ;;  %5439 = vrot.lane.b32.xlu1 %v5202_v23, %s15435_s11  ;;  %v5256_v23 = vshrl.u32 %v13102_v24, 16  ;;  %v5281_v14 = vshrl.u32 %v13105_v2, 16  ;;  %v17186_v39 = vrot.slane %v5264_v53, 7  ;;  %v5284_v37 = vshll.u32 %v13105_v2, 16  ;;  %v15337_v2 = vld [vmem:[#allocation2 + $0xcc] sm:$0xff]  }
 0x14e   : > { %13865 = vmatprep.mubr.msk.bf16.mxu0 %vm1737_vm4, %v17017_v33  ;;  %v17164_v20 = vrot.slane %v5230_v0, 7  ;;  %5437 = vrot.lane.b32.xlu0 %v5193_v16, %s15435_s11  ;;  %v13104_v16 = vpack.c.bf16 %v5039_v58, %v5039_v58  ;;  %v5041_v0 = vld [vmem:[%s17097_s30 + $0x80] sm:$0xff]  ;;  %v5046_v53 = vld [vmem:[%s17097_s30 + $0xa8] sm:$0xff] }
 0x14f   : > { %v5269_v58 = vor.u32 %v5267_v52, %v17186_v39  ;;  %v17194_v26 = vrot.slane %v5281_v14, 7  ;;  %v5047_v14 = vld [vmem:[%s17097_s30 + $0xb0] sm:$0xff] }
 0x150   : > { %13704 = vmatmul.mubr.msk.bf16.gmra.mrb[20].mxu1 %vm1737_vm4, %v16723_v28  ;;  %v5219_v28 = vsel %vm17116_vm6, %v5211_v44, %v5218_v31  ;;  %v5273_v44 = vshrl.u32 %v13104_v16, 16  ;;  %v5258_v31 = vrot.slane %v5256_v23, 7 }
 0x151   : > { %13707 = vmatprep.mubr.msk.bf16.mxu1 %vm1737_vm4, %v16725_v12  ;;  %v5235_v12 = vor.u32 %v5233_v43, %v17164_v20  ;;  %5445 = vrot.lane.b32.xlu1 %v5219_v28, %s15435_s11  ;;  %v5252_v43 = vor.u32 %v5250_v22, %v17174_v36  ;;  %v13107_v28 = vpack.c.bf16 %v5042_v17, %v5042_v17  ;;  %v5044_v22 = vld [vmem:[%s17097_s30 + $0x98] sm:$0xff] }
 0x152   : > { %5443 = vrot.lane.b32.xlu0 %v5210_v9, %s15435_s11  ;;  %v5275_v49 = vrot.slane %v5273_v44, 7  ;;  %v5262_v21 = vrot.slane %v5258_v31, 4  ;;  %v5043_v9 = vld [vmem:[%s17097_s30 + $0x90] sm:$0xff]  ;;  %v5048_v17 = vld [vmem:[%s17097_s30 + $0xb8] sm:$0xff] }
 0x153   : > { %v5236_v51 = vsel %vm17116_vm6, %v5228_v4, %v5235_v12  ;;  %v13106_v4 = vpack.c.bf16 %v5041_v0, %v5041_v0  ;;  %v5244_v12 = vor.u32 %v5242_v29, %v5241_v61  ;;  %v17206_v23 = vpack.c.bf16 %v5043_v9, %v5043_v9 }
 0x154   : > { %v5270_v61 = vsel %vm17116_vm6, %v5262_v21, %v5269_v58  ;;  %v5261_v29 = vor.u32 %v5259_v8, %v5258_v31  ;;  %v5286_v0 = vor.u32 %v5284_v37, %v17194_v26  ;;  %v5301_v44 = vshll.u32 %v13107_v28, 16 }
 0x155   : > { %13866 = vmatmul.mubr.msk.bf16.gmra.mrb[12].mxu0 %vm1737_vm4, %v17021_v50  ;;  %5451 = vrot.lane.b32.xlu1 %v5236_v51, %s15435_s11  ;;  %v5290_v24 = vshrl.u32 %v13106_v4, 16  ;;  %v5276_v51 = vshll.u32 %v13104_v16, 16  ;;  %v17216_v16 = vpack.c.bf16 %v5045_v57, %v5045_v57  ;;  %v5307_v9 = vshrl.u32 %v17206_v23, 16  ;;  %v5049_v57 = vld [vmem:[%s17097_s30 + $0xc0] sm:$0xff] }
 0x156   : > { %13869 = vmatprep.mubr.msk.bf16.mxu0 %vm1737_vm4, %v17039_v41  ;;  %5449 = vrot.lane.b32.xlu0 %v5227_v62, %s15435_s11  ;;  %v13109_v62 = vpack.c.bf16 %v5044_v22, %v5044_v22  ;;  %v5293_v8 = vshll.u32 %v13106_v4, 16  ;;  %v17225_v37 = vpack.c.bf16 %v5047_v14, %v5047_v14  ;;  %v13113_v21 = vpack.c.bf16 %v5048_v17, %v5048_v17 }
 0x157   : > { %v5278_v31 = vor.u32 %v5276_v51, %v5275_v49 }
 0x158   : > { %13708 = vmatmul.mubr.msk.bf16.gmra.mrb[24].mxu1 %vm1737_vm4, %v16727_v60  ;;  %v5253_v60 = vsel %vm17116_vm6, %v5245_v32, %v5252_v43  ;;  %v5279_v32 = vrot.slane %v5275_v49, 4  ;;  %v5292_v43 = vrot.slane %v5290_v24, 7  ;;  %v5315_v22 = vshrl.u32 %v13109_v62, 16 }
 0x159   : > { %13711 = vmatprep.mubr.msk.bf16.mxu1 %vm1737_vm4, %v16758_v55  ;;  %v5298_v55 = vshrl.u32 %v13107_v28, 16  ;;  %5457 = vrot.lane.b32.xlu1 %v5253_v60, %s15435_s11  ;;  %v13111_v60 = vpack.c.bf16 %v5046_v53, %v5046_v53  ;;  %v5324_v24 = vshrl.u32 %v17216_v16, 16  ;;  %v5318_v4 = vshll.u32 %v13109_v62, 16 }
 0x15a   : > { %5455 = vrot.lane.b32.xlu0 %v5244_v12, %s15435_s11  ;;  %v5287_v58 = vsel %vm17116_vm6, %v5279_v32, %v5286_v0  ;;  %v5296_v28 = vrot.slane %v5292_v43, 4  ;;  %v17234_v49 = vrot.slane %v5315_v22, 7  ;;  %v5295_v51 = vor.u32 %v5293_v8, %v5292_v43  ;;  %v5051_v22 = vld [vmem:[%s17097_s30 + $0xd0] sm:$0xff] }
 0x15b   : > { %v17214_v52 = vrot.slane %v5298_v55, 7  ;;  %v5332_v55 = vshrl.u32 %v13111_v60, 16  ;;  %v5310_v53 = vshll.u32 %v17206_v23, 16  ;;  %v5326_v32 = vrot.slane %v5324_v24, 7  ;;  %v5052_v23 = vld [vmem:[%s17097_s30 + $0xd8] sm:$0xff] }
 0x15c   : > { %v5335_v0 = vshll.u32 %v13111_v60, 16  ;;  %v5320_v17 = vor.u32 %v5318_v4, %v17234_v49  ;;  %v5327_v60 = vshll.u32 %v17216_v16, 16  ;;  %v13117_v24 = vpack.c.bf16 %v5052_v23, %v5052_v23 }
 0x15d   : > { %13870 = vmatmul.mubr.msk.bf16.gmra.mrb[16].mxu0 %vm1737_vm4, %v17043_v5  ;;  %5463 = vrot.lane.b32.xlu1 %v5270_v61, %s15435_s11  ;;  %v5303_v12 = vor.u32 %v5301_v44, %v17214_v52  ;;  %v5341_v61 = vshrl.u32 %v17225_v37, 16  ;;  %v17246_v44 = vpack.c.bf16 %v5049_v57, %v5049_v57 }
 0x15e   : > { %13873 = vmatprep.mubr.msk.bf16.mxu0 %vm1737_vm4, %v16919_v42  ;;  %5461 = vrot.lane.b32.xlu0 %v5261_v29, %s15435_s11  ;;  %v5349_v29 = vshrl.u32 %v13113_v21, 16 }
 0x15f   : > { %v5304_v62 = vsel %vm17116_vm6, %v5296_v28, %v5303_v12  ;;  %v13116_v12 = vpack.c.bf16 %v5051_v22, %v5051_v22  ;;  %v5055_v22 = vld [vmem:[%s17097_s30 + $0xf0] sm:$0xff] }
 0x160   : > { %13712 = vmatmul.mubr.msk.bf16.gmra.mrb[28].mxu1 %vm1737_vm4, %v15337_v2  ;;  %v5050_v2 = vld [vmem:[%s17097_s30 + $0xc8] sm:$0xff]  ;;  %v17259_v8 = vrot.slane %v5349_v29, 7  ;;  %v5383_v29 = vshrl.u32 %v13117_v24, 16 }
 0x161   : > { %13717 = vmatprep.mubr.msk.bf16.mxu1 %vm1737_vm4, %v17001_v19  ;;  %v5309_v19 = vrot.slane %v5307_v9, 7  ;;  %5469 = vrot.lane.b32.xlu1 %v5287_v58, %s15435_s11  ;;  %v17249_v9 = vrot.slane %v5332_v55, 7  ;;  %v13115_v43 = vpack.c.bf16 %v5050_v2, %v5050_v2  ;;  %v5352_v58 = vshll.u32 %v13113_v21, 16  ;;  %v5053_v21 = vld [vmem:[%s17097_s30 + $0xe0] sm:$0xff]  ;;  %v5054_v55 = vld [vmem:[%s17097_s30 + $0xe8] sm:$0xff] }
 0x162   : > { %5467 = vrot.lane.b32.xlu0 %v5278_v31, %s15435_s11  ;;  %v5343_v31 = vrot.slane %v5341_v61, 7  ;;  %v5375_v61 = vshrl.u32 %v13116_v12, 16 }
 0x163   : > { %v5313_v14 = vrot.slane %v5309_v19, 4  ;;  %v5312_v28 = vor.u32 %v5310_v53, %v5309_v19  ;;  %v5337_v16 = vor.u32 %v5335_v0, %v17249_v9  ;;  %v5366_v4 = vshrl.u32 %v13115_v43, 16 }
 0x164   : > { %v5329_v19 = vor.u32 %v5327_v60, %v5326_v32  ;;  %v5347_v57 = vrot.slane %v5343_v31, 4  ;;  %v5354_v2 = vor.u32 %v5352_v58, %v17259_v8  ;;  %v5361_v58 = vshll.u32 %v17246_v44, 16 }
 0x165   : > { %13874 = vmatmul.mubr.msk.bf16.gmra.mrb[20].mxu0 %vm1737_vm4, %v16929_v59  ;;  %5475 = vrot.lane.b32.xlu1 %v5304_v62, %s15435_s11  ;;  %v13118_v62 = vpack.c.bf16 %v5053_v21, %v5053_v21 }
 0x166   : > { %13877 = vmatprep.mubr.msk.bf16.mxu0 %vm1737_vm4, %v16938_v47  ;;  %5473 = vrot.lane.b32.xlu0 %v5295_v51, %s15435_s11  ;;  %v5344_v51 = vshll.u32 %v17225_v37, 16  ;;  %v5056_v37 = vld [vmem:[%s17097_s30 + $0xf8] sm:$0xff]  ;;  %v5355_v23 = vsel %vm17116_vm6, %v5347_v57, %v5354_v2 }
 0x168   : > { %13718 = vmatmul.mubr.msk.bf16.vlgmr.msra.gmra.mrb[0].mxu1 %vm1737_vm4, %v16106_v27  ;;  %v5358_v27 = vshrl.u32 %v17246_v44, 16  ;;  %v5346_v60 = vor.u32 %v5344_v51, %v5343_v31  ;;  %v13121_v31 = vpack.c.bf16 %v5056_v37, %v5056_v37 }
 0x169   : > { %13721 = vmatprep.mubr.msk.bf16.mxu1 %vm1737_vm4, %v16111_v46  ;;  %14532 = vmatpush3.bf16.msra.mxu1 %v17067_v38  ;;  %v5321_v46 = vsel %vm17116_vm6, %v5313_v14, %v5320_v17  ;;  %v5330_v38 = vrot.slane %v5326_v32, 4  ;;  %v17279_v14 = vrot.slane %v5366_v4, 7  ;;  %v5369_v32 = vshll.u32 %v13115_v43, 16 }
 0x16a   : > { %5481 = vrot.lane.b32.xlu1 %v5321_v46, %s15435_s11  ;;  %5479 = vrot.lane.b32.xlu0 %v5312_v28, %s15435_s11  ;;  %v5360_v53 = vrot.slane %v5358_v27, 7  ;;  %v13119_v17 = vpack.c.bf16 %v5054_v55, %v5054_v55  ;;  %v5386_v28 = vshll.u32 %v13117_v24, 16  ;;  %v5377_v27 = vrot.slane %v5375_v61, 7 }
 0x16b   : > { %v5338_v0 = vsel %vm17116_vm6, %v5330_v38, %v5337_v16  ;;  %v17292_v46 = vrot.slane %v5383_v29, 7  ;;  %v13120_v16 = vpack.c.bf16 %v5055_v22, %v5055_v22  ;;  %v5378_v24 = vshll.u32 %v13116_v12, 16 }
 0x16c   : > { %v5364_v43 = vrot.slane %v5360_v53, 4  ;;  %v5400_v38 = vshrl.u32 %v13119_v17, 16  ;;  %v5363_v44 = vor.u32 %v5361_v58, %v5360_v53  ;;  %v5381_v4 = vrot.slane %v5377_v27, 4 }
 0x16d   : > { %13878 = vmatmul.mubr.msk.bf16.gmra.mrb[24].mxu0 %vm1737_vm4, %v16956_v34  ;;  %v5388_v21 = vor.u32 %v5386_v28, %v17292_v46  ;;  %v5409_v51 = vshrl.u32 %v13120_v16, 16  ;;  %v5417_v61 = vshrl.u32 %v13121_v31, 16  ;;  %v5380_v12 = vor.u32 %v5378_v24, %v5377_v27  ;;  %v20044_v27 = vld [vmem:[#allocation11_spill] sm:$0xff] }
 0x16e   : > { %13881 = vmatprep.mubr.msk.bf16.mxu0 %vm1737_vm4, %v16966_v11  ;;  %5487 = vrot.lane.b32.xlu1 %v5338_v0, %s15435_s11  ;;  %v17304_v2 = vrot.slane %v5400_v38, 7  ;;  %v5395_v29 = vshll.u32 %v13118_v62, 16  ;;  %v5412_v22 = vshll.u32 %v13120_v16, 16  ;;  %v5186_v28 = vrot.slane %v17113_v10, 4 }
 0x16f   : > { %5485 = vrot.lane.b32.xlu0 %v5329_v19, %s15435_s11  ;;  %v5403_v19 = vshll.u32 %v13119_v17, 16  ;;  %v5420_v17 = vshll.u32 %v13121_v31, 16  ;;  %v5254_v10 = vrot.slane %v17174_v36, 4  ;;  %v20048_v36 = vld [vmem:[#allocation15_spill] sm:$0xff]  ;;  %v20051_v31 = vld [vmem:[#allocation18_spill] sm:$0xff] }
 0x170   : > { %13722 = vmatmul.mubr.msk.bf16.gmra.mrb[4].mxu1 %vm1737_vm4, %v16144_v25  ;;  %v5392_v25 = vshrl.u32 %v13118_v62, 16 }
 0x171   : > { %13725 = vmatprep.mubr.msk.bf16.mxu1 %vm1737_vm4, %v16150_v1  ;;  %v5371_v1 = vor.u32 %v5369_v32, %v17279_v14  ;;  %v5405_v0 = vor.u32 %v5403_v19, %v17304_v2  ;;  %v5411_v32 = vrot.slane %v5409_v51, 7  ;;  %v570_v19 = vld [vmem:[#allocation3 + $0x20] sm:$0x1] }
 0x172   : > { %5493 = vrot.lane.b32.xlu1 %v5355_v23, %s15435_s11  ;;  %v5394_v55 = vrot.slane %v5392_v25, 7  ;;  %v20042_v23 = vld [vmem:[#allocation9_spill] sm:$0xff]  ;;  %v20045_v25 = vld [vmem:[#allocation12_spill] sm:$0xff]  ;;  %v571_v51 = vsel %vm15567_vm9, 0, %v570_v19  ;;  %v603_v19 = vld [vmem:[#allocation3 + $0xa4] sm:$0x1] }
 0x173   : > { %5491 = vrot.lane.b32.xlu0 %v5346_v60, %s15435_s11  ;;  %v5372_v57 = vsel %vm17116_vm6, %v5364_v43, %v5371_v1  ;;  %v5415_v37 = vrot.slane %v5411_v32, 4  ;;  %v20043_v60 = vld [vmem:[#allocation10_spill] sm:$0xff]  ;;  %v5169_v43 = vrot.slane %v17120_v45, 4  ;;  %v5237_v45 = vrot.slane %v17164_v20, 4  ;;  %v20046_v1 = vld [vmem:[#allocation13_spill] sm:$0xff] }
 0x174   : > { %v5398_v53 = vrot.slane %v5394_v55, 4  ;;  %v5305_v20 = vrot.slane %v17214_v52, 4  ;;  %v5373_v52 = vrot.slane %v17279_v14, 4  ;;  %572 = vst [vmem:[#allocation3 + $0x20] sm:$0x1] %v571_v51  ;;  %v604_v51 = vsel %vm15567_vm9, 0, %v603_v19 }
 0x175   : > { %13882 = vmatmul.mubr.msk.bf16.gmra.mrb[28].mxu0 %vm1737_vm4, %v16997_v6  ;;  %605 = vst [vmem:[#allocation3 + $0xa4] sm:$0x1] %v604_v51 }
 0x176   : > { %13887 = vmatprep.mubr.msk.bf16.mxu0 %vm1737_vm4, %v16861_v35  ;;  %5499 = vrot.lane.b32.xlu1 %v5372_v57, %s15435_s11  ;;  %v5389_v35 = vsel %vm17116_vm6, %v5381_v4, %v5388_v21  ;;  %v5406_v62 = vsel %vm17116_vm6, %v5398_v53, %v5405_v0  ;;  %v513_v21 = vld [vmem:[#allocation3 + $0xc] sm:$0x1]  ;;  %v15338_v57 = vld [vmem:[%s19926_s4 + $0x18] sm:$0xff]  }
 0x177   : > { %5497 = vrot.lane.b32.xlu0 %v5363_v44, %s15435_s11  ;;  %v516_v44 = vld [vmem:[#allocation3 + $0x18] sm:$0x1]  ;;  %13919 = vmatprep.subr.bf16.mxu1 %v15338_v57 }
 0x178   : > { %13726 = vmatmul.mubr.msk.bf16.gmra.mrb[8].mxu1 %vm1737_vm4, %v16188_v40  ;;  %v17317_v40 = vrot.slane %v5417_v61, 7  ;;  %v517_v4 = vsel %vm15506_vm2, 0, %v516_v44  ;;  %v567_v61 = vld [vmem:[#allocation3 + $0x14] sm:$0x1]  ;;  %v549_v44 = vld [vmem:[#allocation3 + $0x9c] sm:$0x1] }
 0x179   : > { %13729 = vmatprep.mubr.msk.bf16.mxu1 %vm1737_vm4, %v16218_v63  ;;  %v5397_v63 = vor.u32 %v5395_v29, %v5394_v55  ;;  %518 = vst [vmem:[#allocation3 + $0x18] sm:$0x1] %v517_v4  ;;  %v514_v55 = vsel %vm15506_vm2, 0, %v513_v21  ;;  %v519_v29 = vld [vmem:[#allocation3 + $0x24] sm:$0x1]  ;;  %v550_v4 = vsel %vm15506_vm2, 0, %v549_v44 }
 0x17a   : > { %5505 = vrot.lane.b32.xlu1 %v5389_v35, %s15435_s11  ;;  %515 = vst [vmem:[#allocation3 + $0xc] sm:$0x1] %v514_v55  ;;  %v522_v35 = vld [vmem:[#allocation3 + $0x30] sm:$0x1]  ;;  %v520_v0 = vsel %vm15506_vm2, 0, %v519_v29 }
 0x17b   : > { %5503 = vrot.lane.b32.xlu0 %v5380_v12, %s15435_s11  ;;  %v568_v12 = vsel %vm15567_vm9, 0, %v567_v61  ;;  %v523_v53 = vsel %vm15506_vm2, 0, %v522_v35  ;;  %521 = vst [vmem:[#allocation3 + $0x24] sm:$0x1] %v520_v0  ;;  %v606_v21 = vld [vmem:[#allocation3 + $0xb0] sm:$0x1] }
 0x17c   : > { %569 = vst [vmem:[#allocation3 + $0x14] sm:$0x1] %v568_v12  ;;  %524 = vst [vmem:[#allocation3 + $0x30] sm:$0x1] %v523_v53  ;;  %v607_v55 = vsel %vm15567_vm9, 0, %v606_v21 }
 0x17d   : > { %13888 = vmatmul.mubr.msk.bf16.vlgmr.msra.gmra.mrb[0].mxu0 %vm1737_vm4, %v16863_v48  ;;  %v5422_v48 = vor.u32 %v5420_v17, %v17317_v40  ;;  %v573_v17 = vld [vmem:[#allocation3 + $0x2c] sm:$0x1]  ;;  %551 = vst [vmem:[#allocation3 + $0x9c] sm:$0x1] %v550_v4  ;;  %608 = vst [vmem:[#allocation3 + $0xb0] sm:$0x1] %v607_v55 }
 0x17e   : > { %13891 = vmatprep.mubr.msk.bf16.mxu0 %vm1737_vm4, %v16877_v7  ;;  %5511 = vrot.lane.b32.xlu1 %v5406_v62, %s15435_s11  ;;  %v5414_v7 = vor.u32 %v5412_v22, %v5411_v32  ;;  %v576_v32 = vld [vmem:[#allocation3 + $0x38] sm:$0x1]  ;;  %v528_v22 = vld [vmem:[#allocation3 + $0x48] sm:$0x1]  ;;  %v558_v35 = vld [vmem:[#allocation3 + $0xc0] sm:$0x1] }
 0x17f   : > { %5509 = vrot.lane.b32.xlu0 %v5397_v63, %s15435_s11  ;;  %v5423_v58 = vsel %vm17116_vm6, %v5415_v37, %v5422_v48  ;;  %v574_v63 = vsel %vm15567_vm9, 0, %v573_v17  ;;  %v529_v62 = vsel %vm15506_vm2, 0, %v528_v22  ;;  %v525_v37 = vld [vmem:[#allocation3 + $0x3c] sm:$0x1]  ;;  %v582_v48 = vld [vmem:[#allocation3 + $0x50] sm:$0x1] }
 0x180   : > { %13730 = vmatmul.mubr.msk.bf16.gmra.mrb[12].mxu1 %vm1737_vm4, %v20042_v23  ;;  %575 = vst [vmem:[#allocation3 + $0x2c] sm:$0x1] %v574_v63  ;;  %530 = vst [vmem:[#allocation3 + $0x48] sm:$0x1] %v529_v62  ;;  %v526_v23 = vsel %vm15506_vm2, 0, %v525_v37  ;;  %v559_v12 = vsel %vm15506_vm2, 0, %v558_v35 }
 0x181   : > { %13733 = vmatprep.mubr.msk.bf16.mxu1 %vm1737_vm4, %v20043_v60  ;;  %v583_v60 = vsel %vm15567_vm9, 0, %v582_v48  ;;  %527 = vst [vmem:[#allocation3 + $0x3c] sm:$0x1] %v526_v23  ;;  %v555_v53 = vld [vmem:[#allocation3 + $0xb4] sm:$0x1] }
 0x182   : > { %5517 = vrot.lane.b32.xlu1 %v5423_v58, %s15435_s11  ;;  %584 = vst [vmem:[#allocation3 + $0x50] sm:$0x1] %v583_v60  ;;  %560 = vst [vmem:[#allocation3 + $0xc0] sm:$0x1] %v559_v12  ;;  %v556_v0 = vsel %vm15506_vm2, 0, %v555_v53 }
 0x183   : > { %5515 = vrot.lane.b32.xlu0 %v5414_v7, %s15435_s11  ;;  %v579_v7 = vld [vmem:[#allocation3 + $0x44] sm:$0x1]  ;;  %557 = vst [vmem:[#allocation3 + $0xb4] sm:$0x1] %v556_v0  ;;  %v609_v63 = vld [vmem:[#allocation3 + $0xbc] sm:$0x1] }
 0x184   : > { %v580_v58 = vsel %vm15567_vm9, 0, %v579_v7  ;;  %v610_v22 = vsel %vm15567_vm9, 0, %v609_v63  ;;  %v4910_v24 = vld [vmem:[#allocation3 + $0xc] sm:$0xf] }
 0x185   : > { %13892 = vmatmul.mubr.msk.bf16.gmra.mrb[4].mxu0 %vm1737_vm4, %v16972_v30  ;;  %v5220_v30 = vrot.slane %v17151_v15, 4  ;;  %v20047_v15 = vld [vmem:[#allocation14_spill] sm:$0xff]  ;;  %581 = vst [vmem:[#allocation3 + $0x44] sm:$0x1] %v580_v58  ;;  %611 = vst [vmem:[#allocation3 + $0xbc] sm:$0x1] %v610_v22 }
 0x186   : > { %13895 = vmatprep.mubr.msk.bf16.mxu0 %vm1737_vm4, %v16981_v13  ;;  %5435 = vrot.lane.b32.xlu1 %v5186_v28, %s15435_s11  ;;  %v5203_v13 = vrot.slane %v17135_v56, 4  ;;  %v5322_v56 = vrot.slane %v17234_v49, 4  ;;  %v20050_v49 = vld [vmem:[#allocation17_spill] sm:$0xff]  ;;  %v534_v28 = vld [vmem:[#allocation3 + $0x60] sm:$0x1] }
 0x187   : > { %5429 = vrot.lane.b32.xlu0 %v5169_v43, %s15435_s11  ;;  %v535_v43 = vsel %vm15506_vm2, 0, %v534_v28 }
 0x188   : > { %13734 = vmatmul.mubr.msk.bf16.gmra.mrb[16].mxu1 %vm1737_vm4, %v20044_v27  ;;  %536 = vst [vmem:[#allocation3 + $0x60] sm:$0x1] %v535_v43 }
 0x189   : > { %13737 = vmatprep.mubr.msk.bf16.mxu1 %vm1737_vm4, %v20045_v25 }
 0x18a   : > { %5447 = vrot.lane.b32.xlu1 %v5220_v30, %s15435_s11  ;;  %v588_v30 = vld [vmem:[#allocation3 + $0x68] sm:$0x1] }
 0x18b   : > { %5441 = vrot.lane.b32.xlu0 %v5203_v13, %s15435_s11  ;;  %v589_v13 = vsel %vm15567_vm9, 0, %v588_v30 }
 0x18c   : > { %590 = vst [vmem:[#allocation3 + $0x68] sm:$0x1] %v589_v13 }
 0x18d   : > { %13896 = vmatmul.mubr.msk.bf16.gmra.mrb[8].mxu0 %vm1737_vm4, %v17017_v33  ;;  %v5288_v33 = vrot.slane %v17194_v26, 4  ;;  %v20049_v26 = vld [vmem:[#allocation16_spill] sm:$0xff] }
 0x18e   : > { %13899 = vmatprep.mubr.msk.bf16.mxu0 %vm1737_vm4, %v17021_v50  ;;  %5459 = vrot.lane.b32.xlu1 %v5254_v10, %s15435_s11  ;;  %v5271_v50 = vrot.slane %v17186_v39, 4  ;;  %v5390_v39 = vrot.slane %v17292_v46, 4  ;;  %v15423_v46 = vld [vmem:[#allocation2 + $0xd4] sm:$0x1] }
 0x18f   : > { %5453 = vrot.lane.b32.xlu0 %v5237_v45, %s15435_s11  ;;  %v4240_v38 = vrot.slane %v15423_v46, 5  ;;  %v585_v10 = vld [vmem:[#allocation3 + $0x5c] sm:$0x1] }
 0x190   : > { %13738 = vmatmul.mubr.msk.bf16.gmra.mrb[20].mxu1 %vm1737_vm4, %v20046_v1  ;;  %v586_v45 = vsel %vm15567_vm9, 0, %v585_v10 }
 0x191   : > { %13741 = vmatprep.mubr.msk.bf16.mxu1 %vm1737_vm4, %v20047_v15  ;;  %587 = vst [vmem:[#allocation3 + $0x5c] sm:$0x1] %v586_v45 }
 0x192   : > { %5471 = vrot.lane.b32.xlu1 %v5288_v33, %s15435_s11 }
 0x193   : > { %5465 = vrot.lane.b32.xlu0 %v5271_v50, %s15435_s11  ;;  %v537_v50 = vld [vmem:[#allocation3 + $0x6c] sm:$0x1] }
 0x195   : > { %13900 = vmatmul.mubr.msk.bf16.gmra.mrb[12].mxu0 %vm1737_vm4, %v17039_v41  ;;  %v5356_v41 = vrot.slane %v17259_v8, 4 }
 0x196   : > { %13903 = vmatprep.mubr.msk.bf16.mxu0 %vm1737_vm4, %v17043_v5  ;;  %5483 = vrot.lane.b32.xlu1 %v5322_v56, %s15435_s11  ;;  %v5339_v5 = vrot.slane %v17249_v9, 4  ;;  %v3552_v9 = vld [vmem:[#allocation2 + $0xcc] sm:$0xe] }
 0x197   : > { %5477 = vrot.lane.b32.xlu0 %v5305_v20, %s15435_s11  ;;  %v12449_v8 = vrot.slane %v3552_v9, 9  ;;  %v538_v20 = vsel %vm15506_vm2, 0, %v537_v50  ;;  %v543_v9 = vld [vmem:[#allocation3 + $0x84] sm:$0x1] }
 0x198   : > { %13742 = vmatmul.mubr.msk.bf16.gmra.mrb[24].mxu1 %vm1737_vm4, %v20048_v36  ;;  %539 = vst [vmem:[#allocation3 + $0x6c] sm:$0x1] %v538_v20 }
 0x199   : > { %13745 = vmatprep.mubr.msk.bf16.mxu1 %vm1737_vm4, %v20049_v26 }
 0x19a   : > { %5495 = vrot.lane.b32.xlu1 %v5356_v41, %s15435_s11 }
 0x19b   : > { %5489 = vrot.lane.b32.xlu0 %v5339_v5, %s15435_s11  ;;  %v591_v5 = vld [vmem:[#allocation3 + $0x74] sm:$0x1] }
 0x19d   : > { %13904 = vmatmul.mubr.msk.bf16.gmra.mrb[16].mxu0 %vm1737_vm4, %v16919_v42  ;;  %v15422_v42 = vld [vmem:[#allocation2 + $0xd0] sm:$0xf] }
 0x19e   : > { %13907 = vmatprep.mubr.msk.bf16.mxu0 %vm1737_vm4, %v16929_v59  ;;  %5507 = vrot.lane.b32.xlu1 %v5390_v39, %s15435_s11  ;;  %v4237_v59 = vrot.slane %v15422_v42, 5  ;;  %v592_v39 = vsel %vm15567_vm9, 0, %v591_v5 }
 0x19f   : > { %5501 = vrot.lane.b32.xlu0 %v5373_v52, %s15435_s11  ;;  %593 = vst [vmem:[#allocation3 + $0x74] sm:$0x1] %v592_v39 }
 0x1a0   : > { %13746 = vmatmul.mubr.msk.bf16.gmra.mrb[28].mxu1 %vm1737_vm4, %v20050_v49  ;;  %v4239_v14 = vrot.slane %v4237_v59, 4 }
 0x1a1   : > { %13767 = vmatprep.mubr.msk.bf16.mxu1 %vm1737_vm4, %v20044_v27  ;;  %v531_v27 = vld [vmem:[#allocation3 + $0x54] sm:$0x1] }
 0x1a5   : > { %13908 = vmatmul.mubr.msk.bf16.gmra.mrb[20].mxu0 %vm1737_vm4, %v16938_v47  ;;  %v4238_v47 = vsel %vm16041_vm14, %v12449_v8, %v4237_v59  ;;  %v544_v8 = vsel %vm15506_vm2, 0, %v543_v9 }
 0x1a6   : > { %13911 = vmatprep.mubr.msk.bf16.mxu0 %vm1737_vm4, %v16956_v34  ;;  %v4241_v34 = vsel %vm16041_vm14, %v4239_v14, %v4240_v38  ;;  %v600_v14 = vld [vmem:[#allocation3 + $0x98] sm:$0x1]  ;;  %545 = vst [vmem:[#allocation3 + $0x84] sm:$0x1] %v544_v8  ;;  %v597_v38 = vld [vmem:[#allocation3 + $0x8c] sm:$0x1] }
 0x1a7   : > { %v12452_v16 = vcombine.low %v4238_v47, %v4241_v34  ;;  %v601_v46 = vsel %vm15567_vm9, 0, %v600_v14  ;;  %v17489_v47 = vld [vmem:[%s19926_s4] sm:$0xff]   ;;  %v598_v34 = vsel %vm15567_vm9, 0, %v597_v38 }
 0x1a8   : > { %13768 = vmatmul.mubr.msk.bf16.vlgmr.msra.gmra.mrb[16].mxu1 %vm1737_vm4, %v20045_v25  ;;  %v532_v25 = vsel %vm15506_vm2, 0, %v531_v27  ;;  %602 = vst [vmem:[#allocation3 + $0x98] sm:$0x1] %v601_v46  ;;  %599 = vst [vmem:[#allocation3 + $0x8c] sm:$0x1] %v598_v34 }
 0x1a9   : > { %13771 = vmatprep.mubr.msk.bf16.mxu1 %vm1737_vm4, %v20046_v1  ;;  %13920 = vmatpush3.bf16.msra.mxu1 %v15338_v57  ;;  %533 = vst [vmem:[#allocation3 + $0x54] sm:$0x1] %v532_v25  ;;  %v540_v1 = vld [vmem:[#allocation3 + $0x78] sm:$0x1]  ;;  %v510_v27 = vld [vmem:[#allocation3] sm:$0x1] }
 0x1aa   : > { %v541_v33 = vsel %vm15506_vm2, 0, %v540_v1  ;;  %13953 = vmatprep.subr.bf16.mxu1 %v17489_v47  ;;  %v511_v30 = vsel %vm15506_vm2, 0, %v510_v27  ;;  %v17567_v38 = vld [vmem:[%s19925_s3] ss:$0 sm:$0xff] }
 0x1ab   : > { %542 = vst [vmem:[#allocation3 + $0x78] sm:$0x1] %v541_v33  ;;  %512 = vst [vmem:[#allocation3] sm:$0x1] %v511_v30 }
 0x1ad   : > { %13912 = vmatmul.mubr.msk.bf16.gmra.mrb[24].mxu0 %vm1737_vm4, %v16966_v11  ;;  %v5424_v11 = vrot.slane %v17317_v40, 4  ;;  %v577_v40 = vsel %vm15567_vm9, 0, %v576_v32  ;;  %v612_v32 = vld [vmem:[#allocation3 + $0xc8] sm:$0x1] }
 0x1ae   : > { %13915 = vmatprep.mubr.msk.bf16.mxu0 %vm1737_vm4, %v16997_v6  ;;  %v5407_v6 = vrot.slane %v17304_v2, 4  ;;  %578 = vst [vmem:[#allocation3 + $0x38] sm:$0x1] %v577_v40  ;;  %v613_v17 = vsel %vm15567_vm9, 0, %v612_v32 }
 0x1af   : > { %5519 = vrot.lane.b32.xlu1 %v5424_v11, %s15435_s11  ;;  %614 = vst [vmem:[#allocation3 + $0xc8] sm:$0x1] %v613_v17 }
 0x1b0   : > { %13772 = vmatmul.mubr.msk.bf16.gmra.mrb[20].mxu1 %vm1737_vm4, %v20047_v15  ;;  %5513 = vrot.lane.b32.xlu0 %v5407_v6, %s15435_s11  ;;  %v552_v6 = vld [vmem:[#allocation3 + $0xa8] sm:$0x1]  ;;  %s19793_s11 = scalar_lea.vmem %s19932_s10, %s13056_s27 }
 0x1b1   : > { %13775 = vmatprep.mubr.msk.bf16.mxu1 %vm1737_vm4, %v20048_v36  ;;  %v17462_v15 = vpop.permute.xlu1 %5431  ;;  %v594_v36 = vld [vmem:[#allocation3 + $0x80] sm:$0x1] }
 0x1b2   : > { %v595_v41 = vsel %vm15567_vm9, 0, %v594_v36 }
 0x1b3   : > { %596 = vst [vmem:[#allocation3 + $0x80] sm:$0x1] %v595_v41 }
 0x1b5   : > { %13916 = vmatmul.mubr.msk.bf16.gmra.mrb[28].mxu0 %vm1737_vm4, %v12452_v16 }
 0x1b8   : > { %13776 = vmatmul.mubr.msk.bf16.gmra.mrb[24].mxu1 %vm1737_vm4, %v20049_v26  ;;  %v17466_v56 = vpop.permute.xlu0 %5425 }
 0x1b9   : > { %13779 = vmatprep.mubr.msk.bf16.mxu1 %vm1737_vm4, %v20050_v49  ;;  %v546_v49 = vld [vmem:[#allocation3 + $0x90] sm:$0x1] }
 0x1ba   : > { %v547_v59 = vsel %vm15506_vm2, 0, %v546_v49 }
 0x1bb   : > { %v17470_v26 = vpop.permute.xlu1 %5433  ;;  %548 = vst [vmem:[#allocation3 + $0x90] sm:$0x1] %v547_v59 }
 0x1bc   : > { %v17476_v52 = vpop.permute.xlu0 %5427 }
 0x1bf   : > { %v17478_v42 = vpop.permute.xlu1 %5439 }
 0x1c0   : > { %13780 = vmatmul.mubr.msk.bf16.gmra.mrb[28].mxu1 %vm1737_vm4, %v20051_v31  ;;  %v17493_v16 = vpop.permute.xlu0 %5437  ;;  %v553_v31 = vsel %vm15506_vm2, 0, %v552_v6 }
 0x1c1   : > { %554 = vst [vmem:[#allocation3 + $0xa8] sm:$0x1] %v553_v31 }
 0x1c3   : > { %v17496_v11 = vpop.permute.xlu1 %5445 }
 0x1c4   : > { %v17504_v57 = vpop.permute.xlu0 %5443 }
 0x1c7   : > { %v17508_v61 = vpop.permute.xlu1 %5451 }
 0x1c8   : > { %v17512_v29 = vpop.permute.xlu0 %5449 }
 0x1cb   : > { %v17516_v40 = vpop.permute.xlu1 %5457 }
 0x1cc   : > { %v17522_v62 = vpop.permute.xlu0 %5455 }
 0x1cf   : > { %v17524_v37 = vpop.permute.xlu1 %5463 }
 0x1d0   : > { %v17526_v48 = vpop.permute.xlu0 %5461 }
 0x1d3   : > { %v17528_v23 = vpop.permute.xlu1 %5469 }
 0x1d4   : > { %v17530_v60 = vpop.permute.xlu0 %5467 }
 0x1d7   : > { %v17532_v7 = vpop.permute.xlu1 %5475 }
 0x1d8   : > { %v17534_v58 = vpop.permute.xlu0 %5473 }
 0x1dc   : > { %v17536_v43 = vpop.permute.xlu1 %5481  ;;  %v17540_v45 = vpop.permute.xlu0 %5479 }
 0x1e0   : > { %v17542_v1 = vpop.permute.xlu1 %5487 }
 0x1e1   : > { %20054 = vst [vmem:[#allocation9_spill] sm:$0xff] %v17542_v1  ;;  %v17548_v41 = vpop.permute.xlu0 %5485 }
 0x1e2   : > { %20055 = vst [vmem:[#allocation10_spill] sm:$0xff] %v17548_v41 }
 0x1e4   : > { %v17550_v5 = vpop.permute.xlu1 %5493 }
 0x1e5   : > { %v17556_v59 = vpop.permute.xlu0 %5491 }
 0x1e8   : > { %v17560_v8 = vpop.permute.xlu1 %5499 }
 0x1e9   : > { %20056 = vst [vmem:[#allocation11_spill] sm:$0xff] %v17560_v8  ;;  %v17571_v35 = vpop.permute.xlu0 %5497 }
 0x1ea   : > { %20057 = vst [vmem:[#allocation12_spill] sm:$0xff] %v17571_v35 }
 0x1ec   : > { %v17576_v32 = vpop.permute.xlu1 %5505 }
 0x1ed   : > { %20058 = vst [vmem:[#allocation13_spill] sm:$0xff] %v17576_v32 }
 0x1f0   : > { %v17594_v35 = vpop.permute.xlu1 %5511 }
 0x1f1   : > { %20062 = vst [vmem:[#allocation15_spill] sm:$0xff] %v17594_v35 }
 0x23b   : > { %v13719_v28 = vpop.f32.mrb[0].mxu1 }
 0x23c   : > { %v2912_v25 = vpop.f32.mrb[1].mxu1 }
 0x23d   : > { %v13720_v13 = vpop.f32.mrb[2].mxu1 }
 0x23e   : > { %v2915_v10 = vpop.f32.mrb[3].mxu1 }
 0x243   : > { %v13723_v33 = vpop.f32.mrb[4].mxu1 }
 0x244   : > { %v2928_v50 = vpop.f32.mrb[5].mxu1 }
 0x245   : > { %v17544_v20 = vpop.f32.mrb[6].mxu1 }
 0x246   : > { %v17546_v36 = vpop.f32.mrb[7].mxu1 }
 0x24b   : > { %v17552_v39 = vpop.f32.mrb[8].mxu1 }
 0x24c   : > { %v17554_v49 = vpop.f32.mrb[9].mxu1 }
 0x24d   : > { %v17558_v9 = vpop.f32.mrb[10].mxu1 }
 0x24e   : > { %v17562_v14 = vpop.f32.mrb[11].mxu1 }
 0x250   : > { %v13889_v46 = vpop.f32.mrb[0].mxu0 }
 0x251   : > { %v14533_v34 = vadd.f32 %v13889_v46, %v13719_v28  ;;  %v4291_v6 = vpop.f32.mrb[1].mxu0 }
 0x252   : > { %v14534_v31 = vadd.f32 %v4291_v6, %v2912_v25  ;;  %v13890_v44 = vpop.f32.mrb[2].mxu0 }
 0x253   : > { %v4459_v4 = vadd.f32 %v14533_v34, %v17567_v38  ;;  %v14535_v21 = vadd.f32 %v13890_v44, %v13720_v13  ;;  %v4294_v55 = vpop.f32.mrb[3].mxu0  ;;  %v17573_v12 = vpop.f32.mrb[12].mxu1 }
 0x254   : > { %v4457_v19 = vadd.f32 %v14534_v31, %v17567_v38  ;;  %v14536_v51 = vadd.f32 %v4294_v55, %v2915_v10  ;;  %v17578_v17 = vpop.f32.mrb[13].mxu1 }
 0x255   : > { %v13060_v53 = vpack.c.bf16 %v4459_v4, %v4459_v4  ;;  %v4460_v0 = vadd.f32 %v14535_v21, %v17567_v38  ;;  %v17581_v28 = vpop.f32.mrb[14].mxu1 }
 0x256   : > { %v13058_v63 = vpack.c.bf16 %v4457_v19, %v4457_v19  ;;  %v4458_v22 = vadd.f32 %v14536_v51, %v17567_v38  ;;  %v17583_v30 = vpop.f32.mrb[15].mxu1  ;;  %v4920_v51 = vld [vmem:[#allocation3 + $0x18] sm:$0xf] }
 0x257   : > { %v4605_v27 = vshrl.u32 %v13060_v53, 16  ;;  %v13061_v25 = vpack.c.bf16 %v4460_v0, %v4460_v0  ;;  %v4608_v13 = vshll.u32 %v13060_v53, 16 }
 0x258   : > { %v4588_v10 = vshrl.u32 %v13058_v63, 16  ;;  %v4591_v46 = vshll.u32 %v13058_v63, 16  ;;  %v13059_v34 = vpack.c.bf16 %v4458_v22, %v4458_v22  ;;  %v13893_v6 = vpop.f32.mrb[4].mxu0  ;;  %v17591_v63 = vpop.permute.xlu0 %5503 }
 0x259   : > { %v4607_v31 = vrot.slane %v4605_v27, 7  ;;  %v4613_v44 = vshrl.u32 %v13061_v25, 16  ;;  %v4616_v4 = vshll.u32 %v13061_v25, 16  ;;  %v14537_v21 = vadd.f32 %v13893_v6, %v13723_v33  ;;  %v4307_v55 = vpop.f32.mrb[5].mxu0  ;;  %20061 = vst [vmem:[#allocation14_spill] sm:$0xff] %v17591_v63 }
 0x25a   : > { %v4590_v0 = vrot.slane %v4588_v10, 7  ;;  %v4596_v18 = vshrl.u32 %v13059_v34, 16  ;;  %v4599_v54 = vshll.u32 %v13059_v34, 16  ;;  %v14538_v53 = vadd.f32 %v4307_v55, %v2928_v50  ;;  %v13894_v2 = vpop.f32.mrb[6].mxu0  ;;  %v4924_v50 = vld [vmem:[#allocation3 + $0x20] sm:$0x1] }
 0x25b   : > { %v4610_v22 = vor.u32 %v4608_v13, %v4607_v31  ;;  %v4611_v27 = vrot.slane %v4607_v31, 4  ;;  %v4615_v25 = vrot.slane %v4613_v44, 7  ;;  %v4463_v33 = vadd.f32 %v14537_v21, %v17567_v38  ;;  %v4310_v6 = vpop.f32.mrb[7].mxu0  ;;  %v4917_v55 = vld [vmem:[#allocation3 + $0x14] sm:$0x1] }
 0x25c   : > { %v4593_v8 = vor.u32 %v4591_v46, %v4590_v0  ;;  %v4594_v32 = vrot.slane %v4590_v0, 4  ;;  %v4598_v34 = vrot.slane %v4596_v18, 7  ;;  %v4461_v13 = vadd.f32 %v14538_v53, %v17567_v38 }
 0x25d   : > { %v4921_v31 = vsel %vm17587_vm8, %v4610_v22, %v4920_v51  ;;  %v4618_v44 = vor.u32 %v4616_v4, %v4615_v25  ;;  %v4620_v21 = vrot.slane %v4615_v25, 4  ;;  %v13064_v63 = vpack.c.bf16 %v4463_v33, %v4463_v33  ;;  %v17616_v51 = vpop.permute.xlu0 %5509 }
 0x25e   : > { %4922 = vst [vmem:[#allocation3 + $0x18] sm:$0xf] %v4921_v31  ;;  %v4911_v46 = vsel %vm17587_vm8, %v4593_v8, %v4910_v24  ;;  %v4601_v0 = vor.u32 %v4599_v54, %v4598_v34  ;;  %v4603_v35 = vrot.slane %v4598_v34, 4  ;;  %v13062_v41 = vpack.c.bf16 %v4461_v13, %v4461_v13  ;;  %20065 = vst [vmem:[#allocation16_spill] sm:$0xff] %v17616_v51 }
 0x25f   : > { %4912 = vst [vmem:[#allocation3 + $0xc] sm:$0xf] %v4911_v46  ;;  %v4619_v18 = vsel %vm17116_vm6, %v4611_v27, %v4618_v44  ;;  %v4925_v53 = vsel %vm17598_vm10, %v4620_v21, %v4924_v50  ;;  %v4639_v1 = vshrl.u32 %v13064_v63, 16  ;;  %v4642_v54 = vshll.u32 %v13064_v63, 16  ;;  %v17626_v63 = vpop.permute.xlu1 %5517  ;;  %v4934_v50 = vld [vmem:[#allocation3 + $0x30] sm:$0xf] }
 0x260   : > { %4923 = vst.msk [vmem:[#allocation3 + $0x1c] sm:$0xf] %vm4908_vm12, %v4619_v18  ;;  %4926 = vst [vmem:[#allocation3 + $0x20] sm:$0x1] %v4925_v53  ;;  %v4602_v4 = vsel %vm17116_vm6, %v4594_v32, %v4601_v0  ;;  %v4918_v24 = vsel %vm17598_vm10, %v4603_v35, %v4917_v55  ;;  %v4622_v8 = vshrl.u32 %v13062_v41, 16  ;;  %v13897_v22 = vpop.f32.mrb[8].mxu0  ;;  %v14539_v25 = vadd.f32 %v13894_v2, %v17544_v20 }
 0x261   : > { %5584 = vst.msk [vmem:[#allocation3 + $0x1c] sm:$0xf] %vm5569_vm13, %v17470_v26  ;;  %4919 = vst [vmem:[#allocation3 + $0x14] sm:$0x1] %v4918_v24  ;;  %v17621_v27 = vrot.slane %v4639_v1, 7  ;;  %v14540_v32 = vadd.f32 %v4310_v6, %v17546_v36  ;;  %v14541_v33 = vadd.f32 %v13897_v22, %v17552_v39  ;;  %v4323_v35 = vpop.f32.mrb[9].mxu0 }
 0x262   : > { %4914 = vst.msk [vmem:[#allocation3 + $0x10] sm:$0xf] %vm4908_vm12, %v4602_v4  ;;  %20066 = vst [vmem:[#allocation17_spill] sm:$0xff] %v17626_v63  ;;  %v17630_v34 = vrot.slane %v4622_v8, 7  ;;  %v4625_v26 = vshll.u32 %v13062_v41, 16  ;;  %v14542_v13 = vadd.f32 %v4323_v35, %v17554_v49  ;;  %v13898_v1 = vpop.f32.mrb[10].mxu0 }
 0x263   : > { %5575 = vst.msk [vmem:[#allocation3 + $0x10] sm:$0xf] %vm5569_vm13, %v17476_v52  ;;  %v4644_v20 = vor.u32 %v4642_v54, %v17621_v27  ;;  %v4645_v36 = vrot.slane %v17621_v27, 4  ;;  %v4927_v39 = vld [vmem:[#allocation3 + $0x24] sm:$0xf]  ;;  %v4464_v52 = vadd.f32 %v14539_v25, %v17567_v38  ;;  %v4462_v6 = vadd.f32 %v14540_v32, %v17567_v38  ;;  %v4326_v41 = vpop.f32.mrb[11].mxu0  ;;  %v17655_v27 = vpop.permute.xlu0 %5515 }
 0x264   : > { %v4627_v49 = vor.u32 %v4625_v26, %v17630_v34  ;;  %v4628_v31 = vrot.slane %v17630_v34, 4  ;;  %v4467_v44 = vadd.f32 %v14541_v33, %v17567_v38  ;;  %v4465_v21 = vadd.f32 %v14542_v13, %v17567_v38  ;;  %v5436_v35 = vpop.permute.xlu1 %5435  ;;  %v4938_v34 = vld [vmem:[#allocation3 + $0x38] sm:$0x1]  ;;  %v4931_v13 = vld [vmem:[#allocation3 + $0x2c] sm:$0x1] }
 0x265   : > { %v5581_v55 = vld [vmem:[#allocation3 + $0x18] sm:$0xf]  ;;  %v4935_v46 = vsel %vm17587_vm8, %v4644_v20, %v4934_v50  ;;  %v13065_v0 = vpack.c.bf16 %v4464_v52, %v4464_v52  ;;  %v13063_v18 = vpack.c.bf16 %v4462_v6, %v4462_v6  ;;  %v14543_v53 = vadd.f32 %v13898_v1, %v17558_v9  ;;  %v4948_v6 = vld [vmem:[#allocation3 + $0x48] sm:$0xf] }
 0x266   : > { %v5582_v4 = vsel %vm17635_vm0, %v17462_v15, %v5581_v55  ;;  %v5571_v24 = vld [vmem:[#allocation3 + $0xc] sm:$0xf]  ;;  %4936 = vst [vmem:[#allocation3 + $0x30] sm:$0xf] %v4935_v46  ;;  %v4928_v54 = vsel %vm17587_vm8, %v4627_v49, %v4927_v39  ;;  %v13068_v8 = vpack.c.bf16 %v4467_v44, %v4467_v44  ;;  %v13066_v22 = vpack.c.bf16 %v4465_v21, %v4465_v21  ;;  %v18037_v15 = vld [vmem:[%s19926_s4 + $0x8] sm:$0xff]  }
 0x267   : > { %5583 = vst [vmem:[#allocation3 + $0x18] sm:$0xf] %v5582_v4  ;;  %v5572_v25 = vsel %vm17635_vm0, %v17466_v56, %v5571_v24  ;;  %4929 = vst [vmem:[#allocation3 + $0x24] sm:$0xf] %v4928_v54  ;;  %v4647_v9 = vshrl.u32 %v13065_v0, 16  ;;  %v4650_v32 = vshll.u32 %v13065_v0, 16  ;;  %v4468_v44 = vadd.f32 %v14543_v53, %v17567_v38 }
 0x268   : > { %v4630_v33 = vshrl.u32 %v13063_v18, 16  ;;  %v5585_v50 = vld [vmem:[#allocation3 + $0x20] sm:$0x1]  ;;  %5573 = vst [vmem:[#allocation3 + $0xc] sm:$0xf] %v5572_v25  ;;  %v4633_v26 = vshll.u32 %v13063_v18, 16  ;;  %v14544_v0 = vadd.f32 %v4326_v41, %v17562_v14 }
 0x269   : > { %v4673_v1 = vshrl.u32 %v13068_v8, 16  ;;  %v4676_v20 = vshll.u32 %v13068_v8, 16  ;;  %v4656_v39 = vshrl.u32 %v13066_v22, 16  ;;  %v4649_v56 = vrot.slane %v4647_v9, 7  ;;  %v13901_v21 = vpop.f32.mrb[12].mxu0 }
 0x26a   : > { %v4632_v52 = vrot.slane %v4630_v33, 7  ;;  %v4659_v49 = vshll.u32 %v13066_v22, 16  ;;  %v5586_v18 = vsel %vm17662_vm3, %v5436_v35, %v5585_v50  ;;  %v4339_v4 = vpop.f32.mrb[13].mxu0  ;;  %v4941_v9 = vld [vmem:[#allocation3 + $0x3c] sm:$0xf] }
 0x26b   : > { %v17667_v55 = vrot.slane %v4673_v1, 7  ;;  %v17669_v46 = vrot.slane %v4656_v39, 7  ;;  %v4652_v24 = vor.u32 %v4650_v32, %v4649_v56  ;;  %v4654_v54 = vrot.slane %v4649_v56, 4  ;;  %5587 = vst [vmem:[#allocation3 + $0x20] sm:$0x1] %v5586_v18  ;;  %v13902_v22 = vpop.f32.mrb[14].mxu0  ;;  %v5430_v1 = vpop.permute.xlu0 %5429 }
 0x26c   : > { %v4635_v8 = vor.u32 %v4633_v26, %v4632_v52  ;;  %v4637_v25 = vrot.slane %v4632_v52, 4  ;;  %v5578_v39 = vld [vmem:[#allocation3 + $0x14] sm:$0x1]  ;;  %v4342_v51 = vpop.f32.mrb[15].mxu0 }
 0x26d   : > { %v4678_v53 = vor.u32 %v4676_v20, %v17667_v55  ;;  %v4661_v33 = vor.u32 %v4659_v49, %v17669_v46  ;;  %v5595_v63 = vld [vmem:[#allocation3 + $0x30] sm:$0xf]  ;;  %v4653_v14 = vsel %vm17116_vm6, %v4645_v36, %v4652_v24  ;;  %v4939_v41 = vsel %vm17598_vm10, %v4654_v54, %v4938_v34  ;;  %v17715_v49 = vld [vmem:[%s19926_s4 + $0x30] sm:$0xff]  }
 0x26e   : > { %v4636_v32 = vsel %vm17116_vm6, %v4628_v31, %v4635_v8  ;;  %v4932_v35 = vsel %vm17598_vm10, %v4637_v25, %v4931_v13  ;;  %v5596_v50 = vsel %vm17635_vm0, %v17504_v57, %v5595_v63  ;;  %v5588_v26 = vld [vmem:[#allocation3 + $0x24] sm:$0xf]  ;;  %4937 = vst.msk [vmem:[#allocation3 + $0x34] sm:$0xf] %vm4908_vm12, %v4653_v14  ;;  %4940 = vst [vmem:[#allocation3 + $0x38] sm:$0x1] %v4939_v41 }
 0x26f   : > { %4930 = vst.msk [vmem:[#allocation3 + $0x28] sm:$0xf] %vm4908_vm12, %v4636_v32  ;;  %4933 = vst [vmem:[#allocation3 + $0x2c] sm:$0x1] %v4932_v35  ;;  %v4949_v36 = vsel %vm17587_vm8, %v4678_v53, %v4948_v6  ;;  %v4942_v31 = vsel %vm17587_vm8, %v4661_v33, %v4941_v9  ;;  %v13069_v34 = vpack.c.bf16 %v4468_v44, %v4468_v44  ;;  %v17704_v56 = vld [vmem:[#allocation3 + $0xc] sm:$0xff]  }
 0x270   : > { %5597 = vst [vmem:[#allocation3 + $0x30] sm:$0xf] %v5596_v50  ;;  %v5589_v13 = vsel %vm17635_vm0, %v17493_v16, %v5588_v26  ;;  %5598 = vst.msk [vmem:[#allocation3 + $0x34] sm:$0xf] %vm5569_vm13, %v17496_v11  ;;  %v4466_v57 = vadd.f32 %v14544_v0, %v17567_v38  ;;  %v5579_v63 = vsel %vm17662_vm3, %v5430_v1, %v5578_v39  ;;  %v17708_v6 = vpop.f32.mrb[16].mxu0  ;;  %13921 = vmatprep.mubr.msk.bf16.mxu1 %vm1737_vm4, %v17704_v56 }
 0x271   : > { %5591 = vst.msk [vmem:[#allocation3 + $0x28] sm:$0xf] %vm5569_vm13, %v17478_v42  ;;  %4950 = vst [vmem:[#allocation3 + $0x48] sm:$0xf] %v4949_v36  ;;  %v14545_v20 = vadd.f32 %v13901_v21, %v17573_v12  ;;  %v4681_v52 = vshrl.u32 %v13069_v34, 16  ;;  %v14546_v16 = vadd.f32 %v4339_v4, %v17578_v17  ;;  %v14547_v11 = vadd.f32 %v13902_v22, %v17581_v28  ;;  %v17710_v42 = vld [vmem:[#allocation3 + $0x18] sm:$0xff]  }
 0x272   : > { %4943 = vst [vmem:[#allocation3 + $0x3c] sm:$0xf] %v4942_v31  ;;  %5590 = vst [vmem:[#allocation3 + $0x24] sm:$0xf] %v5589_v13  ;;  %v4679_v12 = vrot.slane %v17667_v55, 4  ;;  %v13067_v44 = vpack.c.bf16 %v4466_v57, %v4466_v57  ;;  %v14548_v0 = vadd.f32 %v4342_v51, %v17583_v30  ;;  %v17720_v18 = vpop.f32.mrb[17].mxu0  ;;  %13922 = vmatmul.mubr.msk.bf16.vlgmr.msra.gmra.mrb[32].mxu1 %vm1737_vm4, %v17710_v42 }
 0x273   : > { %5580 = vst [vmem:[#allocation3 + $0x14] sm:$0x1] %v5579_v63  ;;  %v4471_v21 = vadd.f32 %v14545_v20, %v17567_v38  ;;  %v4683_v17 = vrot.slane %v4681_v52, 7  ;;  %v4684_v28 = vshll.u32 %v13069_v34, 16  ;;  %v4469_v4 = vadd.f32 %v14546_v16, %v17567_v38  ;;  %v17726_v54 = vpop.f32.mrb[18].mxu0  ;;  %13954 = vmatpush3.bf16.msra.mxu1 %v17489_v47  ;;  %v5448_v16 = vpop.permute.xlu1 %5447 }
 0x274   : > { %v4472_v24 = vadd.f32 %v14547_v11, %v17567_v38  ;;  %v4662_v55 = vrot.slane %v17669_v46, 4  ;;  %v4952_v8 = vld [vmem:[#allocation3 + $0x50] sm:$0x1]  ;;  %v4664_v30 = vshrl.u32 %v13067_v44, 16  ;;  %v4470_v25 = vadd.f32 %v14548_v0, %v17567_v38  ;;  %v17732_v9 = vpop.f32.mrb[19].mxu0  ;;  %13987 = vmatprep.subr.bf16.mxu1 %v17715_v49  ;;  %v5442_v0 = vpop.permute.xlu0 %5441 }
 0x275   : > { %v13072_v51 = vpack.c.bf16 %v4471_v21, %v4471_v21  ;;  %v4686_v22 = vor.u32 %v4684_v28, %v4683_v17  ;;  %v4688_v53 = vrot.slane %v4683_v17, 4  ;;  %v13070_v33 = vpack.c.bf16 %v4469_v4, %v4469_v4  ;;  %v4945_v41 = vld [vmem:[#allocation3 + $0x44] sm:$0x1]  ;;  %v5599_v34 = vld [vmem:[#allocation3 + $0x38] sm:$0x1] }
 0x276   : > { %v17735_v1 = vpack.c.bf16 %v4472_v24, %v4472_v24  ;;  %v4666_v39 = vrot.slane %v4664_v30, 7  ;;  %v4667_v14 = vshll.u32 %v13067_v44, 16  ;;  %v13071_v32 = vpack.c.bf16 %v4470_v25, %v4470_v25  ;;  %v4962_v52 = vld [vmem:[#allocation3 + $0x60] sm:$0xf]  ;;  %v5592_v11 = vld [vmem:[#allocation3 + $0x2c] sm:$0x1] }
 0x277   : > { %v4707_v46 = vshrl.u32 %v13072_v51, 16  ;;  %v4687_v26 = vsel %vm17116_vm6, %v4679_v12, %v4686_v22  ;;  %v4953_v47 = vsel %vm17598_vm10, %v4688_v53, %v4952_v8  ;;  %v4710_v36 = vshll.u32 %v13072_v51, 16  ;;  %v17756_v28 = vld [vmem:[#allocation3 + $0x30] sm:$0xff]  }
 0x278   : > { %v5609_v35 = vld [vmem:[#allocation3 + $0x48] sm:$0xf]  ;;  %v4690_v31 = vshrl.u32 %v13070_v33, 16  ;;  %4951 = vst.msk [vmem:[#allocation3 + $0x4c] sm:$0xf] %vm4908_vm12, %v4687_v26  ;;  %v4669_v63 = vor.u32 %v4667_v14, %v4666_v39  ;;  %v4671_v20 = vrot.slane %v4666_v39, 4  ;;  %v5600_v14 = vsel %vm17662_vm3, %v5448_v16, %v5599_v34 }
 0x279   : > { %v5602_v50 = vld [vmem:[#allocation3 + $0x3c] sm:$0xf]  ;;  %v5610_v13 = vsel %vm17635_vm0, %v17522_v62, %v5609_v35  ;;  %4954 = vst [vmem:[#allocation3 + $0x50] sm:$0x1] %v4953_v47  ;;  %v17749_v12 = vld [vmem:[#allocation3 + $0x24] sm:$0xff]   ;;  %v4709_v62 = vrot.slane %v4707_v46, 7 }
 0x27a   : > { %v5603_v57 = vsel %vm17635_vm0, %v17512_v29, %v5602_v50  ;;  %5611 = vst [vmem:[#allocation3 + $0x48] sm:$0xf] %v5610_v13  ;;  %5612 = vst.msk [vmem:[#allocation3 + $0x4c] sm:$0xf] %vm5569_vm13, %v17516_v40  ;;  %v4692_v44 = vrot.slane %v4690_v31, 7  ;;  %v4693_v21 = vshll.u32 %v13070_v33, 16  ;;  %v4670_v4 = vsel %vm17116_vm6, %v4662_v55, %v4669_v63  ;;  %13925 = vmatprep.mubr.msk.bf16.mxu1 %vm1737_vm4, %v17749_v12 }
 0x27b   : > { %5604 = vst [vmem:[#allocation3 + $0x3c] sm:$0xf] %v5603_v57  ;;  %v4715_v29 = vshrl.u32 %v17735_v1, 16  ;;  %v17754_v17 = vpop.f32.mrb[20].mxu0  ;;  %v4946_v24 = vsel %vm17598_vm10, %v4671_v20, %v4945_v41  ;;  %v4955_v8 = vld [vmem:[#allocation3 + $0x54] sm:$0xf]  ;;  %v4712_v40 = vor.u32 %v4710_v36, %v4709_v62  ;;  %13926 = vmatmul.mubr.msk.bf16.gmra.mrb[36].mxu1 %vm1737_vm4, %v17756_v28  ;;  %v5593_v41 = vsel %vm17662_vm3, %v5442_v0, %v5592_v11  ;;  %v5460_v57 = vpop.permute.xlu1 %5459 }
 0x27c   : > { %v4698_v30 = vshrl.u32 %v13071_v32, 16  ;;  %v17762_v51 = vpop.f32.mrb[21].mxu0  ;;  %4944 = vst.msk [vmem:[#allocation3 + $0x40] sm:$0xf] %vm4908_vm12, %v4670_v4  ;;  %4947 = vst [vmem:[#allocation3 + $0x44] sm:$0x1] %v4946_v24  ;;  %v4695_v25 = vor.u32 %v4693_v21, %v4692_v44 }
 0x27d   : > { %v4718_v22 = vshll.u32 %v17735_v1, 16  ;;  %v4701_v53 = vshll.u32 %v13071_v32, 16  ;;  %v17768_v33 = vpop.f32.mrb[22].mxu0  ;;  %5605 = vst.msk [vmem:[#allocation3 + $0x40] sm:$0xf] %vm5569_vm13, %v17508_v61  ;;  %v4717_v55 = vrot.slane %v4715_v29, 7  ;;  %v4963_v32 = vsel %vm17587_vm8, %v4712_v40, %v4962_v52  ;;  %v5454_v29 = vpop.permute.xlu0 %5453 }
 0x27e   : > { %v4700_v39 = vrot.slane %v4698_v30, 7  ;;  %v17778_v46 = vpop.f32.mrb[23].mxu0  ;;  %v4713_v1 = vrot.slane %v4709_v62, 4  ;;  %v4696_v35 = vrot.slane %v4692_v44, 4  ;;  %v4956_v50 = vsel %vm17587_vm8, %v4695_v25, %v4955_v8  ;;  %v4966_v26 = vld [vmem:[#allocation3 + $0x68] sm:$0x1] }
 0x27f   : > { %v4959_v61 = vld [vmem:[#allocation3 + $0x5c] sm:$0x1]  ;;  %5601 = vst [vmem:[#allocation3 + $0x38] sm:$0x1] %v5600_v14  ;;  %5594 = vst [vmem:[#allocation3 + $0x2c] sm:$0x1] %v5593_v41  ;;  %v4720_v36 = vor.u32 %v4718_v22, %v4717_v55 }
 0x280   : > { %v13769_v47 = vpop.f32.mrb[16].mxu1  ;;  %4964 = vst [vmem:[#allocation3 + $0x60] sm:$0xf] %v4963_v32  ;;  %4957 = vst [vmem:[#allocation3 + $0x54] sm:$0xf] %v4956_v50  ;;  %v4722_v31 = vrot.slane %v4717_v55, 4  ;;  %v4703_v34 = vor.u32 %v4701_v53, %v4700_v39 }
 0x281   : > { %v4705_v13 = vrot.slane %v4700_v39, 4  ;;  %v3208_v63 = vpop.f32.mrb[17].mxu1  ;;  %v14549_v20 = vadd.f32 %v17708_v6, %v13769_v47  ;;  %v5613_v52 = vld [vmem:[#allocation3 + $0x50] sm:$0x1]  ;;  %v4721_v11 = vsel %vm17116_vm6, %v4713_v1, %v4720_v36  ;;  %v17800_v30 = vpop.f32.mrb[24].mxu0  ;;  %v17820_v14 = vld [vmem:[#allocation3 + $0x48] sm:$0xff]  }
 0x282   : > { %v13770_v16 = vpop.f32.mrb[18].mxu1  ;;  %v4967_v62 = vsel %vm17598_vm10, %v4722_v31, %v4966_v26  ;;  %v4704_v44 = vsel %vm17116_vm6, %v4696_v35, %v4703_v34  ;;  %4965 = vst.msk [vmem:[#allocation3 + $0x64] sm:$0xf] %vm4908_vm12, %v4721_v11  ;;  %v14550_v4 = vadd.f32 %v17720_v18, %v3208_v63  ;;  %v5614_v8 = vsel %vm17662_vm3, %v5460_v57, %v5613_v52  ;;  %v17807_v22 = vpop.f32.mrb[25].mxu0  ;;  %v4976_v52 = vld [vmem:[#allocation3 + $0x78] sm:$0xf] }
 0x283   : > { %v4960_v21 = vsel %vm17598_vm10, %v4705_v13, %v4959_v61  ;;  %v3211_v0 = vpop.f32.mrb[19].mxu1  ;;  %4968 = vst [vmem:[#allocation3 + $0x68] sm:$0x1] %v4967_v62  ;;  %4958 = vst.msk [vmem:[#allocation3 + $0x58] sm:$0xf] %vm4908_vm12, %v4704_v44  ;;  %v4475_v6 = vadd.f32 %v14549_v20, %v17567_v38  ;;  %v14551_v24 = vadd.f32 %v17726_v54, %v13770_v16  ;;  %v17813_v39 = vpop.f32.mrb[26].mxu0 }
 0x284   : > { %4961 = vst [vmem:[#allocation3 + $0x5c] sm:$0x1] %v4960_v21  ;;  %5626 = vst.msk [vmem:[#allocation3 + $0x64] sm:$0xf] %vm5569_vm13, %v17528_v23  ;;  %v14552_v40 = vadd.f32 %v17732_v9, %v3211_v0  ;;  %v5606_v25 = vld [vmem:[#allocation3 + $0x44] sm:$0x1]  ;;  %v4473_v54 = vadd.f32 %v14550_v4, %v17567_v38 }
 0x285   : > { %5619 = vst.msk [vmem:[#allocation3 + $0x58] sm:$0xf] %vm5569_vm13, %v17524_v37  ;;  %5615 = vst [vmem:[#allocation3 + $0x50] sm:$0x1] %v5614_v8  ;;  %v13076_v18 = vpack.c.bf16 %v4475_v6, %v4475_v6  ;;  %v4476_v53 = vadd.f32 %v14551_v24, %v17567_v38  ;;  %v5607_v55 = vsel %vm17662_vm3, %v5454_v29, %v5606_v25  ;;  %v17815_v23 = vld [vmem:[#allocation3 + $0x3c] sm:$0xff]   ;;  %v17818_v9 = vpop.f32.mrb[27].mxu0 }
 0x286   : > { %v4474_v37 = vadd.f32 %v14552_v40, %v17567_v38  ;;  %5608 = vst [vmem:[#allocation3 + $0x44] sm:$0x1] %v5607_v55  ;;  %v13074_v35 = vpack.c.bf16 %v4473_v54, %v4473_v54  ;;  %13929 = vmatprep.mubr.msk.bf16.mxu1 %vm1737_vm4, %v17815_v23  ;;  %v13773_v47 = vpop.f32.mrb[20].mxu1  ;;  %v4969_v0 = vld [vmem:[#allocation3 + $0x6c] sm:$0xf] }
 0x287   : > { %v5623_v41 = vld [vmem:[#allocation3 + $0x60] sm:$0xf]  ;;  %v5616_v1 = vld [vmem:[#allocation3 + $0x54] sm:$0xf]  ;;  %v4741_v32 = vshrl.u32 %v13076_v18, 16  ;;  %v13077_v50 = vpack.c.bf16 %v4476_v53, %v4476_v53  ;;  %v4744_v36 = vshll.u32 %v13076_v18, 16  ;;  %13930 = vmatmul.mubr.msk.bf16.gmra.mrb[40].mxu1 %vm1737_vm4, %v17820_v14 }
 0x288   : > { %v5624_v26 = vsel %vm17635_vm0, %v17530_v60, %v5623_v41  ;;  %v5617_v61 = vsel %vm17635_vm0, %v17526_v48, %v5616_v1  ;;  %v13075_v31 = vpack.c.bf16 %v4474_v37, %v4474_v37  ;;  %v3224_v34 = vpop.f32.mrb[21].mxu1  ;;  %v4724_v57 = vshrl.u32 %v13074_v35, 16  ;;  %v17836_v18 = vpop.f32.mrb[28].mxu0  ;;  %v4980_v37 = vld [vmem:[#allocation3 + $0x80] sm:$0x1] }
 0x289   : > { %5625 = vst [vmem:[#allocation3 + $0x60] sm:$0xf] %v5624_v26  ;;  %5618 = vst [vmem:[#allocation3 + $0x54] sm:$0xf] %v5617_v61  ;;  %v4743_v13 = vrot.slane %v4741_v32, 7  ;;  %v4727_v63 = vshll.u32 %v13074_v35, 16  ;;  %v14553_v48 = vadd.f32 %v17754_v17, %v13773_v47  ;;  %v14554_v40 = vadd.f32 %v17762_v51, %v3224_v34  ;;  %v5472_v51 = vpop.permute.xlu1 %5471 }
 0x28a   : > { %v4749_v20 = vshrl.u32 %v13077_v50, 16  ;;  %v13774_v16 = vpop.f32.mrb[22].mxu1  ;;  %v4752_v60 = vshll.u32 %v13077_v50, 16  ;;  %v4732_v11 = vshrl.u32 %v13075_v31, 16  ;;  %v4735_v62 = vshll.u32 %v13075_v31, 16  ;;  %v17840_v1 = vpop.f32.mrb[29].mxu0 }
 0x28b   : > { %v4746_v44 = vor.u32 %v4744_v36, %v4743_v13  ;;  %v4747_v21 = vrot.slane %v4743_v13, 4  ;;  %v4726_v29 = vrot.slane %v4724_v57, 7  ;;  %v3227_v6 = vpop.f32.mrb[23].mxu1  ;;  %v4479_v8 = vadd.f32 %v14553_v48, %v17567_v38  ;;  %v4973_v41 = vld [vmem:[#allocation3 + $0x74] sm:$0x1]  ;;  %v17842_v61 = vpop.f32.mrb[30].mxu0 }
 0x28c   : > { %v4751_v4 = vrot.slane %v4749_v20, 7  ;;  %v4734_v24 = vrot.slane %v4732_v11, 7  ;;  %v14555_v25 = vadd.f32 %v17768_v33, %v13774_v16  ;;  %v4477_v36 = vadd.f32 %v14554_v40, %v17567_v38  ;;  %v5627_v34 = vld [vmem:[#allocation3 + $0x68] sm:$0x1]  ;;  %v5466_v13 = vpop.permute.xlu0 %5465  ;;  %v5620_v57 = vld [vmem:[#allocation3 + $0x5c] sm:$0x1] }
 0x28d   : > { %v4977_v54 = vsel %vm17587_vm8, %v4746_v44, %v4976_v52  ;;  %v4729_v53 = vor.u32 %v4727_v63, %v4726_v29  ;;  %v4730_v17 = vrot.slane %v4726_v29, 4  ;;  %v13080_v26 = vpack.c.bf16 %v4479_v8, %v4479_v8  ;;  %v17850_v63 = vpop.f32.mrb[31].mxu0 }
 0x28e   : > { %v4754_v55 = vor.u32 %v4752_v60, %v4751_v4  ;;  %4978 = vst [vmem:[#allocation3 + $0x78] sm:$0xf] %v4977_v54  ;;  %v4756_v32 = vrot.slane %v4751_v4, 4  ;;  %v4737_v35 = vor.u32 %v4735_v62, %v4734_v24  ;;  %v4739_v50 = vrot.slane %v4734_v24, 4  ;;  %v13777_v60 = vpop.f32.mrb[24].mxu1 }
 0x28f   : > { %v4970_v33 = vsel %vm17587_vm8, %v4729_v53, %v4969_v0  ;;  %v4480_v31 = vadd.f32 %v14555_v25, %v17567_v38  ;;  %v4775_v11 = vshrl.u32 %v13080_v26, 16  ;;  %v3240_v48 = vpop.f32.mrb[25].mxu1  ;;  %v4778_v44 = vshll.u32 %v13080_v26, 16  ;;  %v4990_v54 = vld [vmem:[#allocation3 + $0x90] sm:$0xf] }
 0x290   : > { %v4755_v47 = vsel %vm17116_vm6, %v4747_v21, %v4754_v55  ;;  %4971 = vst [vmem:[#allocation3 + $0x6c] sm:$0xf] %v4970_v33  ;;  %v4981_v20 = vsel %vm17598_vm10, %v4756_v32, %v4980_v37  ;;  %v4738_v52 = vsel %vm17116_vm6, %v4730_v17, %v4737_v35  ;;  %v4974_v16 = vsel %vm17598_vm10, %v4739_v50, %v4973_v41  ;;  %v17859_v62 = vld [vmem:[#allocation3 + $0x54] sm:$0xff]   ;;  %v17865_v4 = vld [vmem:[#allocation3 + $0x60] sm:$0xff]   ;;  %v13778_v8 = vpop.f32.mrb[26].mxu1 }
 0x291   : > { %4979 = vst.msk [vmem:[#allocation3 + $0x7c] sm:$0xf] %vm4908_vm12, %v4755_v47  ;;  %4982 = vst [vmem:[#allocation3 + $0x80] sm:$0x1] %v4981_v20  ;;  %v13078_v21 = vpack.c.bf16 %v4477_v36, %v4477_v36  ;;  %v13081_v29 = vpack.c.bf16 %v4480_v31, %v4480_v31  ;;  %v14556_v0 = vadd.f32 %v17778_v46, %v3227_v6  ;;  %v4777_v24 = vrot.slane %v4775_v11, 7  ;;  %v3243_v53 = vpop.f32.mrb[27].mxu1 }
 0x292   : > { %5640 = vst.msk [vmem:[#allocation3 + $0x7c] sm:$0xf] %vm5569_vm13, %v17536_v43  ;;  %4975 = vst [vmem:[#allocation3 + $0x74] sm:$0x1] %v4974_v16  ;;  %v5628_v43 = vsel %vm17662_vm3, %v5472_v51, %v5627_v34  ;;  %v5621_v40 = vsel %vm17662_vm3, %v5466_v13, %v5620_v57  ;;  %v14557_v25 = vadd.f32 %v17800_v30, %v13777_v60  ;;  %13933 = vmatprep.mubr.msk.bf16.mxu1 %vm1737_vm4, %v17859_v62  ;;  %v4983_v47 = vld [vmem:[#allocation3 + $0x84] sm:$0xf]  ;;  %v5484_v16 = vpop.permute.xlu1 %5483 }
 0x293   : > { %4972 = vst.msk [vmem:[#allocation3 + $0x70] sm:$0xf] %vm4908_vm12, %v4738_v52  ;;  %v4758_v46 = vshrl.u32 %v13078_v21, 16  ;;  %v4761_v6 = vshll.u32 %v13078_v21, 16  ;;  %v4783_v17 = vshrl.u32 %v13081_v29, 16  ;;  %13934 = vmatmul.mubr.msk.bf16.gmra.mrb[44].mxu1 %vm1737_vm4, %v17865_v4  ;;  %v4786_v55 = vshll.u32 %v13081_v29, 16  ;;  %v5478_v21 = vpop.permute.xlu0 %5477 }
 0x294   : > { %5633 = vst.msk [vmem:[#allocation3 + $0x70] sm:$0xf] %vm5569_vm13, %v17532_v7  ;;  %5629 = vst [vmem:[#allocation3 + $0x68] sm:$0x1] %v5628_v43  ;;  %v4780_v7 = vor.u32 %v4778_v44, %v4777_v24  ;;  %v4478_v37 = vadd.f32 %v14556_v0, %v17567_v38  ;;  %v4483_v41 = vadd.f32 %v14557_v25, %v17567_v38  ;;  %v4994_v36 = vld [vmem:[#allocation3 + $0x98] sm:$0x1] }
 0x295   : > { %5622 = vst [vmem:[#allocation3 + $0x5c] sm:$0x1] %v5621_v40  ;;  %v5637_v30 = vld [vmem:[#allocation3 + $0x78] sm:$0xf]  ;;  %v4760_v32 = vrot.slane %v4758_v46, 7  ;;  %v4785_v35 = vrot.slane %v4783_v17, 7  ;;  %v14558_v50 = vadd.f32 %v17807_v22, %v3240_v48  ;;  %v14559_v26 = vadd.f32 %v17813_v39, %v13778_v8 }
 0x296   : > { %v5638_v51 = vsel %vm17635_vm0, %v17540_v45, %v5637_v30  ;;  %v4991_v33 = vsel %vm17587_vm8, %v4780_v7, %v4990_v54  ;;  %v13079_v31 = vpack.c.bf16 %v4478_v37, %v4478_v37  ;;  %v13084_v34 = vpack.c.bf16 %v4483_v41, %v4483_v41  ;;  %v13781_v11 = vpop.f32.mrb[28].mxu1  ;;  %v4987_v17 = vld [vmem:[#allocation3 + $0x8c] sm:$0x1]  ;;  %v5004_v7 = vld [vmem:[#allocation3 + $0xa8] sm:$0xf] }
 0x297   : > { %5639 = vst [vmem:[#allocation3 + $0x78] sm:$0xf] %v5638_v51  ;;  %v5630_v13 = vld [vmem:[#allocation3 + $0x6c] sm:$0xf]  ;;  %v4781_v57 = vrot.slane %v4777_v24, 4  ;;  %v4763_v20 = vor.u32 %v4761_v6, %v4760_v32  ;;  %v4788_v52 = vor.u32 %v4786_v55, %v4785_v35  ;;  %v4790_v22 = vrot.slane %v4785_v35, 4 }
 0x298   : > { %4992 = vst [vmem:[#allocation3 + $0x90] sm:$0xf] %v4991_v33  ;;  %v5631_v39 = vsel %vm17635_vm0, %v17534_v58, %v5630_v13  ;;  %v4766_v45 = vshrl.u32 %v13079_v31, 16  ;;  %v4769_v60 = vshll.u32 %v13079_v31, 16  ;;  %v4809_v48 = vshrl.u32 %v13084_v34, 16  ;;  %v3256_v8 = vpop.f32.mrb[29].mxu1 }
 0x299   : > { %v5641_v44 = vld [vmem:[#allocation3 + $0x80] sm:$0x1]  ;;  %5632 = vst [vmem:[#allocation3 + $0x6c] sm:$0xf] %v5631_v39  ;;  %v4984_v29 = vsel %vm17587_vm8, %v4763_v20, %v4983_v47  ;;  %v4789_v0 = vsel %vm17116_vm6, %v4781_v57, %v4788_v52  ;;  %v4995_v24 = vsel %vm17598_vm10, %v4790_v22, %v4994_v36  ;;  %v4812_v43 = vshll.u32 %v13084_v34, 16  ;;  %v13782_v54 = vpop.f32.mrb[30].mxu1 }
 0x29a   : > { %v5634_v40 = vld [vmem:[#allocation3 + $0x74] sm:$0x1]  ;;  %4985 = vst [vmem:[#allocation3 + $0x84] sm:$0xf] %v4984_v29  ;;  %4993 = vst.msk [vmem:[#allocation3 + $0x94] sm:$0xf] %vm4908_vm12, %v4789_v0  ;;  %v4481_v46 = vadd.f32 %v14558_v50, %v17567_v38  ;;  %v4484_v6 = vadd.f32 %v14559_v26, %v17567_v38  ;;  %v14560_v37 = vadd.f32 %v17818_v9, %v3243_v53 }
 0x29b   : > { %4996 = vst [vmem:[#allocation3 + $0x98] sm:$0x1] %v4995_v24  ;;  %v4768_v58 = vrot.slane %v4766_v45, 7  ;;  %v17897_v25 = vrot.slane %v4809_v48, 7  ;;  %5654 = vst.msk [vmem:[#allocation3 + $0x94] sm:$0xf] %vm5569_vm13, %v17550_v5  ;;  %v5642_v41 = vsel %vm17662_vm3, %v5484_v16, %v5641_v44  ;;  %v5635_v30 = vsel %vm17662_vm3, %v5478_v21, %v5634_v40 }
 0x29c   : > { %v3259_v55 = vpop.f32.mrb[31].mxu1  ;;  %v14561_v35 = vadd.f32 %v17836_v18, %v13781_v11  ;;  %v4764_v51 = vrot.slane %v4760_v32, 4  ;;  %5643 = vst [vmem:[#allocation3 + $0x80] sm:$0x1] %v5642_v41  ;;  %5636 = vst [vmem:[#allocation3 + $0x74] sm:$0x1] %v5635_v30  ;;  %v13082_v5 = vpack.c.bf16 %v4481_v46, %v4481_v46  ;;  %v13085_v47 = vpack.c.bf16 %v4484_v6, %v4484_v6 }
 0x29d   : > { %v4771_v50 = vor.u32 %v4769_v60, %v4768_v58  ;;  %v4773_v33 = vrot.slane %v4768_v58, 4  ;;  %v4814_v26 = vor.u32 %v4812_v43, %v17897_v25  ;;  %v4482_v36 = vadd.f32 %v14560_v37, %v17567_v38  ;;  %v20071_v22 = vld [vmem:[#allocation9_spill] sm:$0xff]  ;;  %v4997_v16 = vld [vmem:[#allocation3 + $0x9c] sm:$0xf]  ;;  %v5001_v30 = vld [vmem:[#allocation3 + $0xa4] sm:$0x1] }
 0x29e   : > { %v4487_v9 = vadd.f32 %v14561_v35, %v17567_v38  ;;  %v14562_v34 = vadd.f32 %v17840_v1, %v3256_v8  ;;  %v4792_v57 = vshrl.u32 %v13082_v5, 16  ;;  %v4795_v20 = vshll.u32 %v13082_v5, 16  ;;  %v5008_v45 = vld [vmem:[#allocation3 + $0xb0] sm:$0x1]  ;;  %v17930_v24 = vld [vmem:[#allocation3 + $0x78] sm:$0xff]  }
 0x29f   : > { %v5651_v53 = vld [vmem:[#allocation3 + $0x90] sm:$0xf]  ;;  %v4772_v31 = vsel %vm17116_vm6, %v4764_v51, %v4771_v50  ;;  %v4988_v18 = vsel %vm17598_vm10, %v4773_v33, %v4987_v17  ;;  %v5005_v32 = vsel %vm17587_vm8, %v4814_v26, %v5004_v7  ;;  %v4817_v52 = vshrl.u32 %v13085_v47, 16  ;;  %v20072_v8 = vld [vmem:[#allocation10_spill] sm:$0xff]  ;;  %v5018_v35 = vld [vmem:[#allocation3 + $0xc0] sm:$0xf] }
 0x2a0   : > { %v5652_v13 = vsel %vm17635_vm0, %v17556_v59, %v5651_v53  ;;  %4986 = vst.msk [vmem:[#allocation3 + $0x88] sm:$0xf] %vm4908_vm12, %v4772_v31  ;;  %4989 = vst [vmem:[#allocation3 + $0x8c] sm:$0x1] %v4988_v18  ;;  %v4820_v39 = vshll.u32 %v13085_v47, 16  ;;  %v13083_v60 = vpack.c.bf16 %v4482_v36, %v4482_v36  ;;  %v13088_v1 = vpack.c.bf16 %v4487_v9, %v4487_v9  ;;  %v17926_v48 = vld [vmem:[#allocation3 + $0x6c] sm:$0xff]   ;;  %v5496_v53 = vpop.permute.xlu1 %5495 }
 0x2a1   : > { %5006 = vst [vmem:[#allocation3 + $0xa8] sm:$0xf] %v5005_v32  ;;  %5653 = vst [vmem:[#allocation3 + $0x90] sm:$0xf] %v5652_v13  ;;  %v4485_v11 = vadd.f32 %v14562_v34, %v17567_v38  ;;  %v5644_v59 = vld [vmem:[#allocation3 + $0x84] sm:$0xf]  ;;  %v14563_v29 = vadd.f32 %v17842_v61, %v13782_v54  ;;  %v14564_v0 = vadd.f32 %v17850_v63, %v3259_v55  ;;  %13937 = vmatprep.mubr.msk.bf16.mxu1 %vm1737_vm4, %v17926_v48 }
 0x2a2   : > { %5647 = vst.msk [vmem:[#allocation3 + $0x88] sm:$0xf] %vm5569_vm13, %v20071_v22  ;;  %v4794_v44 = vrot.slane %v4792_v57, 7  ;;  %v4819_v21 = vrot.slane %v4817_v52, 7  ;;  %v5645_v43 = vsel %vm17635_vm0, %v20072_v8, %v5644_v59  ;;  %v4815_v40 = vrot.slane %v17897_v25, 4  ;;  %13938 = vmatmul.mubr.msk.bf16.gmra.mrb[48].mxu1 %vm1737_vm4, %v17930_v24  ;;  %v20073_v18 = vld [vmem:[#allocation14_spill] sm:$0xff] }
 0x2a3   : > { %v4800_v58 = vshrl.u32 %v13083_v60, 16  ;;  %v4843_v46 = vshrl.u32 %v13088_v1, 16  ;;  %5646 = vst [vmem:[#allocation3 + $0x84] sm:$0xf] %v5645_v43  ;;  %v4803_v61 = vshll.u32 %v13083_v60, 16  ;;  %v4846_v7 = vshll.u32 %v13088_v1, 16 }
 0x2a4   : > { %v4797_v38 = vor.u32 %v4795_v20, %v4794_v44  ;;  %v4822_v6 = vor.u32 %v4820_v39, %v4819_v21  ;;  %v4824_v17 = vrot.slane %v4819_v21, 4  ;;  %v13086_v55 = vpack.c.bf16 %v4485_v11, %v4485_v11  ;;  %v15424_v51 = vld [vmem:[%s19925_s3] ss:$0 sm:$0xff]  ;;  %v5655_v33 = vld [vmem:[#allocation3 + $0x98] sm:$0x1]  ;;  %v20074_v34 = vld [vmem:[#allocation13_spill] sm:$0xff]  ;;  %v5490_v20 = vpop.permute.xlu0 %5489 }
 0x2a5   : > { %v4802_v63 = vrot.slane %v4800_v58, 7  ;;  %v17940_v54 = vrot.slane %v4843_v46, 7  ;;  %v4488_v50 = vadd.f32 %v15424_v51, %v14563_v29  ;;  %v4798_v5 = vrot.slane %v4794_v44, 4  ;;  %v20075_v59 = vld [vmem:[#allocation11_spill] sm:$0xff]  ;;  %v5011_v44 = vld [vmem:[#allocation3 + $0xb4] sm:$0xf]  ;;  %v5508_v58 = vpop.permute.xlu1 %5507 }
 0x2a6   : > { %v4998_v25 = vsel %vm17587_vm8, %v4797_v38, %v4997_v16  ;;  %v4823_v37 = vsel %vm17116_vm6, %v4815_v40, %v4822_v6  ;;  %v5009_v41 = vsel %vm17598_vm10, %v4824_v17, %v5008_v45  ;;  %v4826_v13 = vshrl.u32 %v13086_v55, 16  ;;  %v5022_v38 = vld [vmem:[#allocation3 + $0xc8] sm:$0x1] }
 0x2a7   : > { %4999 = vst [vmem:[#allocation3 + $0x9c] sm:$0xf] %v4998_v25  ;;  %5007 = vst.msk [vmem:[#allocation3 + $0xac] sm:$0xf] %vm4908_vm12, %v4823_v37  ;;  %v4805_v47 = vor.u32 %v4803_v61, %v4802_v63  ;;  %v4807_v36 = vrot.slane %v4802_v63, 4  ;;  %v4848_v9 = vor.u32 %v4846_v7, %v17940_v54  ;;  %v13089_v57 = vpack.c.bf16 %v4488_v50, %v4488_v50  ;;  %v20076_v37 = vld [vmem:[#allocation12_spill] sm:$0xff] }
 0x2a8   : > { %v5665_v26 = vld [vmem:[#allocation3 + $0xa8] sm:$0xf]  ;;  %5010 = vst [vmem:[#allocation3 + $0xb0] sm:$0x1] %v5009_v41  ;;  %v5648_v31 = vld [vmem:[#allocation3 + $0x8c] sm:$0x1]  ;;  %v4486_v39 = vadd.f32 %v15424_v51, %v14564_v0  ;;  %v5656_v11 = vsel %vm17662_vm3, %v5496_v53, %v5655_v33 }
 0x2a9   : > { %v5666_v32 = vsel %vm17635_vm0, %v20073_v18, %v5665_v26  ;;  %5668 = vst.msk [vmem:[#allocation3 + $0xac] sm:$0xf] %vm5569_vm13, %v20074_v34  ;;  %v4806_v52 = vsel %vm17116_vm6, %v4798_v5, %v4805_v47  ;;  %v5002_v22 = vsel %vm17598_vm10, %v4807_v36, %v5001_v30  ;;  %v5019_v16 = vsel %vm17587_vm8, %v4848_v9, %v5018_v35  ;;  %v17973_v46 = vld [vmem:[#allocation3 + $0x90] sm:$0xff]   ;;  %v5015_v33 = vld [vmem:[#allocation3 + $0xbc] sm:$0x1] }
 0x2aa   : > { %5667 = vst [vmem:[#allocation3 + $0xa8] sm:$0xf] %v5666_v32  ;;  %5000 = vst.msk [vmem:[#allocation3 + $0xa0] sm:$0xf] %vm4908_vm12, %v4806_v52  ;;  %v4828_v45 = vrot.slane %v4826_v13, 7  ;;  %v4829_v60 = vshll.u32 %v13086_v55, 16  ;;  %v13087_v21 = vpack.c.bf16 %v4486_v39, %v4486_v39  ;;  %v5649_v29 = vsel %vm17662_vm3, %v5490_v20, %v5648_v31 }
 0x2ab   : > { %5003 = vst [vmem:[#allocation3 + $0xa4] sm:$0x1] %v5002_v22  ;;  %5020 = vst [vmem:[#allocation3 + $0xc0] sm:$0xf] %v5019_v16  ;;  %v4851_v1 = vshrl.u32 %v13089_v57, 16  ;;  %v17971_v0 = vld [vmem:[#allocation3 + $0x84] sm:$0xff]  }
 0x2ac   : > { %5661 = vst.msk [vmem:[#allocation3 + $0xa0] sm:$0xf] %vm5569_vm13, %v20075_v59  ;;  %5657 = vst [vmem:[#allocation3 + $0x98] sm:$0x1] %v5656_v11  ;;  %v4831_v8 = vor.u32 %v4829_v60, %v4828_v45  ;;  %v4854_v40 = vshll.u32 %v13089_v57, 16  ;;  %v4834_v6 = vshrl.u32 %v13087_v21, 16  ;;  %13941 = vmatprep.mubr.msk.bf16.mxu1 %vm1737_vm4, %v17971_v0  ;;  %v5520_v57 = vpop.permute.xlu1 %5519 }
 0x2ad   : > { %v4853_v43 = vrot.slane %v4851_v1, 7  ;;  %5650 = vst [vmem:[#allocation3 + $0x8c] sm:$0x1] %v5649_v29  ;;  %v4849_v61 = vrot.slane %v17940_v54, 4  ;;  %13942 = vmatmul.mubr.msk.bf16.gmra.mrb[52].mxu1 %vm1737_vm4, %v17973_v46  ;;  %v4837_v35 = vshll.u32 %v13087_v21, 16  ;;  %v5502_v54 = vpop.permute.xlu0 %5501  ;;  %v4832_v5 = vrot.slane %v4828_v45, 4 }
 0x2ae   : > { %v5658_v17 = vld [vmem:[#allocation3 + $0x9c] sm:$0xf]  ;;  %v5012_v63 = vsel %vm17587_vm8, %v4831_v8, %v5011_v44  ;;  %v4836_v30 = vrot.slane %v4834_v6, 7  ;;  %v20077_v31 = vld [vmem:[#allocation17_spill] sm:$0xff]  ;;  %v20078_v13 = vld [vmem:[#allocation15_spill] sm:$0xff] }
 0x2af   : > { %v4856_v7 = vor.u32 %v4854_v40, %v4853_v43  ;;  %v4858_v55 = vrot.slane %v4853_v43, 4  ;;  %v5669_v25 = vld [vmem:[#allocation3 + $0xb0] sm:$0x1]  ;;  %v5659_v41 = vsel %vm17635_vm0, %v20076_v37, %v5658_v17  ;;  %5013 = vst [vmem:[#allocation3 + $0xb4] sm:$0xf] %v5012_v63  ;;  %v20079_v20 = vld [vmem:[#allocation16_spill] sm:$0xff] }
 0x2b0   : > { %v5670_v51 = vsel %vm17662_vm3, %v5508_v58, %v5669_v25  ;;  %5660 = vst [vmem:[#allocation3 + $0x9c] sm:$0xf] %v5659_v41  ;;  %v4839_v47 = vor.u32 %v4837_v35, %v4836_v30  ;;  %v4841_v36 = vrot.slane %v4836_v30, 4  ;;  %v561_v60 = vld [vmem:[#allocation3 + $0xcc] sm:$0x1]  ;;  %v15356_v43 = vld [vmem:[#allocation3] sm:$0xff]  }
 0x2b1   : > { %v4857_v19 = vsel %vm17116_vm6, %v4849_v61, %v4856_v7  ;;  %v5023_v50 = vsel %vm17598_vm10, %v4858_v55, %v5022_v38  ;;  %5671 = vst [vmem:[#allocation3 + $0xb0] sm:$0x1] %v5670_v51  ;;  %v18011_v39 = vld [vmem:[#allocation3 + $0xa8] sm:$0xff]   ;;  %v5514_v45 = vpop.permute.xlu0 %5513  ;;  %v562_v11 = vsel %vm15506_vm2, 0, %v561_v60  ;;  %v18075_v6 = vld [vmem:[#allocation3 + $0x50] sm:$0x1] }
 0x2b2   : > { %v5679_v26 = vld [vmem:[#allocation3 + $0xc0] sm:$0xf]  ;;  %5021 = vst.msk [vmem:[#allocation3 + $0xc4] sm:$0xf] %vm4908_vm12, %v4857_v19  ;;  %5024 = vst [vmem:[#allocation3 + $0xc8] sm:$0x1] %v5023_v50  ;;  %v4840_v32 = vsel %vm17116_vm6, %v4832_v5, %v4839_v47  ;;  %v5016_v34 = vsel %vm17598_vm10, %v4841_v36, %v5015_v33 }
 0x2b3   : > { %v5662_v9 = vld [vmem:[#allocation3 + $0xa4] sm:$0x1]  ;;  %v5680_v53 = vsel %vm17635_vm0, %v17655_v27, %v5679_v26  ;;  %5682 = vst.msk [vmem:[#allocation3 + $0xc4] sm:$0xf] %vm5569_vm13, %v20077_v31  ;;  %5017 = vst [vmem:[#allocation3 + $0xbc] sm:$0x1] %v5016_v34 }
 0x2b4   : > { %v5663_v18 = vsel %vm17662_vm3, %v5502_v54, %v5662_v9  ;;  %5681 = vst [vmem:[#allocation3 + $0xc0] sm:$0xf] %v5680_v53  ;;  %5014 = vst.msk [vmem:[#allocation3 + $0xb8] sm:$0xf] %vm4908_vm12, %v4840_v32  ;;  %v564_v59 = vld [vmem:[#allocation3 + $0x8] sm:$0x1] }
 0x2b5   : > { %5664 = vst [vmem:[#allocation3 + $0xa4] sm:$0x1] %v5663_v18  ;;  %5675 = vst.msk [vmem:[#allocation3 + $0xb8] sm:$0xf] %vm5569_vm13, %v20078_v13  ;;  %v565_v29 = vsel %vm15567_vm9, 0, %v564_v59  ;;  %v7720_v54 = vrot.slane %v18075_v6, 5 }
 0x2b6   : > { %v5672_v27 = vld [vmem:[#allocation3 + $0xb4] sm:$0xf]  ;;  %563 = vst [vmem:[#allocation3 + $0xcc] sm:$0x1] %v562_v11  ;;  %566 = vst [vmem:[#allocation3 + $0x8] sm:$0x1] %v565_v29 }
 0x2b7   : > { %v5673_v52 = vsel %vm17635_vm0, %v20079_v20, %v5672_v27  ;;  %v18009_v22 = vld [vmem:[#allocation3 + $0x9c] sm:$0xff]   ;;  %v7613_v58 = vld [vmem:[#allocation3 + $0x48] sm:$0xe]  ;;  %v18073_v38 = vld [vmem:[#allocation3 + $0x4c] sm:$0xf] }
 0x2b8   : > { %5674 = vst [vmem:[#allocation3 + $0xb4] sm:$0xf] %v5673_v52  ;;  %13945 = vmatprep.mubr.msk.bf16.mxu1 %vm1737_vm4, %v18009_v22  ;;  %v7614_v61 = vld [vmem:[#allocation3 + $0x54] sm:$0xe]  ;;  %v18077_v63 = vld [vmem:[#allocation3 + $0x58] sm:$0xf] }
 0x2b9   : > { %v5683_v16 = vld [vmem:[#allocation3 + $0xc8] sm:$0x1]  ;;  %13946 = vmatmul.mubr.msk.bf16.gmra.mrb[56].mxu1 %vm1737_vm4, %v18011_v39  ;;  %v12689_v25 = vrot.slane %v7613_v58, 9  ;;  %v18081_v37 = vld [vmem:[#allocation3 + $0x5c] sm:$0x1]  ;;  %v7717_v41 = vrot.slane %v18073_v38, 5 }
 0x2ba   : > { %v5684_v10 = vsel %vm17662_vm3, %v5520_v57, %v5683_v16  ;;  %v5676_v2 = vld [vmem:[#allocation3 + $0xbc] sm:$0x1]  ;;  %v7615_v30 = vld [vmem:[#allocation3 + $0x60] sm:$0xe]  ;;  %v18084_v35 = vld [vmem:[#allocation3 + $0x68] sm:$0x1] }
 0x2bb   : > { %5685 = vst [vmem:[#allocation3 + $0xc8] sm:$0x1] %v5684_v10  ;;  %v5677_v44 = vsel %vm17662_vm3, %v5514_v45, %v5676_v2  ;;  %v18027_v40 = vld [vmem:[#allocation3 + $0xc0] sm:$0xff]   ;;  %v12690_v19 = vrot.slane %v7614_v61, 9  ;;  %v18089_v33 = vld [vmem:[#allocation3 + $0x70] sm:$0xf]  ;;  %v7718_v18 = vsel %vm16041_vm14, %v12689_v25, %v7717_v41 }
 0x2bc   : > { %5678 = vst [vmem:[#allocation3 + $0xbc] sm:$0x1] %v5677_v44  ;;  %v18087_v50 = vld [vmem:[#allocation3 + $0x64] sm:$0xf]  ;;  %v7719_v47 = vrot.slane %v7717_v41, 4  ;;  %v7724_v36 = vrot.slane %v18077_v63, 5 }
 0x2bd   : > { %v7616_v9 = vld [vmem:[#allocation3 + $0x6c] sm:$0xe]  ;;  %v18096_v53 = vld [vmem:[#allocation3 + $0x74] sm:$0x1]  ;;  %v7727_v32 = vrot.slane %v18081_v37, 5  ;;  %v12691_v34 = vrot.slane %v7615_v30, 9 }
 0x2be   : > { %v7617_v13 = vld [vmem:[#allocation3 + $0x78] sm:$0xe]  ;;  %v18104_v57 = vld [vmem:[#allocation3 + $0x7c] sm:$0xf]  ;;  %v18106_v20 = vld [vmem:[#allocation3 + $0x80] sm:$0x1]  ;;  %v7721_v16 = vsel %vm16041_vm14, %v7719_v47, %v7720_v54  ;;  %v7725_v10 = vsel %vm16041_vm14, %v12690_v19, %v7724_v36 }
 0x2bf   : > { %v18025_v8 = vld [vmem:[#allocation3 + $0xb4] sm:$0xff]   ;;  %v7726_v45 = vrot.slane %v7724_v36, 4  ;;  %v18114_v60 = vcombine.low %v7718_v18, %v7721_v16  ;;  %v7731_v2 = vrot.slane %v18087_v50, 5  ;;  %v7734_v11 = vrot.slane %v18084_v35, 5  ;;  %v7618_v44 = vld [vmem:[#allocation3 + $0x84] sm:$0xe] }
 0x2c0   : > { %13949 = vmatprep.mubr.msk.bf16.mxu1 %vm1737_vm4, %v18025_v8  ;;  %v15425_v27 = vld [vmem:[#allocation3 + $0x18] sm:$0xff]   ;;  %v12692_v59 = vrot.slane %v7616_v9, 9  ;;  %v18118_v29 = vld [vmem:[#allocation3 + $0x88] sm:$0xf]  ;;  %v7741_v58 = vrot.slane %v18096_v53, 5  ;;  %v7745_v25 = vrot.slane %v18104_v57, 5 }
 0x2c1   : > { %13950 = vmatmul.mubr.msk.bf16.gmra.mrb[60].mxu1 %vm1737_vm4, %v18027_v40  ;;  %20084 = vst [vmem:[#allocation9_spill] sm:$0xff] %v18114_v60  ;;  %v18124_v61 = vld [vmem:[#allocation3 + $0x8c] sm:$0x1]  ;;  %v7619_v41 = vld [vmem:[#allocation3 + $0x90] sm:$0xe]  ;;  %v7748_v19 = vrot.slane %v18106_v20, 5 }
 0x2c2   : > { %13955 = vmatprep.mubr.msk.bf16.mxu1 %vm1737_vm4, %v15356_v43  ;;  %v7728_v43 = vsel %vm16041_vm14, %v7726_v45, %v7727_v32  ;;  %v18129_v30 = vld [vmem:[#allocation3 + $0x98] sm:$0x1]  ;;  %v18137_v47 = vld [vmem:[%s19926_s4 + $0x20] sm:$0xff]   ;;  %v18139_v36 = vld [vmem:[#allocation3 + $0x94] sm:$0xf]  ;;  %v7747_v32 = vrot.slane %v7745_v25, 4 }
 0x2c3   : > { %v18141_v9 = vld [vmem:[#allocation3 + $0xa0] sm:$0xf]  ;;  %v7755_v45 = vrot.slane %v18124_v61, 5  ;;  %v6422_v60 = vld [vmem:[#allocation3 + $0x3c] sm:$0xf] }
 0x2c4   : > { %v15389_v21 = vld [vmem:[%s19929_s7 + $0x10] sm:$0xff]  }
 0x2c9   : > { %13956 = vmatmul.mubr.msk.bf16.vlgmr.msra.gmra.mrb[32].mxu1 %vm1737_vm4, %v17704_v56  ;;  %v7612_v56 = vld [vmem:[#allocation3 + $0x3c] sm:$0xe] }
 0x2ca   : > { %13988 = vmatpush3.bf16.msra.mxu1 %v17715_v49  ;;  %13959 = vmatprep.mubr.msk.bf16.mxu1 %vm1737_vm4, %v17710_v42  ;;  %v18069_v42 = vld [vmem:[#allocation3 + $0x40] sm:$0xf]  ;;  %v18071_v49 = vld [vmem:[#allocation3 + $0x44] sm:$0x1]  ;;  %v12688_v17 = vrot.slane %v7612_v56, 9  ;;  %v7738_v56 = vrot.slane %v18089_v33, 5 }
 0x2cb   : > { %14021 = vmatprep.subr.bf16.mxu1 %v18037_v15  ;;  %v7710_v7 = vrot.slane %v18069_v42, 5  ;;  %v7713_v55 = vrot.slane %v18071_v49, 5 }
 0x2cc   : > { %v7740_v54 = vrot.slane %v7738_v56, 4  ;;  %v7739_v18 = vsel %vm16041_vm14, %v12692_v59, %v7738_v56  ;;  %v12695_v56 = vrot.slane %v7619_v41, 9 }
 0x2cd   : > { %v7712_v51 = vrot.slane %v7710_v7, 4  ;;  %v7711_v5 = vsel %vm16041_vm14, %v12688_v17, %v7710_v7  ;;  %v12693_v17 = vrot.slane %v7617_v13, 9  ;;  %v18126_v7 = vcombine.low %v7725_v10, %v7728_v43  ;;  %v18148_v13 = vld [vmem:[#allocation3 + $0xa4] sm:$0x1] }
 0x2ce   : > { %v7742_v16 = vsel %vm16041_vm14, %v7740_v54, %v7741_v58  ;;  %v18168_v58 = vld [vmem:[#allocation3 + $0xb0] sm:$0x1]  ;;  %v7762_v54 = vrot.slane %v18129_v30, 5 }
 0x2cf   : > { %v7714_v31 = vsel %vm16041_vm14, %v7712_v51, %v7713_v55  ;;  %20085 = vst [vmem:[#allocation10_spill] sm:$0xff] %v18126_v7  ;;  %v7733_v55 = vrot.slane %v7731_v2, 4  ;;  %v7732_v51 = vsel %vm16041_vm14, %v12691_v34, %v7731_v2  ;;  %v7752_v34 = vrot.slane %v18118_v29, 5  ;;  %v7620_v2 = vld [vmem:[#allocation3 + $0x9c] sm:$0xe] }
 0x2d0   : > { %v18108_v52 = vcombine.low %v7711_v5, %v7714_v31  ;;  %v12694_v5 = vrot.slane %v7618_v44, 9  ;;  %v7746_v10 = vsel %vm16041_vm14, %v12693_v17, %v7745_v25  ;;  %v18161_v59 = vcombine.low %v7739_v18, %v7742_v16  ;;  %v18170_v17 = vld [vmem:[#allocation3 + $0xb8] sm:$0xf]  ;;  %v18183_v18 = vld [vmem:[#allocation3 + $0xbc] sm:$0x1] }
 0x2d1   : > { %13960 = vmatmul.mubr.msk.bf16.gmra.mrb[36].mxu1 %vm1737_vm4, %v17749_v12  ;;  %v7735_v31 = vsel %vm16041_vm14, %v7733_v55, %v7734_v11  ;;  %v18159_v11 = vld [vmem:[#allocation3 + $0xac] sm:$0xf]  ;;  %v7749_v44 = vsel %vm16041_vm14, %v7747_v32, %v7748_v19  ;;  %v7754_v43 = vrot.slane %v7752_v34, 4  ;;  %v7621_v55 = vld [vmem:[#allocation3 + $0xa8] sm:$0xe]  ;;  %v12696_v41 = vrot.slane %v7620_v2, 9 }
 0x2d2   : > { %13963 = vmatprep.mubr.msk.bf16.mxu1 %vm1737_vm4, %v17756_v28  ;;  %20083 = vst [vmem:[#allocation18_spill] sm:$0xff] %v18108_v52  ;;  %20087 = vst [vmem:[#allocation13_spill] sm:$0xff] %v18161_v59  ;;  %v7753_v25 = vsel %vm16041_vm14, %v12694_v5, %v7752_v34  ;;  %v7769_v19 = vrot.slane %v18148_v13, 5  ;;  %v12697_v34 = vrot.slane %v7621_v55, 9  ;;  %v7773_v16 = vrot.slane %v18159_v11, 5 }
 0x2d3   : > { %v7776_v2 = vrot.slane %v18168_v58, 5 }
 0x2d4   : > { %v7775_v3 = vrot.slane %v7773_v16, 4 }
 0x2d9   : > { %13964 = vmatmul.mubr.msk.bf16.gmra.mrb[40].mxu1 %vm1737_vm4, %v17815_v23 }
 0x2da   : > { %13967 = vmatprep.mubr.msk.bf16.mxu1 %vm1737_vm4, %v17820_v14 }
 0x2e1   : > { %13968 = vmatmul.mubr.msk.bf16.gmra.mrb[44].mxu1 %vm1737_vm4, %v17859_v62 }
 0x2e2   : > { %13971 = vmatprep.mubr.msk.bf16.mxu1 %vm1737_vm4, %v17865_v4 }
 0x2e9   : > { %13972 = vmatmul.mubr.msk.bf16.gmra.mrb[48].mxu1 %vm1737_vm4, %v17926_v48 }
 0x2ea   : > { %13975 = vmatprep.mubr.msk.bf16.mxu1 %vm1737_vm4, %v17930_v24 }
 0x2f1   : > { %13976 = vmatmul.mubr.msk.bf16.gmra.mrb[52].mxu1 %vm1737_vm4, %v17971_v0 }
 0x2f2   : > { %13979 = vmatprep.mubr.msk.bf16.mxu1 %vm1737_vm4, %v17973_v46 }
 0x2f9   : > { %13980 = vmatmul.mubr.msk.bf16.gmra.mrb[56].mxu1 %vm1737_vm4, %v18009_v22 }
 0x2fa   : > { %13983 = vmatprep.mubr.msk.bf16.mxu1 %vm1737_vm4, %v18011_v39 }
 0x301   : > { %13984 = vmatmul.mubr.msk.bf16.gmra.mrb[60].mxu1 %vm1737_vm4, %v18025_v8 }
 0x302   : > { %13989 = vmatprep.mubr.msk.bf16.mxu1 %vm1737_vm4, %v15425_v27  ;;  %v18150_v27 = vcombine.low %v7732_v51, %v7735_v31  ;;  %v7759_v51 = vrot.slane %v18139_v36, 5  ;;  %v7622_v31 = vld [vmem:[#allocation3 + $0xb4] sm:$0xe] }
 0x303   : > { %v12698_v1 = vrot.slane %v7622_v31, 9  ;;  %v7777_v31 = vsel %vm16041_vm14, %v7775_v3, %v7776_v2 }
 0x304   : > { %20086 = vst [vmem:[#allocation14_spill] sm:$0xff] %v18150_v27  ;;  %v7761_v5 = vrot.slane %v7759_v51, 4  ;;  %v18275_v27 = vld [vmem:[#allocation3 + $0x20] sm:$0x1] }
 0x305   : > { %20100 = vst [vmem:[#allocation26_spill] sm:$0xff] %v18275_v27 }
 0x309   : > { %13990 = vmatmul.mubr.msk.bf16.vlgmr.msra.gmra.mrb[32].mxu1 %vm1737_vm4, %v17749_v12  ;;  %v18172_v12 = vcombine.low %v7746_v10, %v7749_v44  ;;  %v18188_v10 = vld [vmem:[#allocation3 + $0xc8] sm:$0x1]  ;;  %v7760_v44 = vsel %vm16041_vm14, %v12695_v56, %v7759_v51  ;;  %v7783_v56 = vrot.slane %v18183_v18, 5  ;;  %v18203_v51 = vld [vmem:[#allocation3 + $0xc4] sm:$0xf] }
 0x30a   : > { %14022 = vmatpush3.bf16.msra.mxu1 %v18037_v15  ;;  %13993 = vmatprep.mubr.msk.bf16.mxu1 %vm1737_vm4, %v17756_v28  ;;  %v7756_v15 = vsel %vm16041_vm14, %v7754_v43, %v7755_v45  ;;  %v7766_v28 = vrot.slane %v18141_v9, 5  ;;  %v7763_v43 = vsel %vm16041_vm14, %v7761_v5, %v7762_v54  ;;  %v7774_v54 = vsel %vm16041_vm14, %v12697_v34, %v7773_v16 }
 0x30b   : > { %20088 = vst [vmem:[#allocation11_spill] sm:$0xff] %v18172_v12  ;;  %14055 = vmatprep.subr.bf16.mxu1 %v18137_v47  ;;  %v18185_v32 = vcombine.low %v7753_v25, %v7756_v15  ;;  %v7780_v25 = vrot.slane %v18170_v17, 5  ;;  %v7623_v15 = vld [vmem:[#allocation3 + $0xc0] sm:$0xe] }
 0x30c   : > { %v7768_v45 = vrot.slane %v7766_v28, 4  ;;  %v7767_v55 = vsel %vm16041_vm14, %v12696_v41, %v7766_v28  ;;  %v18213_v41 = vcombine.low %v7774_v54, %v7777_v31  ;;  %v12734_v28 = vrot.slane %v7623_v15, 9 }
 0x30d   : > { %20089 = vst [vmem:[#allocation12_spill] sm:$0xff] %v18185_v32  ;;  %v18196_v32 = vcombine.low %v7760_v44, %v7763_v43  ;;  %v7782_v5 = vrot.slane %v7780_v25, 4  ;;  %v8091_v44 = vrot.slane %v18188_v10, 5  ;;  %v6410_v43 = vld [vmem:[#allocation3 + $0xc] sm:$0xf] }
 0x30e   : > { %v7770_v12 = vsel %vm16041_vm14, %v7768_v45, %v7769_v19  ;;  %20092 = vst [vmem:[#allocation16_spill] sm:$0xff] %v18213_v41  ;;  %v8088_v19 = vrot.slane %v18203_v51, 5 }
 0x30f   : > { %20090 = vst [vmem:[#allocation17_spill] sm:$0xff] %v18196_v32  ;;  %v18205_v59 = vcombine.low %v7767_v55, %v7770_v12  ;;  %v7781_v12 = vsel %vm16041_vm14, %v12698_v1, %v7780_v25  ;;  %v7784_v3 = vsel %vm16041_vm14, %v7782_v5, %v7783_v56  ;;  %v18239_v1 = vld [vmem:[#allocation3 + $0x4] sm:$0xf]  ;;  %v6489_v55 = vshll.u32 %v6410_v43, 16  ;;  %v18247_v56 = vld [vmem:[#allocation3 + $0x10] sm:$0xf] }
 0x310   : > { %v18223_v34 = vcombine.low %v7781_v12, %v7784_v3  ;;  %v8090_v16 = vrot.slane %v8088_v19, 4  ;;  %v6475_v15 = vshrl.u32 %v18239_v1, 16  ;;  %20095 = vst [vmem:[#allocation21_spill] sm:$0xff] %v18247_v56  ;;  %v18256_v12 = vld [vmem:[#allocation3 + $0x1c] sm:$0xf]  ;;  %v6499_v3 = vshrl.u32 %v18247_v56, 16 }
 0x311   : > { %20091 = vst [vmem:[#allocation15_spill] sm:$0xff] %v18205_v59  ;;  %13994 = vmatmul.mubr.msk.bf16.gmra.mrb[36].mxu1 %vm1737_vm4, %v17815_v23  ;;  %v8089_v23 = vsel %vm16041_vm14, %v12734_v28, %v8088_v19  ;;  %v18251_v28 = vld [vmem:[#allocation3 + $0x8] sm:$0x1]  ;;  %20097 = vst [vmem:[#allocation23_spill] sm:$0xff] %v18256_v12  ;;  %v18270_v32 = vld [vmem:[#allocation3 + $0x14] sm:$0x1] }
 0x312   : > { %13997 = vmatprep.mubr.msk.bf16.mxu1 %vm1737_vm4, %v17820_v14  ;;  %20093 = vst [vmem:[#allocation6_spill] sm:$0xff] %v18223_v34  ;;  %v8092_v45 = vsel %vm16041_vm14, %v8090_v16, %v8091_v44  ;;  %v6407_v14 = vld [vmem:[#allocation3] sm:$0xf]  ;;  %v6477_v5 = vrot.slane %v6475_v15, 4  ;;  %20096 = vst [vmem:[#allocation22_spill] sm:$0xff] %v18251_v28  ;;  %v6495_v44 = vshll.u32 %v18247_v56, 16 }
 0x313   : > { %v18229_v2 = vcombine.low %v8089_v23, %v8092_v45  ;;  %v6465_v25 = vshll.u32 %v6407_v14, 16  ;;  %v6416_v45 = vld [vmem:[#allocation3 + $0x24] sm:$0xf]  ;;  %v6523_v15 = vshrl.u32 %v18256_v12, 16  ;;  %20099 = vst [vmem:[#allocation25_spill] sm:$0xff] %v18270_v32 }
 0x314   : > { %v6425_v56 = vld [vmem:[#allocation3 + $0x48] sm:$0xf] }
 0x315   : > { %20094 = vst [vmem:[#allocation20_spill] sm:$0xff] %v18229_v2  ;;  %v6467_v54 = vrot.slane %v6465_v25, 5  ;;  %v18263_v25 = vld [vmem:[#allocation3 + $0x28] sm:$0xf]  ;;  %v6501_v2 = vrot.slane %v6499_v3, 4 }
 0x316   : > { %20098 = vst [vmem:[#allocation24_spill] sm:$0xff] %v18263_v25 }
 0x319   : > { %13998 = vmatmul.mubr.msk.bf16.gmra.mrb[40].mxu1 %vm1737_vm4, %v17859_v62  ;;  %v6462_v62 = vshrl.u32 %v6407_v14, 16 }
 0x31a   : > { %14001 = vmatprep.mubr.msk.bf16.mxu1 %vm1737_vm4, %v17865_v4  ;;  %v6471_v4 = vshll.u32 %v18239_v1, 16 }
 0x31c   : > { %v18249_v31 = vrot.slane %v6471_v4, 5  ;;  %v6519_v4 = vshll.u32 %v18256_v12, 16 }
 0x321   : > { %14002 = vmatmul.mubr.msk.bf16.gmra.mrb[44].mxu1 %vm1737_vm4, %v17926_v48  ;;  %v6486_v48 = vshrl.u32 %v6410_v43, 16  ;;  %v6478_v43 = vor.u32 %v6477_v5, %v18249_v31 }
 0x322   : > { %14005 = vmatprep.mubr.msk.bf16.mxu1 %vm1737_vm4, %v17930_v24  ;;  %v6464_v24 = vrot.slane %v6462_v62, 4  ;;  %v6481_v62 = vshll.u32 %v18251_v28, 16 }
 0x323   : > { %v6488_v19 = vrot.slane %v6486_v48, 4  ;;  %v18267_v48 = vrot.slane %v6495_v44, 5  ;;  %v6479_v41 = vrot.slane %v6478_v43, 4  ;;  %v18277_v44 = vrot.slane %v6519_v4, 5 }
 0x324   : > { %v6468_v14 = vor.u32 %v6467_v54, %v6464_v24  ;;  %v6543_v24 = vshll.u32 %v18263_v25, 16  ;;  %v6419_v54 = vld [vmem:[#allocation3 + $0x30] sm:$0xf]  ;;  %v6483_v59 = vrot.slane %v6481_v62, 5 }
 0x325   : > { %v6561_v43 = vshll.u32 %v6419_v54, 16  ;;  %v6502_v62 = vor.u32 %v6501_v2, %v18267_v48  ;;  %v6529_v2 = vshll.u32 %v18275_v27, 16 }
 0x326   : > { %v6469_v5 = vrot.slane %v6468_v14, 4  ;;  %v6558_v14 = vshrl.u32 %v6419_v54, 16  ;;  %v18299_v54 = vld [vmem:[#allocation3 + $0x2c] sm:$0x1] }
 0x327   : > { %v6503_v52 = vrot.slane %v6502_v62, 4  ;;  %v6553_v27 = vshll.u32 %v18299_v54, 16 }
 0x329   : > { %14006 = vmatmul.mubr.msk.bf16.gmra.mrb[48].mxu1 %vm1737_vm4, %v17971_v0  ;;  %v6413_v0 = vld [vmem:[#allocation3 + $0x18] sm:$0xf] }
 0x32a   : > { %14009 = vmatprep.mubr.msk.bf16.mxu1 %vm1737_vm4, %v17973_v46  ;;  %v6491_v46 = vrot.slane %v6489_v55, 5  ;;  %v6510_v16 = vshrl.u32 %v6413_v0, 16  ;;  %v6513_v23 = vshll.u32 %v6413_v0, 16  ;;  %v6537_v55 = vshll.u32 %v6416_v45, 16 }
 0x32c   : > { %v6512_v34 = vrot.slane %v6510_v16, 4  ;;  %v6515_v0 = vrot.slane %v6513_v23, 5  ;;  %v6539_v16 = vrot.slane %v6537_v55, 5  ;;  %v18281_v23 = vld [vmem:[#allocation3 + $0x34] sm:$0xf] }
 0x32d   : > { %20101 = vst [vmem:[#allocation27_spill] sm:$0xff] %v18281_v23 }
 0x32e   : > { %v6516_v7 = vor.u32 %v6515_v0, %v6512_v34  ;;  %v6567_v34 = vshll.u32 %v18281_v23, 16  ;;  %v15359_v0 = vld [vmem:[#allocation3 + $0xcc] sm:$0xff]  }
 0x330   : > { %v6569_v26 = vrot.slane %v6567_v34, 5  ;;  %v6555_v34 = vrot.slane %v6553_v27, 5 }
 0x331   : > { %14010 = vmatmul.mubr.msk.bf16.gmra.mrb[52].mxu1 %vm1737_vm4, %v18009_v22  ;;  %v6492_v22 = vor.u32 %v6491_v46, %v6488_v19  ;;  %v6547_v19 = vshrl.u32 %v18263_v25, 16  ;;  %v6582_v25 = vshrl.u32 %v6422_v60, 16 }
 0x332   : > { %14013 = vmatprep.mubr.msk.bf16.mxu1 %vm1737_vm4, %v18011_v39  ;;  %v6534_v39 = vshrl.u32 %v6416_v45, 16  ;;  %v6525_v45 = vrot.slane %v6523_v15, 4  ;;  %v6474_v15 = vsel %vm16060_vm15, %v6469_v5, %v18249_v31  ;;  %v6571_v31 = vshrl.u32 %v18281_v23, 16 }
 0x333   : > { %v18273_v46 = vrot.slane %v6492_v22, 4  ;;  %v6505_v22 = vshll.u32 %v18270_v32, 16  ;;  %v6549_v55 = vrot.slane %v6547_v19, 4  ;;  %v6563_v5 = vrot.slane %v6561_v43, 5  ;;  %v18309_v43 = vld [vmem:[#allocation3 + $0x38] sm:$0x1] }
 0x334   : > { %v6536_v3 = vrot.slane %v6534_v39, 4  ;;  %v18292_v39 = vrot.slane %v6543_v24, 5  ;;  %v6560_v24 = vrot.slane %v6558_v14, 4  ;;  %v6585_v32 = vshll.u32 %v6422_v60, 16 }
 0x335   : > { %v6507_v12 = vrot.slane %v6505_v22, 5  ;;  %v6573_v28 = vrot.slane %v6571_v31, 4  ;;  %v6591_v23 = vshll.u32 %v18069_v42, 16  ;;  %v6606_v22 = vshrl.u32 %v6425_v56, 16 }
 0x336   : > { %v6564_v60 = vor.u32 %v6563_v5, %v6560_v24  ;;  %v6587_v62 = vrot.slane %v6585_v32, 5  ;;  %v6577_v31 = vshll.u32 %v18309_v43, 16  ;;  %v6428_v5 = vld [vmem:[#allocation3 + $0x54] sm:$0xf] }
 0x337   : > { %v6608_v27 = vrot.slane %v6606_v22, 4  ;;  %v6639_v22 = vshll.u32 %v18077_v63, 16 }
 0x339   : > { %14014 = vmatmul.mubr.msk.bf16.gmra.mrb[56].mxu1 %vm1737_vm4, %v18025_v8  ;;  %v6484_v8 = vsel %vm16060_vm15, %v6479_v41, %v6483_v59  ;;  %v6526_v59 = vor.u32 %v6525_v45, %v18277_v44  ;;  %v6540_v41 = vor.u32 %v6539_v16, %v6536_v3  ;;  %v6595_v45 = vshrl.u32 %v18069_v42, 16 }
 0x33a   : > { %14017 = vmatprep.mubr.msk.bf16.mxu1 %vm1737_vm4, %v18027_v40  ;;  %v6498_v40 = vsel %vm16060_vm15, %v18273_v46, %v18267_v48  ;;  %v12610_v19 = vcombine.low %v6474_v15, %v6484_v8  ;;  %v6517_v48 = vrot.slane %v6516_v7, 4  ;;  %v6550_v46 = vor.u32 %v6549_v55, %v18292_v39 }
 0x33b   : > { %v6527_v3 = vrot.slane %v6526_v59, 4  ;;  %v6531_v16 = vrot.slane %v6529_v2, 5  ;;  %v6541_v14 = vrot.slane %v6540_v41, 4  ;;  %v6584_v7 = vrot.slane %v6582_v25, 4 }
 0x33c   : > { %v6609_v15 = vshll.u32 %v6425_v56, 16  ;;  %v6508_v8 = vsel %vm16060_vm15, %v6503_v52, %v6507_v12  ;;  %v6522_v42 = vsel %vm16060_vm15, %v6517_v48, %v18277_v44  ;;  %v6551_v55 = vrot.slane %v6550_v46, 4 }
 0x33d   : > { %v6574_v2 = vor.u32 %v6573_v28, %v6569_v26  ;;  %v6597_v59 = vrot.slane %v6595_v45, 4  ;;  %v6532_v32 = vsel %vm16060_vm15, %v6527_v3, %v6531_v16  ;;  %v6565_v25 = vrot.slane %v6564_v60, 4  ;;  %v6431_v45 = vld [vmem:[#allocation3 + $0x60] sm:$0xf] }
 0x33e   : > { %v6615_v56 = vshll.u32 %v18073_v38, 16  ;;  %v6619_v52 = vshrl.u32 %v18073_v38, 16  ;;  %v6546_v12 = vsel %vm16060_vm15, %v6541_v14, %v18292_v39  ;;  %v6588_v44 = vor.u32 %v6587_v62, %v6584_v7 }
 0x33f   : > { %v6611_v28 = vrot.slane %v6609_v15, 5  ;;  %v18327_v41 = vcombine.low %v6498_v40, %v6508_v8  ;;  %v6556_v24 = vsel %vm16060_vm15, %v6551_v55, %v6555_v34  ;;  %v6575_v38 = vrot.slane %v6574_v2, 4 }
 0x340   : > { %v6579_v48 = vrot.slane %v6577_v31, 5  ;;  %v6601_v46 = vshll.u32 %v18071_v49, 16  ;;  %v18342_v40 = vcombine.low %v6546_v12, %v6556_v24  ;;  %v6570_v3 = vsel %vm16060_vm15, %v6565_v25, %v6569_v26 }
 0x341   : > { %14018 = vmatmul.mubr.msk.bf16.gmra.mrb[60].mxu1 %vm1737_vm4, %v15359_v0  ;;  %v18318_v0 = vrot.slane %v6591_v23, 5  ;;  %v18329_v23 = vcombine.low %v6522_v42, %v6532_v32  ;;  %v18346_v16 = vrot.slane %v6615_v56, 5  ;;  %v6621_v14 = vrot.slane %v6619_v52, 4 }
 0x342   : > { %14023 = vmatprep.mubr.msk.bf16.mxu1 %vm1737_vm4, %v12610_v19  ;;  %v18336_v19 = vld [vmem:[%s19926_s4 + $0x38] sm:$0xff]   ;;  %v6589_v60 = vrot.slane %v6588_v44, 4  ;;  %v6612_v7 = vor.u32 %v6611_v28, %v6608_v27  ;;  %v6630_v49 = vshrl.u32 %v6428_v5, 16  ;;  %v6633_v62 = vshll.u32 %v6428_v5, 16 }
 0x343   : > { %v6598_v39 = vor.u32 %v6597_v59, %v18318_v0  ;;  %v6643_v15 = vshrl.u32 %v18077_v63, 16  ;;  %v6654_v8 = vshrl.u32 %v6431_v45, 16  ;;  %v6657_v42 = vshll.u32 %v6431_v45, 16  ;;  %v6434_v63 = vld [vmem:[#allocation3 + $0x6c] sm:$0xf] }
 0x344   : > { %v6580_v26 = vsel %vm16060_vm15, %v6575_v38, %v6579_v48  ;;  %v6625_v34 = vshll.u32 %v18075_v6, 16  ;;  %v6622_v31 = vor.u32 %v6621_v14, %v18346_v16  ;;  %v6663_v59 = vshll.u32 %v18087_v50, 16  ;;  %v6437_v45 = vld [vmem:[#allocation3 + $0x78] sm:$0xf] }
 0x345   : > { %v6599_v55 = vrot.slane %v6598_v39, 4  ;;  %v18357_v2 = vcombine.low %v6570_v3, %v6580_v26  ;;  %v6667_v32 = vshrl.u32 %v18087_v50, 16  ;;  %v6594_v25 = vsel %vm16060_vm15, %v6589_v60, %v18318_v0 }
 0x346   : > { %v6613_v56 = vrot.slane %v6612_v7, 4  ;;  %v6632_v52 = vrot.slane %v6630_v49, 4  ;;  %v6635_v12 = vrot.slane %v6633_v62, 5  ;;  %v18365_v44 = vrot.slane %v6639_v22, 5 }
 0x347   : > { %v6645_v27 = vrot.slane %v6643_v15, 4  ;;  %v6656_v6 = vrot.slane %v6654_v8, 4  ;;  %v6659_v28 = vrot.slane %v6657_v42, 5  ;;  %v6627_v5 = vrot.slane %v6625_v34, 5 }
 0x348   : > { %v6678_v38 = vshrl.u32 %v6434_v63, 16  ;;  %v6681_v48 = vshll.u32 %v6434_v63, 16  ;;  %v6623_v50 = vrot.slane %v6622_v31, 4  ;;  %v6649_v0 = vshll.u32 %v18081_v37, 16 }
 0x349   : > { %14024 = vmatmul.mubr.msk.bf16.vlgmr.msra.gmra.mrb[32].mxu1 %vm1737_vm4, %v18327_v41  ;;  %v6665_v39 = vrot.slane %v6663_v59, 5  ;;  %v6687_v14 = vshll.u32 %v18089_v33, 16  ;;  %v6691_v60 = vshrl.u32 %v18089_v33, 16  ;;  %v6618_v7 = vsel %vm16060_vm15, %v6613_v56, %v18346_v16 }
 0x34a   : > { %14056 = vmatpush3.bf16.msra.mxu1 %v18137_v47  ;;  %14027 = vmatprep.mubr.msk.bf16.mxu1 %vm1737_vm4, %v18329_v23  ;;  %v6603_v47 = vrot.slane %v6601_v46, 5  ;;  %v6669_v46 = vrot.slane %v6667_v32, 4  ;;  %v6636_v49 = vor.u32 %v6635_v12, %v6632_v52  ;;  %v6646_v62 = vor.u32 %v6645_v27, %v18365_v44 }
 0x34b   : > { %14089 = vmatprep.subr.bf16.mxu1 %v18336_v19  ;;  %v6660_v37 = vor.u32 %v6659_v28, %v6656_v6  ;;  %v6680_v22 = vrot.slane %v6678_v38, 4  ;;  %v6683_v15 = vrot.slane %v6681_v48, 5  ;;  %v6702_v8 = vshrl.u32 %v6437_v45, 16  ;;  %v6440_v28 = vld [vmem:[#allocation3 + $0x84] sm:$0xf] }
 0x34c   : > { %v6604_v24 = vsel %vm16060_vm15, %v6599_v55, %v6603_v47  ;;  %v6705_v42 = vshll.u32 %v6437_v45, 16  ;;  %v6628_v26 = vsel %vm16060_vm15, %v6623_v50, %v6627_v5  ;;  %v6651_v55 = vrot.slane %v6649_v0, 5  ;;  %v6443_v48 = vld [vmem:[#allocation3 + $0x90] sm:$0xf] }
 0x34d   : > { %v18374_v3 = vcombine.low %v6594_v25, %v6604_v24  ;;  %v6670_v47 = vor.u32 %v6669_v46, %v6665_v39  ;;  %v6673_v34 = vshll.u32 %v18084_v35, 16  ;;  %v6689_v33 = vrot.slane %v6687_v14, 5 }
 0x34e   : > { %v6693_v31 = vrot.slane %v6691_v60, 4  ;;  %v6711_v59 = vshll.u32 %v18104_v57, 16  ;;  %v6715_v16 = vshrl.u32 %v18104_v57, 16  ;;  %v6637_v32 = vrot.slane %v6636_v49, 4 }
 0x34f   : > { %v6647_v63 = vrot.slane %v6646_v62, 4  ;;  %v6661_v25 = vrot.slane %v6660_v37, 4  ;;  %v6697_v56 = vshll.u32 %v18096_v53, 16  ;;  %v18388_v52 = vcombine.low %v6618_v7, %v6628_v26 }
 0x350   : > { %v6684_v12 = vor.u32 %v6683_v15, %v6680_v22  ;;  %v6704_v27 = vrot.slane %v6702_v8, 4  ;;  %v6707_v6 = vrot.slane %v6705_v42, 5  ;;  %v6675_v35 = vrot.slane %v6673_v34, 5 }
 0x351   : > { %14028 = vmatmul.mubr.msk.bf16.gmra.mrb[36].mxu1 %vm1737_vm4, %v18342_v40  ;;  %v6671_v24 = vrot.slane %v6670_v47, 4  ;;  %v6694_v57 = vor.u32 %v6693_v31, %v6689_v33  ;;  %v6713_v5 = vrot.slane %v6711_v59, 5  ;;  %v6717_v38 = vrot.slane %v6715_v16, 4 }
 0x352   : > { %14031 = vmatprep.mubr.msk.bf16.mxu1 %vm1737_vm4, %v18357_v2  ;;  %v6642_v53 = vsel %vm16060_vm15, %v6637_v32, %v18365_v44  ;;  %v6652_v50 = vsel %vm16060_vm15, %v6647_v63, %v6651_v55  ;;  %v6666_v0 = vsel %vm16060_vm15, %v6661_v25, %v6665_v39  ;;  %v6699_v46 = vrot.slane %v6697_v56, 5  ;;  %v6446_v25 = vld [vmem:[#allocation3 + $0x9c] sm:$0xf] }
 0x353   : > { %v6685_v45 = vrot.slane %v6684_v12, 4  ;;  %v6708_v14 = vor.u32 %v6707_v6, %v6704_v27  ;;  %v6726_v60 = vshrl.u32 %v6440_v28, 16  ;;  %v6729_v7 = vshll.u32 %v6440_v28, 16  ;;  %v6449_v27 = vld [vmem:[#allocation3 + $0xa8] sm:$0xf] }
 0x354   : > { %v6735_v49 = vshll.u32 %v18118_v29, 16  ;;  %v6739_v62 = vshrl.u32 %v18118_v29, 16  ;;  %v6750_v37 = vshrl.u32 %v6443_v48, 16  ;;  %v6753_v22 = vshll.u32 %v6443_v48, 16 }
 0x355   : > { %v6676_v44 = vsel %vm16060_vm15, %v6671_v24, %v6675_v35  ;;  %v6695_v15 = vrot.slane %v6694_v57, 4  ;;  %v6718_v8 = vor.u32 %v6717_v38, %v6713_v5  ;;  %v6721_v42 = vshll.u32 %v18106_v20, 16 }
 0x356   : > { %v18406_v26 = vcombine.low %v6642_v53, %v6652_v50  ;;  %v18408_v39 = vcombine.low %v6666_v0, %v6676_v44  ;;  %v6759_v55 = vshll.u32 %v18139_v36, 16  ;;  %v6763_v47 = vshrl.u32 %v18139_v36, 16 }
 0x357   : > { %v6690_v29 = vsel %vm16060_vm15, %v6685_v45, %v6689_v33  ;;  %v6709_v34 = vrot.slane %v6708_v14, 4  ;;  %v6728_v31 = vrot.slane %v6726_v60, 4  ;;  %v6731_v59 = vrot.slane %v6729_v7, 5 }
 0x358   : > { %v6737_v16 = vrot.slane %v6735_v49, 5  ;;  %v6741_v32 = vrot.slane %v6739_v62, 4  ;;  %v6752_v20 = vrot.slane %v6750_v37, 4  ;;  %v6755_v63 = vrot.slane %v6753_v22, 5 }
 0x359   : > { %14032 = vmatmul.mubr.msk.bf16.gmra.mrb[40].mxu1 %vm1737_vm4, %v18374_v3  ;;  %v6700_v36 = vsel %vm16060_vm15, %v6695_v15, %v6699_v46  ;;  %v6719_v56 = vrot.slane %v6718_v8, 4  ;;  %v6723_v12 = vrot.slane %v6721_v42, 5  ;;  %v6745_v33 = vshll.u32 %v18124_v61, 16 }
 0x35a   : > { %14035 = vmatprep.mubr.msk.bf16.mxu1 %vm1737_vm4, %v18388_v52  ;;  %v18421_v6 = vcombine.low %v6690_v29, %v6700_v36  ;;  %v6761_v35 = vrot.slane %v6759_v55, 5  ;;  %v6765_v28 = vrot.slane %v6763_v47, 4  ;;  %v6714_v24 = vsel %vm16060_vm15, %v6709_v34, %v6713_v5 }
 0x35b   : > { %v6732_v57 = vor.u32 %v6731_v59, %v6728_v31  ;;  %v6774_v38 = vshrl.u32 %v6446_v25, 16  ;;  %v6777_v48 = vshll.u32 %v6446_v25, 16  ;;  %v6742_v53 = vor.u32 %v6741_v32, %v6737_v16 }
 0x35c   : > { %v6756_v50 = vor.u32 %v6755_v63, %v6752_v20  ;;  %v6798_v0 = vshrl.u32 %v6449_v27, 16  ;;  %v6801_v45 = vshll.u32 %v6449_v27, 16  ;;  %v6724_v46 = vsel %vm16060_vm15, %v6719_v56, %v6723_v12 }
 0x35d   : > { %v6747_v14 = vrot.slane %v6745_v33, 5  ;;  %v6783_v61 = vshll.u32 %v18141_v9, 16  ;;  %v6787_v60 = vshrl.u32 %v18141_v9, 16  ;;  %v6766_v7 = vor.u32 %v6765_v28, %v6761_v35  ;;  %v6452_v9 = vld [vmem:[#allocation3 + $0xb4] sm:$0xf] }
 0x35e   : > { %v6769_v49 = vshll.u32 %v18129_v30, 16  ;;  %v6807_v5 = vshll.u32 %v18159_v11, 16  ;;  %v6811_v62 = vshrl.u32 %v18159_v11, 16  ;;  %v18432_v37 = vcombine.low %v6714_v24, %v6724_v46 }
 0x35f   : > { %v6733_v22 = vrot.slane %v6732_v57, 4  ;;  %v6776_v44 = vrot.slane %v6774_v38, 4  ;;  %v6779_v15 = vrot.slane %v6777_v48, 5  ;;  %v6743_v8 = vrot.slane %v6742_v53, 4 }
 0x360   : > { %v6757_v42 = vrot.slane %v6756_v50, 4  ;;  %v6800_v55 = vrot.slane %v6798_v0, 4  ;;  %v6803_v47 = vrot.slane %v6801_v45, 5  ;;  %v6785_v30 = vrot.slane %v6783_v61, 5 }
 0x361   : > { %14036 = vmatmul.mubr.msk.bf16.gmra.mrb[44].mxu1 %vm1737_vm4, %v18406_v26  ;;  %v6789_v29 = vrot.slane %v6787_v60, 4  ;;  %v6767_v34 = vrot.slane %v6766_v7, 4  ;;  %v6771_v11 = vrot.slane %v6769_v49, 5  ;;  %v6809_v31 = vrot.slane %v6807_v5, 5 }
 0x362   : > { %14039 = vmatprep.mubr.msk.bf16.mxu1 %vm1737_vm4, %v18408_v39  ;;  %v6813_v59 = vrot.slane %v6811_v62, 4  ;;  %v6738_v32 = vsel %vm16060_vm15, %v6733_v22, %v6737_v16  ;;  %v6780_v20 = vor.u32 %v6779_v15, %v6776_v44  ;;  %v6822_v63 = vshrl.u32 %v6452_v9, 16 }
 0x363   : > { %v6825_v25 = vshll.u32 %v6452_v9, 16  ;;  %v6748_v36 = vsel %vm16060_vm15, %v6743_v8, %v6747_v14  ;;  %v6762_v56 = vsel %vm16060_vm15, %v6757_v42, %v6761_v35  ;;  %v6804_v12 = vor.u32 %v6803_v47, %v6800_v55  ;;  %v615_v9 = vld [vmem:[#allocation3 + $0xd4] sm:$0x1] }
 0x364   : > { %v6790_v33 = vor.u32 %v6789_v29, %v6785_v30  ;;  %v6793_v27 = vshll.u32 %v18148_v13, 16  ;;  %v6831_v28 = vshll.u32 %v18170_v17, 16  ;;  %v6835_v24 = vshrl.u32 %v18170_v17, 16 }
 0x365   : > { %v18447_v57 = vcombine.low %v6738_v32, %v6748_v36  ;;  %v6772_v16 = vsel %vm16060_vm15, %v6767_v34, %v6771_v11  ;;  %v6814_v38 = vor.u32 %v6813_v59, %v6809_v31  ;;  %v6817_v48 = vshll.u32 %v18168_v58, 16  ;;  %v15362_v11 = vld [vmem:[%s19926_s4 + $0x10] sm:$0xff]  }
 0x366   : > { %v18452_v53 = vcombine.low %v6762_v56, %v6772_v16  ;;  %v6781_v50 = vrot.slane %v6780_v20, 4  ;;  %v6824_v35 = vrot.slane %v6822_v63, 4  ;;  %v6827_v0 = vrot.slane %v6825_v25, 5 }
 0x367   : > { %v6805_v13 = vrot.slane %v6804_v12, 4  ;;  %v6791_v17 = vrot.slane %v6790_v33, 4  ;;  %v6795_v45 = vrot.slane %v6793_v27, 5  ;;  %v6833_v46 = vrot.slane %v6831_v28, 5 }
 0x368   : > { %v6837_v14 = vrot.slane %v6835_v24, 4  ;;  %v6815_v61 = vrot.slane %v6814_v38, 4  ;;  %v6819_v60 = vrot.slane %v6817_v48, 5  ;;  %v6786_v58 = vsel %vm16060_vm15, %v6781_v50, %v6785_v30 }
 0x369   : > { %14040 = vmatmul.mubr.msk.bf16.gmra.mrb[48].mxu1 %vm1737_vm4, %v18421_v6  ;;  %v6828_v7 = vor.u32 %v6827_v0, %v6824_v35  ;;  %v6810_v49 = vsel %vm16060_vm15, %v6805_v13, %v6809_v31  ;;  %v6796_v5 = vsel %vm16060_vm15, %v6791_v17, %v6795_v45  ;;  %v6841_v22 = vshll.u32 %v18183_v18, 16  ;;  %v7607_v13 = vld [vmem:[#allocation3] sm:$0xe] }
 0x36a   : > { %14043 = vmatprep.mubr.msk.bf16.mxu1 %vm1737_vm4, %v18432_v37  ;;  %v6838_v62 = vor.u32 %v6837_v14, %v6833_v46  ;;  %v18465_v44 = vcombine.low %v6786_v58, %v6796_v5  ;;  %v6820_v15 = vsel %vm16060_vm15, %v6815_v61, %v6819_v60  ;;  %v616_v18 = vsel %vm15567_vm9, 0, %v615_v9  ;;  %v20103_v60 = vld [vmem:[#allocation22_spill] sm:$0xff] }
 0x36b   : > { %v18469_v8 = vcombine.low %v6810_v49, %v6820_v15  ;;  %v6829_v42 = vrot.slane %v6828_v7, 4  ;;  %v6843_v47 = vrot.slane %v6841_v22, 5  ;;  %617 = vst [vmem:[#allocation3 + $0xd4] sm:$0x1] %v616_v18  ;;  %v7153_v59 = vshll.u32 %v18203_v51, 16  ;;  %v20105_v22 = vld [vmem:[#allocation21_spill] sm:$0xff] }
 0x36c   : > { %v6839_v55 = vrot.slane %v6838_v62, 4  ;;  %v7157_v32 = vshrl.u32 %v18203_v51, 16  ;;  %v7163_v33 = vshll.u32 %v18188_v10, 16  ;;  %v18532_v10 = vld [vmem:[%s19926_s4 + $0x28] sm:$0xff]   ;;  %v7675_v0 = vrot.slane %v18239_v1, 5 }
 0x36d   : > { %v6834_v30 = vsel %vm16060_vm15, %v6829_v42, %v6833_v46  ;;  %v7155_v25 = vrot.slane %v7153_v59, 5  ;;  %v12683_v14 = vrot.slane %v7607_v13, 9  ;;  %v7678_v58 = vrot.slane %v20103_v60, 5  ;;  %v20107_v18 = vld [vmem:[#allocation25_spill] sm:$0xff]  ;;  %v20117_v13 = vld [vmem:[#allocation12_spill] sm:$0xff] }
 0x36e   : > { %v6844_v29 = vsel %vm16060_vm15, %v6839_v55, %v6843_v47  ;;  %v7159_v36 = vrot.slane %v7157_v32, 4  ;;  %v7165_v28 = vrot.slane %v7163_v33, 5  ;;  %v7677_v61 = vrot.slane %v7675_v0, 4  ;;  %v7608_v47 = vld [vmem:[#allocation3 + $0xc] sm:$0xe] }
 0x36f   : > { %v18481_v34 = vcombine.low %v6834_v30, %v6844_v29  ;;  %v7676_v5 = vsel %vm16041_vm14, %v12683_v14, %v7675_v0  ;;  %v7685_v30 = vrot.slane %v20107_v18, 5  ;;  %v7609_v29 = vld [vmem:[#allocation3 + $0x18] sm:$0xe]  ;;  %v20116_v0 = vld [vmem:[#allocation11_spill] sm:$0xff]  ;;  %v631_v60 = vld [vmem:[#allocation4 + $0x18] sm:$0x1] }
 0x370   : > { %v7160_v12 = vor.u32 %v7159_v36, %v7155_v25  ;;  %v7679_v62 = vsel %vm16041_vm14, %v7677_v61, %v7678_v58  ;;  %v20110_v36 = vld [vmem:[#allocation24_spill] sm:$0xff]  ;;  %v20121_v14 = vld [vmem:[#allocation6_spill] sm:$0xff]  ;;  %v15365_v61 = vld [vmem:[%s19929_s7 + $0x18] sm:$0xff]  }
 0x371   : > { %14044 = vmatmul.mubr.msk.bf16.gmra.mrb[52].mxu1 %vm1737_vm4, %v18447_v57  ;;  %v12701_v55 = vcombine.low %v7676_v5, %v7679_v62  ;;  %14225 = vmatprep.subr.bf16.mxu0 %v15365_v61  ;;  %v7624_v62 = vld [vmem:[#allocation3 + $0xcc] sm:$0xe]  ;;  %v682_v18 = vld [vmem:[#allocation4 + $0x14] sm:$0x1]  ;;  %v19100_v58 = vld [vmem:[%s19929_s7 + $0x8] sm:$0xff]  }
 0x372   : > { %14047 = vmatprep.mubr.msk.bf16.mxu1 %vm1737_vm4, %v18452_v53  ;;  %v7161_v51 = vrot.slane %v7160_v12, 4  ;;  %14226 = vmatpush3.bf16.msra.mxu0 %v15365_v61 }
 0x374   : > { %v7166_v16 = vsel %vm16060_vm15, %v7161_v51, %v7165_v28  ;;  %v15364_v51 = vld [vmem:[%s19926_s4 + $0x40] sm:$0xff]  }
 0x379   : > { %14048 = vmatmul.mubr.msk.bf16.gmra.mrb[56].mxu1 %vm1737_vm4, %v18465_v44 }
 0x37a   : > { %14051 = vmatprep.mubr.msk.bf16.mxu1 %vm1737_vm4, %v18469_v8 }
 0x381   : > { %14052 = vmatmul.mubr.msk.bf16.gmra.mrb[60].mxu1 %vm1737_vm4, %v18481_v34 }
 0x382   : > { %14057 = vmatprep.mubr.msk.bf16.mxu1 %vm1737_vm4, %v18327_v41  ;;  %v6455_v41 = vld [vmem:[#allocation3 + $0xc0] sm:$0xf] }
 0x383   : > { %v7147_v31 = vshll.u32 %v6455_v41, 16 }
 0x385   : > { %v7149_v63 = vrot.slane %v7147_v31, 5  ;;  %v12685_v31 = vrot.slane %v7609_v29, 9  ;;  %v637_v29 = vld [vmem:[#allocation4 + $0x30] sm:$0x1] }
 0x389   : > { %14058 = vmatmul.mubr.msk.bf16.vlgmr.msra.gmra.mrb[32].mxu1 %vm1737_vm4, %v18329_v23 }
 0x38a   : > { %14090 = vmatpush3.bf16.msra.mxu1 %v18336_v19  ;;  %14061 = vmatprep.mubr.msk.bf16.mxu1 %vm1737_vm4, %v18342_v40  ;;  %v7144_v19 = vshrl.u32 %v6455_v41, 16 }
 0x38b   : > { %14123 = vmatprep.subr.bf16.mxu1 %v15362_v11 }
 0x38c   : > { %v7146_v20 = vrot.slane %v7144_v19, 4  ;;  %v12684_v19 = vrot.slane %v7608_v47, 9 }
 0x38e   : > { %v7150_v56 = vor.u32 %v7149_v63, %v7146_v20  ;;  %v20109_v20 = vld [vmem:[#allocation27_spill] sm:$0xff] }
 0x38f   : > { %v7703_v63 = vrot.slane %v20109_v20, 5 }
 0x390   : > { %v7151_v27 = vrot.slane %v7150_v56, 4  ;;  %v7696_v56 = vrot.slane %v20110_v36, 5  ;;  %v697_v36 = vld [vmem:[#allocation4 + $0x50] sm:$0x1] }
 0x391   : > { %14062 = vmatmul.mubr.msk.bf16.gmra.mrb[36].mxu1 %vm1737_vm4, %v18357_v2 }
 0x392   : > { %14065 = vmatprep.mubr.msk.bf16.mxu1 %vm1737_vm4, %v18374_v3  ;;  %v7156_v24 = vsel %vm16060_vm15, %v7151_v27, %v7155_v25  ;;  %v7610_v27 = vld [vmem:[#allocation3 + $0x24] sm:$0xe] }
 0x393   : > { %v12645_v38 = vcombine.low %v7156_v24, %v7166_v16  ;;  %v7699_v24 = vrot.slane %v18299_v54, 5  ;;  %v7611_v16 = vld [vmem:[#allocation3 + $0x30] sm:$0xe] }
 0x399   : > { %14066 = vmatmul.mubr.msk.bf16.gmra.mrb[40].mxu1 %vm1737_vm4, %v18388_v52 }
 0x39a   : > { %14069 = vmatprep.mubr.msk.bf16.mxu1 %vm1737_vm4, %v18406_v26 }
 0x3a1   : > { %14070 = vmatmul.mubr.msk.bf16.gmra.mrb[44].mxu1 %vm1737_vm4, %v18408_v39 }
 0x3a2   : > { %14073 = vmatprep.mubr.msk.bf16.mxu1 %vm1737_vm4, %v18421_v6 }
 0x3a9   : > { %14074 = vmatmul.mubr.msk.bf16.gmra.mrb[48].mxu1 %vm1737_vm4, %v18432_v37 }
 0x3aa   : > { %14077 = vmatprep.mubr.msk.bf16.mxu1 %vm1737_vm4, %v18447_v57 }
 0x3b1   : > { %14078 = vmatmul.mubr.msk.bf16.gmra.mrb[52].mxu1 %vm1737_vm4, %v18452_v53 }
 0x3b2   : > { %14081 = vmatprep.mubr.msk.bf16.mxu1 %vm1737_vm4, %v18465_v44 }
 0x3b9   : > { %14082 = vmatmul.mubr.msk.bf16.gmra.mrb[56].mxu1 %vm1737_vm4, %v18469_v8 }
 0x3ba   : > { %14085 = vmatprep.mubr.msk.bf16.mxu1 %vm1737_vm4, %v18481_v34 }
 0x3c1   : > { %14086 = vmatmul.mubr.msk.bf16.gmra.mrb[60].mxu1 %vm1737_vm4, %v12645_v38 }
 0x3c2   : > { %14091 = vmatprep.mubr.msk.bf16.mxu1 %vm1737_vm4, %v18329_v23  ;;  %v6458_v23 = vld [vmem:[#allocation3 + $0xcc] sm:$0xf] }
 0x3c9   : > { %14092 = vmatmul.mubr.msk.bf16.vlgmr.msra.gmra.mrb[32].mxu1 %vm1737_vm4, %v18342_v40  ;;  %v18551_v40 = vld [vmem:[#allocation3 + $0xd0] sm:$0xf] }
 0x3ca   : > { %14124 = vmatpush3.bf16.msra.mxu1 %v15362_v11  ;;  %14095 = vmatprep.mubr.msk.bf16.mxu1 %vm1737_vm4, %v18357_v2  ;;  %v7376_v2 = vshrl.u32 %v6458_v23, 16  ;;  %v20108_v11 = vld [vmem:[#allocation26_spill] sm:$0xff]  ;;  %v8306_v5 = vrot.slane %v18551_v40, 5 }
 0x3cb   : > { %14157 = vmatprep.subr.bf16.mxu1 %v18532_v10  ;;  %v7692_v41 = vrot.slane %v20108_v11, 5  ;;  %v634_v11 = vld [vmem:[#allocation4 + $0x24] sm:$0x1] }
 0x3d1   : > { %14096 = vmatmul.mubr.msk.bf16.gmra.mrb[36].mxu1 %vm1737_vm4, %v18374_v3  ;;  %v7379_v3 = vshll.u32 %v6458_v23, 16  ;;  %v7706_v23 = vrot.slane %v18309_v43, 5 }
 0x3d2   : > { %14099 = vmatprep.mubr.msk.bf16.mxu1 %vm1737_vm4, %v18388_v52  ;;  %v7385_v52 = vshll.u32 %v18551_v40, 16 }
 0x3d4   : > { %v7387_v48 = vrot.slane %v7385_v52, 5  ;;  %v12687_v52 = vrot.slane %v7611_v16, 9 }
 0x3d6   : > { %v7704_v43 = vsel %vm16041_vm14, %v12687_v52, %v7703_v63  ;;  %v18735_v52 = vld [vmem:[%s19929_s7] sm:$0xff]  }
 0x3d7   : > { %14259 = vmatprep.subr.bf16.mxu0 %v18735_v52 }
 0x3d9   : > { %14100 = vmatmul.mubr.msk.bf16.gmra.mrb[40].mxu1 %vm1737_vm4, %v18406_v26  ;;  %v7389_v26 = vshrl.u32 %v18551_v40, 16  ;;  %v628_v40 = vld [vmem:[#allocation4 + $0xc] sm:$0x1] }
 0x3da   : > { %14103 = vmatprep.mubr.msk.bf16.mxu1 %vm1737_vm4, %v18408_v39  ;;  %v7378_v39 = vrot.slane %v7376_v2, 4  ;;  %v12686_v2 = vrot.slane %v7610_v27, 9  ;;  %v629_v47 = vsel %vm15506_vm2, 0, %v628_v40 }
 0x3db   : > { %v7391_v50 = vrot.slane %v7389_v26, 4  ;;  %630 = vst [vmem:[#allocation4 + $0xc] sm:$0x1] %v629_v47  ;;  %v724_v47 = vld [vmem:[#allocation4 + $0xbc] sm:$0x1] }
 0x3e1   : > { %14104 = vmatmul.mubr.msk.bf16.gmra.mrb[44].mxu1 %vm1737_vm4, %v18421_v6  ;;  %v7381_v6 = vrot.slane %v7379_v3, 5  ;;  %v7698_v3 = vrot.slane %v7696_v56, 4 }
 0x3e2   : > { %14107 = vmatprep.mubr.msk.bf16.mxu1 %vm1737_vm4, %v18432_v37  ;;  %v18559_v37 = vld [vmem:[#allocation3 + $0xd4] sm:$0x1] }
 0x3e3   : > { %v7395_v35 = vshll.u32 %v18559_v37, 16  ;;  %v7700_v26 = vsel %vm16041_vm14, %v7698_v3, %v7699_v24  ;;  %v646_v24 = vld [vmem:[#allocation4 + $0x54] sm:$0x1] }
 0x3e4   : > { %v647_v16 = vsel %vm15506_vm2, 0, %v646_v24 }
 0x3e5   : > { %v7397_v46 = vrot.slane %v7395_v35, 5  ;;  %v20115_v35 = vld [vmem:[#allocation13_spill] sm:$0xff]  ;;  %648 = vst [vmem:[#allocation4 + $0x54] sm:$0x1] %v647_v16 }
 0x3e9   : > { %14108 = vmatmul.mubr.msk.bf16.gmra.mrb[48].mxu1 %vm1737_vm4, %v18447_v57  ;;  %v7382_v57 = vor.u32 %v7381_v6, %v7378_v39  ;;  %v7697_v39 = vsel %vm16041_vm14, %v12686_v2, %v7696_v56  ;;  %v700_v2 = vld [vmem:[#allocation4 + $0x5c] sm:$0x1] }
 0x3ea   : > { %14111 = vmatprep.mubr.msk.bf16.mxu1 %vm1737_vm4, %v18452_v53  ;;  %v7392_v53 = vor.u32 %v7391_v50, %v7387_v48  ;;  %v12704_v6 = vcombine.low %v7697_v39, %v7700_v26  ;;  %v20112_v50 = vld [vmem:[#allocation9_spill] sm:$0xff]  ;;  %v701_v3 = vsel %vm15567_vm9, 0, %v700_v2  ;;  %v652_v39 = vld [vmem:[#allocation4 + $0x6c] sm:$0x1] }
 0x3eb   : > { %v7383_v17 = vrot.slane %v7382_v57, 4  ;;  %v20113_v57 = vld [vmem:[#allocation10_spill] sm:$0xff]  ;;  %v655_v26 = vld [vmem:[#allocation4 + $0x78] sm:$0x1]  ;;  %702 = vst [vmem:[#allocation4 + $0x5c] sm:$0x1] %v701_v3 }
 0x3ec   : > { %v7393_v45 = vrot.slane %v7392_v53, 4  ;;  %v20114_v53 = vld [vmem:[#allocation14_spill] sm:$0xff] }
 0x3ed   : > { %v7388_v7 = vsel %vm16060_vm15, %v7383_v17, %v7387_v48  ;;  %v20111_v48 = vld [vmem:[#allocation18_spill] sm:$0xff]  ;;  %v20118_v17 = vld [vmem:[#allocation17_spill] sm:$0xff] }
 0x3ee   : > { %v7398_v49 = vsel %vm16060_vm15, %v7393_v45, %v7397_v46  ;;  %v20119_v45 = vld [vmem:[#allocation15_spill] sm:$0xff]  ;;  %v20120_v46 = vld [vmem:[#allocation16_spill] sm:$0xff] }
 0x3ef   : > { %v12665_v15 = vcombine.low %v7388_v7, %v7398_v49  ;;  %v632_v7 = vsel %vm15506_vm2, 0, %v631_v60  ;;  %v20123_v49 = vld [vmem:[#allocation20_spill] sm:$0xff]  ;;  %v664_v60 = vld [vmem:[#allocation4 + $0x9c] sm:$0x1] }
 0x3f0   : > { %633 = vst [vmem:[#allocation4 + $0x18] sm:$0x1] %v632_v7  ;;  %v665_v7 = vsel %vm15506_vm2, 0, %v664_v60 }
 0x3f1   : > { %14112 = vmatmul.mubr.msk.bf16.gmra.mrb[52].mxu1 %vm1737_vm4, %v18465_v44  ;;  %v7682_v44 = vrot.slane %v20105_v22, 5  ;;  %v12755_v22 = vrot.slane %v7624_v62, 9  ;;  %666 = vst [vmem:[#allocation4 + $0x9c] sm:$0x1] %v665_v7  ;;  %v9048_v7 = vld [vmem:[#allocation4 + $0xc] sm:$0xf] }
 0x3f2   : > { %14115 = vmatprep.mubr.msk.bf16.mxu1 %vm1737_vm4, %v18469_v8  ;;  %v20106_v8 = vld [vmem:[#allocation23_spill] sm:$0xff] }
 0x3f3   : > { %v7689_v42 = vrot.slane %v20106_v8, 5  ;;  %v7684_v9 = vrot.slane %v7682_v44, 4  ;;  %v7683_v25 = vsel %vm16041_vm14, %v12684_v19, %v7682_v44  ;;  %v8308_v44 = vrot.slane %v8306_v5, 4  ;;  %v691_v19 = vld [vmem:[#allocation4 + $0x38] sm:$0x1] }
 0x3f4   : > { %v8307_v8 = vsel %vm16041_vm14, %v12755_v22, %v8306_v5  ;;  %v718_v5 = vld [vmem:[#allocation4 + $0xa4] sm:$0x1] }
 0x3f5   : > { %v7686_v59 = vsel %vm16041_vm14, %v7684_v9, %v7685_v30  ;;  %v7690_v33 = vsel %vm16041_vm14, %v12685_v31, %v7689_v42  ;;  %v683_v30 = vsel %vm15567_vm9, 0, %v682_v18  ;;  %v692_v31 = vsel %vm15567_vm9, 0, %v691_v19 }
 0x3f6   : > { %v12702_v12 = vcombine.low %v7683_v25, %v7686_v59  ;;  %684 = vst [vmem:[#allocation4 + $0x14] sm:$0x1] %v683_v30  ;;  %693 = vst [vmem:[#allocation4 + $0x38] sm:$0x1] %v692_v31  ;;  %v688_v59 = vld [vmem:[#allocation4 + $0x2c] sm:$0x1] }
 0x3f7   : > { %v689_v20 = vsel %vm15567_vm9, 0, %v688_v59  ;;  %v640_v25 = vld [vmem:[#allocation4 + $0x3c] sm:$0x1]  ;;  %v719_v22 = vsel %vm15567_vm9, 0, %v718_v5  ;;  %v18775_v30 = vld [vmem:[%s19927_s5] ss:$0 sm:$0xff] }
 0x3f8   : > { %690 = vst [vmem:[#allocation4 + $0x2c] sm:$0x1] %v689_v20  ;;  %v641_v56 = vsel %vm15506_vm2, 0, %v640_v25  ;;  %720 = vst [vmem:[#allocation4 + $0xa4] sm:$0x1] %v719_v22 }
 0x3f9   : > { %14116 = vmatmul.mubr.msk.bf16.gmra.mrb[56].mxu1 %vm1737_vm4, %v18481_v34  ;;  %v7691_v34 = vrot.slane %v7689_v42, 4  ;;  %642 = vst [vmem:[#allocation4 + $0x3c] sm:$0x1] %v641_v56 }
 0x3fa   : > { %14119 = vmatprep.mubr.msk.bf16.mxu1 %vm1737_vm4, %v12645_v38  ;;  %v7705_v38 = vrot.slane %v7703_v63, 4 }
 0x3fb   : > { %v7693_v32 = vsel %vm16041_vm14, %v7691_v34, %v7692_v41  ;;  %v638_v34 = vsel %vm15506_vm2, 0, %v637_v29  ;;  %v635_v41 = vsel %vm15506_vm2, 0, %v634_v11 }
 0x3fc   : > { %v12703_v28 = vcombine.low %v7690_v33, %v7693_v32  ;;  %v7707_v54 = vsel %vm16041_vm14, %v7705_v38, %v7706_v23  ;;  %639 = vst [vmem:[#allocation4 + $0x30] sm:$0x1] %v638_v34  ;;  %636 = vst [vmem:[#allocation4 + $0x24] sm:$0x1] %v635_v41  ;;  %v643_v32 = vld [vmem:[#allocation4 + $0x48] sm:$0x1] }
 0x3fd   : > { %v644_v63 = vsel %vm15506_vm2, 0, %v643_v32  ;;  %v694_v33 = vld [vmem:[#allocation4 + $0x44] sm:$0x1]  ;;  %v703_v38 = vld [vmem:[#allocation4 + $0x68] sm:$0x1] }
 0x3fe   : > { %645 = vst [vmem:[#allocation4 + $0x48] sm:$0x1] %v644_v63  ;;  %v695_v27 = vsel %vm15567_vm9, 0, %v694_v33  ;;  %v704_v23 = vsel %vm15567_vm9, 0, %v703_v38  ;;  %v18780_v34 = vld [vmem:[%s19928_s6] ss:$0 sm:$0xff] }
 0x3ff   : > { %696 = vst [vmem:[#allocation4 + $0x44] sm:$0x1] %v695_v27  ;;  %705 = vst [vmem:[#allocation4 + $0x68] sm:$0x1] %v704_v23 }
 0x401   : > { %14120 = vmatmul.mubr.msk.bf16.gmra.mrb[60].mxu1 %vm1737_vm4, %v12665_v15  ;;  %v8309_v15 = vrot.slane %v18559_v37, 5  ;;  %v685_v37 = vld [vmem:[#allocation4 + $0x20] sm:$0x1] }
 0x402   : > { %14125 = vmatprep.mubr.msk.bf16.mxu1 %vm1737_vm4, %v12701_v55  ;;  %v686_v9 = vsel %vm15567_vm9, 0, %v685_v37  ;;  %v725_v37 = vsel %vm15567_vm9, 0, %v724_v47  ;;  %v9052_v47 = vld [vmem:[#allocation4 + $0x14] sm:$0x1] }
 0x403   : > { %v8310_v42 = vsel %vm16041_vm14, %v8308_v44, %v8309_v15  ;;  %687 = vst [vmem:[#allocation4 + $0x20] sm:$0x1] %v686_v9  ;;  %v673_v44 = vld [vmem:[#allocation4 + $0xc0] sm:$0x1]  ;;  %v670_v15 = vld [vmem:[#allocation4 + $0xb4] sm:$0x1] }
 0x404   : > { %v12758_v55 = vcombine.low %v8307_v8, %v8310_v42  ;;  %v674_v8 = vsel %vm15506_vm2, 0, %v673_v44  ;;  %v671_v42 = vsel %vm15506_vm2, 0, %v670_v15  ;;  %726 = vst [vmem:[#allocation4 + $0xbc] sm:$0x1] %v725_v37  ;;  %v625_v9 = vld [vmem:[#allocation4] sm:$0x1] }
 0x405   : > { %675 = vst [vmem:[#allocation4 + $0xc0] sm:$0x1] %v674_v8  ;;  %672 = vst [vmem:[#allocation4 + $0xb4] sm:$0x1] %v671_v42  ;;  %v626_v18 = vsel %vm15506_vm2, 0, %v625_v9 }
 0x406   : > { %627 = vst [vmem:[#allocation4] sm:$0x1] %v626_v18 }
 0x409   : > { %14126 = vmatmul.mubr.msk.bf16.vlgmr.msra.gmra.mrb[32].mxu1 %vm1737_vm4, %v12702_v12 }
 0x40a   : > { %14158 = vmatpush3.bf16.msra.mxu1 %v18532_v10  ;;  %14129 = vmatprep.mubr.msk.bf16.mxu1 %vm1737_vm4, %v12703_v28  ;;  %v12705_v10 = vcombine.low %v7704_v43, %v7707_v54  ;;  %v656_v54 = vsel %vm15506_vm2, 0, %v655_v26  ;;  %v709_v43 = vld [vmem:[#allocation4 + $0x80] sm:$0x1] }
 0x40b   : > { %14191 = vmatprep.subr.bf16.mxu1 %v15364_v51  ;;  %657 = vst [vmem:[#allocation4 + $0x78] sm:$0x1] %v656_v54  ;;  %v9059_v44 = vld [vmem:[#allocation4 + $0x20] sm:$0x1] }
 0x411   : > { %14130 = vmatmul.mubr.msk.bf16.gmra.mrb[36].mxu1 %vm1737_vm4, %v12704_v6 }
 0x412   : > { %14133 = vmatprep.mubr.msk.bf16.mxu1 %vm1737_vm4, %v12705_v10 }
 0x419   : > { %14134 = vmatmul.mubr.msk.bf16.gmra.mrb[40].mxu1 %vm1737_vm4, %v20111_v48 }
 0x41a   : > { %14137 = vmatprep.mubr.msk.bf16.mxu1 %vm1737_vm4, %v20112_v50 }
 0x421   : > { %14138 = vmatmul.mubr.msk.bf16.gmra.mrb[44].mxu1 %vm1737_vm4, %v20113_v57 }
 0x422   : > { %14141 = vmatprep.mubr.msk.bf16.mxu1 %vm1737_vm4, %v20114_v53 }
 0x429   : > { %14142 = vmatmul.mubr.msk.bf16.gmra.mrb[48].mxu1 %vm1737_vm4, %v20115_v35 }
 0x42a   : > { %14145 = vmatprep.mubr.msk.bf16.mxu1 %vm1737_vm4, %v20116_v0 }
 0x431   : > { %14146 = vmatmul.mubr.msk.bf16.gmra.mrb[52].mxu1 %vm1737_vm4, %v20117_v13 }
 0x432   : > { %14149 = vmatprep.mubr.msk.bf16.mxu1 %vm1737_vm4, %v20118_v17 }
 0x439   : > { %14150 = vmatmul.mubr.msk.bf16.gmra.mrb[56].mxu1 %vm1737_vm4, %v20119_v45 }
 0x43a   : > { %14153 = vmatprep.mubr.msk.bf16.mxu1 %vm1737_vm4, %v20120_v46 }
 0x441   : > { %14154 = vmatmul.mubr.msk.bf16.gmra.mrb[60].mxu1 %vm1737_vm4, %v20121_v14 }
 0x442   : > { %14159 = vmatprep.mubr.msk.bf16.mxu1 %vm1737_vm4, %v12702_v12  ;;  %v698_v12 = vsel %vm15567_vm9, 0, %v697_v36 }
 0x443   : > { %699 = vst [vmem:[#allocation4 + $0x50] sm:$0x1] %v698_v12 }
 0x449   : > { %14160 = vmatmul.mubr.msk.bf16.vlgmr.msra.gmra.mrb[32].mxu1 %vm1737_vm4, %v12703_v28 }
 0x44a   : > { %14192 = vmatpush3.bf16.msra.mxu1 %v15364_v51  ;;  %14163 = vmatprep.mubr.msk.bf16.mxu1 %vm1737_vm4, %v12704_v6  ;;  %v649_v51 = vld [vmem:[#allocation4 + $0x60] sm:$0x1] }
 0x451   : > { %14164 = vmatmul.mubr.msk.bf16.gmra.mrb[36].mxu1 %vm1737_vm4, %v12705_v10 }
 0x452   : > { %14167 = vmatprep.mubr.msk.bf16.mxu1 %vm1737_vm4, %v20111_v48 }
 0x459   : > { %14168 = vmatmul.mubr.msk.bf16.gmra.mrb[40].mxu1 %vm1737_vm4, %v20112_v50 }
 0x45a   : > { %14171 = vmatprep.mubr.msk.bf16.mxu1 %vm1737_vm4, %v20113_v57 }
 0x461   : > { %14172 = vmatmul.mubr.msk.bf16.gmra.mrb[44].mxu1 %vm1737_vm4, %v20114_v53 }
 0x462   : > { %14175 = vmatprep.mubr.msk.bf16.mxu1 %vm1737_vm4, %v20115_v35 }
 0x469   : > { %14176 = vmatmul.mubr.msk.bf16.gmra.mrb[48].mxu1 %vm1737_vm4, %v20116_v0 }
 0x46a   : > { %14179 = vmatprep.mubr.msk.bf16.mxu1 %vm1737_vm4, %v20117_v13 }
 0x471   : > { %14180 = vmatmul.mubr.msk.bf16.gmra.mrb[52].mxu1 %vm1737_vm4, %v20118_v17 }
 0x472   : > { %14183 = vmatprep.mubr.msk.bf16.mxu1 %vm1737_vm4, %v20119_v45 }
 0x479   : > { %14184 = vmatmul.mubr.msk.bf16.gmra.mrb[56].mxu1 %vm1737_vm4, %v20120_v46 }
 0x47a   : > { %14187 = vmatprep.mubr.msk.bf16.mxu1 %vm1737_vm4, %v20121_v14 }
 0x481   : > { %14188 = vmatmul.mubr.msk.bf16.gmra.mrb[60].mxu1 %vm1737_vm4, %v20123_v49 }
 0x482   : > { %14193 = vmatprep.mubr.msk.bf16.mxu1 %vm1737_vm4, %v12703_v28  ;;  %v650_v28 = vsel %vm15506_vm2, 0, %v649_v51 }
 0x483   : > { %651 = vst [vmem:[#allocation4 + $0x60] sm:$0x1] %v650_v28 }
 0x489   : > { %14194 = vmatmul.mubr.msk.bf16.vlgmr.msra.gmra.mrb[32].mxu1 %vm1737_vm4, %v12704_v6  ;;  %v653_v6 = vsel %vm15506_vm2, 0, %v652_v39 }
 0x48a   : > { %14197 = vmatprep.mubr.msk.bf16.mxu1 %vm1737_vm4, %v12705_v10  ;;  %654 = vst [vmem:[#allocation4 + $0x6c] sm:$0x1] %v653_v6  ;;  %v710_v10 = vsel %vm15567_vm9, 0, %v709_v43 }
 0x48b   : > { %711 = vst [vmem:[#allocation4 + $0x80] sm:$0x1] %v710_v10 }
 0x491   : > { %14198 = vmatmul.mubr.msk.bf16.gmra.mrb[36].mxu1 %vm1737_vm4, %v20111_v48  ;;  %v706_v48 = vld [vmem:[#allocation4 + $0x74] sm:$0x1] }
 0x492   : > { %14201 = vmatprep.mubr.msk.bf16.mxu1 %vm1737_vm4, %v20112_v50  ;;  %v707_v50 = vsel %vm15567_vm9, 0, %v706_v48 }
 0x493   : > { %708 = vst [vmem:[#allocation4 + $0x74] sm:$0x1] %v707_v50 }
 0x499   : > { %14202 = vmatmul.mubr.msk.bf16.gmra.mrb[40].mxu1 %vm1737_vm4, %v20113_v57  ;;  %v661_v57 = vld [vmem:[#allocation4 + $0x90] sm:$0x1] }
 0x49a   : > { %14205 = vmatprep.mubr.msk.bf16.mxu1 %vm1737_vm4, %v20114_v53  ;;  %v662_v53 = vsel %vm15506_vm2, 0, %v661_v57 }
 0x49b   : > { %663 = vst [vmem:[#allocation4 + $0x90] sm:$0x1] %v662_v53 }
 0x4a1   : > { %14206 = vmatmul.mubr.msk.bf16.gmra.mrb[44].mxu1 %vm1737_vm4, %v20115_v35  ;;  %v658_v35 = vld [vmem:[#allocation4 + $0x84] sm:$0x1] }
 0x4a2   : > { %14209 = vmatprep.mubr.msk.bf16.mxu1 %vm1737_vm4, %v20116_v0  ;;  %v659_v0 = vsel %vm15506_vm2, 0, %v658_v35 }
 0x4a3   : > { %660 = vst [vmem:[#allocation4 + $0x84] sm:$0x1] %v659_v0 }
 0x4a9   : > { %14210 = vmatmul.mubr.msk.bf16.gmra.mrb[48].mxu1 %vm1737_vm4, %v20117_v13  ;;  %v715_v13 = vld [vmem:[#allocation4 + $0x98] sm:$0x1] }
 0x4aa   : > { %14213 = vmatprep.mubr.msk.bf16.mxu1 %vm1737_vm4, %v20118_v17  ;;  %v716_v17 = vsel %vm15567_vm9, 0, %v715_v13  ;;  %v9055_v13 = vld [vmem:[#allocation4 + $0x18] sm:$0xf] }
 0x4ab   : > { %717 = vst [vmem:[#allocation4 + $0x98] sm:$0x1] %v716_v17 }
 0x4b1   : > { %14214 = vmatmul.mubr.msk.bf16.gmra.mrb[52].mxu1 %vm1737_vm4, %v20119_v45  ;;  %v712_v45 = vld [vmem:[#allocation4 + $0x8c] sm:$0x1] }
 0x4b2   : > { %14217 = vmatprep.mubr.msk.bf16.mxu1 %vm1737_vm4, %v20120_v46  ;;  %v713_v46 = vsel %vm15567_vm9, 0, %v712_v45 }
 0x4b3   : > { %714 = vst [vmem:[#allocation4 + $0x8c] sm:$0x1] %v713_v46 }
 0x4b9   : > { %14218 = vmatmul.mubr.msk.bf16.gmra.mrb[56].mxu1 %vm1737_vm4, %v20121_v14  ;;  %v667_v14 = vld [vmem:[#allocation4 + $0xa8] sm:$0x1] }
 0x4ba   : > { %14221 = vmatprep.mubr.msk.bf16.mxu1 %vm1737_vm4, %v20123_v49  ;;  %v668_v61 = vsel %vm15506_vm2, 0, %v667_v14  ;;  %v721_v49 = vld [vmem:[#allocation4 + $0xb0] sm:$0x1] }
 0x4bb   : > { %669 = vst [vmem:[#allocation4 + $0xa8] sm:$0x1] %v668_v61  ;;  %v722_v62 = vsel %vm15567_vm9, 0, %v721_v49 }
 0x4bc   : > { %723 = vst [vmem:[#allocation4 + $0xb0] sm:$0x1] %v722_v62 }
 0x4c1   : > { %14222 = vmatmul.mubr.msk.bf16.gmra.mrb[60].mxu1 %vm1737_vm4, %v12758_v55  ;;  %v727_v55 = vld [vmem:[#allocation4 + $0xc8] sm:$0x1] }
 0x4c2   : > { %v728_v40 = vsel %vm15567_vm9, 0, %v727_v55 }
 0x4c3   : > { %729 = vst [vmem:[#allocation4 + $0xc8] sm:$0x1] %v728_v40 }
 0x55c   : > { %v14195_v29 = vpop.f32.mrb[32].mxu1 }
 0x55d   : > { %v8528_v11 = vmul.f32 %v14195_v29, %v18775_v30  ;;  %v8360_v41 = vpop.f32.mrb[33].mxu1 }
 0x55e   : > { %v8526_v19 = vmul.f32 %v18775_v30, %v8360_v41  ;;  %v14196_v31 = vpop.f32.mrb[34].mxu1 }
 0x55f   : > { %v8567_v59 = vadd.f32 %v18780_v34, %v8528_v11  ;;  %v8529_v32 = vmul.f32 %v14196_v31, %v18775_v30  ;;  %v8363_v20 = vpop.f32.mrb[35].mxu1 }
 0x560   : > { %v8565_v63 = vadd.f32 %v18780_v34, %v8526_v19  ;;  %v8527_v25 = vmul.f32 %v18775_v30, %v8363_v20 }
 0x561   : > { %v8599_v36 = vmax.f32 %v8567_v59, 0.0  ;;  %v8568_v56 = vadd.f32 %v18780_v34, %v8529_v32 }
 0x562   : > { %v8597_v12 = vmax.f32 %v8565_v63, 0.0  ;;  %v8566_v33 = vadd.f32 %v18780_v34, %v8527_v25 }
 0x563   : > { %v13124_v27 = vpack.c.bf16 %v8599_v36, %v8599_v36  ;;  %v8600_v51 = vmax.f32 %v8568_v56, 0.0 }
 0x564   : > { %v13122_v28 = vpack.c.bf16 %v8597_v12, %v8597_v12  ;;  %v8598_v24 = vmax.f32 %v8566_v33, 0.0  ;;  %v14199_v16 = vpop.f32.mrb[36].mxu1 }
 0x565   : > { %v8743_v38 = vshrl.u32 %v13124_v27, 16  ;;  %v8746_v23 = vshll.u32 %v13124_v27, 16  ;;  %v13125_v2 = vpack.c.bf16 %v8600_v51, %v8600_v51  ;;  %v8532_v3 = vmul.f32 %v14199_v16, %v18775_v30  ;;  %v8376_v26 = vpop.f32.mrb[37].mxu1 }
 0x566   : > { %v8726_v54 = vshrl.u32 %v13122_v28, 16  ;;  %v8729_v39 = vshll.u32 %v13122_v28, 16  ;;  %v13123_v6 = vpack.c.bf16 %v8598_v24, %v8598_v24  ;;  %v8530_v43 = vmul.f32 %v18775_v30, %v8376_v26  ;;  %v14200_v10 = vpop.f32.mrb[38].mxu1 }
 0x567   : > { %v8745_v48 = vrot.slane %v8743_v38, 7  ;;  %v8751_v50 = vshrl.u32 %v13125_v2, 16  ;;  %v8754_v57 = vshll.u32 %v13125_v2, 16  ;;  %v8571_v53 = vadd.f32 %v18780_v34, %v8532_v3  ;;  %v8379_v35 = vpop.f32.mrb[39].mxu1  ;;  %v9069_v38 = vld [vmem:[#allocation4 + $0x30] sm:$0xf] }
 0x568   : > { %v8728_v17 = vrot.slane %v8726_v54, 7  ;;  %v8734_v45 = vshrl.u32 %v13123_v6, 16  ;;  %v8737_v46 = vshll.u32 %v13123_v6, 16  ;;  %v8569_v14 = vadd.f32 %v18780_v34, %v8530_v43  ;;  %v9062_v6 = vld [vmem:[#allocation4 + $0x24] sm:$0xf] }
 0x569   : > { %v8748_v61 = vor.u32 %v8746_v23, %v8745_v48  ;;  %v8749_v60 = vrot.slane %v8745_v48, 4  ;;  %v8753_v49 = vrot.slane %v8751_v50, 7  ;;  %v8603_v5 = vmax.f32 %v8571_v53, 0.0 }
 0x56a   : > { %v8731_v62 = vor.u32 %v8729_v39, %v8728_v17  ;;  %v8732_v22 = vrot.slane %v8728_v17, 4  ;;  %v8736_v15 = vrot.slane %v8734_v45, 7  ;;  %v8601_v8 = vmax.f32 %v8569_v14, 0.0 }
 0x56b   : > { %v9056_v42 = vsel %vm18795_vm1, %v8748_v61, %v9055_v13  ;;  %v8756_v55 = vor.u32 %v8754_v57, %v8753_v49  ;;  %v8758_v40 = vrot.slane %v8753_v49, 4  ;;  %v13128_v37 = vpack.c.bf16 %v8603_v5, %v8603_v5 }
 0x56c   : > { %9057 = vst [vmem:[#allocation4 + $0x18] sm:$0xf] %v9056_v42  ;;  %v9049_v9 = vsel %vm18795_vm1, %v8731_v62, %v9048_v7  ;;  %v8739_v18 = vor.u32 %v8737_v46, %v8736_v15  ;;  %v8741_v29 = vrot.slane %v8736_v15, 4  ;;  %v13126_v11 = vpack.c.bf16 %v8601_v8, %v8601_v8  ;;  %v14203_v41 = vpop.f32.mrb[40].mxu1 }
 0x56d   : > { %9050 = vst [vmem:[#allocation4 + $0xc] sm:$0xf] %v9049_v9  ;;  %v8757_v31 = vsel %vm17116_vm6, %v8749_v60, %v8756_v55  ;;  %v9060_v59 = vsel %vm15506_vm2, %v8758_v40, %v9059_v44  ;;  %v8777_v32 = vshrl.u32 %v13128_v37, 16  ;;  %v8780_v20 = vshll.u32 %v13128_v37, 16  ;;  %v8392_v63 = vpop.f32.mrb[41].mxu1  ;;  %v18845_v37 = vld [vmem:[%s19929_s7 + $0x30] sm:$0xff]  }
 0x56e   : > { %9058 = vst.msk [vmem:[#allocation4 + $0x1c] sm:$0xf] %vm381_vm7, %v8757_v31  ;;  %9061 = vst [vmem:[#allocation4 + $0x20] sm:$0x1] %v9060_v59  ;;  %v8740_v25 = vsel %vm17116_vm6, %v8732_v22, %v8739_v18  ;;  %v9053_v36 = vsel %vm15506_vm2, %v8741_v29, %v9052_v47  ;;  %v8760_v56 = vshrl.u32 %v13126_v11, 16  ;;  %v8763_v12 = vshll.u32 %v13126_v11, 16 }
 0x56f   : > { %v14204_v33 = vpop.f32.mrb[42].mxu1  ;;  %9051 = vst.msk [vmem:[#allocation4 + $0x10] sm:$0xf] %vm381_vm7, %v8740_v25  ;;  %9054 = vst [vmem:[#allocation4 + $0x14] sm:$0x1] %v9053_v36  ;;  %v18814_v27 = vrot.slane %v8777_v32, 7  ;;  %v8533_v51 = vmul.f32 %v14200_v10, %v18775_v30  ;;  %v8531_v28 = vmul.f32 %v18775_v30, %v8379_v35  ;;  %v8536_v24 = vmul.f32 %v14203_v41, %v18775_v30 }
 0x570   : > { %v8395_v16 = vpop.f32.mrb[43].mxu1  ;;  %v18819_v23 = vrot.slane %v8760_v56, 7  ;;  %v8534_v2 = vmul.f32 %v18775_v30, %v8392_v63  ;;  %v8537_v3 = vmul.f32 %v14204_v33, %v18775_v30  ;;  %v9073_v36 = vld [vmem:[#allocation4 + $0x38] sm:$0x1] }
 0x571   : > { %v8535_v26 = vmul.f32 %v18775_v30, %v8395_v16  ;;  %v8782_v54 = vor.u32 %v8780_v20, %v18814_v27  ;;  %v8783_v39 = vrot.slane %v18814_v27, 4  ;;  %v8572_v43 = vadd.f32 %v18780_v34, %v8533_v51  ;;  %v9066_v51 = vld [vmem:[#allocation4 + $0x2c] sm:$0x1] }
 0x572   : > { %v8570_v10 = vadd.f32 %v18780_v34, %v8531_v28  ;;  %v8765_v48 = vor.u32 %v8763_v12, %v18819_v23  ;;  %v8766_v50 = vrot.slane %v18819_v23, 4  ;;  %v8575_v57 = vadd.f32 %v18780_v34, %v8536_v24  ;;  %v9083_v24 = vld [vmem:[#allocation4 + $0x48] sm:$0xf] }
 0x573   : > { %v8573_v53 = vadd.f32 %v18780_v34, %v8534_v2  ;;  %v9070_v35 = vsel %vm18795_vm1, %v8782_v54, %v9069_v38  ;;  %v8604_v13 = vmax.f32 %v8572_v43, 0.0  ;;  %v8576_v45 = vadd.f32 %v18780_v34, %v8537_v3  ;;  %v9076_v43 = vld [vmem:[#allocation4 + $0x3c] sm:$0xf] }
 0x574   : > { %v8602_v17 = vmax.f32 %v8570_v10, 0.0  ;;  %9071 = vst [vmem:[#allocation4 + $0x30] sm:$0xf] %v9070_v35  ;;  %v9063_v46 = vsel %vm18795_vm1, %v8765_v48, %v9062_v6  ;;  %v8607_v14 = vmax.f32 %v8575_v57, 0.0  ;;  %v8574_v60 = vadd.f32 %v18780_v34, %v8535_v26  ;;  %v14207_v7 = vpop.f32.mrb[44].mxu1 }
 0x575   : > { %v8605_v61 = vmax.f32 %v8573_v53, 0.0  ;;  %9064 = vst [vmem:[#allocation4 + $0x24] sm:$0xf] %v9063_v46  ;;  %v13129_v49 = vpack.c.bf16 %v8604_v13, %v8604_v13  ;;  %v8608_v62 = vmax.f32 %v8576_v45, 0.0  ;;  %v8540_v22 = vmul.f32 %v14207_v7, %v18775_v30  ;;  %v8408_v44 = vpop.f32.mrb[45].mxu1  ;;  %v18847_v31 = vld [vmem:[#allocation4 + $0x18] sm:$0xff]  }
 0x576   : > { %v13127_v5 = vpack.c.bf16 %v8602_v17, %v8602_v17  ;;  %v13132_v15 = vpack.c.bf16 %v8607_v14, %v8607_v14  ;;  %v8606_v42 = vmax.f32 %v8574_v60, 0.0  ;;  %v8538_v55 = vmul.f32 %v18775_v30, %v8408_v44  ;;  %v14208_v40 = vpop.f32.mrb[46].mxu1  ;;  %v18840_v47 = vld [vmem:[#allocation4 + $0xc] sm:$0xff]  }
 0x577   : > { %v13130_v8 = vpack.c.bf16 %v8605_v61, %v8605_v61  ;;  %v8785_v9 = vshrl.u32 %v13129_v49, 16  ;;  %v8788_v18 = vshll.u32 %v13129_v49, 16  ;;  %v8411_v41 = vpop.f32.mrb[47].mxu1  ;;  %14227 = vmatprep.mubr.msk.bf16.mxu0 %vm1737_vm4, %v18840_v47  ;;  %v13133_v12 = vpack.c.bf16 %v8608_v62, %v8608_v62 }
 0x578   : > { %v8768_v29 = vshrl.u32 %v13127_v5, 16  ;;  %v8771_v11 = vshll.u32 %v13127_v5, 16  ;;  %v8811_v59 = vshrl.u32 %v13132_v15, 16  ;;  %v8814_v32 = vshll.u32 %v13132_v15, 16  ;;  %14228 = vmatmul.mubr.msk.bf16.vlgmr.msra.gmra.mrb[32].mxu0 %vm1737_vm4, %v18847_v31 }
 0x579   : > { %v8794_v20 = vshrl.u32 %v13130_v8, 16  ;;  %v8797_v63 = vshll.u32 %v13130_v8, 16  ;;  %v8787_v25 = vrot.slane %v8785_v9, 7  ;;  %v13131_v33 = vpack.c.bf16 %v8606_v42, %v8606_v42  ;;  %14260 = vmatpush3.bf16.msra.mxu0 %v18735_v52  ;;  %v9087_v8 = vld [vmem:[#allocation4 + $0x50] sm:$0x1] }
 0x57a   : > { %v8770_v56 = vrot.slane %v8768_v29, 7  ;;  %v8813_v28 = vrot.slane %v8811_v59, 7  ;;  %v8579_v38 = vadd.f32 %v18780_v34, %v8540_v22  ;;  %v8577_v2 = vadd.f32 %v18780_v34, %v8538_v55  ;;  %14293 = vmatprep.subr.bf16.mxu0 %v18845_v37  ;;  %v9080_v59 = vld [vmem:[#allocation4 + $0x44] sm:$0x1] }
 0x57b   : > { %v18853_v16 = vrot.slane %v8794_v20, 7  ;;  %v8790_v3 = vor.u32 %v8788_v18, %v8787_v25  ;;  %v8792_v26 = vrot.slane %v8787_v25, 4  ;;  %v8819_v23 = vshrl.u32 %v13133_v12, 16 }
 0x57c   : > { %v8773_v54 = vor.u32 %v8771_v11, %v8770_v56  ;;  %v8775_v6 = vrot.slane %v8770_v56, 4  ;;  %v8816_v10 = vor.u32 %v8814_v32, %v8813_v28  ;;  %v8817_v48 = vrot.slane %v8813_v28, 4  ;;  %v14211_v35 = vpop.f32.mrb[48].mxu1 }
 0x57d   : > { %v8799_v57 = vor.u32 %v8797_v63, %v18853_v16  ;;  %v8800_v53 = vrot.slane %v18853_v16, 4  ;;  %v8791_v13 = vsel %vm17116_vm6, %v8783_v39, %v8790_v3  ;;  %v9074_v52 = vsel %vm15506_vm2, %v8792_v26, %v9073_v36  ;;  %v8424_v46 = vpop.f32.mrb[49].mxu1 }
 0x57e   : > { %v8774_v17 = vsel %vm17116_vm6, %v8766_v50, %v8773_v54  ;;  %v9067_v45 = vsel %vm15506_vm2, %v8775_v6, %v9066_v51  ;;  %9072 = vst.msk [vmem:[#allocation4 + $0x34] sm:$0xf] %vm381_vm7, %v8791_v13  ;;  %9075 = vst [vmem:[#allocation4 + $0x38] sm:$0x1] %v9074_v52  ;;  %v9084_v27 = vsel %vm18795_vm1, %v8816_v10, %v9083_v24  ;;  %v8822_v14 = vshll.u32 %v13133_v12, 16  ;;  %v14212_v61 = vpop.f32.mrb[50].mxu1 }
 0x57f   : > { %9065 = vst.msk [vmem:[#allocation4 + $0x28] sm:$0xf] %vm381_vm7, %v8774_v17  ;;  %9068 = vst [vmem:[#allocation4 + $0x2c] sm:$0x1] %v9067_v45  ;;  %v9077_v39 = vsel %vm18795_vm1, %v8799_v57, %v9076_v43  ;;  %v8802_v50 = vshrl.u32 %v13131_v33, 16  ;;  %v8805_v60 = vshll.u32 %v13131_v33, 16  ;;  %v8541_v22 = vmul.f32 %v14208_v40, %v18775_v30 }
 0x580   : > { %9085 = vst [vmem:[#allocation4 + $0x48] sm:$0xf] %v9084_v27  ;;  %9078 = vst [vmem:[#allocation4 + $0x3c] sm:$0xf] %v9077_v39  ;;  %v8611_v7 = vmax.f32 %v8579_v38, 0.0  ;;  %v8609_v49 = vmax.f32 %v8577_v2, 0.0  ;;  %v8539_v44 = vmul.f32 %v18775_v30, %v8411_v41  ;;  %v8544_v15 = vmul.f32 %v14211_v35, %v18775_v30 }
 0x581   : > { %v18879_v5 = vpop.f32.mrb[51].mxu1  ;;  %v8821_v62 = vrot.slane %v8819_v23, 7  ;;  %v8804_v42 = vrot.slane %v8802_v50, 7  ;;  %v8542_v18 = vmul.f32 %v18775_v30, %v8424_v46  ;;  %v8580_v32 = vadd.f32 %v18780_v34, %v8541_v22  ;;  %v9097_v12 = vld [vmem:[#allocation4 + $0x60] sm:$0xf] }
 0x582   : > { %v13136_v55 = vpack.c.bf16 %v8611_v7, %v8611_v7  ;;  %v13134_v9 = vpack.c.bf16 %v8609_v49, %v8609_v49  ;;  %v8578_v20 = vadd.f32 %v18780_v34, %v8539_v44  ;;  %v9090_v2 = vld [vmem:[#allocation4 + $0x54] sm:$0xf]  ;;  %v8583_v43 = vadd.f32 %v18780_v34, %v8544_v15  ;;  %v9101_v15 = vld [vmem:[#allocation4 + $0x68] sm:$0x1] }
 0x583   : > { %v8824_v29 = vor.u32 %v8822_v14, %v8821_v62  ;;  %v8826_v11 = vrot.slane %v8821_v62, 4  ;;  %v8807_v63 = vor.u32 %v8805_v60, %v8804_v42  ;;  %v8809_v25 = vrot.slane %v8804_v42, 4 }
 0x584   : > { %v8845_v40 = vshrl.u32 %v13136_v55, 16  ;;  %v8848_v36 = vshll.u32 %v13136_v55, 16  ;;  %v8828_v33 = vshrl.u32 %v13134_v9, 16  ;;  %v8831_v51 = vshll.u32 %v13134_v9, 16  ;;  %v14215_v28 = vpop.f32.mrb[52].mxu1 }
 0x585   : > { %v8825_v41 = vsel %vm17116_vm6, %v8817_v48, %v8824_v29  ;;  %v9088_v56 = vsel %vm15506_vm2, %v8826_v11, %v9087_v8  ;;  %v8808_v24 = vsel %vm17116_vm6, %v8800_v53, %v8807_v63  ;;  %v9081_v16 = vsel %vm15506_vm2, %v8809_v25, %v9080_v59  ;;  %v18901_v48 = vld [vmem:[#allocation4 + $0x30] sm:$0xff]   ;;  %v18903_v57 = vpop.f32.mrb[53].mxu1  ;;  %v9094_v8 = vld [vmem:[#allocation4 + $0x5c] sm:$0x1] }
 0x586   : > { %9086 = vst.msk [vmem:[#allocation4 + $0x4c] sm:$0xf] %vm381_vm7, %v8825_v41  ;;  %9089 = vst [vmem:[#allocation4 + $0x50] sm:$0x1] %v9088_v56  ;;  %v8847_v38 = vrot.slane %v8845_v40, 7  ;;  %v8612_v3 = vmax.f32 %v8580_v32, 0.0  ;;  %v8581_v10 = vadd.f32 %v18780_v34, %v8542_v18  ;;  %v8545_v52 = vmul.f32 %v14212_v61, %v18775_v30 }
 0x587   : > { %v18896_v26 = vld [vmem:[#allocation4 + $0x24] sm:$0xff]   ;;  %9079 = vst.msk [vmem:[#allocation4 + $0x40] sm:$0xf] %vm381_vm7, %v8808_v24  ;;  %9082 = vst [vmem:[#allocation4 + $0x44] sm:$0x1] %v9081_v16  ;;  %v8830_v54 = vrot.slane %v8828_v33, 7  ;;  %v8543_v9 = vmul.f32 %v18775_v30, %v18879_v5  ;;  %v8548_v59 = vmul.f32 %v14215_v28, %v18775_v30 }
 0x588   : > { %v8610_v6 = vmax.f32 %v8578_v20, 0.0  ;;  %v8850_v53 = vor.u32 %v8848_v36, %v8847_v38  ;;  %v8851_v35 = vrot.slane %v8847_v38, 4  ;;  %v13137_v13 = vpack.c.bf16 %v8612_v3, %v8612_v3  ;;  %14231 = vmatprep.mubr.msk.bf16.mxu0 %vm1737_vm4, %v18896_v26  ;;  %v18908_v17 = vpop.f32.mrb[54].mxu1  ;;  %v9111_v24 = vld [vmem:[#allocation4 + $0x78] sm:$0xf] }
 0x589   : > { %v8833_v45 = vor.u32 %v8831_v51, %v8830_v54  ;;  %v8834_v46 = vrot.slane %v8830_v54, 4  ;;  %v8615_v39 = vmax.f32 %v8583_v43, 0.0  ;;  %14232 = vmatmul.mubr.msk.bf16.gmra.mrb[36].mxu0 %vm1737_vm4, %v18901_v48  ;;  %v18912_v23 = vpop.f32.mrb[55].mxu1  ;;  %v8613_v61 = vmax.f32 %v8581_v10, 0.0  ;;  %v9104_v10 = vld [vmem:[#allocation4 + $0x6c] sm:$0xf] }
 0x58a   : > { %v13135_v27 = vpack.c.bf16 %v8610_v6, %v8610_v6  ;;  %v9098_v14 = vsel %vm18795_vm1, %v8850_v53, %v9097_v12  ;;  %v8853_v50 = vshrl.u32 %v13137_v13, 16  ;;  %v8856_v60 = vshll.u32 %v13137_v13, 16 }
 0x58b   : > { %9099 = vst [vmem:[#allocation4 + $0x60] sm:$0xf] %v9098_v14  ;;  %v9091_v7 = vsel %vm18795_vm1, %v8833_v45, %v9090_v2  ;;  %v13140_v22 = vpack.c.bf16 %v8615_v39, %v8615_v39  ;;  %v13138_v42 = vpack.c.bf16 %v8613_v61, %v8613_v61  ;;  %v8584_v55 = vadd.f32 %v18780_v34, %v8545_v52 }
 0x58c   : > { %v8836_v49 = vshrl.u32 %v13135_v27, 16  ;;  %v8839_v62 = vshll.u32 %v13135_v27, 16  ;;  %9092 = vst [vmem:[#allocation4 + $0x54] sm:$0xf] %v9091_v7  ;;  %v8855_v44 = vrot.slane %v8853_v50, 7  ;;  %v14219_v51 = vpop.f32.mrb[56].mxu1  ;;  %v8582_v38 = vadd.f32 %v18780_v34, %v8543_v9 }
 0x58d   : > { %v8879_v29 = vshrl.u32 %v13140_v22, 16  ;;  %v8882_v11 = vshll.u32 %v13140_v22, 16  ;;  %v8862_v63 = vshrl.u32 %v13138_v42, 16  ;;  %v8865_v25 = vshll.u32 %v13138_v42, 16  ;;  %v18926_v33 = vld [vmem:[#allocation4 + $0x48] sm:$0xff]   ;;  %v18937_v2 = vpop.f32.mrb[57].mxu1 }
 0x58e   : > { %v8838_v18 = vrot.slane %v8836_v49, 7  ;;  %v8858_v32 = vor.u32 %v8856_v60, %v8855_v44  ;;  %v8860_v20 = vrot.slane %v8855_v44, 4  ;;  %v18922_v40 = vld [vmem:[#allocation4 + $0x3c] sm:$0xff]   ;;  %v8616_v12 = vmax.f32 %v8584_v55, 0.0  ;;  %v18948_v53 = vpop.f32.mrb[58].mxu1 }
 0x58f   : > { %v18924_v56 = vrot.slane %v8879_v29, 7  ;;  %v18932_v16 = vrot.slane %v8862_v63, 7  ;;  %14235 = vmatprep.mubr.msk.bf16.mxu0 %vm1737_vm4, %v18922_v40  ;;  %v8614_v45 = vmax.f32 %v8582_v38, 0.0  ;;  %v8587_v39 = vadd.f32 %v18780_v34, %v8548_v59  ;;  %v9108_v29 = vld [vmem:[#allocation4 + $0x74] sm:$0x1] }
 0x590   : > { %v8841_v36 = vor.u32 %v8839_v62, %v8838_v18  ;;  %v8843_v41 = vrot.slane %v8838_v18, 4  ;;  %v8859_v5 = vsel %vm17116_vm6, %v8851_v35, %v8858_v32  ;;  %v9102_v28 = vsel %vm15506_vm2, %v8860_v20, %v9101_v15 }
 0x591   : > { %9100 = vst.msk [vmem:[#allocation4 + $0x64] sm:$0xf] %vm381_vm7, %v8859_v5  ;;  %9103 = vst [vmem:[#allocation4 + $0x68] sm:$0x1] %v9102_v28  ;;  %v8884_v6 = vor.u32 %v8882_v11, %v18924_v56  ;;  %v8885_v43 = vrot.slane %v18924_v56, 4  ;;  %14236 = vmatmul.mubr.msk.bf16.gmra.mrb[40].mxu0 %vm1737_vm4, %v18926_v33  ;;  %v8867_v35 = vor.u32 %v8865_v25, %v18932_v16  ;;  %v8868_v13 = vrot.slane %v18932_v16, 4 }
 0x592   : > { %v8842_v3 = vsel %vm17116_vm6, %v8834_v46, %v8841_v36  ;;  %v9095_v54 = vsel %vm15506_vm2, %v8843_v41, %v9094_v8  ;;  %v13141_v52 = vpack.c.bf16 %v8616_v12, %v8616_v12  ;;  %v18953_v46 = vpop.f32.mrb[59].mxu1  ;;  %v8546_v14 = vmul.f32 %v18775_v30, %v18903_v57 }
 0x593   : > { %9093 = vst.msk [vmem:[#allocation4 + $0x58] sm:$0xf] %vm381_vm7, %v8842_v3  ;;  %9096 = vst [vmem:[#allocation4 + $0x5c] sm:$0x1] %v9095_v54  ;;  %v9112_v27 = vsel %vm18795_vm1, %v8884_v6, %v9111_v24  ;;  %v8549_v50 = vmul.f32 %v18908_v17, %v18775_v30  ;;  %v9105_v60 = vsel %vm18795_vm1, %v8867_v35, %v9104_v10  ;;  %v8619_v62 = vmax.f32 %v8587_v39, 0.0 }
 0x594   : > { %9113 = vst [vmem:[#allocation4 + $0x78] sm:$0xf] %v9112_v27  ;;  %v8887_v61 = vshrl.u32 %v13141_v52, 16  ;;  %v8890_v7 = vshll.u32 %v13141_v52, 16  ;;  %v13139_v49 = vpack.c.bf16 %v8614_v45, %v8614_v45  ;;  %9106 = vst [vmem:[#allocation4 + $0x6c] sm:$0xf] %v9105_v60  ;;  %v8585_v22 = vadd.f32 %v18780_v34, %v8546_v14 }
 0x595   : > { %v8588_v44 = vadd.f32 %v18780_v34, %v8549_v50  ;;  %v8547_v15 = vmul.f32 %v18775_v30, %v18912_v23  ;;  %v18968_v57 = vpop.f32.mrb[60].mxu1  ;;  %v9115_v17 = vld [vmem:[#allocation4 + $0x80] sm:$0x1]  ;;  %v8552_v9 = vmul.f32 %v14219_v51, %v18775_v30  ;;  %v13144_v11 = vpack.c.bf16 %v8619_v62, %v8619_v62  ;;  %v9125_v39 = vld [vmem:[#allocation4 + $0x90] sm:$0xf] }
 0x596   : > { %v8889_v8 = vrot.slane %v8887_v61, 7  ;;  %v8870_v42 = vshrl.u32 %v13139_v49, 16  ;;  %v8873_v55 = vshll.u32 %v13139_v49, 16  ;;  %v18971_v18 = vpop.f32.mrb[61].mxu1  ;;  %v8617_v59 = vmax.f32 %v8585_v22, 0.0 }
 0x597   : > { %v8620_v32 = vmax.f32 %v8588_v44, 0.0  ;;  %v8586_v20 = vadd.f32 %v18780_v34, %v8547_v15  ;;  %v18974_v63 = vpop.f32.mrb[62].mxu1  ;;  %v8591_v41 = vadd.f32 %v18780_v34, %v8552_v9  ;;  %v8913_v12 = vshrl.u32 %v13144_v11, 16  ;;  %v9118_v62 = vld [vmem:[#allocation4 + $0x84] sm:$0xf] }
 0x598   : > { %v8892_v25 = vor.u32 %v8890_v7, %v8889_v8  ;;  %v8894_v23 = vrot.slane %v8889_v8, 4  ;;  %v8872_v36 = vrot.slane %v8870_v42, 7  ;;  %v18977_v56 = vpop.f32.mrb[63].mxu1  ;;  %v8916_v5 = vshll.u32 %v13144_v11, 16  ;;  %v18985_v6 = vld [vmem:[#allocation4 + $0x60] sm:$0xff]  }
 0x599   : > { %v13142_v51 = vpack.c.bf16 %v8617_v59, %v8617_v59  ;;  %v13145_v28 = vpack.c.bf16 %v8620_v32, %v8620_v32  ;;  %v8915_v10 = vrot.slane %v8913_v12, 7  ;;  %v8618_v50 = vmax.f32 %v8586_v20, 0.0  ;;  %v9129_v9 = vld [vmem:[#allocation4 + $0x98] sm:$0x1] }
 0x59a   : > { %v18979_v24 = vld [vmem:[#allocation4 + $0x54] sm:$0xff]   ;;  %v8893_v16 = vsel %vm17116_vm6, %v8885_v43, %v8892_v25  ;;  %v9116_v38 = vsel %vm15506_vm2, %v8894_v23, %v9115_v17  ;;  %v8875_v3 = vor.u32 %v8873_v55, %v8872_v36  ;;  %v8877_v54 = vrot.slane %v8872_v36, 4 }
 0x59b   : > { %9114 = vst.msk [vmem:[#allocation4 + $0x7c] sm:$0xf] %vm381_vm7, %v8893_v16  ;;  %9117 = vst [vmem:[#allocation4 + $0x80] sm:$0x1] %v9116_v38  ;;  %v8896_v35 = vshrl.u32 %v13142_v51, 16  ;;  %v8899_v52 = vshll.u32 %v13142_v51, 16  ;;  %14239 = vmatprep.mubr.msk.bf16.mxu0 %vm1737_vm4, %v18979_v24  ;;  %v8918_v60 = vor.u32 %v8916_v5, %v8915_v10  ;;  %v13143_v22 = vpack.c.bf16 %v8618_v50, %v8618_v50 }
 0x59c   : > { %v8921_v45 = vshrl.u32 %v13145_v28, 16  ;;  %v8876_v43 = vsel %vm17116_vm6, %v8868_v13, %v8875_v3  ;;  %v9109_v27 = vsel %vm15506_vm2, %v8877_v54, %v9108_v29  ;;  %v8924_v14 = vshll.u32 %v13145_v28, 16  ;;  %14240 = vmatmul.mubr.msk.bf16.gmra.mrb[44].mxu0 %vm1737_vm4, %v18985_v6  ;;  %v9122_v5 = vld [vmem:[#allocation4 + $0x8c] sm:$0x1] }
 0x59d   : > { %9107 = vst.msk [vmem:[#allocation4 + $0x70] sm:$0xf] %vm381_vm7, %v8876_v43  ;;  %9110 = vst [vmem:[#allocation4 + $0x74] sm:$0x1] %v9109_v27  ;;  %v8919_v61 = vrot.slane %v8915_v10, 4  ;;  %v8898_v7 = vrot.slane %v8896_v35, 7  ;;  %v8550_v13 = vmul.f32 %v18775_v30, %v18937_v2  ;;  %v8553_v15 = vmul.f32 %v18948_v53, %v18775_v30 }
 0x59e   : > { %v8923_v49 = vrot.slane %v8921_v45, 7  ;;  %v8623_v44 = vmax.f32 %v8591_v41, 0.0  ;;  %v9126_v8 = vsel %vm18795_vm1, %v8918_v60, %v9125_v39  ;;  %v8904_v11 = vshrl.u32 %v13143_v22, 16  ;;  %v9139_v45 = vld [vmem:[#allocation4 + $0xa8] sm:$0xf] }
 0x59f   : > { %v8901_v17 = vor.u32 %v8899_v52, %v8898_v7  ;;  %v8902_v42 = vrot.slane %v8898_v7, 4  ;;  %9127 = vst [vmem:[#allocation4 + $0x90] sm:$0xf] %v9126_v8  ;;  %v8907_v59 = vshll.u32 %v13143_v22, 16  ;;  %v8589_v53 = vadd.f32 %v18780_v34, %v8550_v13 }
 0x5a0   : > { %v8926_v55 = vor.u32 %v8924_v14, %v8923_v49  ;;  %v8928_v29 = vrot.slane %v8923_v49, 4  ;;  %v13148_v32 = vpack.c.bf16 %v8623_v44, %v8623_v44  ;;  %v8592_v25 = vadd.f32 %v18780_v34, %v8553_v15 }
 0x5a1   : > { %v9119_v20 = vsel %vm18795_vm1, %v8901_v17, %v9118_v62  ;;  %v8906_v36 = vrot.slane %v8904_v11, 7  ;;  %v8621_v51 = vmax.f32 %v8589_v53, 0.0  ;;  %v8551_v16 = vmul.f32 %v18775_v30, %v18953_v46 }
 0x5a2   : > { %v8927_v2 = vsel %vm17116_vm6, %v8919_v61, %v8926_v55  ;;  %9120 = vst [vmem:[#allocation4 + $0x84] sm:$0xf] %v9119_v20  ;;  %v9130_v23 = vsel %vm15506_vm2, %v8928_v29, %v9129_v9  ;;  %v8947_v41 = vshrl.u32 %v13148_v32, 16  ;;  %v8950_v12 = vshll.u32 %v13148_v32, 16  ;;  %v19022_v50 = vld [vmem:[#allocation4 + $0x78] sm:$0xff]  }
 0x5a3   : > { %9128 = vst.msk [vmem:[#allocation4 + $0x94] sm:$0xf] %vm381_vm7, %v8927_v2  ;;  %9131 = vst [vmem:[#allocation4 + $0x98] sm:$0x1] %v9130_v23  ;;  %v8624_v28 = vmax.f32 %v8592_v25, 0.0  ;;  %v8556_v38 = vmul.f32 %v18968_v57, %v18775_v30  ;;  %v8909_v3 = vor.u32 %v8907_v59, %v8906_v36  ;;  %v8911_v54 = vrot.slane %v8906_v36, 4 }
 0x5a4   : > { %v8949_v10 = vrot.slane %v8947_v41, 7  ;;  %v8554_v35 = vmul.f32 %v18775_v30, %v18971_v18  ;;  %v19018_v52 = vld [vmem:[#allocation4 + $0x6c] sm:$0xff]   ;;  %v13146_v43 = vpack.c.bf16 %v8621_v51, %v8621_v51  ;;  %v8590_v39 = vadd.f32 %v18780_v34, %v8551_v16 }
 0x5a5   : > { %v13149_v27 = vpack.c.bf16 %v8624_v28, %v8624_v28  ;;  %v8595_v14 = vadd.f32 %v18780_v34, %v8556_v38  ;;  %v8910_v46 = vsel %vm17116_vm6, %v8902_v42, %v8909_v3  ;;  %v9123_v57 = vsel %vm15506_vm2, %v8911_v54, %v9122_v5  ;;  %14243 = vmatprep.mubr.msk.bf16.mxu0 %vm1737_vm4, %v19018_v52  ;;  %v9132_v42 = vld [vmem:[#allocation4 + $0x9c] sm:$0xf]  ;;  %v9143_v55 = vld [vmem:[#allocation4 + $0xb0] sm:$0x1]  ;;  %v9136_v3 = vld [vmem:[#allocation4 + $0xa4] sm:$0x1] }
 0x5a6   : > { %v8952_v60 = vor.u32 %v8950_v12, %v8949_v10  ;;  %9121 = vst.msk [vmem:[#allocation4 + $0x88] sm:$0xf] %vm381_vm7, %v8910_v46  ;;  %9124 = vst [vmem:[#allocation4 + $0x8c] sm:$0x1] %v9123_v57  ;;  %v8930_v18 = vshrl.u32 %v13146_v43, 16  ;;  %v8933_v61 = vshll.u32 %v13146_v43, 16  ;;  %14244 = vmatmul.mubr.msk.bf16.gmra.mrb[48].mxu0 %vm1737_vm4, %v19022_v50  ;;  %v8593_v13 = vadd.f32 %v18780_v34, %v8554_v35 }
 0x5a7   : > { %v8955_v7 = vshrl.u32 %v13149_v27, 16  ;;  %v8958_v49 = vshll.u32 %v13149_v27, 16  ;;  %v8622_v22 = vmax.f32 %v8590_v39, 0.0  ;;  %v8627_v44 = vmax.f32 %v8595_v14, 0.0  ;;  %v9153_v54 = vld [vmem:[#allocation4 + $0xc0] sm:$0xf] }
 0x5a8   : > { %v9140_v62 = vsel %vm18795_vm1, %v8952_v60, %v9139_v45  ;;  %v8932_v15 = vrot.slane %v8930_v18, 7  ;;  %v8557_v17 = vmul.f32 %v18974_v63, %v18775_v30  ;;  %v8625_v11 = vmax.f32 %v8593_v13, 0.0 }
 0x5a9   : > { %9141 = vst [vmem:[#allocation4 + $0xa8] sm:$0xf] %v9140_v62  ;;  %v8957_v8 = vrot.slane %v8955_v7, 7  ;;  %v13147_v9 = vpack.c.bf16 %v8622_v22, %v8622_v22  ;;  %v13152_v29 = vpack.c.bf16 %v8627_v44, %v8627_v44  ;;  %v8555_v59 = vmul.f32 %v18775_v30, %v18977_v56  ;;  %v9146_v7 = vld [vmem:[#allocation4 + $0xb4] sm:$0xf] }
 0x5aa   : > { %v8953_v32 = vrot.slane %v8949_v10, 4  ;;  %v8935_v20 = vor.u32 %v8933_v61, %v8932_v15  ;;  %v13150_v51 = vpack.c.bf16 %v8625_v11, %v8625_v11  ;;  %v8596_v28 = vadd.f32 %v18780_v34, %v8557_v17  ;;  %v19051_v35 = vld [vmem:[#allocation4 + $0x90] sm:$0xff]   ;;  %v9157_v11 = vld [vmem:[#allocation4 + $0xc8] sm:$0x1] }
 0x5ab   : > { %v8960_v2 = vor.u32 %v8958_v49, %v8957_v8  ;;  %v8962_v53 = vrot.slane %v8957_v8, 4  ;;  %v8938_v25 = vshrl.u32 %v13147_v9, 16  ;;  %v8941_v23 = vshll.u32 %v13147_v9, 16 }
 0x5ac   : > { %v8981_v36 = vshrl.u32 %v13152_v29, 16  ;;  %v8984_v41 = vshll.u32 %v13152_v29, 16  ;;  %v9133_v12 = vsel %vm18795_vm1, %v8935_v20, %v9132_v42  ;;  %v8594_v16 = vadd.f32 %v18780_v34, %v8555_v59  ;;  %v9150_v59 = vld [vmem:[#allocation4 + $0xbc] sm:$0x1] }
 0x5ad   : > { %v8961_v63 = vsel %vm17116_vm6, %v8953_v32, %v8960_v2  ;;  %v9144_v5 = vsel %vm15506_vm2, %v8962_v53, %v9143_v55  ;;  %9134 = vst [vmem:[#allocation4 + $0x9c] sm:$0xf] %v9133_v12  ;;  %v8940_v30 = vrot.slane %v8938_v25, 7  ;;  %v19049_v38 = vld [vmem:[#allocation4 + $0x84] sm:$0xff]   ;;  %v8964_v10 = vshrl.u32 %v13150_v51, 16 }
 0x5ae   : > { %9142 = vst.msk [vmem:[#allocation4 + $0xac] sm:$0xf] %vm381_vm7, %v8961_v63  ;;  %9145 = vst [vmem:[#allocation4 + $0xb0] sm:$0x1] %v9144_v5  ;;  %v8983_v56 = vrot.slane %v8981_v36, 7  ;;  %v8936_v45 = vrot.slane %v8932_v15, 4  ;;  %14247 = vmatprep.mubr.msk.bf16.mxu0 %vm1737_vm4, %v19049_v38 }
 0x5af   : > { %v8943_v43 = vor.u32 %v8941_v23, %v8940_v30  ;;  %v8945_v27 = vrot.slane %v8940_v30, 4  ;;  %v8966_v14 = vrot.slane %v8964_v10, 7  ;;  %v8967_v46 = vshll.u32 %v13150_v51, 16  ;;  %14248 = vmatmul.mubr.msk.bf16.gmra.mrb[52].mxu0 %vm1737_vm4, %v19051_v35  ;;  %v676_v63 = vld [vmem:[#allocation4 + $0xcc] sm:$0x1]  ;;  %v15383_v5 = vld [vmem:[#allocation4] sm:$0xff]  }
 0x5b0   : > { %v8986_v39 = vor.u32 %v8984_v41, %v8983_v56  ;;  %v8628_v57 = vmax.f32 %v8596_v28, 0.0  ;;  %v8626_v60 = vmax.f32 %v8594_v16, 0.0  ;;  %v8987_v9 = vrot.slane %v8983_v56, 4  ;;  %v679_v56 = vld [vmem:[#allocation4 + $0x8] sm:$0x1] }
 0x5b1   : > { %v8944_v34 = vsel %vm17116_vm6, %v8936_v45, %v8943_v43  ;;  %v9137_v18 = vsel %vm15506_vm2, %v8945_v27, %v9136_v3  ;;  %v8969_v49 = vor.u32 %v8967_v46, %v8966_v14  ;;  %v8970_v29 = vrot.slane %v8966_v14, 4  ;;  %v19134_v16 = vld [vmem:[#allocation4 + $0x44] sm:$0x1]  ;;  %v19136_v3 = vld [vmem:[#allocation4 + $0x4c] sm:$0xf] }
 0x5b2   : > { %v9154_v61 = vsel %vm18795_vm1, %v8986_v39, %v9153_v54  ;;  %9135 = vst.msk [vmem:[#allocation4 + $0xa0] sm:$0xf] %vm381_vm7, %v8944_v34  ;;  %9138 = vst [vmem:[#allocation4 + $0xa4] sm:$0x1] %v9137_v18  ;;  %v13153_v62 = vpack.c.bf16 %v8628_v57, %v8628_v57  ;;  %v13151_v22 = vpack.c.bf16 %v8626_v60, %v8626_v60  ;;  %v677_v19 = vsel %vm15506_vm2, 0, %v676_v63 }
 0x5b3   : > { %9155 = vst [vmem:[#allocation4 + $0xc0] sm:$0xf] %v9154_v61  ;;  %v9147_v44 = vsel %vm18795_vm1, %v8969_v49, %v9146_v7  ;;  %678 = vst [vmem:[#allocation4 + $0xcc] sm:$0x1] %v677_v19  ;;  %v680_v28 = vsel %vm15567_vm9, 0, %v679_v56  ;;  %v11187_v60 = vrot.slane %v19134_v16, 5 }
 0x5b4   : > { %v8989_v13 = vshrl.u32 %v13153_v62, 16  ;;  %v8972_v15 = vshrl.u32 %v13151_v22, 16  ;;  %9148 = vst [vmem:[#allocation4 + $0xb4] sm:$0xf] %v9147_v44  ;;  %v8992_v17 = vshll.u32 %v13153_v62, 16  ;;  %v8975_v55 = vshll.u32 %v13151_v22, 16 }
 0x5b5   : > { %v19076_v12 = vld [vmem:[#allocation4 + $0xa8] sm:$0xff]   ;;  %681 = vst [vmem:[#allocation4 + $0x8] sm:$0x1] %v680_v28  ;;  %v19138_v54 = vld [vmem:[#allocation4 + $0x50] sm:$0x1]  ;;  %v11191_v34 = vrot.slane %v19136_v3, 5 }
 0x5b6   : > { %v8991_v8 = vrot.slane %v8989_v13, 7  ;;  %v8974_v42 = vrot.slane %v8972_v15, 7  ;;  %v19142_v10 = vld [vmem:[#allocation4 + $0x58] sm:$0xf]  ;;  %v11087_v43 = vld [vmem:[#allocation4 + $0x48] sm:$0xe] }
 0x5b7   : > { %v19147_v27 = vld [vmem:[#allocation4 + $0x5c] sm:$0x1]  ;;  %v11088_v14 = vld [vmem:[#allocation4 + $0x54] sm:$0xe]  ;;  %v19149_v46 = vld [vmem:[#allocation4 + $0x64] sm:$0xf] }
 0x5b8   : > { %v8994_v32 = vor.u32 %v8992_v17, %v8991_v8  ;;  %v8996_v20 = vrot.slane %v8991_v8, 4  ;;  %v8977_v2 = vor.u32 %v8975_v55, %v8974_v42  ;;  %v8979_v53 = vrot.slane %v8974_v42, 4  ;;  %v19153_v18 = vld [vmem:[#allocation4 + $0x68] sm:$0x1]  ;;  %v11090_v62 = vld [vmem:[#allocation4 + $0x6c] sm:$0xe] }
 0x5b9   : > { %v19066_v25 = vld [vmem:[#allocation4 + $0x9c] sm:$0xff]   ;;  %v12964_v7 = vrot.slane %v11087_v43, 9  ;;  %v11198_v49 = vrot.slane %v19142_v10, 5  ;;  %v19158_v22 = vld [vmem:[#allocation4 + $0x70] sm:$0xf]  ;;  %v11193_v13 = vrot.slane %v11191_v34, 4 }
 0x5ba   : > { %v8995_v0 = vsel %vm17116_vm6, %v8987_v9, %v8994_v32  ;;  %v9158_v23 = vsel %vm15506_vm2, %v8996_v20, %v9157_v11  ;;  %v8978_v36 = vsel %vm17116_vm6, %v8970_v29, %v8977_v2  ;;  %v9151_v41 = vsel %vm15506_vm2, %v8979_v53, %v9150_v59  ;;  %14251 = vmatprep.mubr.msk.bf16.mxu0 %vm1737_vm4, %v19066_v25  ;;  %v19163_v17 = vld [vmem:[#allocation4 + $0x7c] sm:$0xf]  ;;  %v11091_v11 = vld [vmem:[#allocation4 + $0x78] sm:$0xe]  ;;  %v19173_v59 = vld [vmem:[%s19929_s7 + $0x20] sm:$0xff]  }
 0x5bb   : > { %9156 = vst.msk [vmem:[#allocation4 + $0xc4] sm:$0xf] %vm381_vm7, %v8995_v0  ;;  %9159 = vst [vmem:[#allocation4 + $0xc8] sm:$0x1] %v9158_v23  ;;  %14252 = vmatmul.mubr.msk.bf16.gmra.mrb[56].mxu0 %vm1737_vm4, %v19076_v12  ;;  %v11194_v15 = vrot.slane %v19138_v54, 5  ;;  %v12965_v8 = vrot.slane %v11088_v14, 9  ;;  %v11192_v55 = vsel %vm16041_vm14, %v12964_v7, %v11191_v34 }
 0x5bc   : > { %9149 = vst.msk [vmem:[#allocation4 + $0xb8] sm:$0xf] %vm381_vm7, %v8978_v36  ;;  %9152 = vst [vmem:[#allocation4 + $0xbc] sm:$0x1] %v9151_v41  ;;  %v11200_v9 = vrot.slane %v11198_v49, 4  ;;  %v11201_v29 = vrot.slane %v19147_v27, 5 }
 0x5bd   : > { %v19175_v32 = vld [vmem:[#allocation4 + $0x74] sm:$0x1]  ;;  %v11195_v20 = vsel %vm16041_vm14, %v11193_v13, %v11194_v15  ;;  %v11199_v2 = vsel %vm16041_vm14, %v12965_v8, %v11198_v49  ;;  %v11205_v0 = vrot.slane %v19149_v46, 5  ;;  %v19182_v23 = vld [vmem:[#allocation4 + $0x80] sm:$0x1]  ;;  %v12967_v19 = vrot.slane %v11090_v62, 9 }
 0x5be   : > { %v19184_v36 = vld [vmem:[#allocation4 + $0x88] sm:$0xf]  ;;  %v19186_v41 = vcombine.low %v11192_v55, %v11195_v20  ;;  %v11202_v63 = vsel %vm16041_vm14, %v11200_v9, %v11201_v29  ;;  %v11092_v43 = vld [vmem:[#allocation4 + $0x84] sm:$0xe]  ;;  %v11093_v34 = vld [vmem:[#allocation4 + $0x90] sm:$0xe] }
 0x5bf   : > { %v19193_v56 = vcombine.low %v11199_v2, %v11202_v63  ;;  %v12968_v7 = vrot.slane %v11091_v11, 9  ;;  %v11226_v49 = vrot.slane %v19184_v36, 5  ;;  %v19216_v62 = vld [vmem:[#allocation4 + $0xa0] sm:$0xf]  ;;  %v12969_v8 = vrot.slane %v11092_v43, 9 }
 0x5c0   : > { %20128 = vst [vmem:[#allocation22_spill] sm:$0xff] %v19186_v41  ;;  %v11094_v11 = vld [vmem:[#allocation4 + $0x9c] sm:$0xe]  ;;  %v11095_v20 = vld [vmem:[#allocation4 + $0xa8] sm:$0xe] }
 0x5c1   : > { %20129 = vst [vmem:[#allocation21_spill] sm:$0xff] %v19193_v56  ;;  %v11228_v9 = vrot.slane %v11226_v49, 4  ;;  %v19225_v2 = vld [vmem:[#allocation4 + $0xa4] sm:$0x1] }
 0x5c2   : > { %v19088_v30 = vld [vmem:[#allocation4 + $0xc0] sm:$0xff]  }
 0x5c3   : > { %v19086_v51 = vld [vmem:[#allocation4 + $0xb4] sm:$0xff]  }
 0x5c4   : > { %14255 = vmatprep.mubr.msk.bf16.mxu0 %vm1737_vm4, %v19086_v51 }
 0x5c5   : > { %14256 = vmatmul.mubr.msk.bf16.gmra.mrb[60].mxu0 %vm1737_vm4, %v19088_v30 }
 0x5c6   : > { %14261 = vmatprep.mubr.msk.bf16.mxu0 %vm1737_vm4, %v15383_v5  ;;  %v11212_v5 = vrot.slane %v19158_v22, 5 }
 0x5c8   : > { %v11213_v14 = vsel %vm16041_vm14, %v12967_v19, %v11212_v5  ;;  %v11227_v19 = vsel %vm16041_vm14, %v12969_v8, %v11226_v49  ;;  %v19250_v49 = vld [vmem:[#allocation4 + $0xbc] sm:$0x1] }
 0x5cd   : > { %14262 = vmatmul.mubr.msk.bf16.vlgmr.msra.gmra.mrb[32].mxu0 %vm1737_vm4, %v18840_v47  ;;  %v19132_v47 = vld [vmem:[#allocation4 + $0x40] sm:$0xf] }
 0x5ce   : > { %14294 = vmatpush3.bf16.msra.mxu0 %v18845_v37  ;;  %14265 = vmatprep.mubr.msk.bf16.mxu0 %vm1737_vm4, %v18847_v31  ;;  %v11086_v37 = vld [vmem:[#allocation4 + $0x3c] sm:$0xe]  ;;  %v11184_v45 = vrot.slane %v19132_v47, 5 }
 0x5cf   : > { %14327 = vmatprep.subr.bf16.mxu0 %v19100_v58  ;;  %v12963_v39 = vrot.slane %v11086_v37, 9  ;;  %v11207_v37 = vrot.slane %v11205_v0, 4 }
 0x5d0   : > { %v11186_v57 = vrot.slane %v11184_v45, 4 }
 0x5d1   : > { %v11185_v61 = vsel %vm16041_vm14, %v12963_v39, %v11184_v45  ;;  %v11208_v45 = vrot.slane %v19153_v18, 5  ;;  %v19201_v39 = vld [vmem:[#allocation4 + $0x8c] sm:$0x1] }
 0x5d2   : > { %v11188_v44 = vsel %vm16041_vm14, %v11186_v57, %v11187_v60  ;;  %v11215_v57 = vrot.slane %v19175_v32, 5  ;;  %v11219_v60 = vrot.slane %v19163_v17, 5  ;;  %v11229_v29 = vrot.slane %v19201_v39, 5 }
 0x5d3   : > { %v19165_v42 = vcombine.low %v11185_v61, %v11188_v44  ;;  %v19208_v61 = vld [vmem:[#allocation4 + $0x94] sm:$0xf] }
 0x5d4   : > { %v11221_v15 = vrot.slane %v11219_v60, 4  ;;  %v11230_v43 = vsel %vm16041_vm14, %v11228_v9, %v11229_v29  ;;  %v19258_v9 = vld [vmem:[#allocation4 + $0xc4] sm:$0xf] }
 0x5d5   : > { %14266 = vmatmul.mubr.msk.bf16.gmra.mrb[36].mxu0 %vm1737_vm4, %v18896_v26  ;;  %20127 = vst [vmem:[#allocation8_spill] sm:$0xff] %v19165_v42 }
 0x5d6   : > { %14269 = vmatprep.mubr.msk.bf16.mxu0 %vm1737_vm4, %v18901_v48 }
 0x5dd   : > { %14270 = vmatmul.mubr.msk.bf16.gmra.mrb[40].mxu0 %vm1737_vm4, %v18922_v40 }
 0x5de   : > { %14273 = vmatprep.mubr.msk.bf16.mxu0 %vm1737_vm4, %v18926_v33 }
 0x5e5   : > { %14274 = vmatmul.mubr.msk.bf16.gmra.mrb[44].mxu0 %vm1737_vm4, %v18979_v24 }
 0x5e6   : > { %14277 = vmatprep.mubr.msk.bf16.mxu0 %vm1737_vm4, %v18985_v6 }
 0x5ed   : > { %14278 = vmatmul.mubr.msk.bf16.gmra.mrb[48].mxu0 %vm1737_vm4, %v19018_v52 }
 0x5ee   : > { %14281 = vmatprep.mubr.msk.bf16.mxu0 %vm1737_vm4, %v19022_v50 }
 0x5f5   : > { %14282 = vmatmul.mubr.msk.bf16.gmra.mrb[52].mxu0 %vm1737_vm4, %v19049_v38 }
 0x5f6   : > { %14285 = vmatprep.mubr.msk.bf16.mxu0 %vm1737_vm4, %v19051_v35 }
 0x5fd   : > { %14286 = vmatmul.mubr.msk.bf16.gmra.mrb[56].mxu0 %vm1737_vm4, %v19066_v25 }
 0x5fe   : > { %14289 = vmatprep.mubr.msk.bf16.mxu0 %vm1737_vm4, %v19076_v12 }
 0x605   : > { %14290 = vmatmul.mubr.msk.bf16.gmra.mrb[60].mxu0 %vm1737_vm4, %v19086_v51 }
 0x606   : > { %14295 = vmatprep.mubr.msk.bf16.mxu0 %vm1737_vm4, %v18847_v31  ;;  %v11089_v31 = vld [vmem:[#allocation4 + $0x60] sm:$0xe] }
 0x607   : > { %v12966_v53 = vrot.slane %v11089_v31, 9  ;;  %v19214_v31 = vld [vmem:[#allocation4 + $0x98] sm:$0x1] }
 0x609   : > { %v11206_v28 = vsel %vm16041_vm14, %v12966_v53, %v11205_v0  ;;  %v19227_v53 = vld [vmem:[#allocation4 + $0xac] sm:$0xf]  ;;  %v11220_v0 = vsel %vm16041_vm14, %v12968_v7, %v11219_v60  ;;  %v12971_v7 = vrot.slane %v11094_v11, 9  ;;  %v12972_v11 = vrot.slane %v11095_v20, 9 }
 0x60a   : > { %v11247_v8 = vrot.slane %v19227_v53, 5 }
 0x60c   : > { %v11248_v20 = vsel %vm16041_vm14, %v12972_v11, %v11247_v8 }
 0x60d   : > { %14296 = vmatmul.mubr.msk.bf16.vlgmr.msra.gmra.mrb[32].mxu0 %vm1737_vm4, %v18896_v26  ;;  %v11214_v26 = vrot.slane %v11212_v5, 4  ;;  %v11233_v5 = vrot.slane %v19208_v61, 5 }
 0x60e   : > { %14328 = vmatpush3.bf16.msra.mxu0 %v19100_v58  ;;  %14299 = vmatprep.mubr.msk.bf16.mxu0 %vm1737_vm4, %v18901_v48  ;;  %v11209_v58 = vsel %vm16041_vm14, %v11207_v37, %v11208_v45  ;;  %v11222_v48 = vrot.slane %v19182_v23, 5  ;;  %v19238_v37 = vld [vmem:[#allocation4 + $0xb8] sm:$0xf] }
 0x60f   : > { %14361 = vmatprep.subr.bf16.mxu0 %v19173_v59  ;;  %v19218_v44 = vcombine.low %v11206_v28, %v11209_v58  ;;  %v11216_v13 = vsel %vm16041_vm14, %v11214_v26, %v11215_v57  ;;  %v19236_v28 = vld [vmem:[#allocation4 + $0xb0] sm:$0x1]  ;;  %v11240_v26 = vrot.slane %v19216_v62, 5  ;;  %v19245_v57 = vcombine.low %v11227_v19, %v11230_v43 }
 0x610   : > { %v19222_v55 = vcombine.low %v11213_v14, %v11216_v13  ;;  %v11223_v63 = vsel %vm16041_vm14, %v11221_v15, %v11222_v48  ;;  %v12970_v14 = vrot.slane %v11093_v34, 9  ;;  %v11235_v60 = vrot.slane %v11233_v5, 4  ;;  %v11096_v48 = vld [vmem:[#allocation4 + $0xb4] sm:$0xe] }
 0x611   : > { %20130 = vst [vmem:[#allocation23_spill] sm:$0xff] %v19218_v44  ;;  %v19240_v45 = vcombine.low %v11220_v0, %v11223_v63  ;;  %20133 = vst [vmem:[#allocation27_spill] sm:$0xff] %v19245_v57  ;;  %v11236_v58 = vrot.slane %v19214_v31, 5  ;;  %v11242_v15 = vrot.slane %v11240_v26, 4  ;;  %v11243_v34 = vrot.slane %v19225_v2, 5 }
 0x612   : > { %20131 = vst [vmem:[#allocation25_spill] sm:$0xff] %v19222_v55  ;;  %v11234_v13 = vsel %vm16041_vm14, %v12970_v14, %v11233_v5  ;;  %v11254_v0 = vrot.slane %v19238_v37, 5  ;;  %v11249_v5 = vrot.slane %v11247_v8, 4  ;;  %v11250_v43 = vrot.slane %v19236_v28, 5  ;;  %v19270_v14 = vld [vmem:[#allocation4 + $0xc8] sm:$0x1] }
 0x613   : > { %20132 = vst [vmem:[#allocation26_spill] sm:$0xff] %v19240_v45  ;;  %v11237_v29 = vsel %vm16041_vm14, %v11235_v60, %v11236_v58  ;;  %v11244_v19 = vsel %vm16041_vm14, %v11242_v15, %v11243_v34  ;;  %v12973_v60 = vrot.slane %v11096_v48, 9 }
 0x614   : > { %v19265_v63 = vcombine.low %v11234_v13, %v11237_v29  ;;  %v11256_v58 = vrot.slane %v11254_v0, 4  ;;  %v11562_v13 = vrot.slane %v19258_v9, 5 }
 0x615   : > { %14300 = vmatmul.mubr.msk.bf16.gmra.mrb[36].mxu0 %vm1737_vm4, %v18922_v40  ;;  %v11241_v40 = vsel %vm16041_vm14, %v12971_v7, %v11240_v26  ;;  %v11257_v26 = vrot.slane %v19250_v49, 5  ;;  %v11251_v7 = vsel %vm16041_vm14, %v11249_v5, %v11250_v43  ;;  %v11255_v34 = vsel %vm16041_vm14, %v12973_v60, %v11254_v0  ;;  %v9881_v5 = vld [vmem:[#allocation4] sm:$0xf]  ;;  %v19303_v43 = vld [vmem:[#allocation4 + $0x4] sm:$0xf] }
 0x616   : > { %14303 = vmatprep.mubr.msk.bf16.mxu0 %vm1737_vm4, %v18926_v33  ;;  %20134 = vst [vmem:[#allocation24_spill] sm:$0xff] %v19265_v63  ;;  %v11097_v33 = vld [vmem:[#allocation4 + $0xc0] sm:$0xe]  ;;  %v19272_v57 = vcombine.low %v11241_v40, %v11244_v19  ;;  %v19280_v15 = vcombine.low %v11248_v20, %v11251_v7  ;;  %v11564_v19 = vrot.slane %v11562_v13, 4  ;;  %v19311_v60 = vld [vmem:[#allocation4 + $0x10] sm:$0xf] }
 0x617   : > { %v11258_v29 = vsel %vm16041_vm14, %v11256_v58, %v11257_v26  ;;  %v13009_v40 = vrot.slane %v11097_v33, 9  ;;  %v9949_v33 = vshrl.u32 %v19303_v43, 16  ;;  %20139 = vst [vmem:[#allocation13_spill] sm:$0xff] %v19311_v60  ;;  %v19317_v7 = vld [vmem:[#allocation4 + $0x28] sm:$0xf] }
 0x618   : > { %20135 = vst [vmem:[#allocation18_spill] sm:$0xff] %v19272_v57  ;;  %20136 = vst [vmem:[#allocation9_spill] sm:$0xff] %v19280_v15  ;;  %v19286_v48 = vcombine.low %v11255_v34, %v11258_v29  ;;  %v11565_v57 = vrot.slane %v19270_v14, 5  ;;  %v9973_v34 = vshrl.u32 %v19311_v60, 16 }
 0x619   : > { %v11563_v8 = vsel %vm16041_vm14, %v13009_v40, %v11562_v13  ;;  %v9951_v20 = vrot.slane %v9949_v33, 4  ;;  %20141 = vst [vmem:[#allocation12_spill] sm:$0xff] %v19317_v7  ;;  %v9884_v13 = vld [vmem:[#allocation4 + $0xc] sm:$0xf]  ;;  %v9887_v40 = vld [vmem:[#allocation4 + $0x18] sm:$0xf] }
 0x61a   : > { %20137 = vst [vmem:[#allocation10_spill] sm:$0xff] %v19286_v48  ;;  %v11566_v11 = vsel %vm16041_vm14, %v11564_v19, %v11565_v57  ;;  %v9939_v57 = vshll.u32 %v9881_v5, 16  ;;  %v9963_v33 = vshll.u32 %v9884_v13, 16  ;;  %v19335_v48 = vld [vmem:[#allocation4 + $0x14] sm:$0x1]  ;;  %v9984_v15 = vshrl.u32 %v9887_v40, 16 }
 0x61b   : > { %v19297_v0 = vcombine.low %v11563_v8, %v11566_v11  ;;  %v10017_v8 = vshll.u32 %v19317_v7, 16  ;;  %20143 = vst [vmem:[#allocation15_spill] sm:$0xff] %v19335_v48  ;;  %v9987_v63 = vshll.u32 %v9887_v40, 16 }
 0x61c   : > { %v9941_v58 = vrot.slane %v9939_v57, 5  ;;  %v9890_v57 = vld [vmem:[#allocation4 + $0x24] sm:$0xf]  ;;  %v9986_v40 = vrot.slane %v9984_v15, 4 }
 0x61d   : > { %14304 = vmatmul.mubr.msk.bf16.gmra.mrb[40].mxu0 %vm1737_vm4, %v18979_v24  ;;  %20138 = vst [vmem:[#allocation14_spill] sm:$0xff] %v19297_v0  ;;  %v9936_v24 = vshrl.u32 %v9881_v5, 16 }
 0x61e   : > { %14307 = vmatprep.mubr.msk.bf16.mxu0 %vm1737_vm4, %v18985_v6  ;;  %v9945_v6 = vshll.u32 %v19303_v43, 16 }
 0x620   : > { %v19315_v26 = vrot.slane %v9945_v6, 5  ;;  %v9960_v6 = vshrl.u32 %v9884_v13, 16 }
 0x622   : > { %v9952_v5 = vor.u32 %v9951_v20, %v19315_v26  ;;  %v19339_v20 = vrot.slane %v10017_v8, 5  ;;  %v9962_v13 = vrot.slane %v9960_v6, 4  ;;  %v19347_v8 = vld [vmem:[#allocation4 + $0x34] sm:$0xf]  ;;  %v20150_v4 = vld [vmem:[#allocation15_spill] sm:$0xff] }
 0x623   : > { %20144 = vst [vmem:[#allocation16_spill] sm:$0xff] %v19347_v8 }
 0x624   : > { %v9953_v56 = vrot.slane %v9952_v5, 4  ;;  %v19352_v5 = vld [vmem:[#allocation4 + $0x2c] sm:$0x1] }
 0x625   : > { %14308 = vmatmul.mubr.msk.bf16.gmra.mrb[44].mxu0 %vm1737_vm4, %v19018_v52  ;;  %v19313_v52 = vld [vmem:[#allocation4 + $0x1c] sm:$0xf]  ;;  %20145 = vst [vmem:[#allocation6_spill] sm:$0xff] %v19352_v5  ;;  %v10027_v1 = vshll.u32 %v19352_v5, 16 }
 0x626   : > { %14311 = vmatprep.mubr.msk.bf16.mxu0 %vm1737_vm4, %v19022_v50  ;;  %20140 = vst [vmem:[#allocation11_spill] sm:$0xff] %v19313_v52  ;;  %v9938_v50 = vrot.slane %v9936_v24, 4  ;;  %v9993_v29 = vshll.u32 %v19313_v52, 16  ;;  %v9997_v19 = vshrl.u32 %v19313_v52, 16  ;;  %v9979_v52 = vshll.u32 %v19335_v48, 16  ;;  %v15386_v48 = vld [vmem:[#allocation4 + $0xcc] sm:$0xff]  }
 0x628   : > { %v9942_v11 = vor.u32 %v9941_v58, %v9938_v50  ;;  %v19337_v45 = vrot.slane %v9993_v29, 5  ;;  %v9999_v55 = vrot.slane %v9997_v19, 4  ;;  %v10008_v50 = vshrl.u32 %v9890_v57, 16  ;;  %v19345_v29 = vld [vmem:[#allocation4 + $0x20] sm:$0x1] }
 0x629   : > { %v10011_v58 = vshll.u32 %v9890_v57, 16  ;;  %v9989_v19 = vrot.slane %v9987_v63, 5 }
 0x62a   : > { %v9943_v44 = vrot.slane %v9942_v11, 4  ;;  %v10000_v11 = vor.u32 %v9999_v55, %v19337_v45  ;;  %v10045_v55 = vshrl.u32 %v19347_v8, 16 }
 0x62b   : > { %v10013_v57 = vrot.slane %v10011_v58, 5  ;;  %v9990_v58 = vor.u32 %v9989_v19, %v9986_v40 }
 0x62d   : > { %14312 = vmatmul.mubr.msk.bf16.gmra.mrb[48].mxu0 %vm1737_vm4, %v19049_v38  ;;  %v19319_v38 = vld [vmem:[#allocation4 + $0x8] sm:$0x1] }
 0x62e   : > { %14315 = vmatprep.mubr.msk.bf16.mxu0 %vm1737_vm4, %v19051_v35  ;;  %20142 = vst [vmem:[#allocation17_spill] sm:$0xff] %v19319_v38  ;;  %v9969_v35 = vshll.u32 %v19311_v60, 16  ;;  %v9955_v24 = vshll.u32 %v19319_v38, 16  ;;  %v10003_v60 = vshll.u32 %v19345_v29, 16 }
 0x630   : > { %v19333_v0 = vrot.slane %v9969_v35, 5  ;;  %v9957_v41 = vrot.slane %v9955_v24, 5  ;;  %v9965_v35 = vrot.slane %v9963_v33, 5  ;;  %v10010_v24 = vrot.slane %v10008_v50, 4 }
 0x632   : > { %v9958_v15 = vsel %vm16060_vm15, %v9953_v56, %v9957_v41  ;;  %v9966_v33 = vor.u32 %v9965_v35, %v9962_v13  ;;  %v10014_v38 = vor.u32 %v10013_v57, %v10010_v24  ;;  %v10065_v41 = vshll.u32 %v19132_v47, 16  ;;  %v19366_v35 = vld [vmem:[#allocation4 + $0x38] sm:$0x1] }
 0x633   : > { %v10001_v56 = vrot.slane %v10000_v11, 4  ;;  %v10005_v57 = vrot.slane %v10003_v60, 5  ;;  %v9991_v11 = vrot.slane %v9990_v58, 4  ;;  %v10089_v58 = vshll.u32 %v19136_v3, 16 }
 0x634   : > { %v9967_v5 = vrot.slane %v9966_v33, 4 }
 0x635   : > { %14316 = vmatmul.mubr.msk.bf16.gmra.mrb[52].mxu0 %vm1737_vm4, %v19066_v25  ;;  %v10021_v25 = vshrl.u32 %v19317_v7, 16  ;;  %v9893_v7 = vld [vmem:[#allocation4 + $0x30] sm:$0xf] }
 0x636   : > { %14319 = vmatprep.mubr.msk.bf16.mxu0 %vm1737_vm4, %v19076_v12  ;;  %v9975_v12 = vrot.slane %v9973_v34, 4  ;;  %v10035_v6 = vshll.u32 %v9893_v7, 16 }
 0x637   : > { %v10023_v42 = vrot.slane %v10021_v25, 4  ;;  %v10032_v25 = vshrl.u32 %v9893_v7, 16 }
 0x638   : > { %v9976_v34 = vor.u32 %v9975_v12, %v19333_v0  ;;  %v9981_v12 = vrot.slane %v9979_v52, 5  ;;  %v10037_v13 = vrot.slane %v10035_v6, 5  ;;  %v10006_v6 = vsel %vm16060_vm15, %v10001_v56, %v10005_v57 }
 0x639   : > { %v10024_v63 = vor.u32 %v10023_v42, %v19339_v20  ;;  %v10069_v42 = vshrl.u32 %v19132_v47, 16  ;;  %v10034_v7 = vrot.slane %v10032_v25, 4  ;;  %v9899_v47 = vld [vmem:[#allocation4 + $0x48] sm:$0xf]  ;;  %v10015_v25 = vrot.slane %v10014_v38, 4 }
 0x63a   : > { %v9977_v50 = vrot.slane %v9976_v34, 4  ;;  %v10047_v34 = vrot.slane %v10045_v55, 4  ;;  %v10080_v55 = vshrl.u32 %v9899_v47, 16  ;;  %v9972_v38 = vsel %vm16060_vm15, %v9967_v5, %v19333_v0 }
 0x63b   : > { %v10025_v52 = vrot.slane %v10024_v63, 4  ;;  %v10071_v63 = vrot.slane %v10069_v42, 4  ;;  %v10038_v33 = vor.u32 %v10037_v13, %v10034_v7  ;;  %v10020_v42 = vsel %vm16060_vm15, %v10015_v25, %v19339_v20  ;;  %v9905_v20 = vld [vmem:[#allocation4 + $0x60] sm:$0xf] }
 0x63c   : > { %v9982_v24 = vsel %vm16060_vm15, %v9977_v50, %v9981_v12  ;;  %v10083_v50 = vshll.u32 %v9899_v47, 16  ;;  %v19408_v57 = vrot.slane %v10089_v58, 5 }
 0x63d   : > { %14320 = vmatmul.mubr.msk.bf16.gmra.mrb[56].mxu0 %vm1737_vm4, %v19086_v51  ;;  %v9948_v51 = vsel %vm16060_vm15, %v9943_v44, %v19315_v26  ;;  %v9896_v44 = vld [vmem:[#allocation4 + $0x3c] sm:$0xf]  ;;  %v10039_v5 = vrot.slane %v10038_v33, 4  ;;  %v10137_v33 = vshll.u32 %v19149_v46, 16 }
 0x63e   : > { %14323 = vmatprep.mubr.msk.bf16.mxu0 %vm1737_vm4, %v19088_v30  ;;  %v10041_v30 = vshll.u32 %v19347_v8, 16  ;;  %v12885_v26 = vcombine.low %v9948_v51, %v9958_v15  ;;  %v10056_v40 = vshrl.u32 %v9896_v44, 16  ;;  %v10059_v19 = vshll.u32 %v9896_v44, 16 }
 0x63f   : > { %v10029_v51 = vrot.slane %v10027_v1, 5  ;;  %v19374_v15 = vrot.slane %v10065_v41, 5  ;;  %v10093_v44 = vshrl.u32 %v19136_v3, 16  ;;  %v9996_v41 = vsel %vm16060_vm15, %v9991_v11, %v19337_v45  ;;  %v19403_v3 = vld [vmem:[%s19929_s7 + $0x38] sm:$0xff]  }
 0x640   : > { %v19368_v8 = vrot.slane %v10041_v30, 5  ;;  %v10051_v30 = vshll.u32 %v19366_v35, 16  ;;  %v10058_v1 = vrot.slane %v10056_v40, 4  ;;  %v10061_v12 = vrot.slane %v10059_v19, 5 }
 0x641   : > { %v10072_v56 = vor.u32 %v10071_v63, %v19374_v15  ;;  %v19396_v7 = vcombine.low %v9996_v41, %v10006_v6  ;;  %v10075_v40 = vshll.u32 %v19134_v16, 16  ;;  %v10082_v19 = vrot.slane %v10080_v55, 4 }
 0x642   : > { %v10048_v60 = vor.u32 %v10047_v34, %v19368_v8  ;;  %v10053_v13 = vrot.slane %v10051_v30, 5  ;;  %v10062_v45 = vor.u32 %v10061_v12, %v10058_v1  ;;  %v10113_v63 = vshll.u32 %v19142_v10, 16 }
 0x643   : > { %v10073_v11 = vrot.slane %v10072_v56, 4  ;;  %v10117_v16 = vshrl.u32 %v19142_v10, 16  ;;  %v10128_v6 = vshrl.u32 %v9905_v20, 16  ;;  %v10141_v30 = vshrl.u32 %v19149_v46, 16 }
 0x644   : > { %v10049_v34 = vrot.slane %v10048_v60, 4  ;;  %v10063_v1 = vrot.slane %v10062_v45, 4  ;;  %v10077_v12 = vrot.slane %v10075_v40, 5  ;;  %v19429_v56 = vrot.slane %v10137_v33, 5 }
 0x645   : > { %14324 = vmatmul.mubr.msk.bf16.gmra.mrb[60].mxu0 %vm1737_vm4, %v15386_v48  ;;  %v10030_v48 = vsel %vm16060_vm15, %v10025_v52, %v10029_v51  ;;  %v9902_v52 = vld [vmem:[#allocation4 + $0x54] sm:$0xf]  ;;  %v10095_v51 = vrot.slane %v10093_v44, 4  ;;  %v19427_v44 = vrot.slane %v10113_v63, 5  ;;  %v10119_v41 = vrot.slane %v10117_v16, 4 }
 0x646   : > { %14329 = vmatprep.mubr.msk.bf16.mxu0 %vm1737_vm4, %v12885_v26  ;;  %v19387_v26 = vcombine.low %v9972_v38, %v9982_v24  ;;  %v19398_v0 = vcombine.low %v10020_v42, %v10030_v48  ;;  %v10085_v24 = vrot.slane %v10083_v50, 5  ;;  %v10104_v47 = vshrl.u32 %v9902_v52, 16  ;;  %v9911_v16 = vld [vmem:[#allocation4 + $0x78] sm:$0xf] }
 0x647   : > { %v10107_v25 = vshll.u32 %v9902_v52, 16  ;;  %v10131_v48 = vshll.u32 %v9905_v20, 16  ;;  %v10054_v60 = vsel %vm16060_vm15, %v10049_v34, %v10053_v13  ;;  %v10096_v10 = vor.u32 %v10095_v51, %v19408_v57 }
 0x648   : > { %v10086_v55 = vor.u32 %v10085_v24, %v10082_v19  ;;  %v10099_v38 = vshll.u32 %v19138_v54, 16  ;;  %v10106_v50 = vrot.slane %v10104_v47, 4  ;;  %v10078_v46 = vsel %vm16060_vm15, %v10073_v11, %v10077_v12 }
 0x649   : > { %v10109_v58 = vrot.slane %v10107_v25, 5  ;;  %v10130_v42 = vrot.slane %v10128_v6, 4  ;;  %v10143_v52 = vrot.slane %v10141_v30, 4  ;;  %v10161_v34 = vshll.u32 %v19158_v22, 16 }
 0x64a   : > { %v10165_v54 = vshrl.u32 %v19158_v22, 16  ;;  %v10068_v45 = vsel %vm16060_vm15, %v10063_v1, %v19374_v15  ;;  %v10087_v40 = vrot.slane %v10086_v55, 4  ;;  %v10097_v19 = vrot.slane %v10096_v10, 4 }
 0x64b   : > { %v19442_v20 = vcombine.low %v10068_v45, %v10078_v46  ;;  %v10101_v24 = vrot.slane %v10099_v38, 5  ;;  %v10110_v11 = vor.u32 %v10109_v58, %v10106_v50  ;;  %v10120_v22 = vor.u32 %v10119_v41, %v19427_v44  ;;  %v9914_v45 = vld [vmem:[#allocation4 + $0x84] sm:$0xf] }
 0x64c   : > { %v10144_v63 = vor.u32 %v10143_v52, %v19429_v56  ;;  %v19446_v6 = vrot.slane %v10161_v34, 5  ;;  %v10167_v15 = vrot.slane %v10165_v54, 4  ;;  %v10189_v33 = vshrl.u32 %v19163_v17, 16 }
 0x64d   : > { %14330 = vmatmul.mubr.msk.bf16.vlgmr.msra.gmra.mrb[32].mxu0 %vm1737_vm4, %v19387_v26  ;;  %v10092_v30 = vsel %vm16060_vm15, %v10087_v40, %v19408_v57  ;;  %v10147_v1 = vshll.u32 %v19153_v18, 16  ;;  %v10176_v10 = vshrl.u32 %v9911_v16, 16  ;;  %v10179_v38 = vshll.u32 %v9911_v16, 16 }
 0x64e   : > { %14362 = vmatpush3.bf16.msra.mxu0 %v19173_v59  ;;  %14333 = vmatprep.mubr.msk.bf16.mxu0 %vm1737_vm4, %v19396_v7  ;;  %v10044_v59 = vsel %vm16060_vm15, %v10039_v5, %v19368_v8  ;;  %v10133_v8 = vrot.slane %v10131_v48, 5  ;;  %v9908_v5 = vld [vmem:[#allocation4 + $0x6c] sm:$0xf]  ;;  %v10185_v48 = vshll.u32 %v19163_v17, 16  ;;  %v10111_v50 = vrot.slane %v10110_v11, 4 }
 0x64f   : > { %14395 = vmatprep.subr.bf16.mxu0 %v19403_v3  ;;  %v19431_v13 = vcombine.low %v10044_v59, %v10054_v60  ;;  %v10152_v51 = vshrl.u32 %v9908_v5, 16  ;;  %v10155_v47 = vshll.u32 %v9908_v5, 16  ;;  %v10102_v59 = vsel %vm16060_vm15, %v10097_v19, %v10101_v24 }
 0x650   : > { %v10134_v25 = vor.u32 %v10133_v8, %v10130_v42  ;;  %v10123_v60 = vshll.u32 %v19147_v27, 16  ;;  %v10121_v46 = vrot.slane %v10120_v22, 4  ;;  %v10145_v41 = vrot.slane %v10144_v63, 4 }
 0x651   : > { %v10154_v12 = vrot.slane %v10152_v51, 4  ;;  %v10157_v55 = vrot.slane %v10155_v47, 5  ;;  %v19457_v17 = vcombine.low %v10092_v30, %v10102_v59  ;;  %v10168_v42 = vor.u32 %v10167_v15, %v19446_v6 }
 0x652   : > { %v10135_v58 = vrot.slane %v10134_v25, 4  ;;  %v19460_v57 = vrot.slane %v10185_v48, 5  ;;  %v10191_v8 = vrot.slane %v10189_v33, 4  ;;  %v10125_v27 = vrot.slane %v10123_v60, 5  ;;  %v9917_v25 = vld [vmem:[#allocation4 + $0x90] sm:$0xf] }
 0x653   : > { %v10149_v18 = vrot.slane %v10147_v1, 5  ;;  %v10158_v52 = vor.u32 %v10157_v55, %v10154_v12  ;;  %v10171_v5 = vshll.u32 %v19175_v32, 16  ;;  %v10178_v34 = vrot.slane %v10176_v10, 4 }
 0x654   : > { %v10181_v54 = vrot.slane %v10179_v38, 5  ;;  %v10116_v40 = vsel %vm16060_vm15, %v10111_v50, %v19427_v44  ;;  %v10126_v19 = vsel %vm16060_vm15, %v10121_v46, %v10125_v27  ;;  %v10140_v24 = vsel %vm16060_vm15, %v10135_v58, %v19429_v56 }
 0x655   : > { %14334 = vmatmul.mubr.msk.bf16.gmra.mrb[36].mxu0 %vm1737_vm4, %v19398_v0  ;;  %v10150_v51 = vsel %vm16060_vm15, %v10145_v41, %v10149_v18  ;;  %v10169_v47 = vrot.slane %v10168_v42, 4  ;;  %v10192_v32 = vor.u32 %v10191_v8, %v19460_v57  ;;  %v10209_v11 = vshll.u32 %v19184_v36, 16 }
 0x656   : > { %14337 = vmatprep.mubr.msk.bf16.mxu0 %vm1737_vm4, %v19431_v13  ;;  %v10213_v22 = vshrl.u32 %v19184_v36, 16  ;;  %v10200_v63 = vshrl.u32 %v9914_v45, 16  ;;  %v10203_v44 = vshll.u32 %v9914_v45, 16  ;;  %v10233_v16 = vshll.u32 %v19208_v61, 16 }
 0x657   : > { %v10237_v15 = vshrl.u32 %v19208_v61, 16  ;;  %v10159_v48 = vrot.slane %v10158_v52, 4  ;;  %v10173_v33 = vrot.slane %v10171_v5, 5  ;;  %v10182_v56 = vor.u32 %v10181_v54, %v10178_v34  ;;  %v9920_v52 = vld [vmem:[#allocation4 + $0x9c] sm:$0xf] }
 0x658   : > { %v10195_v30 = vshll.u32 %v19182_v23, 16  ;;  %v19483_v59 = vcombine.low %v10116_v40, %v10126_v19  ;;  %v19485_v60 = vcombine.low %v10140_v24, %v10150_v51  ;;  %v10224_v1 = vshrl.u32 %v9917_v25, 16  ;;  %v9923_v40 = vld [vmem:[#allocation4 + $0xa8] sm:$0xf] }
 0x659   : > { %v10227_v12 = vshll.u32 %v9917_v25, 16  ;;  %v10174_v36 = vsel %vm16060_vm15, %v10169_v47, %v10173_v33  ;;  %v10193_v55 = vrot.slane %v10192_v32, 4  ;;  %v10211_v10 = vrot.slane %v10209_v11, 5 }
 0x65a   : > { %v10215_v38 = vrot.slane %v10213_v22, 4  ;;  %v10202_v61 = vrot.slane %v10200_v63, 4  ;;  %v10205_v50 = vrot.slane %v10203_v44, 5  ;;  %v10235_v46 = vrot.slane %v10233_v16, 5 }
 0x65b   : > { %v10239_v58 = vrot.slane %v10237_v15, 4  ;;  %v10164_v23 = vsel %vm16060_vm15, %v10159_v48, %v19446_v6  ;;  %v10183_v41 = vrot.slane %v10182_v56, 4  ;;  %v10197_v42 = vrot.slane %v10195_v30, 5 }
 0x65c   : > { %v19496_v8 = vcombine.low %v10164_v23, %v10174_v36  ;;  %v10226_v27 = vrot.slane %v10224_v1, 4  ;;  %v10229_v18 = vrot.slane %v10227_v12, 5  ;;  %v10216_v34 = vor.u32 %v10215_v38, %v10211_v10 }
 0x65d   : > { %14338 = vmatmul.mubr.msk.bf16.gmra.mrb[40].mxu0 %vm1737_vm4, %v19442_v20  ;;  %v10198_v5 = vsel %vm16060_vm15, %v10193_v55, %v10197_v42  ;;  %v10257_v54 = vshll.u32 %v19216_v62, 16  ;;  %v10261_v45 = vshrl.u32 %v19216_v62, 16  ;;  %v10206_v19 = vor.u32 %v10205_v50, %v10202_v61  ;;  %v9926_v61 = vld [vmem:[#allocation4 + $0xb4] sm:$0xf] }
 0x65e   : > { %14341 = vmatprep.mubr.msk.bf16.mxu0 %vm1737_vm4, %v19457_v17  ;;  %v10240_v24 = vor.u32 %v10239_v58, %v10235_v46  ;;  %v10281_v6 = vshll.u32 %v19227_v53, 16  ;;  %v10285_v51 = vshrl.u32 %v19227_v53, 16  ;;  %v10188_v47 = vsel %vm16060_vm15, %v10183_v41, %v19460_v57 }
 0x65f   : > { %v10219_v32 = vshll.u32 %v19201_v39, 16  ;;  %v10248_v11 = vshrl.u32 %v9920_v52, 16  ;;  %v10251_v22 = vshll.u32 %v9920_v52, 16  ;;  %v10230_v25 = vor.u32 %v10229_v18, %v10226_v27 }
 0x660   : > { %v10243_v63 = vshll.u32 %v19214_v31, 16  ;;  %v10272_v44 = vshrl.u32 %v9923_v40, 16  ;;  %v10275_v62 = vshll.u32 %v9923_v40, 16  ;;  %v19509_v16 = vcombine.low %v10188_v47, %v10198_v5 }
 0x661   : > { %v10217_v15 = vrot.slane %v10216_v34, 4  ;;  %v10259_v48 = vrot.slane %v10257_v54, 5  ;;  %v10263_v33 = vrot.slane %v10261_v45, 4  ;;  %v10207_v53 = vrot.slane %v10206_v19, 4 }
 0x662   : > { %v10241_v56 = vrot.slane %v10240_v24, 4  ;;  %v10283_v57 = vrot.slane %v10281_v6, 5  ;;  %v10287_v30 = vrot.slane %v10285_v51, 4  ;;  %v10221_v39 = vrot.slane %v10219_v32, 5 }
 0x663   : > { %v10250_v1 = vrot.slane %v10248_v11, 4  ;;  %v10253_v31 = vrot.slane %v10251_v22, 5  ;;  %v10231_v12 = vrot.slane %v10230_v25, 4  ;;  %v10245_v36 = vrot.slane %v10243_v63, 5 }
 0x664   : > { %v10274_v55 = vrot.slane %v10272_v44, 4  ;;  %v10277_v38 = vrot.slane %v10275_v62, 5  ;;  %v10222_v50 = vsel %vm16060_vm15, %v10217_v15, %v10221_v39  ;;  %v10264_v58 = vor.u32 %v10263_v33, %v10259_v48 }
 0x665   : > { %14342 = vmatmul.mubr.msk.bf16.gmra.mrb[44].mxu0 %vm1737_vm4, %v19483_v59  ;;  %v10305_v23 = vshll.u32 %v19238_v37, 16  ;;  %v10309_v41 = vshrl.u32 %v19238_v37, 16  ;;  %v10212_v42 = vsel %vm16060_vm15, %v10207_v53, %v10211_v10  ;;  %v10246_v27 = vsel %vm16060_vm15, %v10241_v56, %v10245_v36 }
 0x666   : > { %14345 = vmatprep.mubr.msk.bf16.mxu0 %vm1737_vm4, %v19485_v60  ;;  %v10288_v18 = vor.u32 %v10287_v30, %v10283_v57  ;;  %v10254_v52 = vor.u32 %v10253_v31, %v10250_v1  ;;  %v10267_v5 = vshll.u32 %v19225_v2, 16  ;;  %v10296_v34 = vshrl.u32 %v9926_v61, 16 }
 0x667   : > { %v10299_v54 = vshll.u32 %v9926_v61, 16  ;;  %v19524_v45 = vcombine.low %v10212_v42, %v10222_v50  ;;  %v10236_v40 = vsel %vm16060_vm15, %v10231_v12, %v10235_v46  ;;  %v10278_v19 = vor.u32 %v10277_v38, %v10274_v55 }
 0x668   : > { %v10291_v37 = vshll.u32 %v19236_v28, 16  ;;  %v19529_v24 = vcombine.low %v10236_v40, %v10246_v27  ;;  %v10265_v10 = vrot.slane %v10264_v58, 4  ;;  %v10307_v6 = vrot.slane %v10305_v23, 5 }
 0x669   : > { %v10311_v51 = vrot.slane %v10309_v41, 4  ;;  %v10289_v47 = vrot.slane %v10288_v18, 4  ;;  %v10255_v2 = vrot.slane %v10254_v52, 4  ;;  %v10269_v32 = vrot.slane %v10267_v5, 5 }
 0x66a   : > { %v10298_v11 = vrot.slane %v10296_v34, 4  ;;  %v10301_v22 = vrot.slane %v10299_v54, 5  ;;  %v10279_v46 = vrot.slane %v10278_v19, 4  ;;  %v10293_v25 = vrot.slane %v10291_v37, 5 }
 0x66b   : > { %v10270_v28 = vsel %vm16060_vm15, %v10265_v10, %v10269_v32  ;;  %v10312_v63 = vor.u32 %v10311_v51, %v10307_v6  ;;  %v10260_v62 = vsel %vm16060_vm15, %v10255_v2, %v10259_v48  ;;  %v10315_v33 = vshll.u32 %v19250_v49, 16  ;;  %v730_v48 = vld [vmem:[#allocation4 + $0xd4] sm:$0x1]  ;;  %v11081_v51 = vld [vmem:[#allocation4] sm:$0xe] }
 0x66c   : > { %v10294_v44 = vsel %vm16060_vm15, %v10289_v47, %v10293_v25  ;;  %v10302_v15 = vor.u32 %v10301_v22, %v10298_v11  ;;  %v19542_v53 = vcombine.low %v10260_v62, %v10270_v28  ;;  %v10284_v56 = vsel %vm16060_vm15, %v10279_v46, %v10283_v57  ;;  %v20146_v46 = vld [vmem:[#allocation17_spill] sm:$0xff] }
 0x66d   : > { %14346 = vmatmul.mubr.msk.bf16.gmra.mrb[48].mxu0 %vm1737_vm4, %v19496_v8  ;;  %v19546_v30 = vcombine.low %v10284_v56, %v10294_v44  ;;  %v10313_v39 = vrot.slane %v10312_v63, 4  ;;  %v10317_v31 = vrot.slane %v10315_v33, 5  ;;  %v731_v49 = vsel %vm15567_vm9, 0, %v730_v48  ;;  %v20149_v56 = vld [vmem:[#allocation11_spill] sm:$0xff] }
 0x66e   : > { %14349 = vmatprep.mubr.msk.bf16.mxu0 %vm1737_vm4, %v19509_v16  ;;  %v10303_v1 = vrot.slane %v10302_v15, 4  ;;  %732 = vst [vmem:[#allocation4 + $0xd4] sm:$0x1] %v731_v49  ;;  %v10631_v55 = vshrl.u32 %v19258_v9, 16  ;;  %v10637_v18 = vshll.u32 %v19270_v14, 16  ;;  %v19609_v14 = vld [vmem:[%s19929_s7 + $0x28] sm:$0xff]  }
 0x66f   : > { %v10318_v12 = vsel %vm16060_vm15, %v10313_v39, %v10317_v31  ;;  %v12958_v11 = vrot.slane %v11081_v51, 9  ;;  %v11152_v25 = vrot.slane %v20146_v46, 5  ;;  %v20148_v15 = vld [vmem:[#allocation13_spill] sm:$0xff]  ;;  %v11082_v31 = vld [vmem:[#allocation4 + $0xc] sm:$0xe]  ;;  %v11159_v49 = vrot.slane %v20150_v4, 5 }
 0x670   : > { %v10308_v57 = vsel %vm16060_vm15, %v10303_v1, %v10307_v6  ;;  %v10633_v58 = vrot.slane %v10631_v55, 4  ;;  %v10639_v5 = vrot.slane %v10637_v18, 5  ;;  %v11149_v6 = vrot.slane %v19303_v43, 5  ;;  %v11084_v18 = vld [vmem:[#allocation4 + $0x24] sm:$0xe] }
 0x671   : > { %v19558_v36 = vcombine.low %v10308_v57, %v10318_v12  ;;  %v11156_v33 = vrot.slane %v20148_v15, 5  ;;  %v11083_v12 = vld [vmem:[#allocation4 + $0x18] sm:$0xe]  ;;  %v11166_v57 = vrot.slane %v19345_v29, 5  ;;  %v15391_v29 = vld [vmem:[%s19929_s7 + $0x40] sm:$0xff]   ;;  %v20162_v51 = vld [vmem:[#allocation18_spill] sm:$0xff] }
 0x672   : > { %v11151_v22 = vrot.slane %v11149_v6, 4  ;;  %v11150_v44 = vsel %vm16041_vm14, %v12958_v11, %v11149_v6  ;;  %v12960_v55 = vrot.slane %v11083_v12, 9  ;;  %v20161_v6 = vld [vmem:[#allocation24_spill] sm:$0xff] }
 0x673   : > { %v11158_v1 = vrot.slane %v11156_v33, 4  ;;  %v19782_v15 = vld [vmem:[%s19931_s9] ss:$0 sm:$0xff] }
 0x674   : > { %v11153_v62 = vsel %vm16041_vm14, %v11151_v22, %v11152_v25  ;;  %v11098_v22 = vld [vmem:[#allocation4 + $0xcc] sm:$0xe] }
 0x675   : > { %14350 = vmatmul.mubr.msk.bf16.gmra.mrb[52].mxu0 %vm1737_vm4, %v19524_v45  ;;  %v12976_v39 = vcombine.low %v11150_v44, %v11153_v62  ;;  %v13030_v46 = vrot.slane %v11098_v22, 9 }
 0x676   : > { %14353 = vmatprep.mubr.msk.bf16.mxu0 %vm1737_vm4, %v19529_v24 }
 0x67d   : > { %14354 = vmatmul.mubr.msk.bf16.gmra.mrb[56].mxu0 %vm1737_vm4, %v19542_v53 }
 0x67e   : > { %14357 = vmatprep.mubr.msk.bf16.mxu0 %vm1737_vm4, %v19546_v30 }
 0x685   : > { %14358 = vmatmul.mubr.msk.bf16.gmra.mrb[60].mxu0 %vm1737_vm4, %v19558_v36 }
 0x686   : > { %14363 = vmatprep.mubr.msk.bf16.mxu0 %vm1737_vm4, %v19387_v26  ;;  %v9929_v26 = vld [vmem:[#allocation4 + $0xc0] sm:$0xf] }
 0x687   : > { %v10618_v38 = vshrl.u32 %v9929_v26, 16  ;;  %v10621_v61 = vshll.u32 %v9929_v26, 16  ;;  %v20151_v26 = vld [vmem:[#allocation12_spill] sm:$0xff] }
 0x689   : > { %v10620_v23 = vrot.slane %v10618_v38, 4  ;;  %v10623_v41 = vrot.slane %v10621_v61, 5  ;;  %v20152_v61 = vld [vmem:[#allocation16_spill] sm:$0xff] }
 0x68b   : > { %v10624_v27 = vor.u32 %v10623_v41, %v10620_v23 }
 0x68d   : > { %14364 = vmatmul.mubr.msk.bf16.vlgmr.msra.gmra.mrb[32].mxu0 %vm1737_vm4, %v19396_v7 }
 0x68e   : > { %14396 = vmatpush3.bf16.msra.mxu0 %v19403_v3  ;;  %14367 = vmatprep.mubr.msk.bf16.mxu0 %vm1737_vm4, %v19398_v0  ;;  %v10627_v3 = vshll.u32 %v19258_v9, 16  ;;  %v10625_v9 = vrot.slane %v10624_v27, 4 }
 0x68f   : > { %14429 = vmatprep.subr.bf16.mxu0 %v15389_v21 }
 0x690   : > { %v10629_v50 = vrot.slane %v10627_v3, 5  ;;  %v11170_v3 = vrot.slane %v20151_v26, 5 }
 0x692   : > { %v10634_v42 = vor.u32 %v10633_v58, %v10629_v50  ;;  %v10630_v54 = vsel %vm16060_vm15, %v10625_v9, %v10629_v50  ;;  %v11177_v50 = vrot.slane %v20152_v61, 5  ;;  %v11172_v27 = vrot.slane %v11170_v3, 4  ;;  %v20153_v9 = vld [vmem:[#allocation6_spill] sm:$0xff] }
 0x694   : > { %v10635_v52 = vrot.slane %v10634_v42, 4 }
 0x695   : > { %14368 = vmatmul.mubr.msk.bf16.gmra.mrb[36].mxu0 %vm1737_vm4, %v19431_v13 }
 0x696   : > { %14371 = vmatprep.mubr.msk.bf16.mxu0 %vm1737_vm4, %v19442_v20  ;;  %v10640_v34 = vsel %vm16060_vm15, %v10635_v52, %v10639_v5  ;;  %v11179_v52 = vrot.slane %v11177_v50, 4  ;;  %v11173_v5 = vrot.slane %v20153_v9, 5 }
 0x697   : > { %v12920_v40 = vcombine.low %v10630_v54, %v10640_v34  ;;  %v11085_v34 = vld [vmem:[#allocation4 + $0x30] sm:$0xe]  ;;  %v11180_v54 = vrot.slane %v19366_v35, 5 }
 0x698   : > { %v20154_v35 = vld [vmem:[#allocation8_spill] sm:$0xff] }
 0x69d   : > { %14372 = vmatmul.mubr.msk.bf16.gmra.mrb[40].mxu0 %vm1737_vm4, %v19457_v17 }
 0x69e   : > { %14375 = vmatprep.mubr.msk.bf16.mxu0 %vm1737_vm4, %v19483_v59 }
 0x6a5   : > { %14376 = vmatmul.mubr.msk.bf16.gmra.mrb[44].mxu0 %vm1737_vm4, %v19485_v60 }
 0x6a6   : > { %14379 = vmatprep.mubr.msk.bf16.mxu0 %vm1737_vm4, %v19496_v8 }
 0x6ad   : > { %14380 = vmatmul.mubr.msk.bf16.gmra.mrb[48].mxu0 %vm1737_vm4, %v19509_v16 }
 0x6ae   : > { %14383 = vmatprep.mubr.msk.bf16.mxu0 %vm1737_vm4, %v19524_v45 }
 0x6b5   : > { %14384 = vmatmul.mubr.msk.bf16.gmra.mrb[52].mxu0 %vm1737_vm4, %v19529_v24 }
 0x6b6   : > { %14387 = vmatprep.mubr.msk.bf16.mxu0 %vm1737_vm4, %v19542_v53 }
 0x6bd   : > { %14388 = vmatmul.mubr.msk.bf16.gmra.mrb[56].mxu0 %vm1737_vm4, %v19546_v30 }
 0x6be   : > { %14391 = vmatprep.mubr.msk.bf16.mxu0 %vm1737_vm4, %v19558_v36 }
 0x6c5   : > { %14392 = vmatmul.mubr.msk.bf16.gmra.mrb[60].mxu0 %vm1737_vm4, %v12920_v40 }
 0x6c6   : > { %14397 = vmatprep.mubr.msk.bf16.mxu0 %vm1737_vm4, %v19396_v7  ;;  %v9932_v7 = vld [vmem:[#allocation4 + $0xcc] sm:$0xf] }
 0x6cd   : > { %14398 = vmatmul.mubr.msk.bf16.vlgmr.msra.gmra.mrb[32].mxu0 %vm1737_vm4, %v19398_v0  ;;  %v19628_v0 = vld [vmem:[#allocation4 + $0xd0] sm:$0xf] }
 0x6ce   : > { %14430 = vmatpush3.bf16.msra.mxu0 %v15389_v21  ;;  %14401 = vmatprep.mubr.msk.bf16.mxu0 %vm1737_vm4, %v19431_v13  ;;  %v10850_v13 = vshrl.u32 %v9932_v7, 16  ;;  %v11160_v21 = vsel %vm16041_vm14, %v11158_v1, %v11159_v49  ;;  %v11780_v11 = vrot.slane %v19628_v0, 5 }
 0x6cf   : > { %14463 = vmatprep.subr.bf16.mxu0 %v19609_v14 }
 0x6d0   : > { %v11782_v25 = vrot.slane %v11780_v11, 4 }
 0x6d5   : > { %14402 = vmatmul.mubr.msk.bf16.gmra.mrb[36].mxu0 %vm1737_vm4, %v19442_v20  ;;  %v10853_v20 = vshll.u32 %v9932_v7, 16  ;;  %v11174_v7 = vsel %vm16041_vm14, %v11172_v27, %v11173_v5 }
 0x6d6   : > { %14405 = vmatprep.mubr.msk.bf16.mxu0 %vm1737_vm4, %v19457_v17  ;;  %v10859_v17 = vshll.u32 %v19628_v0, 16 }
 0x6d8   : > { %v10861_v19 = vrot.slane %v10859_v17, 5 }
 0x6dd   : > { %14406 = vmatmul.mubr.msk.bf16.gmra.mrb[40].mxu0 %vm1737_vm4, %v19483_v59  ;;  %v10863_v59 = vshrl.u32 %v19628_v0, 16  ;;  %v19777_v0 = vld [vmem:[%s19930_s8] ss:$0 sm:$0xff] }
 0x6de   : > { %14409 = vmatprep.mubr.msk.bf16.mxu0 %vm1737_vm4, %v19485_v60  ;;  %v10852_v60 = vrot.slane %v10850_v13, 4  ;;  %v12962_v13 = vrot.slane %v11085_v34, 9 }
 0x6df   : > { %v10865_v37 = vrot.slane %v10863_v59, 4 }
 0x6e0   : > { %v11178_v59 = vsel %vm16041_vm14, %v12962_v13, %v11177_v50 }
 0x6e5   : > { %14410 = vmatmul.mubr.msk.bf16.gmra.mrb[44].mxu0 %vm1737_vm4, %v19496_v8  ;;  %v10855_v8 = vrot.slane %v10853_v20, 5  ;;  %v11181_v20 = vsel %vm16041_vm14, %v11179_v52, %v11180_v54 }
 0x6e6   : > { %14413 = vmatprep.mubr.msk.bf16.mxu0 %vm1737_vm4, %v19509_v16  ;;  %v19636_v16 = vld [vmem:[#allocation4 + $0xd4] sm:$0x1] }
 0x6e7   : > { %v10869_v10 = vshll.u32 %v19636_v16, 16 }
 0x6e9   : > { %v10871_v32 = vrot.slane %v10869_v10, 5  ;;  %v20160_v10 = vld [vmem:[#allocation27_spill] sm:$0xff] }
 0x6ed   : > { %14414 = vmatmul.mubr.msk.bf16.gmra.mrb[48].mxu0 %vm1737_vm4, %v19524_v45  ;;  %v10856_v45 = vor.u32 %v10855_v8, %v10852_v60  ;;  %v12980_v60 = vcombine.low %v11178_v59, %v11181_v20  ;;  %v20155_v8 = vld [vmem:[#allocation22_spill] sm:$0xff] }
 0x6ee   : > { %14417 = vmatprep.mubr.msk.bf16.mxu0 %vm1737_vm4, %v19529_v24  ;;  %v10866_v24 = vor.u32 %v10865_v37, %v10861_v19  ;;  %v20157_v37 = vld [vmem:[#allocation23_spill] sm:$0xff] }
 0x6ef   : > { %v10857_v47 = vrot.slane %v10856_v45, 4  ;;  %v20158_v45 = vld [vmem:[#allocation25_spill] sm:$0xff] }
 0x6f0   : > { %v10867_v2 = vrot.slane %v10866_v24, 4  ;;  %v20159_v24 = vld [vmem:[#allocation26_spill] sm:$0xff] }
 0x6f1   : > { %v10862_v28 = vsel %vm16060_vm15, %v10857_v47, %v10861_v19  ;;  %v20156_v19 = vld [vmem:[#allocation21_spill] sm:$0xff] }
 0x6f2   : > { %v10872_v63 = vsel %vm16060_vm15, %v10867_v2, %v10871_v32  ;;  %v20163_v47 = vld [vmem:[#allocation9_spill] sm:$0xff]  ;;  %v20164_v2 = vld [vmem:[#allocation10_spill] sm:$0xff] }
 0x6f3   : > { %v20165_v32 = vld [vmem:[#allocation14_spill] sm:$0xff] }
 0x6f5   : > { %14418 = vmatmul.mubr.msk.bf16.gmra.mrb[52].mxu0 %vm1737_vm4, %v19542_v53  ;;  %v12940_v53 = vcombine.low %v10862_v28, %v10872_v63  ;;  %v11783_v28 = vrot.slane %v19636_v16, 5  ;;  %v11781_v63 = vsel %vm16041_vm14, %v13030_v46, %v11780_v11 }
 0x6f6   : > { %14421 = vmatprep.mubr.msk.bf16.mxu0 %vm1737_vm4, %v19546_v30  ;;  %v11163_v30 = vrot.slane %v20149_v56, 5 }
 0x6f7   : > { %v11784_v44 = vsel %vm16041_vm14, %v11782_v25, %v11783_v28 }
 0x6f8   : > { %v11165_v48 = vrot.slane %v11163_v30, 4  ;;  %v11164_v41 = vsel %vm16041_vm14, %v12960_v55, %v11163_v30  ;;  %v13033_v62 = vcombine.low %v11781_v63, %v11784_v44 }
 0x6fa   : > { %v11167_v38 = vsel %vm16041_vm14, %v11165_v48, %v11166_v57 }
 0x6fb   : > { %v12978_v42 = vcombine.low %v11164_v41, %v11167_v38 }
 0x6fd   : > { %14422 = vmatmul.mubr.msk.bf16.gmra.mrb[56].mxu0 %vm1737_vm4, %v19558_v36  ;;  %v12959_v36 = vrot.slane %v11082_v31, 9 }
 0x6fe   : > { %14425 = vmatprep.mubr.msk.bf16.mxu0 %vm1737_vm4, %v12920_v40  ;;  %v12961_v40 = vrot.slane %v11084_v18, 9 }
 0x6ff   : > { %v11157_v58 = vsel %vm16041_vm14, %v12959_v36, %v11156_v33 }
 0x700   : > { %v12977_v23 = vcombine.low %v11157_v58, %v11160_v21  ;;  %v11171_v17 = vsel %vm16041_vm14, %v12961_v40, %v11170_v3 }
 0x705   : > { %14426 = vmatmul.mubr.msk.bf16.gmra.mrb[60].mxu0 %vm1737_vm4, %v12940_v53 }
 0x706   : > { %14431 = vmatprep.mubr.msk.bf16.mxu0 %vm1737_vm4, %v12976_v39 }
 0x70d   : > { %14432 = vmatmul.mubr.msk.bf16.vlgmr.msra.gmra.mrb[32].mxu0 %vm1737_vm4, %v12977_v23 }
 0x70e   : > { %14464 = vmatpush3.bf16.msra.mxu0 %v19609_v14  ;;  %14435 = vmatprep.mubr.msk.bf16.mxu0 %vm1737_vm4, %v12978_v42  ;;  %v12979_v14 = vcombine.low %v11171_v17, %v11174_v7 }
 0x70f   : > { %14497 = vmatprep.subr.bf16.mxu0 %v15391_v29 }
 0x715   : > { %14436 = vmatmul.mubr.msk.bf16.gmra.mrb[36].mxu0 %vm1737_vm4, %v12979_v14 }
 0x716   : > { %14439 = vmatprep.mubr.msk.bf16.mxu0 %vm1737_vm4, %v12980_v60 }
 0x71d   : > { %14440 = vmatmul.mubr.msk.bf16.gmra.mrb[40].mxu0 %vm1737_vm4, %v20154_v35 }
 0x71e   : > { %14443 = vmatprep.mubr.msk.bf16.mxu0 %vm1737_vm4, %v20155_v8 }
 0x725   : > { %14444 = vmatmul.mubr.msk.bf16.gmra.mrb[44].mxu0 %vm1737_vm4, %v20156_v19 }
 0x726   : > { %14447 = vmatprep.mubr.msk.bf16.mxu0 %vm1737_vm4, %v20157_v37 }
 0x72d   : > { %14448 = vmatmul.mubr.msk.bf16.gmra.mrb[48].mxu0 %vm1737_vm4, %v20158_v45 }
 0x72e   : > { %14451 = vmatprep.mubr.msk.bf16.mxu0 %vm1737_vm4, %v20159_v24 }
 0x735   : > { %14452 = vmatmul.mubr.msk.bf16.gmra.mrb[52].mxu0 %vm1737_vm4, %v20160_v10 }
 0x736   : > { %14455 = vmatprep.mubr.msk.bf16.mxu0 %vm1737_vm4, %v20161_v6 }
 0x73d   : > { %14456 = vmatmul.mubr.msk.bf16.gmra.mrb[56].mxu0 %vm1737_vm4, %v20162_v51 }
 0x73e   : > { %14459 = vmatprep.mubr.msk.bf16.mxu0 %vm1737_vm4, %v20163_v47 }
 0x745   : > { %14460 = vmatmul.mubr.msk.bf16.gmra.mrb[60].mxu0 %vm1737_vm4, %v20164_v2 }
 0x746   : > { %14465 = vmatprep.mubr.msk.bf16.mxu0 %vm1737_vm4, %v12977_v23 }
 0x74d   : > { %14466 = vmatmul.mubr.msk.bf16.vlgmr.msra.gmra.mrb[32].mxu0 %vm1737_vm4, %v12978_v42 }
 0x74e   : > { %14498 = vmatpush3.bf16.msra.mxu0 %v15391_v29  ;;  %14469 = vmatprep.mubr.msk.bf16.mxu0 %vm1737_vm4, %v12979_v14 }
 0x755   : > { %14470 = vmatmul.mubr.msk.bf16.gmra.mrb[36].mxu0 %vm1737_vm4, %v12980_v60 }
 0x756   : > { %14473 = vmatprep.mubr.msk.bf16.mxu0 %vm1737_vm4, %v20154_v35 }
 0x75d   : > { %14474 = vmatmul.mubr.msk.bf16.gmra.mrb[40].mxu0 %vm1737_vm4, %v20155_v8 }
 0x75e   : > { %14477 = vmatprep.mubr.msk.bf16.mxu0 %vm1737_vm4, %v20156_v19 }
 0x765   : > { %14478 = vmatmul.mubr.msk.bf16.gmra.mrb[44].mxu0 %vm1737_vm4, %v20157_v37 }
 0x766   : > { %14481 = vmatprep.mubr.msk.bf16.mxu0 %vm1737_vm4, %v20158_v45 }
 0x76d   : > { %14482 = vmatmul.mubr.msk.bf16.gmra.mrb[48].mxu0 %vm1737_vm4, %v20159_v24 }
 0x76e   : > { %14485 = vmatprep.mubr.msk.bf16.mxu0 %vm1737_vm4, %v20160_v10 }
 0x775   : > { %14486 = vmatmul.mubr.msk.bf16.gmra.mrb[52].mxu0 %vm1737_vm4, %v20161_v6 }
 0x776   : > { %14489 = vmatprep.mubr.msk.bf16.mxu0 %vm1737_vm4, %v20162_v51 }
 0x77d   : > { %14490 = vmatmul.mubr.msk.bf16.gmra.mrb[56].mxu0 %vm1737_vm4, %v20163_v47 }
 0x77e   : > { %14493 = vmatprep.mubr.msk.bf16.mxu0 %vm1737_vm4, %v20164_v2 }
 0x785   : > { %14494 = vmatmul.mubr.msk.bf16.gmra.mrb[60].mxu0 %vm1737_vm4, %v20165_v32 }
 0x786   : > { %14499 = vmatprep.mubr.msk.bf16.mxu0 %vm1737_vm4, %v12978_v42 }
 0x78d   : > { %14500 = vmatmul.mubr.msk.bf16.vlgmr.msra.gmra.mrb[32].mxu0 %vm1737_vm4, %v12979_v14 }
 0x78e   : > { %14503 = vmatprep.mubr.msk.bf16.mxu0 %vm1737_vm4, %v12980_v60 }
 0x795   : > { %14504 = vmatmul.mubr.msk.bf16.gmra.mrb[36].mxu0 %vm1737_vm4, %v20154_v35 }
 0x796   : > { %14507 = vmatprep.mubr.msk.bf16.mxu0 %vm1737_vm4, %v20155_v8 }
 0x79d   : > { %14508 = vmatmul.mubr.msk.bf16.gmra.mrb[40].mxu0 %vm1737_vm4, %v20156_v19 }
 0x79e   : > { %14511 = vmatprep.mubr.msk.bf16.mxu0 %vm1737_vm4, %v20157_v37 }
 0x7a5   : > { %14512 = vmatmul.mubr.msk.bf16.gmra.mrb[44].mxu0 %vm1737_vm4, %v20158_v45 }
 0x7a6   : > { %14515 = vmatprep.mubr.msk.bf16.mxu0 %vm1737_vm4, %v20159_v24 }
 0x7ad   : > { %14516 = vmatmul.mubr.msk.bf16.gmra.mrb[48].mxu0 %vm1737_vm4, %v20160_v10 }
 0x7ae   : > { %14519 = vmatprep.mubr.msk.bf16.mxu0 %vm1737_vm4, %v20161_v6 }
 0x7b5   : > { %14520 = vmatmul.mubr.msk.bf16.gmra.mrb[52].mxu0 %vm1737_vm4, %v20162_v51 }
 0x7b6   : > { %14523 = vmatprep.mubr.msk.bf16.mxu0 %vm1737_vm4, %v20163_v47 }
 0x7bd   : > { %14524 = vmatmul.mubr.msk.bf16.gmra.mrb[56].mxu0 %vm1737_vm4, %v20164_v2 }
 0x7be   : > { %14527 = vmatprep.mubr.msk.bf16.mxu0 %vm1737_vm4, %v20165_v32 }
 0x7c5   : > { %14528 = vmatmul.mubr.msk.bf16.gmra.mrb[60].mxu0 %vm1737_vm4, %v13033_v62 }
 0x860   : > { %v14501_v16 = vpop.f32.mrb[32].mxu0 }
 0x861   : > { %v12002_v33 = vmul.f32 %v14501_v16, %v19777_v0  ;;  %v11834_v53 = vpop.f32.mrb[33].mxu0 }
 0x862   : > { %v12000_v43 = vmul.f32 %v19777_v0, %v11834_v53  ;;  %v14502_v56 = vpop.f32.mrb[34].mxu0 }
 0x863   : > { %v12041_v30 = vadd.f32 %v19782_v15, %v12002_v33  ;;  %v12003_v39 = vmul.f32 %v14502_v56, %v19777_v0  ;;  %v11837_v1 = vpop.f32.mrb[35].mxu0 }
 0x864   : > { %v12039_v31 = vadd.f32 %v19782_v15, %v12000_v43  ;;  %v12001_v48 = vmul.f32 %v19777_v0, %v11837_v1 }
 0x865   : > { %v12073_v4 = vmax.f32 %v12041_v30, 0.0  ;;  %v12042_v49 = vadd.f32 %v19782_v15, %v12003_v39 }
 0x866   : > { %v12071_v12 = vmax.f32 %v12039_v31, 0.0  ;;  %v12040_v57 = vadd.f32 %v19782_v15, %v12001_v48 }
 0x867   : > { %12105 = vst.msk [vmem:[%s19793_s11 + $0x10] sm:$0xff] %vm1737_vm4, %v12073_v4  ;;  %v12074_v36 = vmax.f32 %v12042_v49, 0.0 }
 0x868   : > { %12103 = vst.msk [vmem:[%s19793_s11] sm:$0xff] %vm1737_vm4, %v12071_v12  ;;  %v12072_v21 = vmax.f32 %v12040_v57, 0.0  ;;  %v14505_v26 = vpop.f32.mrb[36].mxu0 }
 0x869   : > { %12106 = vst.msk [vmem:[%s19793_s11 + $0x18] sm:$0xff] %vm1737_vm4, %v12074_v36  ;;  %v12006_v3 = vmul.f32 %v14505_v26, %v19777_v0  ;;  %v11850_v55 = vpop.f32.mrb[37].mxu0 }
 0x86a   : > { %12104 = vst.msk [vmem:[%s19793_s11 + $0x8] sm:$0xff] %vm1737_vm4, %v12072_v21  ;;  %v12004_v38 = vmul.f32 %v19777_v0, %v11850_v55  ;;  %v14506_v61 = vpop.f32.mrb[38].mxu0 }
 0x86b   : > { %v12045_v50 = vadd.f32 %v19782_v15, %v12006_v3  ;;  %v12007_v58 = vmul.f32 %v14506_v61, %v19777_v0  ;;  %v11853_v23 = vpop.f32.mrb[39].mxu0 }
 0x86c   : > { %v12043_v41 = vadd.f32 %v19782_v15, %v12004_v38  ;;  %v12005_v29 = vmul.f32 %v19777_v0, %v11853_v23 }
 0x86d   : > { %v12077_v42 = vmax.f32 %v12045_v50, 0.0  ;;  %v12046_v27 = vadd.f32 %v19782_v15, %v12007_v58 }
 0x86e   : > { %v12075_v18 = vmax.f32 %v12043_v41, 0.0  ;;  %v12044_v52 = vadd.f32 %v19782_v15, %v12005_v29 }
 0x86f   : > { %12109 = vst.msk [vmem:[%s19793_s11 + $0x30] sm:$0xff] %vm1737_vm4, %v12077_v42  ;;  %v12078_v9 = vmax.f32 %v12046_v27, 0.0 }
 0x870   : > { %12107 = vst.msk [vmem:[%s19793_s11 + $0x20] sm:$0xff] %vm1737_vm4, %v12075_v18  ;;  %v12076_v5 = vmax.f32 %v12044_v52, 0.0  ;;  %v14509_v34 = vpop.f32.mrb[40].mxu0 }
 0x871   : > { %12110 = vst.msk [vmem:[%s19793_s11 + $0x38] sm:$0xff] %vm1737_vm4, %v12078_v9  ;;  %v12010_v54 = vmul.f32 %v14509_v34, %v19777_v0  ;;  %v11866_v40 = vpop.f32.mrb[41].mxu0 }
 0x872   : > { %12108 = vst.msk [vmem:[%s19793_s11 + $0x28] sm:$0xff] %vm1737_vm4, %v12076_v5  ;;  %v12008_v7 = vmul.f32 %v19777_v0, %v11866_v40  ;;  %v14510_v13 = vpop.f32.mrb[42].mxu0 }
 0x873   : > { %v12049_v20 = vadd.f32 %v19782_v15, %v12010_v54  ;;  %v12011_v17 = vmul.f32 %v14510_v13, %v19777_v0  ;;  %v11869_v14 = vpop.f32.mrb[43].mxu0 }
 0x874   : > { %v12047_v59 = vadd.f32 %v19782_v15, %v12008_v7  ;;  %v12009_v60 = vmul.f32 %v19777_v0, %v11869_v14 }
 0x875   : > { %v12081_v35 = vmax.f32 %v12049_v20, 0.0  ;;  %v12050_v8 = vadd.f32 %v19782_v15, %v12011_v17 }
 0x876   : > { %v12079_v19 = vmax.f32 %v12047_v59, 0.0  ;;  %v12048_v37 = vadd.f32 %v19782_v15, %v12009_v60 }
 0x877   : > { %12113 = vst.msk [vmem:[%s19793_s11 + $0x50] sm:$0xff] %vm1737_vm4, %v12081_v35  ;;  %v12082_v45 = vmax.f32 %v12050_v8, 0.0 }
 0x878   : > { %12111 = vst.msk [vmem:[%s19793_s11 + $0x40] sm:$0xff] %vm1737_vm4, %v12079_v19  ;;  %v12080_v24 = vmax.f32 %v12048_v37, 0.0  ;;  %v14513_v10 = vpop.f32.mrb[44].mxu0 }
 0x879   : > { %12114 = vst.msk [vmem:[%s19793_s11 + $0x58] sm:$0xff] %vm1737_vm4, %v12082_v45  ;;  %v12014_v6 = vmul.f32 %v14513_v10, %v19777_v0  ;;  %v11882_v51 = vpop.f32.mrb[45].mxu0 }
 0x87a   : > { %12112 = vst.msk [vmem:[%s19793_s11 + $0x48] sm:$0xff] %vm1737_vm4, %v12080_v24  ;;  %v12012_v47 = vmul.f32 %v19777_v0, %v11882_v51  ;;  %v14514_v2 = vpop.f32.mrb[46].mxu0 }
 0x87b   : > { %v12053_v32 = vadd.f32 %v19782_v15, %v12014_v6  ;;  %v12015_v11 = vmul.f32 %v14514_v2, %v19777_v0  ;;  %v11885_v22 = vpop.f32.mrb[47].mxu0 }
 0x87c   : > { %v12051_v46 = vadd.f32 %v19782_v15, %v12012_v47  ;;  %v12013_v25 = vmul.f32 %v19777_v0, %v11885_v22 }
 0x87d   : > { %v12085_v28 = vmax.f32 %v12053_v32, 0.0  ;;  %v12054_v63 = vadd.f32 %v19782_v15, %v12015_v11 }
 0x87e   : > { %v12083_v44 = vmax.f32 %v12051_v46, 0.0  ;;  %v12052_v62 = vadd.f32 %v19782_v15, %v12013_v25 }
 0x87f   : > { %12117 = vst.msk [vmem:[%s19793_s11 + $0x70] sm:$0xff] %vm1737_vm4, %v12085_v28  ;;  %v12086_v16 = vmax.f32 %v12054_v63, 0.0 }
 0x880   : > { %12115 = vst.msk [vmem:[%s19793_s11 + $0x60] sm:$0xff] %vm1737_vm4, %v12083_v44  ;;  %v12084_v33 = vmax.f32 %v12052_v62, 0.0  ;;  %v14517_v53 = vpop.f32.mrb[48].mxu0 }
 0x881   : > { %12118 = vst.msk [vmem:[%s19793_s11 + $0x78] sm:$0xff] %vm1737_vm4, %v12086_v16  ;;  %v12018_v43 = vmul.f32 %v14517_v53, %v19777_v0  ;;  %v11898_v56 = vpop.f32.mrb[49].mxu0 }
 0x882   : > { %12116 = vst.msk [vmem:[%s19793_s11 + $0x68] sm:$0xff] %vm1737_vm4, %v12084_v33  ;;  %v12016_v30 = vmul.f32 %v19777_v0, %v11898_v56  ;;  %v14518_v39 = vpop.f32.mrb[50].mxu0 }
 0x883   : > { %v12057_v1 = vadd.f32 %v19782_v15, %v12018_v43  ;;  %v12019_v31 = vmul.f32 %v14518_v39, %v19777_v0  ;;  %v11901_v48 = vpop.f32.mrb[51].mxu0 }
 0x884   : > { %v12055_v4 = vadd.f32 %v19782_v15, %v12016_v30  ;;  %v12017_v49 = vmul.f32 %v19777_v0, %v11901_v48 }
 0x885   : > { %v12089_v12 = vmax.f32 %v12057_v1, 0.0  ;;  %v12058_v57 = vadd.f32 %v19782_v15, %v12019_v31 }
 0x886   : > { %v12087_v36 = vmax.f32 %v12055_v4, 0.0  ;;  %v12056_v21 = vadd.f32 %v19782_v15, %v12017_v49 }
 0x887   : > { %12121 = vst.msk [vmem:[%s19793_s11 + $0x90] sm:$0xff] %vm1737_vm4, %v12089_v12  ;;  %v12090_v26 = vmax.f32 %v12058_v57, 0.0 }
 0x888   : > { %12119 = vst.msk [vmem:[%s19793_s11 + $0x80] sm:$0xff] %vm1737_vm4, %v12087_v36  ;;  %v12088_v3 = vmax.f32 %v12056_v21, 0.0  ;;  %v14521_v55 = vpop.f32.mrb[52].mxu0 }
 0x889   : > { %12122 = vst.msk [vmem:[%s19793_s11 + $0x98] sm:$0xff] %vm1737_vm4, %v12090_v26  ;;  %v12022_v38 = vmul.f32 %v14521_v55, %v19777_v0  ;;  %v11914_v61 = vpop.f32.mrb[53].mxu0 }
 0x88a   : > { %12120 = vst.msk [vmem:[%s19793_s11 + $0x88] sm:$0xff] %vm1737_vm4, %v12088_v3  ;;  %v12020_v50 = vmul.f32 %v19777_v0, %v11914_v61  ;;  %v14522_v58 = vpop.f32.mrb[54].mxu0 }
 0x88b   : > { %v12061_v23 = vadd.f32 %v19782_v15, %v12022_v38  ;;  %v12023_v41 = vmul.f32 %v14522_v58, %v19777_v0  ;;  %v11917_v29 = vpop.f32.mrb[55].mxu0 }
 0x88c   : > { %v12059_v42 = vadd.f32 %v19782_v15, %v12020_v50  ;;  %v12021_v27 = vmul.f32 %v19777_v0, %v11917_v29 }
 0x88d   : > { %v12093_v18 = vmax.f32 %v12061_v23, 0.0  ;;  %v12062_v52 = vadd.f32 %v19782_v15, %v12023_v41 }
 0x88e   : > { %v12091_v9 = vmax.f32 %v12059_v42, 0.0  ;;  %v12060_v5 = vadd.f32 %v19782_v15, %v12021_v27 }
 0x88f   : > { %12125 = vst.msk [vmem:[%s19793_s11 + $0xb0] sm:$0xff] %vm1737_vm4, %v12093_v18  ;;  %v12094_v34 = vmax.f32 %v12062_v52, 0.0 }
 0x890   : > { %12123 = vst.msk [vmem:[%s19793_s11 + $0xa0] sm:$0xff] %vm1737_vm4, %v12091_v9  ;;  %v12092_v54 = vmax.f32 %v12060_v5, 0.0  ;;  %v14525_v40 = vpop.f32.mrb[56].mxu0 }
 0x891   : > { %12126 = vst.msk [vmem:[%s19793_s11 + $0xb8] sm:$0xff] %vm1737_vm4, %v12094_v34  ;;  %v12026_v7 = vmul.f32 %v14525_v40, %v19777_v0  ;;  %v11930_v13 = vpop.f32.mrb[57].mxu0 }
 0x892   : > { %12124 = vst.msk [vmem:[%s19793_s11 + $0xa8] sm:$0xff] %vm1737_vm4, %v12092_v54  ;;  %v12024_v20 = vmul.f32 %v19777_v0, %v11930_v13  ;;  %v14526_v17 = vpop.f32.mrb[58].mxu0 }
 0x893   : > { %v12065_v14 = vadd.f32 %v19782_v15, %v12026_v7  ;;  %v12027_v59 = vmul.f32 %v14526_v17, %v19777_v0  ;;  %v11933_v60 = vpop.f32.mrb[59].mxu0 }
 0x894   : > { %v12063_v35 = vadd.f32 %v19782_v15, %v12024_v20  ;;  %v12025_v8 = vmul.f32 %v19777_v0, %v11933_v60 }
 0x895   : > { %v12097_v19 = vmax.f32 %v12065_v14, 0.0  ;;  %v12066_v37 = vadd.f32 %v19782_v15, %v12027_v59 }
 0x896   : > { %v12095_v45 = vmax.f32 %v12063_v35, 0.0  ;;  %v12064_v24 = vadd.f32 %v19782_v15, %v12025_v8 }
 0x897   : > { %12129 = vst.msk [vmem:[%s19793_s11 + $0xd0] sm:$0xff] %vm1737_vm4, %v12097_v19  ;;  %v12098_v10 = vmax.f32 %v12066_v37, 0.0 }
 0x898   : > { %12127 = vst.msk [vmem:[%s19793_s11 + $0xc0] sm:$0xff] %vm1737_vm4, %v12095_v45  ;;  %v12096_v6 = vmax.f32 %v12064_v24, 0.0  ;;  %v14529_v51 = vpop.f32.mrb[60].mxu0 }
 0x899   : > { %12130 = vst.msk [vmem:[%s19793_s11 + $0xd8] sm:$0xff] %vm1737_vm4, %v12098_v10  ;;  %v12030_v47 = vmul.f32 %v14529_v51, %v19777_v0  ;;  %v11946_v2 = vpop.f32.mrb[61].mxu0 }
 0x89a   : > { %12128 = vst.msk [vmem:[%s19793_s11 + $0xc8] sm:$0xff] %vm1737_vm4, %v12096_v6  ;;  %v12028_v32 = vmul.f32 %v19777_v0, %v11946_v2  ;;  %v14530_v11 = vpop.f32.mrb[62].mxu0 }
 0x89b   : > { %v12069_v22 = vadd.f32 %v19782_v15, %v12030_v47  ;;  %v12031_v46 = vmul.f32 %v14530_v11, %v19777_v0  ;;  %v11949_v25 = vpop.f32.mrb[63].mxu0 }
 0x89c   : > { %v12067_v28 = vadd.f32 %v19782_v15, %v12028_v32  ;;  %v12029_v63 = vmul.f32 %v19777_v0, %v11949_v25 }
 0x89d   : > { %v12101_v44 = vmax.f32 %v12069_v22, 0.0  ;;  %v12070_v62 = vadd.f32 %v19782_v15, %v12031_v46 }
 0x89e   : > { %v12099_v16 = vmax.f32 %v12067_v28, 0.0  ;;  %v12068_v33 = vadd.f32 %v19782_v15, %v12029_v63 }
 0x89f   : > { %12133 = vst.msk [vmem:[%s19793_s11 + $0xf0] sm:$0xff] %vm1737_vm4, %v12101_v44  ;;  %v12102_v53 = vmax.f32 %v12070_v62, 0.0 }
 0x8a0   : > { %12131 = vst.msk [vmem:[%s19793_s11 + $0xe0] sm:$0xff] %vm1737_vm4, %v12099_v16  ;;  %v12100_v43 = vmax.f32 %v12068_v33, 0.0 }
 0x8a1   : > { %12134 = vst.msk [vmem:[%s19793_s11 + $0xf8] sm:$0xff] %vm1737_vm4, %v12102_v53 }
 0x8a2   : > { %12132 = vst.msk [vmem:[%s19793_s11 + $0xe8] sm:$0xff] %vm1737_vm4, %v12100_v43 }
 0x8a3 PF: > { %s20_s13 = sadd.s32 1, %s15432_s13  }
 0x8a4   : > { %p17_p4 = scmp.ge.s32.totalorder %s20_s13, 4  }
 0x8a6   :  { %19 = sbr.rel (!%p17_p4) target bundleno = 1 (0x1), region = 123 }

</bundles_post_ra>
